<compile_context>
chip_gen: v5e
topology: v5e:2x2
jax: 0.10.0
libtpu: 0.0.40
codegen_flags: <defaults>
</compile_context>

<pallas_src>
import jax
import jax.numpy as jnp
from jax import lax
from jax.experimental import pallas as pl
from jax.experimental.pallas import tpu as pltpu

# ---- module constants (from the PyTorch source) ----
N_EMBD = 384
NUM_HEADS = 6
HEAD_SIZE = N_EMBD // NUM_HEADS     # 64
FFN_HIDDEN = 4 * N_EMBD             # 1536
BLOCK_SIZE = 256                    # tril buffer extent; only [:T, :T] used
DROPOUT_P = 0.2                     # eval-mode: dropout is identity
LN_EPS = 1e-5


def _layernorm(v, gamma, beta):
    """PyTorch-style LayerNorm over the last axis (biased variance, eps=1e-5)."""
    mu = jnp.mean(v, axis=-1, keepdims=True)
    d = v - mu
    var = jnp.mean(d * d, axis=-1, keepdims=True)
    return d * lax.rsqrt(var + LN_EPS) * gamma + beta


# ---------------------------------------------------------------------------
# Fused Block kernel: grid = (B,), one full transformer block per batch row.
# ---------------------------------------------------------------------------
def _block_kernel(x_ref,
                  g1_ref, b1_ref,
                  wqkv_ref, wproj_ref, bproj_ref,
                  g2_ref, b2_ref,
                  wfc1_ref, bfc1_ref, wfc2_ref, bfc2_ref,
                  o_ref):
    # x_ref   : (1, T, C)
    # wqkv_ref: (C, 3C)   [Q_allheads | K_allheads | V_allheads]
    # wproj   : (C, C), bproj: (1, C)
    # wfc1    : (C, 4C), bfc1: (1, 4C); wfc2: (4C, C), bfc2: (1, C)
    # g*/b*   : (1, C) LayerNorm affine params
    # o_ref   : (1, T, C)
    x = x_ref[0]                                         # (T, C) fp32
    T = x.shape[0]

    # ---- LayerNorm 1 ----
    xn = _layernorm(x, g1_ref[...], b1_ref[...])

    # ---- fused QKV projection: one lane-dense matmul ----
    qkv = jnp.dot(xn, wqkv_ref[...], preferred_element_type=jnp.float32)  # (T, 3C)
    # NOTE: PyTorch source scales by C**-0.5 where C = n_embd (NOT head_size).
    scale = float(N_EMBD) ** -0.5
    q_all = qkv[:, :N_EMBD] * scale                      # fold scale into Q once
    k_all = qkv[:, N_EMBD:2 * N_EMBD]
    v_all = qkv[:, 2 * N_EMBD:]

    # causal mask (== tril[:T, :T]) built once, shared by all heads
    row = lax.broadcasted_iota(jnp.int32, (T, T), 0)
    col = lax.broadcasted_iota(jnp.int32, (T, T), 1)
    causal = col <= row

    # ---- per-head causal attention (static unrolled loop over 6 heads) ----
    heads = []
    for h in range(NUM_HEADS):
        sl = slice(h * HEAD_SIZE, (h + 1) * HEAD_SIZE)
        qh = q_all[:, sl]
        kh = k_all[:, sl]
        vh = v_all[:, sl]

        s = jnp.dot(qh, kh.T, preferred_element_type=jnp.float32)   # (T, T)
        s = jnp.where(causal, s, -jnp.inf)

        m = jnp.max(s, axis=-1, keepdims=True)           # finite: diag unmasked
        e = jnp.exp(s - m)
        inv = pl.reciprocal(jnp.sum(e, axis=-1, keepdims=True), approx=True)
        wei = e * inv
        # TODO(synk): attention dropout (p=0.2) omitted — eval-mode semantics.
        heads.append(jnp.dot(wei, vh, preferred_element_type=jnp.float32))

    concat = jnp.concatenate(heads, axis=-1)             # (T, C)

    # ---- output projection + residual ----
    sa = jnp.dot(concat, wproj_ref[...],
                 preferred_element_type=jnp.float32) + bproj_ref[...]
    # TODO(synk): projection dropout (p=0.2) omitted — eval-mode semantics.
    x1 = x + sa

    # ---- LayerNorm 2 + FeedForward + residual ----
    xn2 = _layernorm(x1, g2_ref[...], b2_ref[...])
    hdn = jnp.dot(xn2, wfc1_ref[...],
                  preferred_element_type=jnp.float32) + bfc1_ref[...]
    hdn = jnp.maximum(hdn, 0.0)                          # ReLU
    ff = jnp.dot(hdn, wfc2_ref[...],
                 preferred_element_type=jnp.float32) + bfc2_ref[...]
    # TODO(synk): FFN dropout (p=0.2) omitted — eval-mode semantics.
    o_ref[0] = x1 + ff


# ---------------------------------------------------------------------------
# Wrapper
# ---------------------------------------------------------------------------
def block_forward(x, g1, b1, w_qkv, w_proj, b_proj, g2, b2,
                  w_fc1, b_fc1, w_fc2, b_fc2):
    """x: (B, T, N_EMBD) float32.  Returns (B, T, N_EMBD)."""
    B, T, C = x.shape
    assert C == N_EMBD

    row_spec = pl.BlockSpec((1, T, C), lambda b: (b, 0, 0))
    const2d = lambda shape: pl.BlockSpec(shape, lambda b: (0, 0))  # resident weights

    return pl.pallas_call(
        _block_kernel,
        out_shape=jax.ShapeDtypeStruct((B, T, C), jnp.float32),
        grid_spec=pl.GridSpec(
            grid=(B,),
            in_specs=[
                row_spec,                               # x
                const2d((1, C)), const2d((1, C)),       # ln1 gamma/beta
                const2d((C, 3 * C)),                    # w_qkv
                const2d((C, C)), const2d((1, C)),       # w_proj, b_proj
                const2d((1, C)), const2d((1, C)),       # ln2 gamma/beta
                const2d((C, FFN_HIDDEN)), const2d((1, FFN_HIDDEN)),  # fc1
                const2d((FFN_HIDDEN, C)), const2d((1, C)),           # fc2
            ],
            out_specs=row_spec,
        ),
        compiler_params=pltpu.CompilerParams(
            dimension_semantics=("parallel",),
            vmem_limit_bytes=64 * 1024 * 1024),
    )(x, g1, b1, w_qkv, w_proj, b_proj, g2, b2, w_fc1, b_fc1, w_fc2, b_fc2)


# ---------------------------------------------------------------------------
# Pure-JAX reference (mirrors the PyTorch Block.forward in eval mode)
# ---------------------------------------------------------------------------
def _reference(x, g1, b1, wq, wk, wv, w_proj, b_proj, g2, b2,
               w_fc1, b_fc1, w_fc2, b_fc2):
    B, T, C = x.shape

    xn = _layernorm(x, g1, b1)
    outs = []
    for h in range(NUM_HEADS):
        q = xn @ wq[h]
        k = xn @ wk[h]
        v = xn @ wv[h]
        wei = (q @ jnp.swapaxes(k, -2, -1)) * (float(C) ** -0.5)
        mask = jnp.tril(jnp.ones((T, T), dtype=bool))
        wei = jnp.where(mask, wei, -jnp.inf)
        wei = jax.nn.softmax(wei, axis=-1)
        outs.append(wei @ v)
    sa = jnp.concatenate(outs, axis=-1) @ w_proj + b_proj
    x1 = x + sa

    xn2 = _layernorm(x1, g2, b2)
    ff = jnp.maximum(xn2 @ w_fc1 + b_fc1, 0.0) @ w_fc2 + b_fc2
    return x1 + ff


if __name__ == "__main__":
    key = jax.random.PRNGKey(0)
    (k_x, k_q, k_k, k_v, k_p, k_pb,
     k_f1, k_f1b, k_f2, k_f2b, k_g1, k_b1, k_g2, k_b2) = jax.random.split(key, 14)

    B, T = 2, 16
    x = jax.random.normal(k_x, (B, T, N_EMBD), dtype=jnp.float32)

    # Per-head weights (pre-transposed for x @ W convention).
    wq = 0.02 * jax.random.normal(k_q, (NUM_HEADS, N_EMBD, HEAD_SIZE), jnp.float32)
    wk = 0.02 * jax.random.normal(k_k, (NUM_HEADS, N_EMBD, HEAD_SIZE), jnp.float32)
    wv = 0.02 * jax.random.normal(k_v, (NUM_HEADS, N_EMBD, HEAD_SIZE), jnp.float32)
    w_proj = 0.02 * jax.random.normal(k_p, (N_EMBD, N_EMBD), jnp.float32)
    b_proj = 0.02 * jax.random.normal(k_pb, (1, N_EMBD), jnp.float32)

    w_fc1 = 0.02 * jax.random.normal(k_f1, (N_EMBD, FFN_HIDDEN), jnp.float32)
    b_fc1 = 0.02 * jax.random.normal(k_f1b, (1, FFN_HIDDEN), jnp.float32)
    w_fc2 = 0.02 * jax.random.normal(k_f2, (FFN_HIDDEN, N_EMBD), jnp.float32)
    b_fc2 = 0.02 * jax.random.normal(k_f2b, (1, N_EMBD), jnp.float32)

    g1 = 1.0 + 0.02 * jax.random.normal(k_g1, (1, N_EMBD), jnp.float32)
    b1 = 0.02 * jax.random.normal(k_b1, (1, N_EMBD), jnp.float32)
    g2 = 1.0 + 0.02 * jax.random.normal(k_g2, (1, N_EMBD), jnp.float32)
    b2 = 0.02 * jax.random.normal(k_b2, (1, N_EMBD), jnp.float32)

    # Stack Q/K/V weights for all heads into a single (C, 3C) matrix:
    # columns [0:C)=Q (head h at h*64:(h+1)*64), [C:2C)=K, [2C:3C)=V.
    q_blk = jnp.transpose(wq, (1, 0, 2)).reshape(N_EMBD, N_EMBD)
    k_blk = jnp.transpose(wk, (1, 0, 2)).reshape(N_EMBD, N_EMBD)
    v_blk = jnp.transpose(wv, (1, 0, 2)).reshape(N_EMBD, N_EMBD)
    w_qkv = jnp.concatenate([q_blk, k_blk, v_blk], axis=-1)       # (C, 3C)

    out = block_forward(x, g1, b1, w_qkv, w_proj, b_proj, g2, b2,
                        w_fc1, b_fc1, w_fc2, b_fc2)
    out = jax.block_until_ready(out)

    ref = _reference(x, g1, b1, wq, wk, wv, w_proj, b_proj, g2, b2,
                     w_fc1, b_fc1, w_fc2, b_fc2)
    assert out.shape == (B, T, N_EMBD)
    assert jnp.allclose(out, ref, atol=1e-3, rtol=1e-3), "mismatch vs reference"

    print("KERNEL_OK")
</pallas_src>

<mosaic_0001>
module attributes {stable_mosaic.version = 11 : i64} {
  func.func @_block_kernel(%arg0: i32, %arg1: memref<1x16x384xf32, #tpu.memory_space<vmem>>, %arg2: memref<1x384xf32, #tpu.memory_space<vmem>>, %arg3: memref<1x384xf32, #tpu.memory_space<vmem>>, %arg4: memref<384x1152xf32, #tpu.memory_space<vmem>>, %arg5: memref<384x384xf32, #tpu.memory_space<vmem>>, %arg6: memref<1x384xf32, #tpu.memory_space<vmem>>, %arg7: memref<1x384xf32, #tpu.memory_space<vmem>>, %arg8: memref<1x384xf32, #tpu.memory_space<vmem>>, %arg9: memref<384x1536xf32, #tpu.memory_space<vmem>>, %arg10: memref<1x1536xf32, #tpu.memory_space<vmem>>, %arg11: memref<1536x384xf32, #tpu.memory_space<vmem>>, %arg12: memref<1x384xf32, #tpu.memory_space<vmem>>, %arg13: memref<1x16x384xf32, #tpu.memory_space<vmem>>) attributes {dimension_semantics = [#tpu.dimension_semantics<parallel>], iteration_bounds = array<i64: 2>, scalar_prefetch = 0 : i64, scratch_operands = 0 : i64, tpu.core_type = #tpu.core_type<tc>, window_params = [{transform_indices = @transform_0, window_bounds = array<i64: 1, 16, 384>}, {pipeline_mode = #tpu.pipeline_mode<synchronous>, transform_indices = @transform_1, window_bounds = array<i64: 1, 384>}, {pipeline_mode = #tpu.pipeline_mode<synchronous>, transform_indices = @transform_2, window_bounds = array<i64: 1, 384>}, {pipeline_mode = #tpu.pipeline_mode<synchronous>, transform_indices = @transform_3, window_bounds = array<i64: 384, 1152>}, {pipeline_mode = #tpu.pipeline_mode<synchronous>, transform_indices = @transform_4, window_bounds = array<i64: 384, 384>}, {pipeline_mode = #tpu.pipeline_mode<synchronous>, transform_indices = @transform_5, window_bounds = array<i64: 1, 384>}, {pipeline_mode = #tpu.pipeline_mode<synchronous>, transform_indices = @transform_6, window_bounds = array<i64: 1, 384>}, {pipeline_mode = #tpu.pipeline_mode<synchronous>, transform_indices = @transform_7, window_bounds = array<i64: 1, 384>}, {pipeline_mode = #tpu.pipeline_mode<synchronous>, transform_indices = @transform_8, window_bounds = array<i64: 384, 1536>}, {pipeline_mode = #tpu.pipeline_mode<synchronous>, transform_indices = @transform_9, window_bounds = array<i64: 1, 1536>}, {pipeline_mode = #tpu.pipeline_mode<synchronous>, transform_indices = @transform_10, window_bounds = array<i64: 1536, 384>}, {pipeline_mode = #tpu.pipeline_mode<synchronous>, transform_indices = @transform_11, window_bounds = array<i64: 1, 384>}, {transform_indices = @transform_12, window_bounds = array<i64: 1, 16, 384>}]} {
    %c0 = arith.constant 0 : index
    %c0_0 = arith.constant 0 : index
    %c0_1 = arith.constant 0 : index
    %0 = vector.load %arg1[%c0, %c0_0, %c0_1] : memref<1x16x384xf32, #tpu.memory_space<vmem>>, vector<1x16x384xf32>
    %1 = vector.shape_cast %0 : vector<1x16x384xf32> to vector<16x384xf32>
    %c0_2 = arith.constant 0 : index
    %c0_3 = arith.constant 0 : index
    %2 = vector.load %arg2[%c0_2, %c0_3] : memref<1x384xf32, #tpu.memory_space<vmem>>, vector<1x384xf32>
    %c0_4 = arith.constant 0 : index
    %c0_5 = arith.constant 0 : index
    %3 = vector.load %arg3[%c0_4, %c0_5] : memref<1x384xf32, #tpu.memory_space<vmem>>, vector<1x384xf32>
    %cst = arith.constant dense<0.000000e+00> : vector<16xf32>
    %4 = vector.multi_reduction <add>, %1, %cst [1] : vector<16x384xf32> to vector<16xf32>
    %5 = vector.shape_cast %4 : vector<16xf32> to vector<16x1xf32>
    %cst_6 = arith.constant 3.840000e+02 : f32
    %6 = vector.broadcast %cst_6 : f32 to vector<16x1xf32>
    %7 = arith.divf %5, %6 : vector<16x1xf32>
    %8 = vector.broadcast %7 : vector<16x1xf32> to vector<16x384xf32>
    %9 = arith.subf %1, %8 : vector<16x384xf32>
    %10 = arith.mulf %9, %9 : vector<16x384xf32>
    %cst_7 = arith.constant dense<0.000000e+00> : vector<16xf32>
    %11 = vector.multi_reduction <add>, %10, %cst_7 [1] : vector<16x384xf32> to vector<16xf32>
    %12 = vector.shape_cast %11 : vector<16xf32> to vector<16x1xf32>
    %cst_8 = arith.constant 3.840000e+02 : f32
    %13 = vector.broadcast %cst_8 : f32 to vector<16x1xf32>
    %14 = arith.divf %12, %13 : vector<16x1xf32>
    %cst_9 = arith.constant 9.99999974E-6 : f32
    %15 = vector.broadcast %cst_9 : f32 to vector<16x1xf32>
    %16 = arith.addf %14, %15 : vector<16x1xf32>
    %17 = math.rsqrt %16 : vector<16x1xf32>
    %18 = vector.broadcast %17 : vector<16x1xf32> to vector<16x384xf32>
    %19 = arith.mulf %9, %18 : vector<16x384xf32>
    %20 = vector.broadcast %2 : vector<1x384xf32> to vector<16x384xf32>
    %21 = arith.mulf %19, %20 : vector<16x384xf32>
    %22 = vector.broadcast %3 : vector<1x384xf32> to vector<16x384xf32>
    %23 = arith.addf %21, %22 : vector<16x384xf32>
    %c0_10 = arith.constant 0 : index
    %c0_11 = arith.constant 0 : index
    %24 = vector.load %arg4[%c0_10, %c0_11] : memref<384x1152xf32, #tpu.memory_space<vmem>>, vector<384x1152xf32>
    %cst_12 = arith.constant dense<0.000000e+00> : vector<16x1152xf32>
    %25 = tpu.matmul %23, %24, %cst_12 {dimension_numbers = #tpu.dot_dimension_numbers<[1], [0], [0], [1], [0, 0, 1, 1], [], []>} : vector<16x384xf32>, vector<384x1152xf32>, vector<16x1152xf32> -> vector<16x1152xf32>
    %26 = vector.extract_strided_slice %25 {offsets = [0, 0], sizes = [16, 384], strides = [1, 1]} : vector<16x1152xf32> to vector<16x384xf32>
    %cst_13 = arith.constant 0.0510310382 : f32
    %27 = vector.broadcast %cst_13 : f32 to vector<16x384xf32>
    %28 = arith.mulf %26, %27 : vector<16x384xf32>
    %29 = vector.extract_strided_slice %25 {offsets = [0, 384], sizes = [16, 384], strides = [1, 1]} : vector<16x1152xf32> to vector<16x384xf32>
    %30 = vector.extract_strided_slice %25 {offsets = [0, 768], sizes = [16, 384], strides = [1, 1]} : vector<16x1152xf32> to vector<16x384xf32>
    %31 = tpu.iota {dimensions = array<i32: 0>} : vector<16x16xi32>
    %32 = tpu.iota {dimensions = array<i32: 1>} : vector<16x16xi32>
    %33 = arith.cmpi sle, %32, %31 : vector<16x16xi32>
    %34 = vector.extract_strided_slice %28 {offsets = [0, 0], sizes = [16, 64], strides = [1, 1]} : vector<16x384xf32> to vector<16x64xf32>
    %35 = vector.extract_strided_slice %29 {offsets = [0, 0], sizes = [16, 64], strides = [1, 1]} : vector<16x384xf32> to vector<16x64xf32>
    %36 = vector.extract_strided_slice %30 {offsets = [0, 0], sizes = [16, 64], strides = [1, 1]} : vector<16x384xf32> to vector<16x64xf32>
    %37 = tpu.transpose %35, [1, 0] : vector<16x64xf32> -> vector<64x16xf32>
    %cst_14 = arith.constant dense<0.000000e+00> : vector<16x16xf32>
    %38 = tpu.matmul %34, %37, %cst_14 {dimension_numbers = #tpu.dot_dimension_numbers<[1], [0], [0], [1], [0, 0, 1, 1], [], []>} : vector<16x64xf32>, vector<64x16xf32>, vector<16x16xf32> -> vector<16x16xf32>
    %cst_15 = arith.constant 0xFF800000 : f32
    %39 = vector.broadcast %cst_15 : f32 to vector<16x16xf32>
    %40 = arith.select %33, %38, %39 : vector<16x16xi1>, vector<16x16xf32>
    %cst_16 = arith.constant dense<0xFF800000> : vector<16xf32>
    %41 = vector.multi_reduction <maximumf>, %40, %cst_16 [1] : vector<16x16xf32> to vector<16xf32>
    %42 = vector.shape_cast %41 : vector<16xf32> to vector<16x1xf32>
    %43 = vector.broadcast %42 : vector<16x1xf32> to vector<16x16xf32>
    %44 = arith.subf %40, %43 : vector<16x16xf32>
    %45 = math.exp %44 : vector<16x16xf32>
    %cst_17 = arith.constant dense<0.000000e+00> : vector<16xf32>
    %46 = vector.multi_reduction <add>, %45, %cst_17 [1] : vector<16x16xf32> to vector<16xf32>
    %47 = vector.shape_cast %46 : vector<16xf32> to vector<16x1xf32>
    %48 = tpu.reciprocal %47 {approx = true} : vector<16x1xf32> -> vector<16x1xf32>
    %49 = vector.broadcast %48 : vector<16x1xf32> to vector<16x16xf32>
    %50 = arith.mulf %45, %49 : vector<16x16xf32>
    %cst_18 = arith.constant dense<0.000000e+00> : vector<16x64xf32>
    %51 = tpu.matmul %50, %36, %cst_18 {dimension_numbers = #tpu.dot_dimension_numbers<[1], [0], [0], [1], [0, 0, 1, 1], [], []>} : vector<16x16xf32>, vector<16x64xf32>, vector<16x64xf32> -> vector<16x64xf32>
    %52 = vector.extract_strided_slice %28 {offsets = [0, 64], sizes = [16, 64], strides = [1, 1]} : vector<16x384xf32> to vector<16x64xf32>
    %53 = vector.extract_strided_slice %29 {offsets = [0, 64], sizes = [16, 64], strides = [1, 1]} : vector<16x384xf32> to vector<16x64xf32>
    %54 = vector.extract_strided_slice %30 {offsets = [0, 64], sizes = [16, 64], strides = [1, 1]} : vector<16x384xf32> to vector<16x64xf32>
    %55 = tpu.transpose %53, [1, 0] : vector<16x64xf32> -> vector<64x16xf32>
    %cst_19 = arith.constant dense<0.000000e+00> : vector<16x16xf32>
    %56 = tpu.matmul %52, %55, %cst_19 {dimension_numbers = #tpu.dot_dimension_numbers<[1], [0], [0], [1], [0, 0, 1, 1], [], []>} : vector<16x64xf32>, vector<64x16xf32>, vector<16x16xf32> -> vector<16x16xf32>
    %cst_20 = arith.constant 0xFF800000 : f32
    %57 = vector.broadcast %cst_20 : f32 to vector<16x16xf32>
    %58 = arith.select %33, %56, %57 : vector<16x16xi1>, vector<16x16xf32>
    %cst_21 = arith.constant dense<0xFF800000> : vector<16xf32>
    %59 = vector.multi_reduction <maximumf>, %58, %cst_21 [1] : vector<16x16xf32> to vector<16xf32>
    %60 = vector.shape_cast %59 : vector<16xf32> to vector<16x1xf32>
    %61 = vector.broadcast %60 : vector<16x1xf32> to vector<16x16xf32>
    %62 = arith.subf %58, %61 : vector<16x16xf32>
    %63 = math.exp %62 : vector<16x16xf32>
    %cst_22 = arith.constant dense<0.000000e+00> : vector<16xf32>
    %64 = vector.multi_reduction <add>, %63, %cst_22 [1] : vector<16x16xf32> to vector<16xf32>
    %65 = vector.shape_cast %64 : vector<16xf32> to vector<16x1xf32>
    %66 = tpu.reciprocal %65 {approx = true} : vector<16x1xf32> -> vector<16x1xf32>
    %67 = vector.broadcast %66 : vector<16x1xf32> to vector<16x16xf32>
    %68 = arith.mulf %63, %67 : vector<16x16xf32>
    %cst_23 = arith.constant dense<0.000000e+00> : vector<16x64xf32>
    %69 = tpu.matmul %68, %54, %cst_23 {dimension_numbers = #tpu.dot_dimension_numbers<[1], [0], [0], [1], [0, 0, 1, 1], [], []>} : vector<16x16xf32>, vector<16x64xf32>, vector<16x64xf32> -> vector<16x64xf32>
    %70 = vector.extract_strided_slice %28 {offsets = [0, 128], sizes = [16, 64], strides = [1, 1]} : vector<16x384xf32> to vector<16x64xf32>
    %71 = vector.extract_strided_slice %29 {offsets = [0, 128], sizes = [16, 64], strides = [1, 1]} : vector<16x384xf32> to vector<16x64xf32>
    %72 = vector.extract_strided_slice %30 {offsets = [0, 128], sizes = [16, 64], strides = [1, 1]} : vector<16x384xf32> to vector<16x64xf32>
    %73 = tpu.transpose %71, [1, 0] : vector<16x64xf32> -> vector<64x16xf32>
    %cst_24 = arith.constant dense<0.000000e+00> : vector<16x16xf32>
    %74 = tpu.matmul %70, %73, %cst_24 {dimension_numbers = #tpu.dot_dimension_numbers<[1], [0], [0], [1], [0, 0, 1, 1], [], []>} : vector<16x64xf32>, vector<64x16xf32>, vector<16x16xf32> -> vector<16x16xf32>
    %cst_25 = arith.constant 0xFF800000 : f32
    %75 = vector.broadcast %cst_25 : f32 to vector<16x16xf32>
    %76 = arith.select %33, %74, %75 : vector<16x16xi1>, vector<16x16xf32>
    %cst_26 = arith.constant dense<0xFF800000> : vector<16xf32>
    %77 = vector.multi_reduction <maximumf>, %76, %cst_26 [1] : vector<16x16xf32> to vector<16xf32>
    %78 = vector.shape_cast %77 : vector<16xf32> to vector<16x1xf32>
    %79 = vector.broadcast %78 : vector<16x1xf32> to vector<16x16xf32>
    %80 = arith.subf %76, %79 : vector<16x16xf32>
    %81 = math.exp %80 : vector<16x16xf32>
    %cst_27 = arith.constant dense<0.000000e+00> : vector<16xf32>
    %82 = vector.multi_reduction <add>, %81, %cst_27 [1] : vector<16x16xf32> to vector<16xf32>
    %83 = vector.shape_cast %82 : vector<16xf32> to vector<16x1xf32>
    %84 = tpu.reciprocal %83 {approx = true} : vector<16x1xf32> -> vector<16x1xf32>
    %85 = vector.broadcast %84 : vector<16x1xf32> to vector<16x16xf32>
    %86 = arith.mulf %81, %85 : vector<16x16xf32>
    %cst_28 = arith.constant dense<0.000000e+00> : vector<16x64xf32>
    %87 = tpu.matmul %86, %72, %cst_28 {dimension_numbers = #tpu.dot_dimension_numbers<[1], [0], [0], [1], [0, 0, 1, 1], [], []>} : vector<16x16xf32>, vector<16x64xf32>, vector<16x64xf32> -> vector<16x64xf32>
    %88 = vector.extract_strided_slice %28 {offsets = [0, 192], sizes = [16, 64], strides = [1, 1]} : vector<16x384xf32> to vector<16x64xf32>
    %89 = vector.extract_strided_slice %29 {offsets = [0, 192], sizes = [16, 64], strides = [1, 1]} : vector<16x384xf32> to vector<16x64xf32>
    %90 = vector.extract_strided_slice %30 {offsets = [0, 192], sizes = [16, 64], strides = [1, 1]} : vector<16x384xf32> to vector<16x64xf32>
    %91 = tpu.transpose %89, [1, 0] : vector<16x64xf32> -> vector<64x16xf32>
    %cst_29 = arith.constant dense<0.000000e+00> : vector<16x16xf32>
    %92 = tpu.matmul %88, %91, %cst_29 {dimension_numbers = #tpu.dot_dimension_numbers<[1], [0], [0], [1], [0, 0, 1, 1], [], []>} : vector<16x64xf32>, vector<64x16xf32>, vector<16x16xf32> -> vector<16x16xf32>
    %cst_30 = arith.constant 0xFF800000 : f32
    %93 = vector.broadcast %cst_30 : f32 to vector<16x16xf32>
    %94 = arith.select %33, %92, %93 : vector<16x16xi1>, vector<16x16xf32>
    %cst_31 = arith.constant dense<0xFF800000> : vector<16xf32>
    %95 = vector.multi_reduction <maximumf>, %94, %cst_31 [1] : vector<16x16xf32> to vector<16xf32>
    %96 = vector.shape_cast %95 : vector<16xf32> to vector<16x1xf32>
    %97 = vector.broadcast %96 : vector<16x1xf32> to vector<16x16xf32>
    %98 = arith.subf %94, %97 : vector<16x16xf32>
    %99 = math.exp %98 : vector<16x16xf32>
    %cst_32 = arith.constant dense<0.000000e+00> : vector<16xf32>
    %100 = vector.multi_reduction <add>, %99, %cst_32 [1] : vector<16x16xf32> to vector<16xf32>
    %101 = vector.shape_cast %100 : vector<16xf32> to vector<16x1xf32>
    %102 = tpu.reciprocal %101 {approx = true} : vector<16x1xf32> -> vector<16x1xf32>
    %103 = vector.broadcast %102 : vector<16x1xf32> to vector<16x16xf32>
    %104 = arith.mulf %99, %103 : vector<16x16xf32>
    %cst_33 = arith.constant dense<0.000000e+00> : vector<16x64xf32>
    %105 = tpu.matmul %104, %90, %cst_33 {dimension_numbers = #tpu.dot_dimension_numbers<[1], [0], [0], [1], [0, 0, 1, 1], [], []>} : vector<16x16xf32>, vector<16x64xf32>, vector<16x64xf32> -> vector<16x64xf32>
    %106 = vector.extract_strided_slice %28 {offsets = [0, 256], sizes = [16, 64], strides = [1, 1]} : vector<16x384xf32> to vector<16x64xf32>
    %107 = vector.extract_strided_slice %29 {offsets = [0, 256], sizes = [16, 64], strides = [1, 1]} : vector<16x384xf32> to vector<16x64xf32>
    %108 = vector.extract_strided_slice %30 {offsets = [0, 256], sizes = [16, 64], strides = [1, 1]} : vector<16x384xf32> to vector<16x64xf32>
    %109 = tpu.transpose %107, [1, 0] : vector<16x64xf32> -> vector<64x16xf32>
    %cst_34 = arith.constant dense<0.000000e+00> : vector<16x16xf32>
    %110 = tpu.matmul %106, %109, %cst_34 {dimension_numbers = #tpu.dot_dimension_numbers<[1], [0], [0], [1], [0, 0, 1, 1], [], []>} : vector<16x64xf32>, vector<64x16xf32>, vector<16x16xf32> -> vector<16x16xf32>
    %cst_35 = arith.constant 0xFF800000 : f32
    %111 = vector.broadcast %cst_35 : f32 to vector<16x16xf32>
    %112 = arith.select %33, %110, %111 : vector<16x16xi1>, vector<16x16xf32>
    %cst_36 = arith.constant dense<0xFF800000> : vector<16xf32>
    %113 = vector.multi_reduction <maximumf>, %112, %cst_36 [1] : vector<16x16xf32> to vector<16xf32>
    %114 = vector.shape_cast %113 : vector<16xf32> to vector<16x1xf32>
    %115 = vector.broadcast %114 : vector<16x1xf32> to vector<16x16xf32>
    %116 = arith.subf %112, %115 : vector<16x16xf32>
    %117 = math.exp %116 : vector<16x16xf32>
    %cst_37 = arith.constant dense<0.000000e+00> : vector<16xf32>
    %118 = vector.multi_reduction <add>, %117, %cst_37 [1] : vector<16x16xf32> to vector<16xf32>
    %119 = vector.shape_cast %118 : vector<16xf32> to vector<16x1xf32>
    %120 = tpu.reciprocal %119 {approx = true} : vector<16x1xf32> -> vector<16x1xf32>
    %121 = vector.broadcast %120 : vector<16x1xf32> to vector<16x16xf32>
    %122 = arith.mulf %117, %121 : vector<16x16xf32>
    %cst_38 = arith.constant dense<0.000000e+00> : vector<16x64xf32>
    %123 = tpu.matmul %122, %108, %cst_38 {dimension_numbers = #tpu.dot_dimension_numbers<[1], [0], [0], [1], [0, 0, 1, 1], [], []>} : vector<16x16xf32>, vector<16x64xf32>, vector<16x64xf32> -> vector<16x64xf32>
    %124 = vector.extract_strided_slice %28 {offsets = [0, 320], sizes = [16, 64], strides = [1, 1]} : vector<16x384xf32> to vector<16x64xf32>
    %125 = vector.extract_strided_slice %29 {offsets = [0, 320], sizes = [16, 64], strides = [1, 1]} : vector<16x384xf32> to vector<16x64xf32>
    %126 = vector.extract_strided_slice %30 {offsets = [0, 320], sizes = [16, 64], strides = [1, 1]} : vector<16x384xf32> to vector<16x64xf32>
    %127 = tpu.transpose %125, [1, 0] : vector<16x64xf32> -> vector<64x16xf32>
    %cst_39 = arith.constant dense<0.000000e+00> : vector<16x16xf32>
    %128 = tpu.matmul %124, %127, %cst_39 {dimension_numbers = #tpu.dot_dimension_numbers<[1], [0], [0], [1], [0, 0, 1, 1], [], []>} : vector<16x64xf32>, vector<64x16xf32>, vector<16x16xf32> -> vector<16x16xf32>
    %cst_40 = arith.constant 0xFF800000 : f32
    %129 = vector.broadcast %cst_40 : f32 to vector<16x16xf32>
    %130 = arith.select %33, %128, %129 : vector<16x16xi1>, vector<16x16xf32>
    %cst_41 = arith.constant dense<0xFF800000> : vector<16xf32>
    %131 = vector.multi_reduction <maximumf>, %130, %cst_41 [1] : vector<16x16xf32> to vector<16xf32>
    %132 = vector.shape_cast %131 : vector<16xf32> to vector<16x1xf32>
    %133 = vector.broadcast %132 : vector<16x1xf32> to vector<16x16xf32>
    %134 = arith.subf %130, %133 : vector<16x16xf32>
    %135 = math.exp %134 : vector<16x16xf32>
    %cst_42 = arith.constant dense<0.000000e+00> : vector<16xf32>
    %136 = vector.multi_reduction <add>, %135, %cst_42 [1] : vector<16x16xf32> to vector<16xf32>
    %137 = vector.shape_cast %136 : vector<16xf32> to vector<16x1xf32>
    %138 = tpu.reciprocal %137 {approx = true} : vector<16x1xf32> -> vector<16x1xf32>
    %139 = vector.broadcast %138 : vector<16x1xf32> to vector<16x16xf32>
    %140 = arith.mulf %135, %139 : vector<16x16xf32>
    %cst_43 = arith.constant dense<0.000000e+00> : vector<16x64xf32>
    %141 = tpu.matmul %140, %126, %cst_43 {dimension_numbers = #tpu.dot_dimension_numbers<[1], [0], [0], [1], [0, 0, 1, 1], [], []>} : vector<16x16xf32>, vector<16x64xf32>, vector<16x64xf32> -> vector<16x64xf32>
    %142 = tpu.concatenate %51, %69, %87, %105, %123, %141 in 1 : vector<16x64xf32>, vector<16x64xf32>, vector<16x64xf32>, vector<16x64xf32>, vector<16x64xf32>, vector<16x64xf32> -> vector<16x384xf32>
    %c0_44 = arith.constant 0 : index
    %c0_45 = arith.constant 0 : index
    %143 = vector.load %arg5[%c0_44, %c0_45] : memref<384x384xf32, #tpu.memory_space<vmem>>, vector<384x384xf32>
    %cst_46 = arith.constant dense<0.000000e+00> : vector<16x384xf32>
    %144 = tpu.matmul %142, %143, %cst_46 {dimension_numbers = #tpu.dot_dimension_numbers<[1], [0], [0], [1], [0, 0, 1, 1], [], []>} : vector<16x384xf32>, vector<384x384xf32>, vector<16x384xf32> -> vector<16x384xf32>
    %c0_47 = arith.constant 0 : index
    %c0_48 = arith.constant 0 : index
    %145 = vector.load %arg6[%c0_47, %c0_48] : memref<1x384xf32, #tpu.memory_space<vmem>>, vector<1x384xf32>
    %146 = vector.broadcast %145 : vector<1x384xf32> to vector<16x384xf32>
    %147 = arith.addf %144, %146 : vector<16x384xf32>
    %148 = arith.addf %1, %147 : vector<16x384xf32>
    %c0_49 = arith.constant 0 : index
    %c0_50 = arith.constant 0 : index
    %149 = vector.load %arg7[%c0_49, %c0_50] : memref<1x384xf32, #tpu.memory_space<vmem>>, vector<1x384xf32>
    %c0_51 = arith.constant 0 : index
    %c0_52 = arith.constant 0 : index
    %150 = vector.load %arg8[%c0_51, %c0_52] : memref<1x384xf32, #tpu.memory_space<vmem>>, vector<1x384xf32>
    %cst_53 = arith.constant dense<0.000000e+00> : vector<16xf32>
    %151 = vector.multi_reduction <add>, %148, %cst_53 [1] : vector<16x384xf32> to vector<16xf32>
    %152 = vector.shape_cast %151 : vector<16xf32> to vector<16x1xf32>
    %cst_54 = arith.constant 3.840000e+02 : f32
    %153 = vector.broadcast %cst_54 : f32 to vector<16x1xf32>
    %154 = arith.divf %152, %153 : vector<16x1xf32>
    %155 = vector.broadcast %154 : vector<16x1xf32> to vector<16x384xf32>
    %156 = arith.subf %148, %155 : vector<16x384xf32>
    %157 = arith.mulf %156, %156 : vector<16x384xf32>
    %cst_55 = arith.constant dense<0.000000e+00> : vector<16xf32>
    %158 = vector.multi_reduction <add>, %157, %cst_55 [1] : vector<16x384xf32> to vector<16xf32>
    %159 = vector.shape_cast %158 : vector<16xf32> to vector<16x1xf32>
    %cst_56 = arith.constant 3.840000e+02 : f32
    %160 = vector.broadcast %cst_56 : f32 to vector<16x1xf32>
    %161 = arith.divf %159, %160 : vector<16x1xf32>
    %cst_57 = arith.constant 9.99999974E-6 : f32
    %162 = vector.broadcast %cst_57 : f32 to vector<16x1xf32>
    %163 = arith.addf %161, %162 : vector<16x1xf32>
    %164 = math.rsqrt %163 : vector<16x1xf32>
    %165 = vector.broadcast %164 : vector<16x1xf32> to vector<16x384xf32>
    %166 = arith.mulf %156, %165 : vector<16x384xf32>
    %167 = vector.broadcast %149 : vector<1x384xf32> to vector<16x384xf32>
    %168 = arith.mulf %166, %167 : vector<16x384xf32>
    %169 = vector.broadcast %150 : vector<1x384xf32> to vector<16x384xf32>
    %170 = arith.addf %168, %169 : vector<16x384xf32>
    %c0_58 = arith.constant 0 : index
    %c0_59 = arith.constant 0 : index
    %171 = vector.load %arg9[%c0_58, %c0_59] : memref<384x1536xf32, #tpu.memory_space<vmem>>, vector<384x1536xf32>
    %cst_60 = arith.constant dense<0.000000e+00> : vector<16x1536xf32>
    %172 = tpu.matmul %170, %171, %cst_60 {dimension_numbers = #tpu.dot_dimension_numbers<[1], [0], [0], [1], [0, 0, 1, 1], [], []>} : vector<16x384xf32>, vector<384x1536xf32>, vector<16x1536xf32> -> vector<16x1536xf32>
    %c0_61 = arith.constant 0 : index
    %c0_62 = arith.constant 0 : index
    %173 = vector.load %arg10[%c0_61, %c0_62] : memref<1x1536xf32, #tpu.memory_space<vmem>>, vector<1x1536xf32>
    %174 = vector.broadcast %173 : vector<1x1536xf32> to vector<16x1536xf32>
    %175 = arith.addf %172, %174 : vector<16x1536xf32>
    %cst_63 = arith.constant 0.000000e+00 : f32
    %176 = vector.broadcast %cst_63 : f32 to vector<16x1536xf32>
    %177 = arith.maximumf %175, %176 : vector<16x1536xf32>
    %c0_64 = arith.constant 0 : index
    %c0_65 = arith.constant 0 : index
    %178 = vector.load %arg11[%c0_64, %c0_65] : memref<1536x384xf32, #tpu.memory_space<vmem>>, vector<1536x384xf32>
    %cst_66 = arith.constant dense<0.000000e+00> : vector<16x384xf32>
    %179 = tpu.matmul %177, %178, %cst_66 {dimension_numbers = #tpu.dot_dimension_numbers<[1], [0], [0], [1], [0, 0, 1, 1], [], []>} : vector<16x1536xf32>, vector<1536x384xf32>, vector<16x384xf32> -> vector<16x384xf32>
    %c0_67 = arith.constant 0 : index
    %c0_68 = arith.constant 0 : index
    %180 = vector.load %arg12[%c0_67, %c0_68] : memref<1x384xf32, #tpu.memory_space<vmem>>, vector<1x384xf32>
    %181 = vector.broadcast %180 : vector<1x384xf32> to vector<16x384xf32>
    %182 = arith.addf %179, %181 : vector<16x384xf32>
    %183 = arith.addf %148, %182 : vector<16x384xf32>
    %c0_69 = arith.constant 0 : index
    %c0_70 = arith.constant 0 : index
    %c0_71 = arith.constant 0 : index
    %184 = vector.load %arg13[%c0_69, %c0_70, %c0_71] : memref<1x16x384xf32, #tpu.memory_space<vmem>>, vector<1x16x384xf32>
    %185 = vector.shape_cast %184 : vector<1x16x384xf32> to vector<16x384xf32>
    %186 = vector.shape_cast %183 : vector<16x384xf32> to vector<1x16x384xf32>
    tpu.vector_store %arg13[%c0_69, %c0_70, %c0_71], %186 {strides = array<i32>} : memref<1x16x384xf32, #tpu.memory_space<vmem>>, vector<1x16x384xf32>,
    return
  }
  func.func @transform_0(%arg0: i32) -> (i32, i32, i32) {
    %c0_i32 = arith.constant 0 : i32
    %c0_i32_0 = arith.constant 0 : i32
    %c0_i32_1 = arith.constant 0 : i32
    return %arg0, %c0_i32, %c0_i32_0 : i32, i32, i32
  }
  func.func @transform_1(%arg0: i32) -> (i32, i32) {
    %c0_i32 = arith.constant 0 : i32
    %c0_i32_0 = arith.constant 0 : i32
    %c0_i32_1 = arith.constant 0 : i32
    return %c0_i32, %c0_i32_0 : i32, i32
  }
  func.func @transform_2(%arg0: i32) -> (i32, i32) {
    %c0_i32 = arith.constant 0 : i32
    %c0_i32_0 = arith.constant 0 : i32
    %c0_i32_1 = arith.constant 0 : i32
    return %c0_i32, %c0_i32_0 : i32, i32
  }
  func.func @transform_3(%arg0: i32) -> (i32, i32) {
    %c0_i32 = arith.constant 0 : i32
    %c0_i32_0 = arith.constant 0 : i32
    %c0_i32_1 = arith.constant 0 : i32
    return %c0_i32, %c0_i32_0 : i32, i32
  }
  func.func @transform_4(%arg0: i32) -> (i32, i32) {
    %c0_i32 = arith.constant 0 : i32
    %c0_i32_0 = arith.constant 0 : i32
    %c0_i32_1 = arith.constant 0 : i32
    return %c0_i32, %c0_i32_0 : i32, i32
  }
  func.func @transform_5(%arg0: i32) -> (i32, i32) {
    %c0_i32 = arith.constant 0 : i32
    %c0_i32_0 = arith.constant 0 : i32
    %c0_i32_1 = arith.constant 0 : i32
    return %c0_i32, %c0_i32_0 : i32, i32
  }
  func.func @transform_6(%arg0: i32) -> (i32, i32) {
    %c0_i32 = arith.constant 0 : i32
    %c0_i32_0 = arith.constant 0 : i32
    %c0_i32_1 = arith.constant 0 : i32
    return %c0_i32, %c0_i32_0 : i32, i32
  }
  func.func @transform_7(%arg0: i32) -> (i32, i32) {
    %c0_i32 = arith.constant 0 : i32
    %c0_i32_0 = arith.constant 0 : i32
    %c0_i32_1 = arith.constant 0 : i32
    return %c0_i32, %c0_i32_0 : i32, i32
  }
  func.func @transform_8(%arg0: i32) -> (i32, i32) {
    %c0_i32 = arith.constant 0 : i32
    %c0_i32_0 = arith.constant 0 : i32
    %c0_i32_1 = arith.constant 0 : i32
    return %c0_i32, %c0_i32_0 : i32, i32
  }
  func.func @transform_9(%arg0: i32) -> (i32, i32) {
    %c0_i32 = arith.constant 0 : i32
    %c0_i32_0 = arith.constant 0 : i32
    %c0_i32_1 = arith.constant 0 : i32
    return %c0_i32, %c0_i32_0 : i32, i32
  }
  func.func @transform_10(%arg0: i32) -> (i32, i32) {
    %c0_i32 = arith.constant 0 : i32
    %c0_i32_0 = arith.constant 0 : i32
    %c0_i32_1 = arith.constant 0 : i32
    return %c0_i32, %c0_i32_0 : i32, i32
  }
  func.func @transform_11(%arg0: i32) -> (i32, i32) {
    %c0_i32 = arith.constant 0 : i32
    %c0_i32_0 = arith.constant 0 : i32
    %c0_i32_1 = arith.constant 0 : i32
    return %c0_i32, %c0_i32_0 : i32, i32
  }
  func.func @transform_12(%arg0: i32) -> (i32, i32, i32) {
    %c0_i32 = arith.constant 0 : i32
    %c0_i32_0 = arith.constant 0 : i32
    %c0_i32_1 = arith.constant 0 : i32
    return %arg0, %c0_i32, %c0_i32_0 : i32, i32, i32
  }
}

</mosaic_0001>

<bundles_post_ra>
// kernel: tpu_custom_call.1
= control target key start
LH: loop header
LB: loop body
LE: loop exit
PB: predicated region body
PF: predicated region fallthrough
CT: control target
= control target key end

     0   :  { %s7874_s0 = inlined_call_operand.hbm [shape: f32[2,16,384], index: 0, kind: input, shape index: {}]   ;;  %s7875_s1 = inlined_call_operand.hbm [shape: f32[1,384], index: 1, kind: input, shape index: {}]   ;;  %s7876_s2 = inlined_call_operand.hbm [shape: f32[1,384], index: 2, kind: input, shape index: {}]   ;;  %s7877_s3 = inlined_call_operand.hbm [shape: f32[384,1152], index: 3, kind: input, shape index: {}]   ;;  %s7878_s4 = inlined_call_operand.hbm [shape: f32[384,384], index: 4, kind: input, shape index: {}]   ;;  %s7879_s5 = inlined_call_operand.hbm [shape: f32[1,384], index: 5, kind: input, shape index: {}]   ;;  %s7880_s6 = inlined_call_operand.hbm [shape: f32[1,384], index: 6, kind: input, shape index: {}]   ;;  %s7881_s7 = inlined_call_operand.hbm [shape: f32[1,384], index: 7, kind: input, shape index: {}]   ;;  %s7882_s8 = inlined_call_operand.hbm [shape: f32[384,1536], index: 8, kind: input, shape index: {}]   ;;  %s7883_s9 = inlined_call_operand.hbm [shape: f32[1,1536], index: 9, kind: input, shape index: {}]   ;;  %s7884_s10 = inlined_call_operand.hbm [shape: f32[1536,384], index: 10, kind: input, shape index: {}]   ;;  %s7885_s11 = inlined_call_operand.hbm [shape: f32[1,384], index: 11, kind: input, shape index: {}]   ;;  %s7886_s12 = inlined_call_operand.hbm [shape: f32[2,16,384], index: 12, kind: output, shape index: {}]  }
   0x1   :  { %7891 = sst [smem:[#allocation32_spill]] %s7875_s1 }
   0x2   :  { %7892 = sst [smem:[#allocation33_spill]] %s7876_s2 }
   0x3   :  { %7893 = sst [smem:[#allocation34_spill]] %s7877_s3 }
   0x4   :  { %7894 = sst [smem:[#allocation35_spill]] %s7878_s4 }
   0x5   :  { %7895 = sst [smem:[#allocation36_spill]] %s7879_s5 }
   0x6   :  { %7896 = sst [smem:[#allocation37_spill]] %s7880_s6 }
   0x7   :  { %7897 = sst [smem:[#allocation38_spill]] %s7881_s7 }
   0x8   :  { %7898 = sst [smem:[#allocation39_spill]] %s7886_s12 }
   0x9   :  { %17 = vsyncpa [#allocation3], 0 }
   0xa   :  { %19 = vsyncpa [#allocation3 + $0x1], 0 }
   0xb   :  { %20 = vsyncpa [#allocation6], 0 }
   0xc   :  { %21 = vsyncpa [#allocation9], 0 }
   0xd   :  { %22 = vsyncpa [#allocation12], 0 }
   0xe   :  { %23 = vsyncpa [#allocation15], 0 }
   0xf   :  { %24 = vsyncpa [#allocation18], 0 }
  0x10   :  { %25 = vsyncpa [#allocation21], 0 }
  0x11   :  { %26 = vsyncpa [#allocation4], 0 }
  0x12   :  { %28 = vsyncpa [#allocation4 + $0x1], 0  ;;  %s6746_s21 = smov 0   ;;  %s6748_s22 = smov 0  }
  0x13   :  { %s6750_s23 = smov 0   ;;  %s6752_s24 = smov 0  }
  0x14 LB: > { %s7899_s1 = sld [smem:[#allocation32_spill]]  ;;  %s6770_s28 = sadd.s32 4294967295, %s6658_s24   ;;  %s6658_s24 = sphi %s6752_s24, %s7925_s24   ;;  %s6654_s23 = sphi %s6750_s23, %s7924_s23   ;;  %s6650_s22 = sphi %s6748_s22, %s7923_s22   ;;  %s6646_s21 = sphi %s6746_s21, %s7922_s21  }
  0x15   : > { %p5893_p0 = scmp.ge.s32.totalorder %s6658_s24, 1  ;;  %p55_p1 = scmp.eq.s32.totalorder %s6770_s28, 0 }
  0x16   : > { %p322_p2 = scmp.lt.s32.totalorder %s6658_s24, 3  ;;  %s6660_s30 = smov [#allocation5]  }
  0x17   : > { %s336_s13 = sshll.u32 %s6660_s30, 4  ;;  %s7902_s3 = sld [smem:[#allocation34_spill]]  ;;  %s337_s13 = int_to_ptr.vmem [resolvable:$true] %s336_s13 }
  0x18   : > { %p6775_p3 = pnand %p5893_p0, %p322_p2  ;;  %s6661_s18 = smov [#allocation8]  }
  0x19   : > { %s359_s19 = sshll.u32 %s6661_s18, 4  ;;  %s6662_s20 = smov 1152   ;;  %s360_s19 = int_to_ptr.vmem [resolvable:$true] %s359_s19 }
  0x1a   : > { %s334_s27 = sshll.u32 %s7899_s1, 4  ;;  %p6010_p5 = pneg %p6775_p3  ;;  %s335_s27 = int_to_ptr.hbm [resolvable:$true] %s334_s27 }
  0x1b   : > { %s7900_s29 = scalar_select %p6775_p3, 1, 0 }
  0x1c   : > { %p6787_p6 = pnand %p6010_p5, %p55_p1  ;;  %s6663_s25 = smov 72  }
  0x1d   : > { %7901 = sst [smem:[#allocation31_spill]] %s7900_s29  ;;  %s357_s16 = sshll.u32 %s7902_s3, 4  ;;  %s358_s16 = int_to_ptr.hbm [resolvable:$true] %s357_s16 }
  0x1e   : > { %6013 = dma.hbm_to_vmem [thread:$0]  (!%p6787_p6), %s335_s27, 48, %s337_s13, [#allocation6]  }
  0x1f   : > { %6019 = dma.hbm_to_vmem [thread:$0]  (!%p6787_p6), %s358_s16, 55296, %s360_s19, [#allocation9], %s6662_s20, %s6662_s20, %s6663_s25  }
  0x20   : > { %s7904_s5 = sld [smem:[#allocation36_spill]]  ;;  %s6664_s15 = smov [#allocation11]  }
  0x21   : > { %s388_s1 = sshll.u32 %s6664_s15, 4  ;;  %s7905_s7 = sld [smem:[#allocation38_spill]]  ;;  %s389_s1 = int_to_ptr.vmem [resolvable:$true] %s388_s1 }
  0x22   : > { %s6665_s27 = smov [#allocation14]   ;;  %s436_s19 = sshll.u32 %s7883_s9, 4  ;;  %s437_s19 = int_to_ptr.hbm [resolvable:$true] %s436_s19 }
  0x23   : > { %s412_s13 = sshll.u32 %s6665_s27, 4  ;;  %s7906_s2 = sld [smem:[#allocation33_spill]]  ;;  %s413_s13 = int_to_ptr.vmem [resolvable:$true] %s412_s13 }
  0x24   : > { %s6666_s3 = smov [#allocation17]   ;;  %s7907_s4 = sld [smem:[#allocation35_spill]] }
  0x25   : > { %s438_s12 = sshll.u32 %s6666_s3, 4  ;;  %s7908_s6 = sld [smem:[#allocation37_spill]]  ;;  %s439_s12 = int_to_ptr.vmem [resolvable:$true] %s438_s12 }
  0x26   : > { %s386_s14 = sshll.u32 %s7904_s5, 4  ;;  %s7889_s25 = smov 384   ;;  %s387_s14 = int_to_ptr.hbm [resolvable:$true] %s386_s14 }
  0x27   : > { %s410_s18 = sshll.u32 %s7905_s7, 4  ;;  %s6671_s3 = smov [#allocation13]   ;;  %s411_s18 = int_to_ptr.hbm [resolvable:$true] %s410_s18 }
  0x28   : > { %6025 = dma.hbm_to_vmem [thread:$0]  (!%p6787_p6), %s387_s14, 48, %s389_s1, [#allocation12]  }
  0x29   : > { %6031 = dma.hbm_to_vmem [thread:$0]  (!%p6787_p6), %s411_s18, 48, %s413_s13, [#allocation15]  }
  0x2a   : > { %s346_s26 = sshll.u32 %s7906_s2, 4  ;;  %s6667_s1 = smov [#allocation7]   ;;  %s347_s26 = int_to_ptr.hbm [resolvable:$true] %s346_s26 }
  0x2b   : > { %6037 = dma.hbm_to_vmem [thread:$0]  (!%p6787_p6), %s437_s19, 192, %s439_s12, [#allocation18]  }
  0x2c   : > { %s348_s30 = sshll.u32 %s6667_s1, 4  ;;  %s371_s15 = sshll.u32 %s7907_s4, 4  ;;  %s349_s30 = int_to_ptr.vmem [resolvable:$true] %s348_s30  ;;  %s372_s15 = int_to_ptr.hbm [resolvable:$true] %s371_s15 }
  0x2d   : > { %6016 = dma.hbm_to_vmem [thread:$0]  (!%p6787_p6), %s347_s26, 48, %s349_s30, [#allocation6]  }
  0x2e   : > { %s6668_s18 = smov [#allocation10]   ;;  %s398_s20 = sshll.u32 %s7908_s6, 4  ;;  %s399_s20 = int_to_ptr.hbm [resolvable:$true] %s398_s20 }
  0x2f   : > { %s373_s27 = sshll.u32 %s6668_s18, 4  ;;  %s7890_s19 = smov 24   ;;  %s374_s27 = int_to_ptr.vmem [resolvable:$true] %s373_s27 }
  0x30   : > { %6022 = dma.hbm_to_vmem [thread:$0]  (!%p6787_p6), %s372_s15, 18432, %s374_s27, [#allocation9], %s7889_s25, %s7889_s25, %s7890_s19  }
  0x31   : > { %s400_s12 = sshll.u32 %s6671_s3, 4  ;;  %s421_s30 = sshll.u32 %s7882_s8, 4  ;;  %s401_s12 = int_to_ptr.vmem [resolvable:$true] %s400_s12  ;;  %s422_s30 = int_to_ptr.hbm [resolvable:$true] %s421_s30 }
  0x32   : > { %6028 = dma.hbm_to_vmem [thread:$0]  (!%p6787_p6), %s399_s20, 48, %s401_s12, [#allocation12]  }
  0x33   : > { %s6672_s29 = smov [#allocation16]   ;;  %s447_s15 = sshll.u32 %s7884_s10, 4  ;;  %s448_s15 = int_to_ptr.hbm [resolvable:$true] %s447_s15 }
  0x34   : > { %s423_s14 = sshll.u32 %s6672_s29, 4  ;;  %s6673_s27 = smov 1536   ;;  %s424_s14 = int_to_ptr.vmem [resolvable:$true] %s423_s14 }
  0x35   : > { %s6674_s16 = smov 96   ;;  %s6675_s20 = smov [#allocation19]  }
  0x36   : > { %6034 = dma.hbm_to_vmem [thread:$0]  (!%p6787_p6), %s422_s30, 73728, %s424_s14, [#allocation15], %s6673_s27, %s6673_s27, %s6674_s16  }
  0x37   : > { %s449_s3 = sshll.u32 %s6675_s20, 4  ;;  %s462_s26 = sshll.u32 %s7885_s11, 4  ;;  %s450_s3 = int_to_ptr.vmem [resolvable:$true] %s449_s3  ;;  %s463_s26 = int_to_ptr.hbm [resolvable:$true] %s462_s26 }
  0x38   : > { %6040 = dma.hbm_to_vmem [thread:$0]  (!%p6787_p6), %s448_s15, 73728, %s450_s3, [#allocation18], %s7889_s25, %s7889_s25, %s7890_s19  }
  0x39   : > { %s6676_s30 = smov [#allocation20]   ;;  %s5892_s14 = sadd.s32 4294967294, %s6658_s24  }
  0x3a   : > { %s464_s29 = sshll.u32 %s6676_s30, 4  ;;  %s6848_s18 = sadd.s32 1, %s6658_s24   ;;  %s465_s29 = int_to_ptr.vmem [resolvable:$true] %s464_s29 }
  0x3b   : > { %6043 = dma.hbm_to_vmem [thread:$0]  (!%p6787_p6), %s463_s26, 48, %s465_s29, [#allocation21]  }
  0x3c   : > { %s41_s13 = sadd.s32 1, %s6654_s23  ;;  %s38_s27 = ssub.s32 %s6658_s24, %s6848_s18 }
  0x3d   : > { %p48_p7 = scmp.ne.s32.totalorder %s6654_s23, %s6650_s22  ;;  %p39_p8 = scmp.eq.s32.totalorder %s38_s27, 0 }
  0x3e   : > { %p49_p9 = scmp.eq.s32.totalorder %s6658_s24, 0  ;;  %p54_p10 = scmp.ne.s32.totalorder %s6650_s22, %s6646_s21 }
  0x3f   : > { %p309_p11 = scmp.eq.s32.totalorder %s6770_s28, 1  ;;  %p315_p2 = scmp.eq.s32.totalorder %s5892_s14, 1 }
  0x40   : > { %s6860_s15 = scalar_select %p39_p8, %s6654_s23, %s41_s13  }
  0x41   : > { %p50_p12 = por %p49_p9, %p48_p7  ;;  %p6864_p13 = por %p55_p1, %p54_p10 }
  0x42   : > { %p6868_p0 = por %p309_p11, %p48_p7  ;;  %p6063_p5 = scmp.lt.s32.totalorder %s6658_s24, 2 }
  0x43   : > { %s475_s20 = sand.u32 1, %s6654_s23   ;;  %p6874_p6 = por %p315_p2, %p54_p10 }
  0x44   : > { %s5958_s12 = smul.u32 48, %s475_s20  ;;  %p6878_p8 = pnand %p6063_p5, %p50_p12 }
  0x45   : > { %s5959_s26 = smul.u32 48, %s6658_s24  ;;  %s476_s19 = scalar_lea.sflag [#allocation3], %s475_s20 }
  0x46   : > { %s479_s27 = scalar_lea.vmem [#allocation2], %s5958_s12  ;;  %p6542_p9 = pneg %p6878_p8 }
  0x47   : > { %s484_s13 = scalar_lea.hbm %s7874_s0, %s5959_s26  ;;  %s487_s25 = sshll.u32 %s479_s27, 4  ;;  %s488_s25 = int_to_ptr.vmem [resolvable:$true] %s487_s25 }
  0x48   : > { %s485_s14 = sshll.u32 %s484_s13, 4  ;;  %s6545_s7 = scalar_lea.hbm %s7874_s0, 96  ;;  %s486_s14 = int_to_ptr.hbm [resolvable:$true] %s485_s14 }
  0x49   : > { %s6538_s2 = sshra.s32 %s486_s14, 4  ;;  %s6539_s2 = int_to_ptr.hbm [resolvable:$true] %s6538_s2 }
  0x4a   : > { %s6540_s4 = scalar_lea.hbm %s6539_s2, 48  ;;  %p6546_p12 = scmp.lt.s32.totalorder %s6539_s2, %s7874_s0 }
  0x4b   : > { %p6541_p7 = scmp.ne.s32.totalorder %s6539_s2, %s6540_s4  ;;  %p6547_p2 = scmp.lt.s32.totalorder %s6545_s7, %s6540_s4 }
  0x4d   : > { %p6543_p10 = pnand %p6542_p9, %p6541_p7  ;;  %p6548_p5 = por %p6547_p2, %p6546_p12 }
  0x4f   : > { %p6544_p11 = pneg %p6543_p10 }
  0x51   : > { %p6549_p4 = pnand %p6548_p5, %p6544_p11 }
  0x53   : > { %6552 = shalt.err (!%p6549_p4)
}
  0x54   : > { %s7913_s20 = smov 24   ;;  %s7914_s12 = smov 384  }
  0x55   : > { %6047 = dma.hbm_to_vmem [thread:$0]  (!%p6878_p8), %s486_s14, 768, %s488_s25, %s476_s19, %s7914_s12, %s7914_s12, %s7913_s20  }
  0x56   : > { %499 = sbr.rel (%p6775_p3) target bundleno = 2679 (0xa77), region = 68  ;;  %s6902_s5 = sand.u32 (!%p6775_p3), 1, %s6650_s22  }
  0x57   : > { %s5960_s2 = smul.u32 (!%p6775_p3), 48, %s6902_s5  ;;  %s502_s4 = scalar_lea.sflag (!%p6775_p3), [#allocation3], %s6902_s5 }
  0x59   : > { %s6908_s6 = scalar_lea.vmem (!%p6775_p3), [#allocation2], %s5960_s2 }
  0x5b   : > { %6613 = dma.done.wait (%p6864_p13), %s502_s4, 768  }
  0x5c   : > { %6615 = vsyncadd (%p6864_p13), %s502_s4, 4294966528 }
  0x5d   : > { %6617 = dma.done.wait (%p55_p1), [#allocation6], 96  }
  0x5e   : > { %6619 = vsyncadd (%p55_p1), [#allocation6], 4294967200 }
  0x5f   : > { %6621 = dma.done.wait (%p55_p1), [#allocation9], 73728  }
  0x60   : > { %6623 = vsyncadd (%p55_p1), [#allocation9], 4294893568 }
  0x61   : > { %6625 = dma.done.wait (%p55_p1), [#allocation12], 96  }
  0x62   : > { %6627 = vsyncadd (%p55_p1), [#allocation12], 4294967200 }
  0x63   : > { %6629 = dma.done.wait (%p55_p1), [#allocation15], 73776  }
  0x64   : > { %6631 = vsyncadd (%p55_p1), [#allocation15], 4294893520 }
  0x65   : > { %6633 = dma.done.wait (%p55_p1), [#allocation18], 73920  }
  0x66   : > { %6635 = vsyncadd (%p55_p1), [#allocation18], 4294893376 }
  0x67   : > { %6637 = dma.done.wait (%p55_p1), [#allocation21], 48  }
  0x68   : > { %6639 = vsyncadd (%p55_p1), [#allocation21], 4294967248  ;;  %v6939_v0 = vld [vmem:[%s6908_s6] sm:$0xff]  ;;  %v6942_v1 = vld [vmem:[%s6908_s6 + $0x8] sm:$0xff]  ;;  %v6677_v10 = vmov 384.0   ;;  %s6678_s7 = smov 64  }
  0x69   : > { %v6945_v2 = vld [vmem:[%s6908_s6 + $0x10] sm:$0xff]  ;;  %v610_v3 = vadd.f32 %v6942_v1, %v6939_v0  ;;  %v6950_v4 = vld [vmem:[%s6908_s6 + $0x18] sm:$0xff]  ;;  %v6953_v5 = vld [vmem:[%s6908_s6 + $0x20] sm:$0xff]  ;;  %6144 = vrcp.f32 %v6677_v10  ;;  %vm1769_vm7 = vcmask 523264   ;;  %vm1807_vm9 = vcmask 130048   ;;  %s7811_s25 = scalar_lea.vmem [#allocation22], %s5960_s2 }
  0x6a   : > { %v614_v7 = vadd.f32 %v6953_v5, %v6950_v4  ;;  %v6959_v8 = vld [vmem:[%s6908_s6 + $0x28] sm:$0xff]  ;;  %v838_v14 = vld [vmem:[#allocation8 + $0x438] sm:$0xff]  ;;  %v820_v22 = vld [vmem:[#allocation8 + $0x3a8] sm:$0xff]  ;;  %s5961_s19 = smul.u32 48, %s6770_s28  ;;  %s7920_s13 = sld [smem:[#allocation39_spill]] }
  0x6b   : > { %v611_v6 = vadd.f32 %v610_v3, %v6945_v2  ;;  %v982_v15 = vld [vmem:[#allocation8 + $0x8b8] sm:$0xff]  ;;  %1135 = vmatpush.msra.mxu0 %v838_v14  ;;  %v839_v17 = vld [vmem:[#allocation8 + $0x440] sm:$0xff]  ;;  %v829_v18 = vld [vmem:[#allocation8 + $0x3f0] sm:$0xff]  ;;  %s5711_s14 = sshll.u32 %s7811_s25, 4  ;;  %s5699_s28 = scalar_lea.sflag [#allocation4], %s6902_s5  ;;  %s5712_s14 = int_to_ptr.vmem [resolvable:$true] %s5711_s14 }
  0x6c   : > { %v615_v9 = vadd.f32 %v614_v7, %v6959_v8  ;;  %v1126_v16 = vld [vmem:[#allocation8 + $0xd38] sm:$0xff]  ;;  %1158 = vmatpush.msra.mxu1 %v982_v15  ;;  %v973_v19 = vld [vmem:[#allocation8 + $0x870] sm:$0xff]  ;;  %1204 = vmatpush.msra.mxu3 %v839_v17  ;;  %v964_v24 = vld [vmem:[#allocation8 + $0x828] sm:$0xff] }
  0x6d   : > { %612 = vadd.xlane.f32.xlu0 %v611_v6  ;;  %1181 = vmatpush.msra.mxu2 %v1126_v16  ;;  %v1117_v20 = vld [vmem:[#allocation8 + $0xcf0] sm:$0xff]  ;;  %v830_v21 = vld [vmem:[#allocation8 + $0x3f8] sm:$0xff]  ;;  %v1108_v25 = vld [vmem:[#allocation8 + $0xca8] sm:$0xff] }
  0x6e   : > { %1136 = vmatpush.msra.mxu0 %v829_v18  ;;  %1159 = vmatpush.msra.mxu1 %v973_v19  ;;  %v821_v26 = vld [vmem:[#allocation8 + $0x3b0] sm:$0xff]  ;;  %v811_v27 = vld [vmem:[#allocation8 + $0x360] sm:$0xff]  ;;  %v812_v30 = vld [vmem:[#allocation8 + $0x368] sm:$0xff] }
  0x6f   : > { %v6145_v11 = vpop.eup %6144  ;;  %1182 = vmatpush.msra.mxu2 %v1117_v20  ;;  %1205 = vmatpush.msra.mxu3 %v830_v21  ;;  %v955_v28 = vld [vmem:[#allocation8 + $0x7e0] sm:$0xff]  ;;  %v802_v31 = vld [vmem:[#allocation8 + $0x318] sm:$0xff]  ;;  %v793_v36 = vld [vmem:[#allocation8 + $0x2d0] sm:$0xff] }
  0x70   : > { %v619_v12 = vmul.f32 384.0, %v6145_v11  ;;  %1137 = vmatpush.msra.mxu0 %v820_v22  ;;  %1160 = vmatpush.msra.mxu1 %v964_v24  ;;  %v1099_v29 = vld [vmem:[#allocation8 + $0xc60] sm:$0xff]  ;;  %v946_v32 = vld [vmem:[#allocation8 + $0x798] sm:$0xff]  ;;  %vm623_vm0 = vweird.f32 %v6145_v11  ;;  %v937_v37 = vld [vmem:[#allocation8 + $0x750] sm:$0xff]  ;;  %s5710_s27 = scalar_lea.hbm %s7920_s13, %s5961_s19  ;;  %s6588_s2 = scalar_lea.hbm %s7920_s13, 96 }
  0x71   : > { %1183 = vmatpush.msra.mxu2 %v1108_v25  ;;  %1206 = vmatpush.msra.mxu3 %v821_v26  ;;  %v1090_v34 = vld [vmem:[#allocation8 + $0xc18] sm:$0xff]  ;;  %v803_v35 = vld [vmem:[#allocation8 + $0x320] sm:$0xff]  ;;  %v1081_v38 = vld [vmem:[#allocation8 + $0xbd0] sm:$0xff]  ;;  %s5713_s30 = sshll.u32 %s5710_s27, 4  ;;  %s5714_s30 = int_to_ptr.hbm [resolvable:$true] %s5713_s30 }
  0x72   : > { %v620_v13 = vsub.f32 1.0, %v619_v12  ;;  %1138 = vmatpush.msra.mxu0 %v811_v27  ;;  %1161 = vmatpush.msra.mxu1 %v955_v28  ;;  %v794_v39 = vld [vmem:[#allocation8 + $0x2d8] sm:$0xff]  ;;  %v784_v40 = vld [vmem:[#allocation8 + $0x288] sm:$0xff]  ;;  %v785_v44 = vld [vmem:[#allocation8 + $0x290] sm:$0xff]  ;;  %s6582_s26 = sshra.s32 %s5714_s30, 4  ;;  %s6583_s26 = int_to_ptr.hbm [resolvable:$true] %s6582_s26 }
  0x73   : > { %1184 = vmatpush.msra.mxu2 %v1099_v29  ;;  %1207 = vmatpush.msra.mxu3 %v812_v30  ;;  %v928_v41 = vld [vmem:[#allocation8 + $0x708] sm:$0xff]  ;;  %v775_v45 = vld [vmem:[#allocation8 + $0x240] sm:$0xff]  ;;  %v766_v51 = vld [vmem:[#allocation8 + $0x1f8] sm:$0xff]  ;;  %s6584_s20 = scalar_lea.hbm %s6583_s26, 48  ;;  %p6589_p13 = scmp.lt.s32.totalorder %s6583_s26, %s7920_s13 }
  0x74   : > { %v621_v23 = vmul.f32 %v6145_v11, %v620_v13  ;;  %1139 = vmatpush.msra.mxu0 %v802_v31  ;;  %1162 = vmatpush.msra.mxu1 %v946_v32  ;;  %v1072_v43 = vld [vmem:[#allocation8 + $0xb88] sm:$0xff]  ;;  %v919_v46 = vld [vmem:[#allocation8 + $0x6c0] sm:$0xff]  ;;  %v910_v52 = vld [vmem:[#allocation8 + $0x678] sm:$0xff]  ;;  %p6585_p1 = scmp.ne.s32.totalorder %s6583_s26, %s6584_s20  ;;  %p6590_p8 = scmp.lt.s32.totalorder %s6588_s2, %s6584_s20 }
  0x75   : > { %616 = vadd.xlane.f32.xlu0 %v615_v9  ;;  %1185 = vmatpush.msra.mxu2 %v1090_v34  ;;  %v1063_v48 = vld [vmem:[#allocation8 + $0xb40] sm:$0xff]  ;;  %v776_v49 = vld [vmem:[#allocation8 + $0x248] sm:$0xff]  ;;  %v1054_v53 = vld [vmem:[#allocation8 + $0xaf8] sm:$0xff] }
  0x76   : > { %v622_v33 = vadd.f32 %v6145_v11, %v621_v23  ;;  %1208 = vmatpush.msra.mxu3 %v803_v35  ;;  %1140 = vmatpush.msra.mxu0 %v793_v36  ;;  %v767_v54 = vld [vmem:[#allocation8 + $0x200] sm:$0xff]  ;;  %v757_v58 = vld [vmem:[#allocation8 + $0x1b0] sm:$0xff]  ;;  %v758_v61 = vld [vmem:[#allocation8 + $0x1b8] sm:$0xff]  ;;  %p6586_p3 = pnand %p6585_p1, %p6868_p0  ;;  %p6591_p7 = por %p6590_p8, %p6589_p13 }
  0x77   : > { %1163 = vmatpush.msra.mxu1 %v937_v37  ;;  %1186 = vmatpush.msra.mxu2 %v1081_v38  ;;  %v901_v59 = vld [vmem:[#allocation8 + $0x630] sm:$0xff]  ;;  %v739_v9 = vld [vmem:[#allocation8 + $0x120] sm:$0xff]  ;;  %v740_v15 = vld [vmem:[#allocation8 + $0x128] sm:$0xff] }
  0x78   : > { %v6962_v42 = vsel %vm623_vm0, %v6145_v11, %v622_v33  ;;  %1209 = vmatpush.msra.mxu3 %v794_v39  ;;  %1141 = vmatpush.msra.mxu0 %v784_v40  ;;  %v1045_v60 = vld [vmem:[#allocation8 + $0xab0] sm:$0xff]  ;;  %v883_v10 = vld [vmem:[#allocation8 + $0x5a0] sm:$0xff]  ;;  %v730_v16 = vld [vmem:[#allocation8 + $0xd8] sm:$0xff]  ;;  %p6587_p4 = pneg %p6586_p3 }
  0x79   : > { %1164 = vmatpush.msra.mxu1 %v928_v41  ;;  %1187 = vmatpush.msra.mxu2 %v1072_v43  ;;  %v749_v3 = vld [vmem:[#allocation8 + $0x170] sm:$0xff]  ;;  %v1027_v12 = vld [vmem:[#allocation8 + $0xa20] sm:$0xff]  ;;  %v874_v17 = vld [vmem:[#allocation8 + $0x558] sm:$0xff] }
  0x7a   : > { %1210 = vmatpush.msra.mxu3 %v785_v44  ;;  %1142 = vmatpush.msra.mxu0 %v775_v45  ;;  %v1018_v18 = vld [vmem:[#allocation8 + $0x9d8] sm:$0xff]  ;;  %v731_v22 = vld [vmem:[#allocation8 + $0xe0] sm:$0xff]  ;;  %v721_v23 = vld [vmem:[#allocation8 + $0x90] sm:$0xff]  ;;  %p6592_p9 = pnand %p6591_p7, %p6587_p4 }
  0x7b   : > { %1165 = vmatpush.msra.mxu1 %v919_v46  ;;  %1188 = vmatpush.msra.mxu2 %v1063_v48  ;;  %v865_v24 = vld [vmem:[#allocation8 + $0x510] sm:$0xff]  ;;  %v712_v27 = vld [vmem:[#allocation8 + $0x48] sm:$0xff]  ;;  %v703_v32 = vld [vmem:[#allocation8] sm:$0xff] }
  0x7c   : > { %1211 = vmatpush.msra.mxu3 %v776_v49  ;;  %1143 = vmatpush.msra.mxu0 %v766_v51  ;;  %v1009_v25 = vld [vmem:[#allocation8 + $0x990] sm:$0xff]  ;;  %v1000_v28 = vld [vmem:[#allocation8 + $0x948] sm:$0xff]  ;;  %v847_v33 = vld [vmem:[#allocation8 + $0x480] sm:$0xff] }
  0x7d   : > { %1166 = vmatpush.msra.mxu1 %v910_v52  ;;  %1189 = vmatpush.msra.mxu2 %v1054_v53  ;;  %v713_v31 = vld [vmem:[#allocation8 + $0x50] sm:$0xff]  ;;  %v991_v35 = vld [vmem:[#allocation8 + $0x900] sm:$0xff]  ;;  %v704_v36 = vld [vmem:[#allocation8 + $0x8] sm:$0xff] }
  0x7e   : > { %1212 = vmatpush.msra.mxu3 %v767_v54  ;;  %1144 = vmatpush.msra.mxu0 %v757_v58  ;;  %v983_v37 = vld [vmem:[#allocation8 + $0x8c0] sm:$0xff]  ;;  %v840_v39 = vld [vmem:[#allocation8 + $0x448] sm:$0xff]  ;;  %v974_v41 = vld [vmem:[#allocation8 + $0x878] sm:$0xff] }
  0x7f   : > { %1167 = vmatpush.msra.mxu1 %v901_v59  ;;  %1190 = vmatpush.msra.mxu2 %v1045_v60  ;;  %v1127_v38 = vld [vmem:[#allocation8 + $0xd40] sm:$0xff]  ;;  %v984_v40 = vld [vmem:[#allocation8 + $0x8c8] sm:$0xff]  ;;  %v1118_v43 = vld [vmem:[#allocation8 + $0xcf8] sm:$0xff] }
  0x80   : > { %1213 = vmatpush.msra.mxu3 %v758_v61  ;;  %v831_v44 = vld [vmem:[#allocation8 + $0x400] sm:$0xff]  ;;  %v965_v46 = vld [vmem:[#allocation8 + $0x830] sm:$0xff]  ;;  %v822_v48 = vld [vmem:[#allocation8 + $0x3b8] sm:$0xff] }
  0x81   : > { %v975_v45 = vld [vmem:[#allocation8 + $0x880] sm:$0xff]  ;;  %v966_v49 = vld [vmem:[#allocation8 + $0x838] sm:$0xff]  ;;  %v1100_v51 = vld [vmem:[#allocation8 + $0xc68] sm:$0xff] }
  0x82   : > { %1214 = vmatpush.msra.mxu3 %v749_v3  ;;  %v813_v52 = vld [vmem:[#allocation8 + $0x370] sm:$0xff]  ;;  %v947_v54 = vld [vmem:[#allocation8 + $0x7a0] sm:$0xff]  ;;  %v804_v59 = vld [vmem:[#allocation8 + $0x328] sm:$0xff] }
  0x83   : > { %v957_v53 = vld [vmem:[#allocation8 + $0x7f0] sm:$0xff]  ;;  %v1091_v58 = vld [vmem:[#allocation8 + $0xc20] sm:$0xff]  ;;  %v948_v60 = vld [vmem:[#allocation8 + $0x7a8] sm:$0xff] }
  0x84   : > { %1215 = vmatpush.msra.mxu3 %v740_v15  ;;  %v938_v61 = vld [vmem:[#allocation8 + $0x758] sm:$0xff]  ;;  %v912_v15 = vld [vmem:[#allocation8 + $0x688] sm:$0xff] }
  0x85   : > { %v786_v3 = vld [vmem:[#allocation8 + $0x298] sm:$0xff] }
  0x86   : > { %1216 = vmatpush.msra.mxu3 %v731_v22  ;;  %v903_v22 = vld [vmem:[#allocation8 + $0x640] sm:$0xff] }
  0xe0   : > { %v613_v47 = vpop.xlane.xlu0 %612 }
  0xe1   : > { %v625_v50 = vmul.f32 %v6962_v42, %v613_v47  ;;  %v1109_v47 = vld [vmem:[#allocation8 + $0xcb0] sm:$0xff] }
  0xe3   : > { %v6966_v55 = vsub.f32 %v6939_v0, %v625_v50  ;;  %v6969_v56 = vsub.f32 %v6942_v1, %v625_v50  ;;  %v6972_v57 = vsub.f32 %v6945_v2, %v625_v50  ;;  %v748_v0 = vld [vmem:[#allocation8 + $0x168] sm:$0xff] }
  0xe4   : > { %v892_v1 = vld [vmem:[#allocation8 + $0x5e8] sm:$0xff]  ;;  %1145 = vmatpush.msra.mxu0 %v748_v0  ;;  %v939_v0 = vld [vmem:[#allocation8 + $0x760] sm:$0xff] }
  0xe5   : > { %v633_v62 = vmul.f32 %v6966_v55, %v6966_v55  ;;  %v634_v63 = vmul.f32 %v6969_v56, %v6969_v56  ;;  %v1036_v2 = vld [vmem:[#allocation8 + $0xa68] sm:$0xff]  ;;  %v635_v6 = vmul.f32 %v6972_v57, %v6972_v57  ;;  %1168 = vmatpush.msra.mxu1 %v892_v1  ;;  %v929_v1 = vld [vmem:[#allocation8 + $0x710] sm:$0xff] }
  0xe6   : > { %1191 = vmatpush.msra.mxu2 %v1036_v2  ;;  %1146 = vmatpush.msra.mxu0 %v739_v9  ;;  %v956_v50 = vld [vmem:[#allocation8 + $0x7e8] sm:$0xff]  ;;  %v1073_v2 = vld [vmem:[#allocation8 + $0xb90] sm:$0xff] }
  0xe7   : > { %v639_v7 = vadd.f32 %v634_v63, %v633_v62  ;;  %1169 = vmatpush.msra.mxu1 %v883_v10  ;;  %v1082_v62 = vld [vmem:[#allocation8 + $0xbd8] sm:$0xff]  ;;  %v795_v63 = vld [vmem:[#allocation8 + $0x2e0] sm:$0xff]  ;;  %v1064_v9 = vld [vmem:[#allocation8 + $0xb48] sm:$0xff] }
  0xe8   : > { %v617_v11 = vpop.xlane.xlu0 %616  ;;  %1192 = vmatpush.msra.mxu2 %v1027_v12  ;;  %1147 = vmatpush.msra.mxu0 %v730_v16  ;;  %v777_v10 = vld [vmem:[#allocation8 + $0x250] sm:$0xff]  ;;  %v911_v12 = vld [vmem:[#allocation8 + $0x680] sm:$0xff]  ;;  %v902_v16 = vld [vmem:[#allocation8 + $0x638] sm:$0xff] }
  0xe9   : > { %v626_v13 = vmul.f32 %v6962_v42, %v617_v11  ;;  %v640_v14 = vadd.f32 %v639_v7, %v635_v6  ;;  %1170 = vmatpush.msra.mxu1 %v874_v17  ;;  %v930_v6 = vld [vmem:[#allocation8 + $0x718] sm:$0xff]  ;;  %v920_v7 = vld [vmem:[#allocation8 + $0x6c8] sm:$0xff]  ;;  %v921_v11 = vld [vmem:[#allocation8 + $0x6d0] sm:$0xff] }
  0xea   : > { %1193 = vmatpush.msra.mxu2 %v1018_v18  ;;  %1148 = vmatpush.msra.mxu0 %v721_v23  ;;  %v1046_v17 = vld [vmem:[#allocation8 + $0xab8] sm:$0xff]  ;;  %v759_v18 = vld [vmem:[#allocation8 + $0x1c0] sm:$0xff]  ;;  %v893_v23 = vld [vmem:[#allocation8 + $0x5f0] sm:$0xff] }
  0xeb   : > { %v6982_v19 = vsub.f32 %v6950_v4, %v626_v13  ;;  %v6985_v20 = vsub.f32 %v6953_v5, %v626_v13  ;;  %v6988_v21 = vsub.f32 %v6959_v8, %v626_v13  ;;  %641 = vadd.xlane.f32.xlu1 %v640_v14  ;;  %v722_v5 = vld [vmem:[#allocation8 + $0x98] sm:$0xff]  ;;  %v856_v8 = vld [vmem:[#allocation8 + $0x4c8] sm:$0xff]  ;;  %1171 = vmatpush.msra.mxu1 %v865_v24  ;;  %v1055_v13 = vld [vmem:[#allocation8 + $0xb00] sm:$0xff] }
  0xec   : > { %1194 = vmatpush.msra.mxu2 %v1009_v25  ;;  %1217 = vmatpush.msra.mxu3 %v722_v5  ;;  %v768_v14 = vld [vmem:[#allocation8 + $0x208] sm:$0xff]  ;;  %v1037_v24 = vld [vmem:[#allocation8 + $0xa70] sm:$0xff]  ;;  %v750_v25 = vld [vmem:[#allocation8 + $0x178] sm:$0xff] }
  0xed   : > { %v636_v26 = vmul.f32 %v6982_v19, %v6982_v19  ;;  %v637_v4 = vmul.f32 %v6985_v20, %v6985_v20  ;;  %v638_v29 = vmul.f32 %v6988_v21, %v6988_v21  ;;  %1149 = vmatpush.msra.mxu0 %v712_v27  ;;  %1172 = vmatpush.msra.mxu1 %v856_v8  ;;  %v1028_v5 = vld [vmem:[#allocation8 + $0xa28] sm:$0xff]  ;;  %v741_v27 = vld [vmem:[#allocation8 + $0x130] sm:$0xff] }
  0xee   : > { %1195 = vmatpush.msra.mxu2 %v1000_v28  ;;  %1218 = vmatpush.msra.mxu3 %v713_v31  ;;  %v885_v8 = vld [vmem:[#allocation8 + $0x5b0] sm:$0xff]  ;;  %v875_v28 = vld [vmem:[#allocation8 + $0x560] sm:$0xff]  ;;  %v876_v31 = vld [vmem:[#allocation8 + $0x568] sm:$0xff] }
  0xef   : > { %v643_v30 = vadd.f32 %v637_v4, %v636_v26  ;;  %1150 = vmatpush.msra.mxu0 %v703_v32  ;;  %1173 = vmatpush.msra.mxu1 %v847_v33  ;;  %v894_v26 = vld [vmem:[#allocation8 + $0x5f8] sm:$0xff]  ;;  %v884_v4 = vld [vmem:[#allocation8 + $0x5a8] sm:$0xff] }
  0xf0   : > { %1196 = vmatpush.msra.mxu2 %v991_v35  ;;  %1219 = vmatpush.msra.mxu3 %v704_v36  ;;  %v866_v32 = vld [vmem:[#allocation8 + $0x518] sm:$0xff]  ;;  %v867_v35 = vld [vmem:[#allocation8 + $0x520] sm:$0xff]  ;;  %v857_v36 = vld [vmem:[#allocation8 + $0x4d0] sm:$0xff] }
  0xf1   : > { %v644_v34 = vadd.f32 %v643_v30, %v638_v29  ;;  %1227 = vmatpush.msrb.mxu0 %v983_v37  ;;  %1250 = vmatpush.msrb.mxu1 %v1127_v38  ;;  %v1019_v29 = vld [vmem:[#allocation8 + $0x9e0] sm:$0xff]  ;;  %v732_v30 = vld [vmem:[#allocation8 + $0xe8] sm:$0xff]  ;;  %v1010_v33 = vld [vmem:[#allocation8 + $0x998] sm:$0xff] }
  0xf2   : > { %1273 = vmatpush.msrb.mxu2 %v840_v39  ;;  %1296 = vmatpush.msrb.mxu3 %v984_v40  ;;  %v1001_v37 = vld [vmem:[#allocation8 + $0x950] sm:$0xff]  ;;  %v714_v38 = vld [vmem:[#allocation8 + $0x58] sm:$0xff]  ;;  %v848_v40 = vld [vmem:[#allocation8 + $0x488] sm:$0xff] }
  0xf3   : > { %645 = vadd.xlane.f32.xlu1 %v644_v34  ;;  %1228 = vmatpush.msrb.mxu0 %v974_v41  ;;  %v723_v34 = vld [vmem:[#allocation8 + $0xa0] sm:$0xff]  ;;  %v858_v39 = vld [vmem:[#allocation8 + $0x4d8] sm:$0xff]  ;;  %v992_v41 = vld [vmem:[#allocation8 + $0x908] sm:$0xff] }
  0xf4   : > { %1251 = vmatpush.msrb.mxu1 %v1118_v43  ;;  %1274 = vmatpush.msrb.mxu2 %v831_v44  ;;  %v705_v43 = vld [vmem:[#allocation8 + $0x10] sm:$0xff] }
  0xf5   : > { %1297 = vmatpush.msrb.mxu3 %v975_v45  ;;  %1229 = vmatpush.msrb.mxu0 %v965_v46  ;;  %v849_v44 = vld [vmem:[#allocation8 + $0x490] sm:$0xff] }
  0xf6   : > { %1252 = vmatpush.msrb.mxu1 %v1109_v47  ;;  %1275 = vmatpush.msrb.mxu2 %v822_v48 }
  0xf7   : > { %1298 = vmatpush.msrb.mxu3 %v966_v49  ;;  %1230 = vmatpush.msrb.mxu0 %v956_v50 }
  0xf8   : > { %1253 = vmatpush.msrb.mxu1 %v1100_v51  ;;  %1276 = vmatpush.msrb.mxu2 %v813_v52 }
  0xf9   : > { %1299 = vmatpush.msrb.mxu3 %v957_v53  ;;  %1231 = vmatpush.msrb.mxu0 %v947_v54 }
  0xfa   : > { %1254 = vmatpush.msrb.mxu1 %v1091_v58  ;;  %1277 = vmatpush.msrb.mxu2 %v804_v59  ;;  %v608_v58 = vld [vmem:[#allocation5] sm:$0x7] }
  0xfb   : > { %1300 = vmatpush.msrb.mxu3 %v948_v60  ;;  %1232 = vmatpush.msrb.mxu0 %v938_v61  ;;  %v6998_v61 = vld [vmem:[#allocation7] sm:$0x7] }
  0xfc   : > { %1255 = vmatpush.msrb.mxu1 %v1082_v62  ;;  %1278 = vmatpush.msrb.mxu2 %v795_v63 }
  0xfd   : > { %1301 = vmatpush.msrb.mxu3 %v939_v0  ;;  %1233 = vmatpush.msrb.mxu0 %v929_v1  ;;  %v678_v0 = vperm.slane %v608_v58, 0  ;;  %v679_v1 = vperm.slane %v608_v58, 1 }
  0xfe   : > { %1256 = vmatpush.msrb.mxu1 %v1073_v2  ;;  %1279 = vmatpush.msrb.mxu2 %v786_v3  ;;  %v680_v2 = vperm.slane %v608_v58, 2  ;;  %v691_v3 = vperm.slane %v6998_v61, 0  ;;  %v1075_v58 = vld [vmem:[#allocation8 + $0xba0] sm:$0xff] }
  0xff   : > { %1302 = vmatpush.msrb.mxu3 %v930_v6  ;;  %1234 = vmatpush.msrb.mxu0 %v920_v7  ;;  %v692_v6 = vperm.slane %v6998_v61, 1 }
 0x100   : > { %1257 = vmatpush.msrb.mxu1 %v1064_v9  ;;  %1280 = vmatpush.msrb.mxu2 %v777_v10  ;;  %v693_v10 = vperm.slane %v6998_v61, 2  ;;  %v922_v61 = vld [vmem:[#allocation8 + $0x6d8] sm:$0xff] }
 0x101   : > { %1303 = vmatpush.msrb.mxu3 %v921_v11  ;;  %1235 = vmatpush.msrb.mxu0 %v911_v12 }
 0x102   : > { %1258 = vmatpush.msrb.mxu1 %v1055_v13  ;;  %1281 = vmatpush.msrb.mxu2 %v768_v14 }
 0x103   : > { %1304 = vmatpush.msrb.mxu3 %v912_v15  ;;  %1236 = vmatpush.msrb.mxu0 %v902_v16 }
 0x104   : > { %1259 = vmatpush.msrb.mxu1 %v1046_v17  ;;  %1282 = vmatpush.msrb.mxu2 %v759_v18 }
 0x105   : > { %1305 = vmatpush.msrb.mxu3 %v903_v22  ;;  %1237 = vmatpush.msrb.mxu0 %v893_v23 }
 0x106   : > { %1260 = vmatpush.msrb.mxu1 %v1037_v24  ;;  %1283 = vmatpush.msrb.mxu2 %v750_v25 }
 0x107   : > { %1306 = vmatpush.msrb.mxu3 %v894_v26  ;;  %1238 = vmatpush.msrb.mxu0 %v884_v4  ;;  %v1128_v26 = vld [vmem:[#allocation8 + $0xd48] sm:$0xff] }
 0x108   : > { %1261 = vmatpush.msrb.mxu1 %v1028_v5  ;;  %1284 = vmatpush.msrb.mxu2 %v741_v27  ;;  %v1119_v5 = vld [vmem:[#allocation8 + $0xd00] sm:$0xff]  ;;  %v832_v27 = vld [vmem:[#allocation8 + $0x408] sm:$0xff] }
 0x109   : > { %1307 = vmatpush.msrb.mxu3 %v885_v8  ;;  %1239 = vmatpush.msrb.mxu0 %v875_v28 }
 0x10a   : > { %1262 = vmatpush.msrb.mxu1 %v1019_v29  ;;  %1285 = vmatpush.msrb.mxu2 %v732_v30  ;;  %v976_v30 = vld [vmem:[#allocation8 + $0x888] sm:$0xff] }
 0x10b   : > { %1308 = vmatpush.msrb.mxu3 %v876_v31  ;;  %1240 = vmatpush.msrb.mxu0 %v866_v32  ;;  %v1120_v31 = vld [vmem:[#allocation8 + $0xd08] sm:$0xff]  ;;  %v1110_v32 = vld [vmem:[#allocation8 + $0xcb8] sm:$0xff] }
 0x10c   : > { %1263 = vmatpush.msrb.mxu1 %v1010_v33  ;;  %1286 = vmatpush.msrb.mxu2 %v723_v34  ;;  %v823_v33 = vld [vmem:[#allocation8 + $0x3c0] sm:$0xff] }
 0x10d   : > { %1309 = vmatpush.msrb.mxu3 %v867_v35  ;;  %1241 = vmatpush.msrb.mxu0 %v857_v36 }
 0x10e   : > { %1264 = vmatpush.msrb.mxu1 %v1001_v37  ;;  %1287 = vmatpush.msrb.mxu2 %v714_v38  ;;  %v967_v37 = vld [vmem:[#allocation8 + $0x840] sm:$0xff] }
 0x10f   : > { %1310 = vmatpush.msrb.mxu3 %v858_v39  ;;  %1242 = vmatpush.msrb.mxu0 %v848_v40  ;;  %v1111_v38 = vld [vmem:[#allocation8 + $0xcc0] sm:$0xff]  ;;  %v958_v40 = vld [vmem:[#allocation8 + $0x7f8] sm:$0xff] }
 0x110   : > { %1265 = vmatpush.msrb.mxu1 %v992_v41  ;;  %1288 = vmatpush.msrb.mxu2 %v705_v43  ;;  %v1102_v41 = vld [vmem:[#allocation8 + $0xc78] sm:$0xff] }
 0x111   : > { %1311 = vmatpush.msrb.mxu3 %v849_v44  ;;  %v1092_v44 = vld [vmem:[#allocation8 + $0xc28] sm:$0xff] }
 0x15e   : > { %v642_v45 = vpop.xlane.xlu1 %641 }
 0x15f   : > { %v647_v46 = vmul.f32 %v642_v45, %v6962_v42  ;;  %v805_v45 = vld [vmem:[#allocation8 + $0x330] sm:$0xff] }
 0x161   : > { %v649_v47 = vadd.f32 1e-05, %v647_v46  ;;  %v949_v46 = vld [vmem:[#allocation8 + $0x7b0] sm:$0xff] }
 0x163   : > { %6146 = vrsqrt.f32 %v649_v47  ;;  %vm657_vm2 = vweird.f32 %v649_v47 }
 0x166   : > { %v646_v48 = vpop.xlane.xlu1 %645 }
 0x167   : > { %v648_v49 = vmul.f32 %v646_v48, %v6962_v42  ;;  %v1083_v48 = vld [vmem:[#allocation8 + $0xbe0] sm:$0xff] }
 0x169   : > { %v6147_v50 = vpop.eup %6146  ;;  %v650_v51 = vadd.f32 1e-05, %v648_v49  ;;  %v796_v49 = vld [vmem:[#allocation8 + $0x2e8] sm:$0xff] }
 0x16a   : > { %v652_v52 = vmul.f32 %v6147_v50, %v649_v47  ;;  %vm658_vm1 = vweird.f32 %v6147_v50  ;;  %v1093_v47 = vld [vmem:[#allocation8 + $0xc30] sm:$0xff] }
 0x16b   : > { %6148 = vrsqrt.f32 %v650_v51  ;;  %vm659_vm3 = vmor %vm657_vm2, %vm658_vm1  ;;  %vm667_vm5 = vweird.f32 %v650_v51 }
 0x16c   : > { %v653_v53 = vmul.f32 %v6147_v50, %v652_v52  ;;  %v1074_v52 = vld [vmem:[#allocation8 + $0xb98] sm:$0xff] }
 0x16e   : > { %v654_v54 = vmul.f32 0.5, %v653_v53  ;;  %v787_v53 = vld [vmem:[#allocation8 + $0x2a0] sm:$0xff] }
 0x170   : > { %v655_v59 = vsub.f32 1.5, %v654_v54  ;;  %v931_v54 = vld [vmem:[#allocation8 + $0x720] sm:$0xff] }
 0x171   : > { %v6149_v60 = vpop.eup %6148 }
 0x172   : > { %v656_v62 = vmul.f32 %v6147_v50, %v655_v59  ;;  %v662_v63 = vmul.f32 %v6149_v60, %v650_v51  ;;  %vm668_vm4 = vweird.f32 %v6149_v60  ;;  %v1084_v51 = vld [vmem:[#allocation8 + $0xbe8] sm:$0xff]  ;;  %v1065_v59 = vld [vmem:[#allocation8 + $0xb50] sm:$0xff] }
 0x173   : > { %vm669_vm6 = vmor %vm667_vm5, %vm668_vm4 }
 0x174   : > { %v660_v7 = vsel %vm659_vm3, %v6147_v50, %v656_v62  ;;  %v663_v9 = vmul.f32 %v6149_v60, %v662_v63  ;;  %v940_v50 = vld [vmem:[#allocation8 + $0x768] sm:$0xff]  ;;  %v1066_v62 = vld [vmem:[#allocation8 + $0xb58] sm:$0xff] }
 0x175   : > { %v671_v11 = vmul.f32 %v660_v7, %v6966_v55  ;;  %v672_v12 = vmul.f32 %v660_v7, %v6969_v56  ;;  %v673_v13 = vmul.f32 %v660_v7, %v6972_v57  ;;  %v841_v55 = vld [vmem:[#allocation8 + $0x450] sm:$0xff]  ;;  %v1056_v63 = vld [vmem:[#allocation8 + $0xb08] sm:$0xff] }
 0x176   : > { %v664_v14 = vmul.f32 0.5, %v663_v9  ;;  %v985_v56 = vld [vmem:[#allocation8 + $0x8d0] sm:$0xff]  ;;  %v904_v7 = vld [vmem:[#allocation8 + $0x648] sm:$0xff] }
 0x177   : > { %v684_v15 = vmul.f32 %v678_v0, %v671_v11  ;;  %v685_v16 = vmul.f32 %v679_v1, %v672_v12  ;;  %v686_v17 = vmul.f32 %v680_v2, %v673_v13  ;;  %v1129_v57 = vld [vmem:[#allocation8 + $0xd50] sm:$0xff]  ;;  %v1048_v9 = vld [vmem:[#allocation8 + $0xac8] sm:$0xff]  ;;  %v751_v11 = vld [vmem:[#allocation8 + $0x180] sm:$0xff] }
 0x178   : > { %v665_v18 = vsub.f32 1.5, %v664_v14  ;;  %v895_v12 = vld [vmem:[#allocation8 + $0x600] sm:$0xff]  ;;  %v1029_v14 = vld [vmem:[#allocation8 + $0xa30] sm:$0xff] }
 0x179   : > { %v7006_v22 = vadd.f32 %v691_v3, %v684_v15  ;;  %v7008_v23 = vadd.f32 %v692_v6, %v685_v16  ;;  %v7010_v24 = vadd.f32 %v693_v10, %v686_v17  ;;  %v1039_v13 = vld [vmem:[#allocation8 + $0xa80] sm:$0xff]  ;;  %v742_v15 = vld [vmem:[#allocation8 + $0x138] sm:$0xff] }
 0x17a   : > { %v666_v25 = vmul.f32 %v6149_v60, %v665_v18  ;;  %v886_v16 = vld [vmem:[#allocation8 + $0x5b8] sm:$0xff]  ;;  %v1020_v18 = vld [vmem:[#allocation8 + $0x9e8] sm:$0xff] }
 0x17b   : > { %1151 = vmatmul.f32.vlgmr.msra.gmra.mxu0 %v7006_v22  ;;  %1174 = vmatmul.f32.vlgmr.msra.gmra.mxu1 %v7008_v23  ;;  %v1030_v17 = vld [vmem:[#allocation8 + $0xa38] sm:$0xff] }
 0x17c   : > { %v670_v4 = vsel %vm669_vm6, %v6149_v60, %v666_v25  ;;  %1197 = vmatmul.f32.vlgmr.msra.gmra.mxu2 %v7010_v24  ;;  %1220 = vmatmul.f32.vlgmr.msra.gmra.mxu3 %v7006_v22  ;;  %v778_v60 = vld [vmem:[#allocation8 + $0x258] sm:$0xff]  ;;  %v733_v25 = vld [vmem:[#allocation8 + $0xf0] sm:$0xff] }
 0x17d   : > { %v674_v8 = vmul.f32 %v670_v4, %v6982_v19  ;;  %v675_v28 = vmul.f32 %v670_v4, %v6985_v20  ;;  %v676_v29 = vmul.f32 %v670_v4, %v6988_v21  ;;  %1319 = vmatpush.msra.mxu0 %v1128_v26  ;;  %1342 = vmatpush.msra.mxu1 %v841_v55  ;;  %v1101_v19 = vld [vmem:[#allocation8 + $0xc70] sm:$0xff]  ;;  %v814_v20 = vld [vmem:[#allocation8 + $0x378] sm:$0xff]  ;;  %v868_v4 = vld [vmem:[#allocation8 + $0x528] sm:$0xff] }
 0x17e   : > { %1365 = vmatpush.msra.mxu2 %v985_v56  ;;  %1388 = vmatpush.msra.mxu3 %v1129_v57  ;;  %v877_v26 = vld [vmem:[#allocation8 + $0x570] sm:$0xff]  ;;  %v1011_v56 = vld [vmem:[#allocation8 + $0x9a0] sm:$0xff]  ;;  %v724_v57 = vld [vmem:[#allocation8 + $0xa8] sm:$0xff] }
 0x17f   : > { %v687_v34 = vmul.f32 %v678_v0, %v674_v8  ;;  %v688_v35 = vmul.f32 %v679_v1, %v675_v28  ;;  %v689_v36 = vmul.f32 %v680_v2, %v676_v29  ;;  %1320 = vmatpush.msra.mxu0 %v1119_v5  ;;  %1343 = vmatpush.msra.mxu1 %v832_v27  ;;  %v769_v0 = vld [vmem:[#allocation8 + $0x210] sm:$0xff]  ;;  %v1012_v5 = vld [vmem:[#allocation8 + $0x9a8] sm:$0xff]  ;;  %v1002_v27 = vld [vmem:[#allocation8 + $0x958] sm:$0xff] }
 0x180   : > { %1366 = vmatpush.msra.mxu2 %v976_v30  ;;  %1389 = vmatpush.msra.mxu3 %v1120_v31  ;;  %v913_v1 = vld [vmem:[#allocation8 + $0x690] sm:$0xff]  ;;  %v715_v8 = vld [vmem:[#allocation8 + $0x60] sm:$0xff]  ;;  %v706_v31 = vld [vmem:[#allocation8 + $0x18] sm:$0xff] }
 0x181   : > { %v7019_v21 = vadd.f32 %v691_v3, %v687_v34  ;;  %v7021_v39 = vadd.f32 %v692_v6, %v688_v35  ;;  %1321 = vmatpush.msra.mxu0 %v1110_v32  ;;  %1344 = vmatpush.msra.mxu1 %v823_v33  ;;  %v7023_v43 = vadd.f32 %v693_v10, %v689_v36  ;;  %v1057_v2 = vld [vmem:[#allocation8 + $0xb10] sm:$0xff]  ;;  %v1047_v3 = vld [vmem:[#allocation8 + $0xac0] sm:$0xff]  ;;  %v760_v6 = vld [vmem:[#allocation8 + $0x1c8] sm:$0xff] }
 0x182   : > { %1367 = vmatpush.msra.mxu2 %v967_v37  ;;  %1390 = vmatpush.msra.mxu3 %v1111_v38  ;;  %v1038_v10 = vld [vmem:[#allocation8 + $0xa78] sm:$0xff]  ;;  %v1021_v55 = vld [vmem:[#allocation8 + $0x9f0] sm:$0xff]  ;;  %v859_v28 = vld [vmem:[#allocation8 + $0x4e0] sm:$0xff] }
 0x183   : > { %1322 = vmatpush.msra.mxu0 %v1101_v19  ;;  %1345 = vmatpush.msra.mxu1 %v814_v20  ;;  %v1003_v29 = vld [vmem:[#allocation8 + $0x960] sm:$0xff]  ;;  %v993_v30 = vld [vmem:[#allocation8 + $0x910] sm:$0xff]  ;;  %v850_v32 = vld [vmem:[#allocation8 + $0x498] sm:$0xff] }
 0x184   : > { %1368 = vmatpush.msra.mxu2 %v958_v40  ;;  %1391 = vmatpush.msra.mxu3 %v1102_v41  ;;  %v994_v33 = vld [vmem:[#allocation8 + $0x918] sm:$0xff]  ;;  %v843_v37 = vld [vmem:[#allocation8 + $0x460] sm:$0xff]  ;;  %v833_v38 = vld [vmem:[#allocation8 + $0x410] sm:$0xff] }
 0x185   : > { %1154 = vmatmul.f32.gmra.mxu0 %v7019_v21  ;;  %1177 = vmatmul.f32.gmra.mxu1 %v7021_v39  ;;  %v842_v34 = vld [vmem:[#allocation8 + $0x458] sm:$0xff]  ;;  %v977_v19 = vld [vmem:[#allocation8 + $0x890] sm:$0xff]  ;;  %v824_v41 = vld [vmem:[#allocation8 + $0x3c8] sm:$0xff] }
 0x186   : > { %1200 = vmatmul.f32.gmra.mxu2 %v7023_v43  ;;  %1223 = vmatmul.f32.gmra.mxu3 %v7019_v21  ;;  %v986_v35 = vld [vmem:[#allocation8 + $0x8d8] sm:$0xff]  ;;  %v1121_v20 = vld [vmem:[#allocation8 + $0xd10] sm:$0xff] }
 0x187   : > { %1323 = vmatpush.msra.mxu0 %v1092_v44  ;;  %1346 = vmatpush.msra.mxu1 %v805_v45  ;;  %v1130_v36 = vld [vmem:[#allocation8 + $0xd58] sm:$0xff]  ;;  %v968_v44 = vld [vmem:[#allocation8 + $0x848] sm:$0xff] }
 0x188   : > { %1369 = vmatpush.msra.mxu2 %v949_v46  ;;  %1392 = vmatpush.msra.mxu3 %v1093_v47  ;;  %v834_v40 = vld [vmem:[#allocation8 + $0x418] sm:$0xff]  ;;  %v1112_v45 = vld [vmem:[#allocation8 + $0xcc8] sm:$0xff]  ;;  %v825_v46 = vld [vmem:[#allocation8 + $0x3d0] sm:$0xff] }
 0x189   : > { %1324 = vmatpush.msra.mxu0 %v1083_v48  ;;  %1347 = vmatpush.msra.mxu1 %v796_v49  ;;  %v815_v47 = vld [vmem:[#allocation8 + $0x380] sm:$0xff] }
 0x18a   : > { %1370 = vmatpush.msra.mxu2 %v940_v50  ;;  %1393 = vmatpush.msra.mxu3 %v1084_v51  ;;  %v959_v48 = vld [vmem:[#allocation8 + $0x800] sm:$0xff]  ;;  %v816_v50 = vld [vmem:[#allocation8 + $0x388] sm:$0xff]  ;;  %v806_v51 = vld [vmem:[#allocation8 + $0x338] sm:$0xff] }
 0x18b   : > { %1325 = vmatpush.msra.mxu0 %v1074_v52  ;;  %1348 = vmatpush.msra.mxu1 %v787_v53  ;;  %v1103_v49 = vld [vmem:[#allocation8 + $0xc80] sm:$0xff]  ;;  %v950_v52 = vld [vmem:[#allocation8 + $0x7b8] sm:$0xff] }
 0x18c   : > { %1371 = vmatpush.msra.mxu2 %v931_v54  ;;  %1394 = vmatpush.msra.mxu3 %v1075_v58  ;;  %v1094_v53 = vld [vmem:[#allocation8 + $0xc38] sm:$0xff]  ;;  %v807_v54 = vld [vmem:[#allocation8 + $0x340] sm:$0xff]  ;;  %v797_v58 = vld [vmem:[#allocation8 + $0x2f0] sm:$0xff] }
 0x18d   : > { %1326 = vmatpush.msra.mxu0 %v1065_v59  ;;  %1349 = vmatpush.msra.mxu1 %v778_v60  ;;  %v941_v59 = vld [vmem:[#allocation8 + $0x770] sm:$0xff] }
 0x18e   : > { %1372 = vmatpush.msra.mxu2 %v922_v61  ;;  %1395 = vmatpush.msra.mxu3 %v1066_v62  ;;  %v1085_v60 = vld [vmem:[#allocation8 + $0xbf0] sm:$0xff]  ;;  %v798_v61 = vld [vmem:[#allocation8 + $0x2f8] sm:$0xff]  ;;  %v788_v62 = vld [vmem:[#allocation8 + $0x2a8] sm:$0xff] }
 0x18f   : > { %1243 = vmatmul.f32.vlgmr.msrb.gmra.mxu0 %v7008_v23  ;;  %1266 = vmatmul.f32.vlgmr.msrb.gmra.mxu1 %v7010_v24 }
 0x190   : > { %1289 = vmatmul.f32.vlgmr.msrb.gmra.mxu2 %v7006_v22  ;;  %1312 = vmatmul.f32.vlgmr.msrb.gmra.mxu3 %v7008_v23 }
 0x191   : > { %1327 = vmatpush.msra.mxu0 %v1056_v63  ;;  %1350 = vmatpush.msra.mxu1 %v769_v0  ;;  %v932_v63 = vld [vmem:[#allocation8 + $0x728] sm:$0xff] }
 0x192   : > { %1373 = vmatpush.msra.mxu2 %v913_v1  ;;  %1396 = vmatpush.msra.mxu3 %v1057_v2  ;;  %v1076_v0 = vld [vmem:[#allocation8 + $0xba8] sm:$0xff]  ;;  %v789_v1 = vld [vmem:[#allocation8 + $0x2b0] sm:$0xff]  ;;  %v779_v2 = vld [vmem:[#allocation8 + $0x260] sm:$0xff] }
 0x193   : > { %1328 = vmatpush.msra.mxu0 %v1047_v3  ;;  %1351 = vmatpush.msra.mxu1 %v760_v6  ;;  %v923_v3 = vld [vmem:[#allocation8 + $0x6e0] sm:$0xff] }
 0x194   : > { %1374 = vmatpush.msra.mxu2 %v904_v7  ;;  %1397 = vmatpush.msra.mxu3 %v1048_v9  ;;  %v1067_v6 = vld [vmem:[#allocation8 + $0xb60] sm:$0xff]  ;;  %v780_v7 = vld [vmem:[#allocation8 + $0x268] sm:$0xff]  ;;  %v770_v9 = vld [vmem:[#allocation8 + $0x218] sm:$0xff] }
 0x195   : > { %1329 = vmatpush.msra.mxu0 %v1038_v10  ;;  %1352 = vmatpush.msra.mxu1 %v751_v11  ;;  %v914_v10 = vld [vmem:[#allocation8 + $0x698] sm:$0xff] }
 0x196   : > { %1375 = vmatpush.msra.mxu2 %v895_v12  ;;  %1398 = vmatpush.msra.mxu3 %v1039_v13  ;;  %v1058_v11 = vld [vmem:[#allocation8 + $0xb18] sm:$0xff]  ;;  %v771_v12 = vld [vmem:[#allocation8 + $0x220] sm:$0xff]  ;;  %v761_v13 = vld [vmem:[#allocation8 + $0x1d0] sm:$0xff] }
 0x197   : > { %1330 = vmatpush.msra.mxu0 %v1029_v14  ;;  %1353 = vmatpush.msra.mxu1 %v742_v15  ;;  %v905_v14 = vld [vmem:[#allocation8 + $0x650] sm:$0xff] }
 0x198   : > { %1376 = vmatpush.msra.mxu2 %v886_v16  ;;  %1399 = vmatpush.msra.mxu3 %v1030_v17  ;;  %v1049_v15 = vld [vmem:[#allocation8 + $0xad0] sm:$0xff]  ;;  %v762_v16 = vld [vmem:[#allocation8 + $0x1d8] sm:$0xff]  ;;  %v752_v17 = vld [vmem:[#allocation8 + $0x188] sm:$0xff] }
 0x199   : > { %1246 = vmatmul.f32.gmra.mxu0 %v7021_v39  ;;  %1269 = vmatmul.f32.gmra.mxu1 %v7023_v43 }
 0x19a   : > { %1292 = vmatmul.f32.gmra.mxu2 %v7019_v21  ;;  %1315 = vmatmul.f32.gmra.mxu3 %v7021_v39 }
 0x19b   : > { %1331 = vmatpush.msra.mxu0 %v1020_v18  ;;  %1354 = vmatpush.msra.mxu1 %v733_v25  ;;  %v896_v18 = vld [vmem:[#allocation8 + $0x608] sm:$0xff] }
 0x19c   : > { %1377 = vmatpush.msra.mxu2 %v877_v26  ;;  %1400 = vmatpush.msra.mxu3 %v1021_v55  ;;  %v1040_v25 = vld [vmem:[#allocation8 + $0xa88] sm:$0xff]  ;;  %v753_v26 = vld [vmem:[#allocation8 + $0x190] sm:$0xff]  ;;  %v743_v55 = vld [vmem:[#allocation8 + $0x140] sm:$0xff] }
 0x19d   : > { %1332 = vmatpush.msra.mxu0 %v1011_v56  ;;  %1355 = vmatpush.msra.mxu1 %v724_v57  ;;  %v887_v56 = vld [vmem:[#allocation8 + $0x5c0] sm:$0xff] }
 0x19e   : > { %1378 = vmatpush.msra.mxu2 %v868_v4  ;;  %1401 = vmatpush.msra.mxu3 %v1012_v5  ;;  %v1031_v57 = vld [vmem:[#allocation8 + $0xa40] sm:$0xff]  ;;  %v744_v4 = vld [vmem:[#allocation8 + $0x148] sm:$0xff]  ;;  %v734_v5 = vld [vmem:[#allocation8 + $0xf8] sm:$0xff] }
 0x19f   : > { %1333 = vmatpush.msra.mxu0 %v1002_v27  ;;  %1356 = vmatpush.msra.mxu1 %v715_v8  ;;  %v878_v27 = vld [vmem:[#allocation8 + $0x578] sm:$0xff] }
 0x1a0   : > { %1379 = vmatpush.msra.mxu2 %v859_v28  ;;  %1402 = vmatpush.msra.mxu3 %v1003_v29  ;;  %v1022_v8 = vld [vmem:[#allocation8 + $0x9f8] sm:$0xff]  ;;  %v735_v28 = vld [vmem:[#allocation8 + $0x100] sm:$0xff]  ;;  %v725_v29 = vld [vmem:[#allocation8 + $0xb0] sm:$0xff] }
 0x1a1   : > { %1334 = vmatpush.msra.mxu0 %v993_v30  ;;  %1357 = vmatpush.msra.mxu1 %v706_v31  ;;  %v869_v30 = vld [vmem:[#allocation8 + $0x530] sm:$0xff] }
 0x1a2   : > { %1380 = vmatpush.msra.mxu2 %v850_v32  ;;  %1403 = vmatpush.msra.mxu3 %v994_v33  ;;  %v1013_v31 = vld [vmem:[#allocation8 + $0x9b0] sm:$0xff]  ;;  %v726_v32 = vld [vmem:[#allocation8 + $0xb8] sm:$0xff]  ;;  %v716_v33 = vld [vmem:[#allocation8 + $0x68] sm:$0xff] }
 0x1a3   : > { %1411 = vmatpush.msrb.mxu0 %v842_v34  ;;  %1434 = vmatpush.msrb.mxu1 %v986_v35  ;;  %v860_v34 = vld [vmem:[#allocation8 + $0x4e8] sm:$0xff] }
 0x1a4   : > { %1457 = vmatpush.msrb.mxu2 %v1130_v36  ;;  %1480 = vmatpush.msrb.mxu3 %v843_v37  ;;  %v1004_v35 = vld [vmem:[#allocation8 + $0x968] sm:$0xff]  ;;  %v717_v36 = vld [vmem:[#allocation8 + $0x70] sm:$0xff]  ;;  %v707_v37 = vld [vmem:[#allocation8 + $0x20] sm:$0xff] }
 0x1a5   : > { %1335 = vmatmul.f32.vlgmr.msra.gmra.mxu0 %v7010_v24  ;;  %1358 = vmatmul.f32.vlgmr.msra.gmra.mxu1 %v7006_v22 }
 0x1a6   : > { %1381 = vmatmul.f32.vlgmr.msra.gmra.mxu2 %v7008_v23  ;;  %1404 = vmatmul.f32.vlgmr.msra.gmra.mxu3 %v7010_v24 }
 0x1a7   : > { %1412 = vmatpush.msrb.mxu0 %v833_v38  ;;  %1435 = vmatpush.msrb.mxu1 %v977_v19  ;;  %v851_v38 = vld [vmem:[#allocation8 + $0x4a0] sm:$0xff] }
 0x1a8   : > { %1458 = vmatpush.msrb.mxu2 %v1121_v20  ;;  %1481 = vmatpush.msrb.mxu3 %v834_v40  ;;  %v995_v19 = vld [vmem:[#allocation8 + $0x920] sm:$0xff]  ;;  %v708_v20 = vld [vmem:[#allocation8 + $0x28] sm:$0xff] }
 0x1a9   : > { %1413 = vmatpush.msrb.mxu0 %v824_v41  ;;  %1436 = vmatpush.msrb.mxu1 %v968_v44  ;;  %v987_v40 = vld [vmem:[#allocation8 + $0x8e0] sm:$0xff]  ;;  %v844_v44 = vld [vmem:[#allocation8 + $0x468] sm:$0xff] }
 0x1aa   : > { %1459 = vmatpush.msrb.mxu2 %v1112_v45  ;;  %1482 = vmatpush.msrb.mxu3 %v825_v46  ;;  %v1131_v41 = vld [vmem:[#allocation8 + $0xd60] sm:$0xff]  ;;  %v988_v45 = vld [vmem:[#allocation8 + $0x8e8] sm:$0xff]  ;;  %v978_v46 = vld [vmem:[#allocation8 + $0x898] sm:$0xff] }
 0x1ab   : > { %1414 = vmatpush.msrb.mxu0 %v815_v47  ;;  %1437 = vmatpush.msrb.mxu1 %v959_v48  ;;  %v1122_v47 = vld [vmem:[#allocation8 + $0xd18] sm:$0xff]  ;;  %v835_v48 = vld [vmem:[#allocation8 + $0x420] sm:$0xff] }
 0x1ac   : > { %1460 = vmatpush.msrb.mxu2 %v1103_v49  ;;  %1483 = vmatpush.msrb.mxu3 %v816_v50  ;;  %v979_v49 = vld [vmem:[#allocation8 + $0x8a0] sm:$0xff]  ;;  %v969_v50 = vld [vmem:[#allocation8 + $0x850] sm:$0xff] }
 0x1ad   : > { %1415 = vmatpush.msrb.mxu0 %v806_v51  ;;  %1438 = vmatpush.msrb.mxu1 %v950_v52  ;;  %v1113_v51 = vld [vmem:[#allocation8 + $0xcd0] sm:$0xff]  ;;  %v826_v52 = vld [vmem:[#allocation8 + $0x3d8] sm:$0xff] }
 0x1ae   : > { %1461 = vmatpush.msrb.mxu2 %v1094_v53  ;;  %1484 = vmatpush.msrb.mxu3 %v807_v54  ;;  %v970_v53 = vld [vmem:[#allocation8 + $0x858] sm:$0xff]  ;;  %v960_v54 = vld [vmem:[#allocation8 + $0x808] sm:$0xff] }
 0x1af   : > { %1338 = vmatmul.f32.gmra.mxu0 %v7023_v43  ;;  %1361 = vmatmul.f32.gmra.mxu1 %v7019_v21 }
 0x1b0   : > { %1384 = vmatmul.f32.gmra.mxu2 %v7021_v39  ;;  %1407 = vmatmul.f32.gmra.mxu3 %v7023_v43 }
 0x1b1   : > { %1416 = vmatpush.msrb.mxu0 %v797_v58  ;;  %1439 = vmatpush.msrb.mxu1 %v941_v59  ;;  %v1104_v58 = vld [vmem:[#allocation8 + $0xc88] sm:$0xff]  ;;  %v817_v59 = vld [vmem:[#allocation8 + $0x390] sm:$0xff] }
 0x1b2   : > { %1462 = vmatpush.msrb.mxu2 %v1085_v60  ;;  %1485 = vmatpush.msrb.mxu3 %v798_v61  ;;  %v961_v60 = vld [vmem:[#allocation8 + $0x810] sm:$0xff]  ;;  %v951_v61 = vld [vmem:[#allocation8 + $0x7c0] sm:$0xff] }
 0x1b3   : > { %1417 = vmatpush.msrb.mxu0 %v788_v62  ;;  %1440 = vmatpush.msrb.mxu1 %v932_v63  ;;  %v1095_v62 = vld [vmem:[#allocation8 + $0xc40] sm:$0xff]  ;;  %v808_v63 = vld [vmem:[#allocation8 + $0x348] sm:$0xff] }
 0x1b4   : > { %1463 = vmatpush.msrb.mxu2 %v1076_v0  ;;  %1486 = vmatpush.msrb.mxu3 %v789_v1  ;;  %v952_v0 = vld [vmem:[#allocation8 + $0x7c8] sm:$0xff]  ;;  %v942_v1 = vld [vmem:[#allocation8 + $0x778] sm:$0xff] }
 0x1b5   : > { %1418 = vmatpush.msrb.mxu0 %v779_v2  ;;  %1441 = vmatpush.msrb.mxu1 %v923_v3  ;;  %v1086_v2 = vld [vmem:[#allocation8 + $0xbf8] sm:$0xff]  ;;  %v799_v3 = vld [vmem:[#allocation8 + $0x300] sm:$0xff] }
 0x1b6   : > { %1464 = vmatpush.msrb.mxu2 %v1067_v6  ;;  %1487 = vmatpush.msrb.mxu3 %v780_v7  ;;  %v943_v6 = vld [vmem:[#allocation8 + $0x780] sm:$0xff]  ;;  %v933_v7 = vld [vmem:[#allocation8 + $0x730] sm:$0xff] }
 0x1b7   : > { %1419 = vmatpush.msrb.mxu0 %v770_v9  ;;  %1442 = vmatpush.msrb.mxu1 %v914_v10  ;;  %v1077_v9 = vld [vmem:[#allocation8 + $0xbb0] sm:$0xff]  ;;  %v790_v10 = vld [vmem:[#allocation8 + $0x2b8] sm:$0xff] }
 0x1b8   : > { %1465 = vmatpush.msrb.mxu2 %v1058_v11  ;;  %1488 = vmatpush.msrb.mxu3 %v771_v12  ;;  %v934_v11 = vld [vmem:[#allocation8 + $0x738] sm:$0xff]  ;;  %v924_v12 = vld [vmem:[#allocation8 + $0x6e8] sm:$0xff] }
 0x1b9   : > { %1420 = vmatpush.msrb.mxu0 %v761_v13  ;;  %1443 = vmatpush.msrb.mxu1 %v905_v14  ;;  %v1068_v13 = vld [vmem:[#allocation8 + $0xb68] sm:$0xff]  ;;  %v781_v14 = vld [vmem:[#allocation8 + $0x270] sm:$0xff] }
 0x1ba   : > { %1466 = vmatpush.msrb.mxu2 %v1049_v15  ;;  %1489 = vmatpush.msrb.mxu3 %v762_v16  ;;  %v925_v15 = vld [vmem:[#allocation8 + $0x6f0] sm:$0xff]  ;;  %v915_v16 = vld [vmem:[#allocation8 + $0x6a0] sm:$0xff] }
 0x1bb   : > { %1421 = vmatpush.msrb.mxu0 %v752_v17  ;;  %1444 = vmatpush.msrb.mxu1 %v896_v18  ;;  %v1059_v17 = vld [vmem:[#allocation8 + $0xb20] sm:$0xff]  ;;  %v772_v18 = vld [vmem:[#allocation8 + $0x228] sm:$0xff] }
 0x1bc   : > { %1467 = vmatpush.msrb.mxu2 %v1040_v25  ;;  %1490 = vmatpush.msrb.mxu3 %v753_v26  ;;  %v916_v25 = vld [vmem:[#allocation8 + $0x6a8] sm:$0xff]  ;;  %v906_v26 = vld [vmem:[#allocation8 + $0x658] sm:$0xff] }
 0x1bd   : > { %1422 = vmatpush.msrb.mxu0 %v743_v55  ;;  %1445 = vmatpush.msrb.mxu1 %v887_v56  ;;  %v1050_v55 = vld [vmem:[#allocation8 + $0xad8] sm:$0xff]  ;;  %v763_v56 = vld [vmem:[#allocation8 + $0x1e0] sm:$0xff] }
 0x1be   : > { %1468 = vmatpush.msrb.mxu2 %v1031_v57  ;;  %1491 = vmatpush.msrb.mxu3 %v744_v4  ;;  %v907_v57 = vld [vmem:[#allocation8 + $0x660] sm:$0xff]  ;;  %v897_v4 = vld [vmem:[#allocation8 + $0x610] sm:$0xff] }
 0x1bf   : > { %1423 = vmatpush.msrb.mxu0 %v734_v5  ;;  %1446 = vmatpush.msrb.mxu1 %v878_v27  ;;  %v1041_v5 = vld [vmem:[#allocation8 + $0xa90] sm:$0xff]  ;;  %v754_v27 = vld [vmem:[#allocation8 + $0x198] sm:$0xff] }
 0x1c0   : > { %1469 = vmatpush.msrb.mxu2 %v1022_v8  ;;  %1492 = vmatpush.msrb.mxu3 %v735_v28  ;;  %v898_v8 = vld [vmem:[#allocation8 + $0x618] sm:$0xff]  ;;  %v888_v28 = vld [vmem:[#allocation8 + $0x5c8] sm:$0xff] }
 0x1c1   : > { %1424 = vmatpush.msrb.mxu0 %v725_v29  ;;  %1447 = vmatpush.msrb.mxu1 %v869_v30  ;;  %v1032_v29 = vld [vmem:[#allocation8 + $0xa48] sm:$0xff]  ;;  %v745_v30 = vld [vmem:[#allocation8 + $0x150] sm:$0xff] }
 0x1c2   : > { %1470 = vmatpush.msrb.mxu2 %v1013_v31  ;;  %1493 = vmatpush.msrb.mxu3 %v726_v32  ;;  %v889_v31 = vld [vmem:[#allocation8 + $0x5d0] sm:$0xff]  ;;  %v879_v32 = vld [vmem:[#allocation8 + $0x580] sm:$0xff] }
 0x1c3   : > { %1425 = vmatpush.msrb.mxu0 %v716_v33  ;;  %1448 = vmatpush.msrb.mxu1 %v860_v34  ;;  %v1023_v33 = vld [vmem:[#allocation8 + $0xa00] sm:$0xff]  ;;  %v736_v34 = vld [vmem:[#allocation8 + $0x108] sm:$0xff] }
 0x1c4   : > { %1471 = vmatpush.msrb.mxu2 %v1004_v35  ;;  %1494 = vmatpush.msrb.mxu3 %v717_v36  ;;  %v880_v35 = vld [vmem:[#allocation8 + $0x588] sm:$0xff]  ;;  %v870_v36 = vld [vmem:[#allocation8 + $0x538] sm:$0xff] }
 0x1c5   : > { %1426 = vmatpush.msrb.mxu0 %v707_v37  ;;  %1449 = vmatpush.msrb.mxu1 %v851_v38  ;;  %v1014_v37 = vld [vmem:[#allocation8 + $0x9b8] sm:$0xff]  ;;  %v727_v38 = vld [vmem:[#allocation8 + $0xc0] sm:$0xff] }
 0x1c6   : > { %1472 = vmatpush.msrb.mxu2 %v995_v19  ;;  %1495 = vmatpush.msrb.mxu3 %v708_v20  ;;  %v871_v19 = vld [vmem:[#allocation8 + $0x540] sm:$0xff]  ;;  %v861_v20 = vld [vmem:[#allocation8 + $0x4f0] sm:$0xff] }
 0x1c7   : > { %1427 = vmatmul.f32.vlgmr.msrb.gmra.mxu0 %v7006_v22  ;;  %1450 = vmatmul.f32.vlgmr.msrb.gmra.mxu1 %v7008_v23 }
 0x1c8   : > { %1473 = vmatmul.f32.vlgmr.msrb.gmra.mxu2 %v7010_v24  ;;  %1496 = vmatmul.f32.vlgmr.msrb.gmra.mxu3 %v7006_v22 }
 0x1c9   : > { %1503 = vmatpush.msra.mxu0 %v987_v40  ;;  %1526 = vmatpush.msra.mxu1 %v1131_v41  ;;  %v1005_v40 = vld [vmem:[#allocation8 + $0x970] sm:$0xff]  ;;  %v718_v41 = vld [vmem:[#allocation8 + $0x78] sm:$0xff] }
 0x1ca   : > { %1549 = vmatpush.msra.mxu2 %v844_v44  ;;  %1572 = vmatpush.msra.mxu3 %v988_v45  ;;  %v862_v44 = vld [vmem:[#allocation8 + $0x4f8] sm:$0xff]  ;;  %v852_v45 = vld [vmem:[#allocation8 + $0x4a8] sm:$0xff] }
 0x1cb   : > { %1504 = vmatpush.msra.mxu0 %v978_v46  ;;  %1527 = vmatpush.msra.mxu1 %v1122_v47  ;;  %v996_v46 = vld [vmem:[#allocation8 + $0x928] sm:$0xff]  ;;  %v709_v47 = vld [vmem:[#allocation8 + $0x30] sm:$0xff] }
 0x1cc   : > { %1550 = vmatpush.msra.mxu2 %v835_v48  ;;  %1573 = vmatpush.msra.mxu3 %v979_v49  ;;  %v853_v48 = vld [vmem:[#allocation8 + $0x4b0] sm:$0xff]  ;;  %v1132_v49 = vld [vmem:[#allocation8 + $0xd68] sm:$0xff] }
 0x1cd   : > { %1505 = vmatpush.msra.mxu0 %v969_v50  ;;  %1528 = vmatpush.msra.mxu1 %v1113_v51  ;;  %v845_v50 = vld [vmem:[#allocation8 + $0x470] sm:$0xff] }
 0x1ce   : > { %1551 = vmatpush.msra.mxu2 %v826_v52  ;;  %1574 = vmatpush.msra.mxu3 %v970_v53  ;;  %v989_v51 = vld [vmem:[#allocation8 + $0x8f0] sm:$0xff]  ;;  %v1123_v53 = vld [vmem:[#allocation8 + $0xd20] sm:$0xff] }
 0x1cf   : > { %1506 = vmatpush.msra.mxu0 %v960_v54  ;;  %1529 = vmatpush.msra.mxu1 %v1104_v58  ;;  %v1133_v52 = vld [vmem:[#allocation8 + $0xd70] sm:$0xff]  ;;  %v836_v54 = vld [vmem:[#allocation8 + $0x428] sm:$0xff] }
 0x1d0   : > { %1552 = vmatpush.msra.mxu2 %v817_v59  ;;  %1575 = vmatpush.msra.mxu3 %v961_v60  ;;  %v980_v58 = vld [vmem:[#allocation8 + $0x8a8] sm:$0xff]  ;;  %v1114_v60 = vld [vmem:[#allocation8 + $0xcd8] sm:$0xff] }
 0x1d1   : > { %1430 = vmatmul.f32.gmra.mxu0 %v7019_v21  ;;  %1453 = vmatmul.f32.gmra.mxu1 %v7021_v39  ;;  %v1124_v59 = vld [vmem:[#allocation8 + $0xd28] sm:$0xff] }
 0x1d2   : > { %1476 = vmatmul.f32.gmra.mxu2 %v7023_v43  ;;  %1499 = vmatmul.f32.gmra.mxu3 %v7019_v21 }
 0x1d3   : > { %1507 = vmatpush.msra.mxu0 %v951_v61  ;;  %1530 = vmatpush.msra.mxu1 %v1095_v62  ;;  %v827_v61 = vld [vmem:[#allocation8 + $0x3e0] sm:$0xff] }
 0x1d4   : > { %1553 = vmatpush.msra.mxu2 %v808_v63  ;;  %1576 = vmatpush.msra.mxu3 %v952_v0  ;;  %v971_v62 = vld [vmem:[#allocation8 + $0x860] sm:$0xff]  ;;  %v1105_v0 = vld [vmem:[#allocation8 + $0xc90] sm:$0xff] }
 0x1d5   : > { %1508 = vmatpush.msra.mxu0 %v942_v1  ;;  %1531 = vmatpush.msra.mxu1 %v1086_v2  ;;  %v1115_v63 = vld [vmem:[#allocation8 + $0xce0] sm:$0xff]  ;;  %v818_v1 = vld [vmem:[#allocation8 + $0x398] sm:$0xff] }
 0x1d6   : > { %1554 = vmatpush.msra.mxu2 %v799_v3  ;;  %1577 = vmatpush.msra.mxu3 %v943_v6  ;;  %v962_v2 = vld [vmem:[#allocation8 + $0x818] sm:$0xff]  ;;  %v1096_v6 = vld [vmem:[#allocation8 + $0xc48] sm:$0xff] }
 0x1d7   : > { %1509 = vmatpush.msra.mxu0 %v933_v7  ;;  %1532 = vmatpush.msra.mxu1 %v1077_v9  ;;  %v1106_v3 = vld [vmem:[#allocation8 + $0xc98] sm:$0xff]  ;;  %v809_v7 = vld [vmem:[#allocation8 + $0x350] sm:$0xff] }
 0x1d8   : > { %1555 = vmatpush.msra.mxu2 %v790_v10  ;;  %1578 = vmatpush.msra.mxu3 %v934_v11  ;;  %v953_v9 = vld [vmem:[#allocation8 + $0x7d0] sm:$0xff]  ;;  %v1087_v11 = vld [vmem:[#allocation8 + $0xc00] sm:$0xff] }
 0x1d9   : > { %1510 = vmatpush.msra.mxu0 %v924_v12  ;;  %1533 = vmatpush.msra.mxu1 %v1068_v13  ;;  %v1097_v10 = vld [vmem:[#allocation8 + $0xc50] sm:$0xff]  ;;  %v800_v12 = vld [vmem:[#allocation8 + $0x308] sm:$0xff] }
 0x1da   : > { %1556 = vmatpush.msra.mxu2 %v781_v14  ;;  %1579 = vmatpush.msra.mxu3 %v925_v15  ;;  %v944_v13 = vld [vmem:[#allocation8 + $0x788] sm:$0xff]  ;;  %v1078_v15 = vld [vmem:[#allocation8 + $0xbb8] sm:$0xff] }
 0x1db   : > { %1511 = vmatpush.msra.mxu0 %v915_v16  ;;  %1534 = vmatpush.msra.mxu1 %v1059_v17  ;;  %v1088_v14 = vld [vmem:[#allocation8 + $0xc08] sm:$0xff]  ;;  %v791_v16 = vld [vmem:[#allocation8 + $0x2c0] sm:$0xff] }
 0x1dc   : > { %1557 = vmatpush.msra.mxu2 %v772_v18  ;;  %1580 = vmatpush.msra.mxu3 %v916_v25  ;;  %v935_v17 = vld [vmem:[#allocation8 + $0x740] sm:$0xff]  ;;  %v1069_v25 = vld [vmem:[#allocation8 + $0xb70] sm:$0xff] }
 0x1dd   : > { %1512 = vmatpush.msra.mxu0 %v906_v26  ;;  %1535 = vmatpush.msra.mxu1 %v1050_v55  ;;  %v1079_v18 = vld [vmem:[#allocation8 + $0xbc0] sm:$0xff]  ;;  %v782_v26 = vld [vmem:[#allocation8 + $0x278] sm:$0xff] }
 0x1de   : > { %1558 = vmatpush.msra.mxu2 %v763_v56  ;;  %1581 = vmatpush.msra.mxu3 %v907_v57  ;;  %v926_v55 = vld [vmem:[#allocation8 + $0x6f8] sm:$0xff]  ;;  %v1060_v57 = vld [vmem:[#allocation8 + $0xb28] sm:$0xff] }
 0x1df   : > { %1513 = vmatpush.msra.mxu0 %v897_v4  ;;  %1536 = vmatpush.msra.mxu1 %v1041_v5  ;;  %v1070_v56 = vld [vmem:[#allocation8 + $0xb78] sm:$0xff]  ;;  %v773_v4 = vld [vmem:[#allocation8 + $0x230] sm:$0xff] }
 0x1e0   : > { %1559 = vmatpush.msra.mxu2 %v754_v27  ;;  %1582 = vmatpush.msra.mxu3 %v898_v8  ;;  %v917_v5 = vld [vmem:[#allocation8 + $0x6b0] sm:$0xff]  ;;  %v1051_v8 = vld [vmem:[#allocation8 + $0xae0] sm:$0xff] }
 0x1e1   : > { %1514 = vmatpush.msra.mxu0 %v888_v28  ;;  %1537 = vmatpush.msra.mxu1 %v1032_v29  ;;  %v1061_v27 = vld [vmem:[#allocation8 + $0xb30] sm:$0xff]  ;;  %v764_v28 = vld [vmem:[#allocation8 + $0x1e8] sm:$0xff] }
 0x1e2   : > { %1560 = vmatpush.msra.mxu2 %v745_v30  ;;  %1583 = vmatpush.msra.mxu3 %v889_v31  ;;  %v908_v29 = vld [vmem:[#allocation8 + $0x668] sm:$0xff]  ;;  %v1042_v31 = vld [vmem:[#allocation8 + $0xa98] sm:$0xff] }
 0x1e3   : > { %1515 = vmatpush.msra.mxu0 %v879_v32  ;;  %1538 = vmatpush.msra.mxu1 %v1023_v33  ;;  %v1052_v30 = vld [vmem:[#allocation8 + $0xae8] sm:$0xff]  ;;  %v755_v32 = vld [vmem:[#allocation8 + $0x1a0] sm:$0xff] }
 0x1e4   : > { %1561 = vmatpush.msra.mxu2 %v736_v34  ;;  %1584 = vmatpush.msra.mxu3 %v880_v35  ;;  %v899_v33 = vld [vmem:[#allocation8 + $0x620] sm:$0xff] }
 0x1e5   : > { %1516 = vmatpush.msra.mxu0 %v870_v36  ;;  %1539 = vmatpush.msra.mxu1 %v1014_v37  ;;  %v1043_v34 = vld [vmem:[#allocation8 + $0xaa0] sm:$0xff]  ;;  %v1033_v37 = vld [vmem:[#allocation8 + $0xa50] sm:$0xff] }
 0x1e6   : > { %1562 = vmatpush.msra.mxu2 %v727_v38  ;;  %1585 = vmatpush.msra.mxu3 %v871_v19  ;;  %v746_v38 = vld [vmem:[#allocation8 + $0x158] sm:$0xff] }
 0x1e7   : > { %1517 = vmatpush.msra.mxu0 %v861_v20  ;;  %1540 = vmatpush.msra.mxu1 %v1005_v40  ;;  %v890_v19 = vld [vmem:[#allocation8 + $0x5d8] sm:$0xff] }
 0x1e8   : > { %1563 = vmatpush.msra.mxu2 %v718_v41  ;;  %1586 = vmatpush.msra.mxu3 %v862_v44  ;;  %v1034_v20 = vld [vmem:[#allocation8 + $0xa58] sm:$0xff]  ;;  %v1024_v41 = vld [vmem:[#allocation8 + $0xa08] sm:$0xff]  ;;  %v737_v44 = vld [vmem:[#allocation8 + $0x110] sm:$0xff] }
 0x1e9   : > { %1518 = vmatpush.msra.mxu0 %v852_v45  ;;  %1541 = vmatpush.msra.mxu1 %v996_v46  ;;  %v881_v45 = vld [vmem:[#allocation8 + $0x590] sm:$0xff] }
 0x1ea   : > { %1564 = vmatpush.msra.mxu2 %v709_v47  ;;  %1587 = vmatpush.msra.mxu3 %v853_v48  ;;  %v1025_v46 = vld [vmem:[#allocation8 + $0xa10] sm:$0xff]  ;;  %v1015_v48 = vld [vmem:[#allocation8 + $0x9c0] sm:$0xff] }
 0x1eb   : > { %1519 = vmatmul.f32.vlgmr.msra.gmra.mxu0 %v7008_v23  ;;  %1542 = vmatmul.f32.vlgmr.msra.gmra.mxu1 %v7010_v24 }
 0x1ec   : > { %1565 = vmatmul.f32.vlgmr.msra.gmra.mxu2 %v7006_v22  ;;  %1588 = vmatmul.f32.vlgmr.msra.gmra.mxu3 %v7008_v23 }
 0x1ed   : > { %1595 = vmatpush.msrb.mxu0 %v1132_v49  ;;  %1618 = vmatpush.msrb.mxu1 %v845_v50  ;;  %v728_v49 = vld [vmem:[#allocation8 + $0xc8] sm:$0xff] }
 0x1ee   : > { %1641 = vmatpush.msrb.mxu2 %v989_v51  ;;  %1664 = vmatpush.msrb.mxu3 %v1133_v52  ;;  %v872_v50 = vld [vmem:[#allocation8 + $0x548] sm:$0xff]  ;;  %v1006_v52 = vld [vmem:[#allocation8 + $0x978] sm:$0xff] }
 0x1ef   : > { %1596 = vmatpush.msrb.mxu0 %v1123_v53  ;;  %1619 = vmatpush.msrb.mxu1 %v836_v54  ;;  %v1016_v51 = vld [vmem:[#allocation8 + $0x9c8] sm:$0xff]  ;;  %v719_v53 = vld [vmem:[#allocation8 + $0x80] sm:$0xff] }
 0x1f0   : > { %1642 = vmatpush.msrb.mxu2 %v980_v58  ;;  %1665 = vmatpush.msrb.mxu3 %v1124_v59  ;;  %v863_v58 = vld [vmem:[#allocation8 + $0x500] sm:$0xff] }
 0x1f1   : > { %1597 = vmatpush.msrb.mxu0 %v1114_v60  ;;  %1620 = vmatpush.msrb.mxu1 %v827_v61  ;;  %v1007_v59 = vld [vmem:[#allocation8 + $0x980] sm:$0xff]  ;;  %v997_v60 = vld [vmem:[#allocation8 + $0x930] sm:$0xff]  ;;  %v710_v61 = vld [vmem:[#allocation8 + $0x38] sm:$0xff] }
 0x1f2   : > { %1643 = vmatpush.msrb.mxu2 %v971_v62  ;;  %1666 = vmatpush.msrb.mxu3 %v1115_v63  ;;  %v854_v63 = vld [vmem:[#allocation8 + $0x4b8] sm:$0xff] }
 0x1f3   : > { %1598 = vmatpush.msrb.mxu0 %v1105_v0  ;;  %1621 = vmatpush.msrb.mxu1 %v818_v1  ;;  %v998_v0 = vld [vmem:[#allocation8 + $0x938] sm:$0xff] }
 0x1f4   : > { %1644 = vmatpush.msrb.mxu2 %v962_v2  ;;  %1667 = vmatpush.msrb.mxu3 %v1106_v3 }
 0x1f5   : > { %1522 = vmatmul.f32.gmra.mxu0 %v7021_v39  ;;  %1545 = vmatmul.f32.gmra.mxu1 %v7023_v43 }
 0x1f6   : > { %1568 = vmatmul.f32.gmra.mxu2 %v7019_v21  ;;  %1591 = vmatmul.f32.gmra.mxu3 %v7021_v39 }
 0x1f7   : > { %1599 = vmatpush.msrb.mxu0 %v1096_v6  ;;  %1622 = vmatpush.msrb.mxu1 %v809_v7  ;;  %v846_v6 = vld [vmem:[#allocation8 + $0x478] sm:$0xff] }
 0x1f8   : > { %1645 = vmatpush.msrb.mxu2 %v953_v9  ;;  %1668 = vmatpush.msrb.mxu3 %v1097_v10  ;;  %v1175_v35 = vpop.f32.mrf.mxu1  ;;  %v1152_v47 = vpop.f32.mrf.mxu0  ;;  %v990_v7 = vld [vmem:[#allocation8 + $0x8f8] sm:$0xff] }
 0x1f9   : > { %1600 = vmatpush.msrb.mxu0 %v1087_v11  ;;  %1623 = vmatpush.msrb.mxu1 %v800_v12  ;;  %v1176_v54 = vadd.f32 %v1175_v35, %v1152_v47  ;;  %v1134_v10 = vld [vmem:[#allocation8 + $0xd78] sm:$0xff]  ;;  %v837_v11 = vld [vmem:[#allocation8 + $0x430] sm:$0xff]  ;;  %v1071_v35 = vld [vmem:[#allocation8 + $0xb80] sm:$0xff] }
 0x1fa   : > { %1646 = vmatpush.msrb.mxu2 %v944_v13  ;;  %1669 = vmatpush.msrb.mxu3 %v1088_v14  ;;  %v981_v12 = vld [vmem:[#allocation8 + $0x8b0] sm:$0xff]  ;;  %v828_v14 = vld [vmem:[#allocation8 + $0x3e8] sm:$0xff] }
 0x1fb   : > { %1601 = vmatpush.msrb.mxu0 %v1078_v15  ;;  %1624 = vmatpush.msrb.mxu1 %v791_v16  ;;  %v1125_v13 = vld [vmem:[#allocation8 + $0xd30] sm:$0xff]  ;;  %v972_v15 = vld [vmem:[#allocation8 + $0x868] sm:$0xff] }
 0x1fc   : > { %1647 = vmatpush.msrb.mxu2 %v935_v17  ;;  %1670 = vmatpush.msrb.mxu3 %v1079_v18  ;;  %v1116_v16 = vld [vmem:[#allocation8 + $0xce8] sm:$0xff]  ;;  %v819_v17 = vld [vmem:[#allocation8 + $0x3a0] sm:$0xff]  ;;  %v1053_v47 = vld [vmem:[#allocation8 + $0xaf0] sm:$0xff] }
 0x1fd   : > { %1602 = vmatpush.msrb.mxu0 %v1069_v25  ;;  %1625 = vmatpush.msrb.mxu1 %v782_v26  ;;  %v963_v18 = vld [vmem:[#allocation8 + $0x820] sm:$0xff] }
 0x1fe   : > { %1648 = vmatpush.msrb.mxu2 %v926_v55  ;;  %1671 = vmatpush.msrb.mxu3 %v1070_v56  ;;  %v1107_v25 = vld [vmem:[#allocation8 + $0xca0] sm:$0xff]  ;;  %v810_v56 = vld [vmem:[#allocation8 + $0x358] sm:$0xff] }
 0x1ff   : > { %1603 = vmatpush.msrb.mxu0 %v1060_v57  ;;  %1626 = vmatpush.msrb.mxu1 %v773_v4  ;;  %v1198_v36 = vpop.f32.mrf.mxu2  ;;  %v7061_v40 = vpop.f32.mrf.mxu3 }
 0x200   : > { %1649 = vmatpush.msrb.mxu2 %v917_v5  ;;  %1672 = vmatpush.msrb.mxu3 %v1061_v27  ;;  %v1199_v62 = vadd.f32 %v1198_v36, %v1176_v54  ;;  %v954_v5 = vld [vmem:[#allocation8 + $0x7d8] sm:$0xff] }
 0x201   : > { %1604 = vmatpush.msrb.mxu0 %v1051_v8  ;;  %1627 = vmatpush.msrb.mxu1 %v764_v28  ;;  %v1098_v27 = vld [vmem:[#allocation8 + $0xc58] sm:$0xff]  ;;  %v801_v8 = vld [vmem:[#allocation8 + $0x310] sm:$0xff] }
 0x202   : > { %1650 = vmatpush.msrb.mxu2 %v908_v29  ;;  %1673 = vmatpush.msrb.mxu3 %v1052_v30  ;;  %v7063_v1 = vpop.f32.mrf.mxu1  ;;  %v7069_v9 = vmul.f32 0.05103104, %v1199_v62  ;;  %v7081_v57 = vpop.f32.mrf.mxu0  ;;  %v945_v28 = vld [vmem:[#allocation8 + $0x790] sm:$0xff]  ;;  %v792_v30 = vld [vmem:[#allocation8 + $0x2c8] sm:$0xff]  ;;  %v774_v36 = vld [vmem:[#allocation8 + $0x238] sm:$0xff] }
 0x203   : > { %1605 = vmatpush.msrb.mxu0 %v1042_v31  ;;  %1628 = vmatpush.msrb.mxu1 %v755_v32  ;;  %v1089_v29 = vld [vmem:[#allocation8 + $0xc10] sm:$0xff]  ;;  %v936_v31 = vld [vmem:[#allocation8 + $0x748] sm:$0xff]  ;;  %v738_v54 = vld [vmem:[#allocation8 + $0x118] sm:$0xff] }
 0x204   : > { %1651 = vmatpush.msrb.mxu2 %v899_v33  ;;  %1674 = vmatpush.msrb.mxu3 %v1043_v34  ;;  %v1080_v32 = vld [vmem:[#allocation8 + $0xbc8] sm:$0xff]  ;;  %v783_v33 = vld [vmem:[#allocation8 + $0x280] sm:$0xff] }
 0x205   : > { %1606 = vmatpush.msrb.mxu0 %v1033_v37  ;;  %1629 = vmatpush.msrb.mxu1 %v746_v38  ;;  %v927_v34 = vld [vmem:[#allocation8 + $0x700] sm:$0xff] }
 0x206   : > { %1652 = vmatpush.msrb.mxu2 %v890_v19  ;;  %1675 = vmatpush.msrb.mxu3 %v1034_v20  ;;  %v918_v19 = vld [vmem:[#allocation8 + $0x6b8] sm:$0xff] }
 0x207   : > { %1607 = vmatpush.msrb.mxu0 %v1024_v41  ;;  %1630 = vmatpush.msrb.mxu1 %v737_v44  ;;  %v1062_v20 = vld [vmem:[#allocation8 + $0xb38] sm:$0xff]  ;;  %v765_v44 = vld [vmem:[#allocation8 + $0x1f0] sm:$0xff] }
 0x208   : > { %1653 = vmatpush.msrb.mxu2 %v881_v45  ;;  %1676 = vmatpush.msrb.mxu3 %v1025_v46  ;;  %v909_v46 = vld [vmem:[#allocation8 + $0x670] sm:$0xff] }
 0x209   : > { %1608 = vmatpush.msrb.mxu0 %v1015_v48  ;;  %1631 = vmatpush.msrb.mxu1 %v728_v49  ;;  %v7065_v2 = vpop.f32.mrf.mxu2  ;;  %v7067_v3 = vpop.f32.mrf.mxu3  ;;  %v756_v48 = vld [vmem:[#allocation8 + $0x1a8] sm:$0xff] }
 0x20a   : > { %1654 = vmatpush.msrb.mxu2 %v872_v50  ;;  %1677 = vmatpush.msrb.mxu3 %v1016_v51  ;;  %v900_v49 = vld [vmem:[#allocation8 + $0x628] sm:$0xff]  ;;  %v747_v51 = vld [vmem:[#allocation8 + $0x160] sm:$0xff] }
 0x20b   : > { %1609 = vmatpush.msrb.mxu0 %v1006_v52  ;;  %1632 = vmatpush.msrb.mxu1 %v719_v53  ;;  %v1044_v50 = vld [vmem:[#allocation8 + $0xaa8] sm:$0xff]  ;;  %v891_v52 = vld [vmem:[#allocation8 + $0x5e0] sm:$0xff] }
 0x20c   : > { %1655 = vmatpush.msrb.mxu2 %v863_v58  ;;  %1678 = vmatpush.msrb.mxu3 %v1007_v59  ;;  %v7077_v26 = vpop.f32.mrf.mxu1  ;;  %v7093_v41 = vpop.f32.mrf.mxu0  ;;  %v1035_v53 = vld [vmem:[#allocation8 + $0xa60] sm:$0xff]  ;;  %v882_v58 = vld [vmem:[#allocation8 + $0x598] sm:$0xff] }
 0x20d   : > { %1610 = vmatpush.msrb.mxu0 %v997_v60  ;;  %1633 = vmatpush.msrb.mxu1 %v710_v61  ;;  %v1026_v59 = vld [vmem:[#allocation8 + $0xa18] sm:$0xff]  ;;  %v729_v60 = vld [vmem:[#allocation8 + $0xd0] sm:$0xff] }
 0x20e   : > { %1656 = vmatpush.msrb.mxu2 %v854_v63  ;;  %1679 = vmatpush.msrb.mxu3 %v998_v0  ;;  %v873_v63 = vld [vmem:[#allocation8 + $0x550] sm:$0xff] }
 0x20f   : > { %1611 = vmatmul.f32.vlgmr.msrb.gmra.mxu0 %v7010_v24  ;;  %1634 = vmatmul.f32.vlgmr.msrb.gmra.mxu1 %v7006_v22  ;;  %v1017_v0 = vld [vmem:[#allocation8 + $0x9d0] sm:$0xff] }
 0x210   : > { %1657 = vmatmul.f32.vlgmr.msrb.gmra.mxu2 %v7008_v23  ;;  %1680 = vmatmul.f32.vlgmr.msrb.gmra.mxu3 %v7010_v24 }
 0x211   : > { %1687 = vmatpush.msra.mxu0 %v846_v6  ;;  %1710 = vmatpush.msra.mxu1 %v990_v7 }
 0x212   : > { %1733 = vmatpush.msra.mxu2 %v1134_v10  ;;  %1859 = vrot.lane.b32.xlu2 %v7069_v9, %s6678_s7  ;;  %v720_v10 = vld [vmem:[#allocation8 + $0x88] sm:$0xff] }
 0x213   : > { %1688 = vmatpush.msra.mxu0 %v837_v11  ;;  %1711 = vmatpush.msra.mxu1 %v981_v12  ;;  %v7079_v55 = vpop.f32.mrf.mxu2  ;;  %v7083_v4 = vpop.f32.mrf.mxu3  ;;  %v864_v12 = vld [vmem:[#allocation8 + $0x508] sm:$0xff] }
 0x214   : > { %1734 = vmatpush.msra.mxu2 %v1125_v13  ;;  %v1008_v13 = vld [vmem:[#allocation8 + $0x988] sm:$0xff] }
 0x215   : > { %1689 = vmatpush.msra.mxu0 %v828_v14  ;;  %1712 = vmatpush.msra.mxu1 %v972_v15  ;;  %v711_v15 = vld [vmem:[#allocation8 + $0x40] sm:$0xff] }
 0x216   : > { %1735 = vmatpush.msra.mxu2 %v1116_v16  ;;  %v7089_v37 = vpop.f32.mrf.mxu1  ;;  %v1247_v7 = vpop.f32.mrf.mxu0  ;;  %v855_v16 = vld [vmem:[#allocation8 + $0x4c0] sm:$0xff] }
 0x217   : > { %1690 = vmatpush.msra.mxu0 %v819_v17  ;;  %1713 = vmatpush.msra.mxu1 %v963_v18  ;;  %v999_v17 = vld [vmem:[#allocation8 + $0x940] sm:$0xff] }
 0x218   : > { %1736 = vmatpush.msra.mxu2 %v1107_v25  ;;  %1614 = vmatmul.f32.gmra.mxu0 %v7023_v43 }
 0x219   : > { %1637 = vmatmul.f32.gmra.mxu1 %v7019_v21  ;;  %1660 = vmatmul.f32.gmra.mxu2 %v7021_v39 }
 0x21a   : > { %1683 = vmatmul.f32.gmra.mxu3 %v7023_v43  ;;  %1691 = vmatpush.msra.mxu0 %v810_v56 }
 0x21b   : > { %1714 = vmatpush.msra.mxu1 %v954_v5  ;;  %1737 = vmatpush.msra.mxu2 %v1098_v27 }
 0x21c   : > { %1692 = vmatpush.msra.mxu0 %v801_v8 }
 0x21d   : > { %1715 = vmatpush.msra.mxu1 %v945_v28  ;;  %1738 = vmatpush.msra.mxu2 %v1089_v29  ;;  %v7091_v38 = vpop.f32.mrf.mxu2  ;;  %v7095_v45 = vpop.f32.mrf.mxu3  ;;  %v1179_v28 = vadd.f32 %v7063_v1, %v7081_v57 }
 0x21e   : > { %1693 = vmatpush.msra.mxu0 %v792_v30 }
 0x21f   : > { %1716 = vmatpush.msra.mxu1 %v936_v31  ;;  %1739 = vmatpush.msra.mxu2 %v1080_v32 }
 0x220   : > { %1694 = vmatpush.msra.mxu0 %v783_v33 }
 0x221   : > { %1717 = vmatpush.msra.mxu1 %v927_v34  ;;  %1740 = vmatpush.msra.mxu2 %v1071_v35 }
 0x222   : > { %1695 = vmatpush.msra.mxu0 %v774_v36  ;;  %v1359_v61 = vpop.f32.mrf.mxu1  ;;  %v1336_v5 = vpop.f32.mrf.mxu0 }
 0x223   : > { %1718 = vmatpush.msra.mxu1 %v918_v19  ;;  %1741 = vmatpush.msra.mxu2 %v1062_v20 }
 0x224   : > { %1696 = vmatpush.msra.mxu0 %v765_v44 }
 0x225   : > { %1719 = vmatpush.msra.mxu1 %v909_v46  ;;  %1742 = vmatpush.msra.mxu2 %v1053_v47  ;;  %v1314_v46 = vadd.f32 %v7083_v4, %v7079_v55 }
 0x226   : > { %1697 = vmatpush.msra.mxu0 %v756_v48 }
 0x227   : > { %1720 = vmatpush.msra.mxu1 %v900_v49  ;;  %1743 = vmatpush.msra.mxu2 %v1044_v50  ;;  %v1317_v49 = vadd.f32 %v7095_v45, %v7091_v38 }
 0x228   : > { %1698 = vmatpush.msra.mxu0 %v747_v51 }
 0x229   : > { %1721 = vmatpush.msra.mxu1 %v891_v52  ;;  %1744 = vmatpush.msra.mxu2 %v1035_v53  ;;  %v1382_v62 = vpop.f32.mrf.mxu2  ;;  %v1405_v11 = vpop.f32.mrf.mxu3 }
 0x22a   : > { %1699 = vmatpush.msra.mxu0 %v738_v54  ;;  %v1383_v6 = vadd.f32 %v1382_v62, %v1359_v61 }
 0x22b   : > { %1722 = vmatpush.msra.mxu1 %v882_v58  ;;  %1745 = vmatpush.msra.mxu2 %v1026_v59 }
 0x22c   : > { %1700 = vmatpush.msra.mxu0 %v729_v60  ;;  %v1406_v14 = vadd.f32 %v1405_v11, %v1383_v6  ;;  %v1362_v18 = vpop.f32.mrf.mxu1  ;;  %v1339_v29 = vpop.f32.mrf.mxu0 }
 0x22d   : > { %1723 = vmatpush.msra.mxu1 %v873_v63  ;;  %1746 = vmatpush.msra.mxu2 %v1017_v0  ;;  %v1340_v51 = vadd.f32 %v1339_v29, %v1317_v49 }
 0x22e   : > { %1701 = vmatpush.msra.mxu0 %v720_v10  ;;  %1863 = vrot.lane.b32.xlu1 %v1406_v14, %s6678_s7 }
 0x22f   : > { %1724 = vmatpush.msra.mxu1 %v864_v12  ;;  %1747 = vmatpush.msra.mxu2 %v1008_v13  ;;  %v1761_v52 = vmul.f32 0.05103104, %v1340_v51  ;;  %v1762_v12 = vlaneseq }
 0x230   : > { %1702 = vmatpush.msra.mxu0 %v711_v15 }
 0x231   : > { %1725 = vmatpush.msra.mxu1 %v855_v16  ;;  %1748 = vmatpush.msra.mxu2 %v999_v17  ;;  %v1763_v15 = vshrl.u32 %v1762_v12, 7  ;;  %v1766_v16 = vand.u32 127, %v1762_v12 }
 0x232   : > { %1703 = vmatmul.f32.vlgmr.msra.gmra.mxu0 %v7006_v22  ;;  %1726 = vmatmul.f32.vlgmr.msra.gmra.mxu1 %v7008_v23  ;;  %v1202_v22 = vadd.f32 %v7065_v2, %v1179_v28 }
 0x233   : > { %1749 = vmatmul.f32.vlgmr.msra.gmra.mxu2 %v7010_v24  ;;  %v1385_v25 = vpop.f32.mrf.mxu2  ;;  %v1408_v27 = vpop.f32.mrf.mxu3  ;;  %v1245_v24 = vadd.f32 %v7093_v41, %v7061_v40  ;;  %v1248_v40 = vadd.f32 %v1247_v7, %v7067_v3  ;;  %vm7158_vm8 = vcmp.le.s32.totalorder %v1766_v16, %v1763_v15 }
 0x234   : > { %v1386_v56 = vadd.f32 %v1385_v25, %v1362_v18  ;;  %v1759_v23 = vmul.f32 0.05103104, %v1202_v22 }
 0x235   : > { %v1268_v1 = vadd.f32 %v7077_v26, %v1245_v24 }
 0x236   : > { %v1409_v8 = vadd.f32 %v1408_v27, %v1386_v56 }
 0x237   : > { %v7116_v2 = vmul.f32 0.05103104, %v1268_v1 }
 0x238   : > { %1865 = vrot.lane.b32.xlu0 %v1409_v8, %s6678_s7  ;;  %5919 = vmatpush.xpose.msk.msra.mxu3 %vm1769_vm7, %v1409_v8 }
 0x23a   : > { %1706 = vmatmul.f32.gmra.mxu0 %v7019_v21  ;;  %1729 = vmatmul.f32.gmra.mxu1 %v7021_v39 }
 0x23b   : > { %1752 = vmatmul.f32.gmra.mxu2 %v7023_v43 }
 0x23c   : > { %5920 = vmatpush.xpose.msk.msra.mxu3 %vm1769_vm7, %v1406_v14 }
 0x23f   : > { %5921 = vmatmul.msk.f32.vlgmr.msra.gmra.mxu3 %vm1769_vm7, %v7069_v9  ;;  %v1271_v9 = vadd.f32 %v7089_v37, %v1248_v40  ;;  %v1337_v37 = vadd.f32 %v1336_v5, %v1314_v46  ;;  %v1764_v5 = vadd.s32 8, %v1763_v15 }
 0x240   : > { %1861 = vrot.lane.b32.xlu0 %v1759_v23, %s6678_s7 }
 0x241   : > { %v7124_v31 = vmul.f32 0.05103104, %v1271_v9  ;;  %v1758_v48 = vmul.f32 0.05103104, %v1337_v37  ;;  %vm7165_vm10 = vcmp.le.s32.totalorder %v1766_v16, %v1764_v5 }
 0x244   : > { %v1428_v21 = vpop.f32.mrf.mxu0  ;;  %v1451_v39 = vpop.f32.mrf.mxu1 }
 0x245   : > { %v1452_v43 = vadd.f32 %v1451_v39, %v1428_v21 }
 0x247   : > { %5922 = vmatmul.msk.f32.gmra.mxu3 %vm1769_vm7, %v1759_v23 }
 0x248   : > { %2047 = vrot.lane.b32.xlu0 %v7116_v2, %s6678_s7 }
 0x24b   : > { %v1474_v57 = vpop.f32.mrf.mxu2  ;;  %v1497_v33 = vpop.f32.mrf.mxu3 }
 0x24c   : > { %v1475_v30 = vadd.f32 %v1474_v57, %v1452_v43 }
 0x24e   : > { %2051 = vrot.lane.b32.xlu1 %v1475_v30, %s6678_s7  ;;  %v1431_v26 = vpop.f32.mrf.mxu0  ;;  %v1454_v32 = vpop.f32.mrf.mxu1 }
 0x24f   : > { %v1455_v62 = vadd.f32 %v1454_v32, %v1431_v26 }
 0x255   : > { %v1500_v36 = vpop.f32.mrf.mxu3  ;;  %v1477_v50 = vpop.f32.mrf.mxu2 }
 0x256   : > { %2049 = vrot.lane.b32.xlu1 %v7124_v31, %s6678_s7  ;;  %v1478_v0 = vadd.f32 %v1477_v50, %v1455_v62 }
 0x268   : > { %v1520_v34 = vpop.f32.mrf.mxu0  ;;  %v1543_v35 = vpop.f32.mrf.mxu1 }
 0x269   : > { %v1521_v3 = vadd.f32 %v1520_v34, %v1497_v33 }
 0x26b   : > { %v1544_v47 = vadd.f32 %v1543_v35, %v1521_v3 }
 0x26c   : > { %v1860_v11 = vpop.permute.xlu2 %1859 }
 0x26f   : > { %v1566_v55 = vpop.f32.mrf.mxu2  ;;  %v1589_v4 = vpop.f32.mrf.mxu3 }
 0x270   : > { %v1590_v59 = vadd.f32 %v1589_v4, %v1566_v55 }
 0x272   : > { %v1523_v19 = vpop.f32.mrf.mxu0  ;;  %v1546_v41 = vpop.f32.mrf.mxu1 }
 0x273   : > { %v1524_v20 = vadd.f32 %v1523_v19, %v1500_v36 }
 0x275   : > { %v1547_v44 = vadd.f32 %v1546_v41, %v1524_v20 }
 0x277   : > { %5943 = vmatpush.xpose.msk.msrb.mxu2 %vm1769_vm7, %v1547_v44  ;;  %2241 = vrot.lane.b32.xlu1 %v1547_v44, %s6678_s7 }
 0x279   : > { %v1569_v54 = vpop.f32.mrf.mxu2  ;;  %v1592_v58 = vpop.f32.mrf.mxu3 }
 0x27a   : > { %v1593_v38 = vadd.f32 %v1592_v58, %v1569_v54 }
 0x27b   : > { %5944 = vmatpush.xpose.msk.msrb.mxu2 %vm1769_vm7, %v1544_v47 }
 0x27e   : > { %5945 = vmatmul.msk.f32.vlgmr.msrb.gmra.mxu2 %vm1769_vm7, %v1758_v48 }
 0x27f   : > { %2239 = vrot.lane.b32.xlu1 %v1544_v47, %s6678_s7 }
 0x286   : > { %5946 = vmatmul.msk.f32.gmra.mxu2 %vm1769_vm7, %v1761_v52 }
 0x287   : > { %2235 = vrot.lane.b32.xlu1 %v1758_v48, %s6678_s7 }
 0x28c   : > { %v1612_v53 = vpop.f32.mrf.mxu0 }
 0x28d   : > { %v7140_v60 = vadd.f32 %v1612_v53, %v1590_v59 }
 0x28f   : > { %2237 = vrot.lane.b32.xlu1 %v1761_v52, %s6678_s7 }
 0x293   : > { %v7152_v10 = vpop.f32.mrf.mxu3  ;;  %v1658_v23 = vpop.f32.mrf.mxu2 }
 0x295   : > { %v1615_v45 = vpop.f32.mrf.mxu0 }
 0x296   : > { %v7142_v61 = vadd.f32 %v1615_v45, %v1593_v38  ;;  %v1635_v38 = vpop.f32.mrf.mxu1 }
 0x298   : > { %v6129_v63 = vpack.i.bf16 %v7140_v60, %v7142_v61  ;;  %1850 = vmatpush.msrb.mxu3 %v7142_v61 }
 0x29a   : > { %1851 = vmatpush.msrb.mxu3 %v7140_v60 }
 0x29c   : > { %5931 = vmatpush.xpose.msk.msra.mxu3 %vm1769_vm7, %v1478_v0  ;;  %v1661_v24 = vpop.f32.mrf.mxu2 }
 0x29d   : > { %v7155_v14 = vpop.f32.mrf.mxu3 }
 0x29e   : > { %v1638_v62 = vpop.f32.mrf.mxu1 }
 0x2a0   : > { %5932 = vmatpush.xpose.msk.msra.mxu3 %vm1769_vm7, %v1475_v30  ;;  %v1864_v7 = vpop.permute.xlu1 %1863 }
 0x2aa   : > { %v1866_v6 = vpop.permute.xlu0 %1865 }
 0x2ab   : > { %5925 = vmatpush.xpose.msk.msrb.mxu0 %vm1769_vm7, %v1866_v6 }
 0x2af   : > { %5926 = vmatpush.xpose.msk.msrb.mxu0 %vm1769_vm7, %v1864_v7  ;;  %v7173_v29 = vpop.f32.mrf.mxu0  ;;  %v1659_v7 = vadd.f32 %v1658_v23, %v1635_v38  ;;  %v1727_v15 = vpop.f32.mrf.mxu1 }
 0x2b1   : > { %v7217_v16 = vadd.f32 %v7152_v10, %v1659_v7  ;;  %v1728_v10 = vadd.f32 %v1727_v15, %v7173_v29 }
 0x2b2   : > { %5927 = vmatmul.msk.f32.vlgmr.msrb.gmra.mxu0 %vm1769_vm7, %v1860_v11  ;;  %v1862_v13 = vpop.permute.xlu0 %1861 }
 0x2b6   : > { %v7175_v1 = vpop.f32.mrf.mxu2 }
 0x2b7   : > { %v7177_v21 = vpop.f32.mrf.mxu0  ;;  %v7233_v23 = vadd.f32 %v7175_v1, %v1728_v10 }
 0x2ba   : > { %5928 = vmatmul.msk.f32.gmra.mxu0 %vm1769_vm7, %v1862_v13  ;;  %v2048_v53 = vpop.permute.xlu0 %2047 }
 0x2be   : > { %v7179_v39 = vpop.f32.mrf.mxu2 }
 0x2c0   : > { %v2052_v9 = vpop.permute.xlu1 %2051 }
 0x2c2   : > { %v1799_v18 = vpop.f32.mrf.mxu3 }
 0x2c3   : > { %v1805_v25 = vsel %vm7158_vm8, %v1799_v18, -inf }
 0x2c4   : > { %v1808_v56 = vsel %vm1807_vm9, %v1805_v25, -inf }
 0x2c5   : > { %1809 = vmax.xlane.f32.xlu2 %v1808_v56  ;;  %v1730_v56 = vpop.f32.mrf.mxu1 }
 0x2c8   : > { %v2050_v20 = vpop.permute.xlu1 %2049 }
 0x2ca   : > { %v1802_v8 = vpop.f32.mrf.mxu3 }
 0x2cb   : > { %v1806_v28 = vsel %vm7165_vm10, %v1802_v8, -inf }
 0x2cc   : > { %v1811_v22 = vsel %vm1807_vm9, %v1806_v28, -inf }
 0x2cd   : > { %1812 = vmax.xlane.f32.xlu2 %v1811_v22 }
 0x2e5   : > { %2053 = vrot.lane.b32.xlu2 %v1478_v0, %s6678_s7  ;;  %v1662_v0 = vadd.f32 %v1661_v24, %v1638_v62 }
 0x2e7   : > { %v7213_v13 = vadd.f32 %v7155_v14, %v1662_v0  ;;  %v1731_v14 = vadd.f32 %v1730_v56, %v7177_v21 }
 0x2e9   : > { %v2242_v49 = vpop.permute.xlu1 %2241  ;;  %v7228_v22 = vadd.f32 %v7179_v39, %v1731_v14 }
 0x2f1   : > { %v2240_v54 = vpop.permute.xlu1 %2239 }
 0x2f9   : > { %v2236_v58 = vpop.permute.xlu1 %2235 }
 0x301   : > { %v2176_v40 = vpop.f32.mrf.mxu2  ;;  %v2238_v59 = vpop.permute.xlu1 %2237 }
 0x302   : > { %v7189_v26 = vsel %vm7158_vm8, %v2176_v40, -inf }
 0x303   : > { %v2184_v34 = vsel %vm1807_vm9, %v7189_v26, -inf }
 0x309   : > { %v2179_v35 = vpop.f32.mrf.mxu2 }
 0x30a   : > { %v7195_v19 = vsel %vm7165_vm10, %v2179_v35, -inf }
 0x30b   : > { %v2187_v44 = vsel %vm1807_vm9, %v7195_v19, -inf }
 0x32f   : > { %v1892_v43 = vpop.f32.mrf.mxu0 }
 0x330   : > { %v7183_v57 = vsel %vm7158_vm8, %v1892_v43, -inf }
 0x331   : > { %v1900_v30 = vsel %vm1807_vm9, %v7183_v57, -inf }
 0x332   : > { %1901 = vmax.xlane.f32.xlu1 %v1900_v30 }
 0x337   : > { %v1895_v48 = vpop.f32.mrf.mxu0 }
 0x338   : > { %v1810_v32 = vpop.xlane.xlu2 %1809  ;;  %v1899_v51 = vsel %vm7165_vm10, %v1895_v48, -inf }
 0x339   : > { %v1814_v33 = vsub.f32 %v1805_v25, %v1810_v32  ;;  %v1903_v55 = vsel %vm1807_vm9, %v1899_v51, -inf }
 0x33a   : > { %2185 = vmax.xlane.f32.xlu1 %v2184_v34 }
 0x33b   : > { %v1816_v36 = vmul.f32 1.442695, %v1814_v33 }
 0x33d   : > { %6150 = vpow2.f32 %v1816_v36 }
 0x340   : > { %v1813_v41 = vpop.xlane.xlu2 %1812 }
 0x341   : > { %v1815_v3 = vsub.f32 %v1806_v28, %v1813_v41 }
 0x342   : > { %2188 = vmax.xlane.f32.xlu1 %v2187_v44 }
 0x343   : > { %v6151_v46 = vpop.eup %6150  ;;  %v1818_v37 = vmul.f32 1.442695, %v1815_v3 }
 0x344   : > { %v1820_v47 = vsel %vm1807_vm9, %v6151_v46, 0.0 }
 0x345   : > { %6152 = vpow2.f32 %v1818_v37  ;;  %1821 = vadd.xlane.f32.xlu2 %v1820_v47 }
 0x348   : > { %v2054_v50 = vpop.permute.xlu2 %2053 }
 0x349   : > { %5937 = vmatpush.xpose.msk.msra.mxu0 %vm1769_vm7, %v2054_v50 }
 0x34b   : > { %v6153_v52 = vpop.eup %6152 }
 0x34c   : > { %v1823_v4 = vsel %vm1807_vm9, %v6153_v52, 0.0 }
 0x34d   : > { %1904 = vmax.xlane.f32.xlu2 %v1903_v55  ;;  %1824 = vadd.xlane.f32.xlu0 %v1823_v4 }
 0x34e   : > { %5938 = vmatpush.xpose.msk.msra.mxu0 %vm1769_vm7, %v2052_v9 }
 0x351   : > { %5939 = vmatmul.msk.f32.vlgmr.msra.gmra.mxu0 %vm1769_vm7, %v2048_v53 }
 0x352   : > { %5949 = vmatpush.xpose.msk.msrb.mxu0 %vm1769_vm7, %v2242_v49 }
 0x356   : > { %5950 = vmatpush.xpose.msk.msrb.mxu0 %vm1769_vm7, %v2240_v54 }
 0x359   : > { %5940 = vmatmul.msk.f32.gmra.mxu0 %vm1769_vm7, %v2050_v20 }
 0x361   : > { %5951 = vmatmul.msk.f32.vlgmr.msrb.gmra.mxu0 %vm1769_vm7, %v2236_v58 }
 0x369   : > { %5952 = vmatmul.msk.f32.gmra.mxu0 %vm1769_vm7, %v2238_v59 }
 0x3a5   : > { %v1902_v40 = vpop.xlane.xlu1 %1901 }
 0x3a6   : > { %v1906_v30 = vsub.f32 %v7183_v57, %v1902_v40 }
 0x3a8   : > { %v1908_v33 = vmul.f32 1.442695, %v1906_v30 }
 0x3b8   : > { %v1822_v45 = vpop.xlane.xlu2 %1821 }
 0x3b9   : > { %6154 = vrcp.f32 %v1822_v45 }
 0x3bf   : > { %v6155_v6 = vpop.eup %6154 }
 0x3c0   : > { %v1828_v11 = vmul.f32 %v6155_v6, %v6151_v46  ;;  %v1825_v12 = vpop.xlane.xlu0 %1824  ;;  %v1905_v24 = vpop.xlane.xlu2 %1904 }
 0x3c1   : > { %6156 = vrcp.f32 %v1825_v12  ;;  %v1907_v43 = vsub.f32 %v1899_v51, %v1905_v24 }
 0x3c2   : > { %5923 = vmatmul.msk.f32.vlgmr.msrb.gmra.mxu3 %vm1807_vm9, %v1828_v11 }
 0x3c3   : > { %2038 = vmatpush.msrb.mxu3 %v7213_v13 }
 0x3c5   : > { %2039 = vmatpush.msrb.mxu3 %v7217_v16 }
 0x3c7   : > { %v6157_v18 = vpop.eup %6156 }
 0x3c8   : > { %v1829_v25 = vmul.f32 %v6157_v18, %v6153_v52 }
 0x3ca   : > { %5924 = vmatmul.msk.f32.gmra.mxu3 %vm1807_vm9, %v1829_v25  ;;  %v6134_v25 = vpack.i.bf16 %v7217_v16, %v7213_v13 }
 0x3ce   : > { %v2080_v5 = vpop.f32.mrf.mxu0 }
 0x3cf   : > { %v2086_v8 = vsel %vm7158_vm8, %v2080_v5, -inf  ;;  %v6139_v5 = vpack.i.bf16 %v7233_v23, %v7228_v22 }
 0x3d0   : > { %v2088_v28 = vsel %vm1807_vm9, %v2086_v8, -inf }
 0x3d1   : > { %2089 = vmax.xlane.f32.xlu0 %v2088_v28 }
 0x3d2   : > { %5933 = vmatmul.msk.f32.vlgmr.msra.gmra.mxu3 %vm1769_vm7, %v7116_v2  ;;  %v1910_v2 = vmul.f32 1.442695, %v1907_v43 }
 0x3d3   : > { %2226 = vmatpush.msra.mxu3 %v7228_v22  ;;  %v2186_v22 = vpop.xlane.xlu1 %2185 }
 0x3d4   : > { %6158 = vpow2.f32 %v1910_v2  ;;  %v2190_v2 = vsub.f32 %v7189_v26, %v2186_v22  ;;  %v2375_v22 = vld [vmem:[#allocation10 + $0x50] sm:$0xff] }
 0x3d5   : > { %2227 = vmatpush.msra.mxu3 %v7233_v23  ;;  %6160 = vpow2.f32 %v1908_v33 }
 0x3d6   : > { %v2083_v21 = vpop.f32.mrf.mxu0  ;;  %v2192_v30 = vmul.f32 1.442695, %v2190_v2  ;;  %v2368_v2 = vld [vmem:[#allocation10 + $0x18] sm:$0xff] }
 0x3d7   : > { %v2087_v29 = vsel %vm7165_vm10, %v2083_v21, -inf }
 0x3d8   : > { %v2091_v39 = vsel %vm1807_vm9, %v2087_v29, -inf }
 0x3d9   : > { %2092 = vmax.xlane.f32.xlu2 %v2091_v39 }
 0x3da   : > { %5934 = vmatmul.msk.f32.gmra.mxu3 %vm1769_vm7, %v7124_v31  ;;  %v6159_v34 = vpop.eup %6158 }
 0x3db   : > { %v1915_v20 = vsel %vm1807_vm9, %v6159_v34, 0.0  ;;  %v6161_v57 = vpop.eup %6160 }
 0x3dc   : > { %v1912_v41 = vsel %vm1807_vm9, %v6161_v57, 0.0 }
 0x3de   : > { %v2268_v1 = vpop.f32.mrf.mxu0 }
 0x3df   : > { %v2274_v9 = vsel %vm7158_vm8, %v2268_v1, -inf }
 0x3e0   : > { %v2276_v32 = vsel %vm1807_vm9, %v2274_v9, -inf }
 0x3e1   : > { %2277 = vmax.xlane.f32.xlu0 %v2276_v32 }
 0x3e6   : > { %v2271_v35 = vpop.f32.mrf.mxu0 }
 0x3e7   : > { %v2275_v36 = vsel %vm7165_vm10, %v2271_v35, -inf }
 0x3e8   : > { %v2279_v31 = vsel %vm1807_vm9, %v2275_v36, -inf }
 0x3e9   : > { %2280 = vmax.xlane.f32.xlu2 %v2279_v31  ;;  %1916 = vadd.xlane.f32.xlu0 %v1915_v20 }
 0x3f1   : > { %1913 = vadd.xlane.f32.xlu2 %v1912_v41 }
 0x409   : > { %6130 = vrot.lane.b32.xlu2 %v6129_v63, %s6678_s7 }
 0x444   : > { %v2090_v3 = vpop.xlane.xlu0 %2089 }
 0x445   : > { %v2094_v44 = vsub.f32 %v2086_v8, %v2090_v3  ;;  %v7255_v46 = vpop.f32.mrf.mxu3 }
 0x447   : > { %v2096_v37 = vmul.f32 1.442695, %v2094_v44 }
 0x449   : > { %6162 = vpow2.f32 %v2096_v37 }
 0x44c   : > { %v2093_v47 = vpop.xlane.xlu2 %2092 }
 0x44d   : > { %v2095_v48 = vsub.f32 %v2087_v29, %v2093_v47  ;;  %v7257_v49 = vpop.f32.mrf.mxu3 }
 0x44f   : > { %v7259_v50 = vpop.eup %6162  ;;  %v2098_v51 = vmul.f32 1.442695, %v2095_v48 }
 0x450   : > { %v2100_v52 = vsel %vm1807_vm9, %v7259_v50, 0.0 }
 0x451   : > { %6164 = vpow2.f32 %v2098_v51  ;;  %2101 = vadd.xlane.f32.xlu0 %v2100_v52 }
 0x454   : > { %v2278_v60 = vpop.xlane.xlu0 %2277 }
 0x455   : > { %v2282_v61 = vsub.f32 %v2274_v9, %v2278_v60  ;;  %v1988_v63 = vpop.f32.mrf.mxu3  ;;  %v2189_v9 = vpop.xlane.xlu1 %2188 }
 0x456   : > { %v1994_v55 = vsel %vm7158_vm8, %v1988_v63, -inf  ;;  %v2191_v33 = vsub.f32 %v7195_v19, %v2189_v9 }
 0x457   : > { %v7265_v4 = vpop.eup %6164  ;;  %v2284_v53 = vmul.f32 1.442695, %v2282_v61  ;;  %v1996_v54 = vsel %vm1807_vm9, %v1994_v55, -inf }
 0x458   : > { %v2103_v58 = vsel %vm1807_vm9, %v7265_v4, 0.0  ;;  %v2194_v35 = vmul.f32 1.442695, %v2191_v33 }
 0x459   : > { %6166 = vpow2.f32 %v2284_v53  ;;  %1997 = vmax.xlane.f32.xlu0 %v1996_v54  ;;  %2104 = vadd.xlane.f32.xlu2 %v2103_v58  ;;  %v2410_v53 = vld [vmem:[#allocation10 + $0x168] sm:$0xff]  ;;  %v2411_v54 = vld [vmem:[#allocation10 + $0x170] sm:$0xff] }
 0x45a   : > { %v2407_v58 = vld [vmem:[#allocation10 + $0x150] sm:$0xff]  ;;  %2517 = vmatpush.msra.mxu2 %v2410_v53  ;;  %v2452_v53 = vld [vmem:[#allocation10 + $0x2b8] sm:$0xff] }
 0x45c   : > { %v2281_v59 = vpop.xlane.xlu2 %2280  ;;  %v1917_v7 = vpop.xlane.xlu0 %1916  ;;  %2518 = vmatpush.msra.mxu2 %v2407_v58  ;;  %v2454_v58 = vld [vmem:[#allocation10 + $0x2c8] sm:$0xff] }
 0x45d   : > { %v1991_v38 = vpop.f32.mrf.mxu3  ;;  %v2283_v8 = vsub.f32 %v2275_v36, %v2281_v59  ;;  %v2408_v59 = vld [vmem:[#allocation10 + $0x158] sm:$0xff] }
 0x45e   : > { %v1995_v45 = vsel %vm7165_vm10, %v1991_v38, -inf  ;;  %v2404_v38 = vld [vmem:[#allocation10 + $0x138] sm:$0xff] }
 0x45f   : > { %v7272_v62 = vpop.eup %6166  ;;  %v1999_v17 = vsel %vm1807_vm9, %v1995_v45, -inf  ;;  %v2286_v28 = vmul.f32 1.442695, %v2283_v8  ;;  %2519 = vmatpush.msra.mxu2 %v2404_v38  ;;  %v2387_v8 = vld [vmem:[#allocation10 + $0xb0] sm:$0xff]  ;;  %v2449_v38 = vld [vmem:[#allocation10 + $0x2a0] sm:$0xff] }
 0x460   : > { %v2288_v0 = vsel %vm1807_vm9, %v7272_v62, 0.0 }
 0x461   : > { %2289 = vadd.xlane.f32.xlu1 %v2288_v0  ;;  %2000 = vmax.xlane.f32.xlu0 %v1999_v17  ;;  %v2401_v17 = vld [vmem:[#allocation10 + $0x120] sm:$0xff] }
 0x462   : > { %2520 = vmatpush.msra.mxu2 %v2401_v17  ;;  %v2451_v17 = vld [vmem:[#allocation10 + $0x2b0] sm:$0xff] }
 0x464   : > { %v1914_v6 = vpop.xlane.xlu2 %1913 }
 0x465   : > { %6168 = vrcp.f32 %v1914_v6 }
 0x466   : > { %6170 = vrcp.f32 %v1917_v7 }
 0x467   : > { %6172 = vpow2.f32 %v2286_v28  ;;  %v2383_v28 = vld [vmem:[#allocation10 + $0x90] sm:$0xff] }
 0x46b   : > { %v6169_v12 = vpop.eup %6168 }
 0x46c   : > { %v6131_v11 = vpop.permute.xlu2 %6130  ;;  %v1920_v27 = vmul.f32 %v6169_v12, %v6161_v57  ;;  %v6171_v56 = vpop.eup %6170  ;;  %v2399_v12 = vld [vmem:[#allocation10 + $0x110] sm:$0xff] }
 0x46d   : > { %v6132_v15 = vunpack.i.l.bf16 %v6131_v11  ;;  %v6133_v18 = vunpack.i.h.bf16 %v6131_v11  ;;  %v1921_v14 = vmul.f32 %v6171_v56, %v6159_v34  ;;  %v7285_v10 = vpop.eup %6172  ;;  %v2398_v11 = vld [vmem:[#allocation10 + $0x108] sm:$0xff]  ;;  %v2389_v56 = vld [vmem:[#allocation10 + $0xc0] sm:$0xff] }
 0x46e   : > { %v2291_v24 = vsel %vm1807_vm9, %v7285_v10, 0.0  ;;  %2521 = vmatpush.msra.mxu2 %v2398_v11  ;;  %v2443_v11 = vld [vmem:[#allocation10 + $0x270] sm:$0xff] }
 0x46f   : > { %1950 = vmatpush.msrb.mxu1 %v6132_v15  ;;  %v2395_v15 = vld [vmem:[#allocation10 + $0xf0] sm:$0xff] }
 0x470   : > { %2522 = vmatpush.msra.mxu2 %v2395_v15  ;;  %v2445_v15 = vld [vmem:[#allocation10 + $0x280] sm:$0xff] }
 0x471   : > { %1951 = vmatpush.msrb.mxu1 %v6133_v18  ;;  %v2396_v18 = vld [vmem:[#allocation10 + $0xf8] sm:$0xff] }
 0x472   : > { %5929 = vmatmul.msk.f32.vlgmr.msrb.gmra.mxu1 %vm1807_vm9, %v1920_v27  ;;  %v2392_v27 = vld [vmem:[#allocation10 + $0xd8] sm:$0xff] }
 0x473   : > { %2523 = vmatpush.msra.mxu2 %v2392_v27  ;;  %v2440_v27 = vld [vmem:[#allocation10 + $0x258] sm:$0xff] }
 0x475   : > { %6135 = vrot.lane.b32.xlu0 %v6134_v25, %s6678_s7  ;;  %v2393_v25 = vld [vmem:[#allocation10 + $0xe0] sm:$0xff]  ;;  %2524 = vmatpush.msra.mxu2 %v2389_v56  ;;  %v2442_v56 = vld [vmem:[#allocation10 + $0x268] sm:$0xff] }
 0x47a   : > { %6140 = vrot.lane.b32.xlu1 %v6139_v5, %s6678_s7  ;;  %5930 = vmatmul.msk.f32.gmra.mxu1 %vm1807_vm9, %v1921_v14  ;;  %v2390_v5 = vld [vmem:[#allocation10 + $0xc8] sm:$0xff] }
 0x47b   : > { %v2386_v14 = vld [vmem:[#allocation10 + $0xa8] sm:$0xff] }
 0x47c   : > { %2525 = vmatpush.msra.mxu2 %v2386_v14  ;;  %v2437_v14 = vld [vmem:[#allocation10 + $0x240] sm:$0xff] }
 0x47e   : > { %2526 = vmatpush.msra.mxu2 %v2383_v28  ;;  %v2439_v28 = vld [vmem:[#allocation10 + $0x250] sm:$0xff] }
 0x49f   : > { %2292 = vadd.xlane.f32.xlu0 %v2291_v24  ;;  %v2380_v24 = vld [vmem:[#allocation10 + $0x78] sm:$0xff] }
 0x4a0   : > { %2527 = vmatpush.msra.mxu2 %v2380_v24  ;;  %v2434_v24 = vld [vmem:[#allocation10 + $0x228] sm:$0xff] }
 0x4c4   : > { %v2102_v13 = vpop.xlane.xlu0 %2101 }
 0x4cc   : > { %v1998_v16 = vpop.xlane.xlu0 %1997  ;;  %v2105_v31 = vpop.xlane.xlu2 %2104 }
 0x4cd   : > { %v2002_v21 = vsub.f32 %v1994_v55, %v1998_v16  ;;  %v2377_v16 = vld [vmem:[#allocation10 + $0x60] sm:$0xff] }
 0x4ce   : > { %2528 = vmatpush.msra.mxu2 %v2377_v16  ;;  %v2436_v16 = vld [vmem:[#allocation10 + $0x238] sm:$0xff] }
 0x4cf   : > { %v2004_v43 = vmul.f32 1.442695, %v2002_v21  ;;  %v2378_v21 = vld [vmem:[#allocation10 + $0x68] sm:$0xff] }
 0x4d1   : > { %6174 = vpow2.f32 %v2004_v43  ;;  %v2374_v43 = vld [vmem:[#allocation10 + $0x48] sm:$0xff] }
 0x4d2   : > { %2529 = vmatpush.msra.mxu2 %v2374_v43  ;;  %v2431_v43 = vld [vmem:[#allocation10 + $0x210] sm:$0xff] }
 0x4d4   : > { %v2001_v23 = vpop.xlane.xlu0 %2000  ;;  %v2290_v26 = vpop.xlane.xlu1 %2289 }
 0x4d5   : > { %v2003_v29 = vsub.f32 %v1995_v45, %v2001_v23  ;;  %v2405_v45 = vld [vmem:[#allocation10 + $0x140] sm:$0xff]  ;;  %v2371_v23 = vld [vmem:[#allocation10 + $0x30] sm:$0xff] }
 0x4d6   : > { %2530 = vmatpush.msra.mxu2 %v2371_v23  ;;  %v2433_v23 = vld [vmem:[#allocation10 + $0x220] sm:$0xff] }
 0x4d7   : > { %v7289_v39 = vpop.eup %6174  ;;  %v2006_v40 = vmul.f32 1.442695, %v2003_v29  ;;  %v2372_v29 = vld [vmem:[#allocation10 + $0x38] sm:$0xff] }
 0x4d8   : > { %v2008_v1 = vsel %vm1807_vm9, %v7289_v39, 0.0  ;;  %2531 = vmatpush.msra.mxu2 %v2368_v2  ;;  %v2428_v2 = vld [vmem:[#allocation10 + $0x1f8] sm:$0xff] }
 0x4d9   : > { %6176 = vpow2.f32 %v2006_v40  ;;  %2009 = vadd.xlane.f32.xlu1 %v2008_v1  ;;  %v2369_v40 = vld [vmem:[#allocation10 + $0x20] sm:$0xff] }
 0x4da   : > { %6178 = vpow2.f32 %v2192_v30  ;;  %v2365_v1 = vld [vmem:[#allocation10] sm:$0xff]  ;;  %v2366_v30 = vld [vmem:[#allocation10 + $0x8] sm:$0xff] }
 0x4db   : > { %6180 = vrcp.f32 %v2102_v13  ;;  %v2381_v13 = vld [vmem:[#allocation10 + $0x80] sm:$0xff]  ;;  %2532 = vmatpush.msra.mxu2 %v2365_v1  ;;  %v2430_v1 = vld [vmem:[#allocation10 + $0x208] sm:$0xff] }
 0x4dc   : > { %6182 = vpow2.f32 %v2194_v35 }
 0x4dd   : > { %6184 = vrcp.f32 %v2105_v31 }
 0x4de   : > { %6186 = vrcp.f32 %v2290_v26 }
 0x4df   : > { %v7294_v32 = vpop.eup %6176 }
 0x4e0   : > { %v2011_v34 = vsel %vm1807_vm9, %v7294_v32, 0.0  ;;  %v7299_v36 = vpop.eup %6178 }
 0x4e1   : > { %2012 = vadd.xlane.f32.xlu2 %v2011_v34  ;;  %v6181_v57 = vpop.eup %6180  ;;  %v2196_v3 = vsel %vm1807_vm9, %v7299_v36, 0.0 }
 0x4e2   : > { %v2108_v44 = vmul.f32 %v6181_v57, %v7259_v50  ;;  %v7304_v47 = vpop.eup %6182 }
 0x4e3   : > { %v6185_v60 = vpop.eup %6184  ;;  %v2199_v61 = vsel %vm1807_vm9, %v7304_v47, 0.0 }
 0x4e4   : > { %v2109_v50 = vmul.f32 %v6185_v60, %v7265_v4  ;;  %v6187_v63 = vpop.eup %6186  ;;  %v2402_v4 = vld [vmem:[#allocation10 + $0x128] sm:$0xff]  ;;  %v2459_v60 = vld [vmem:[#allocation10 + $0x2f0] sm:$0xff] }
 0x4e5   : > { %v2296_v55 = vmul.f32 %v6187_v63, %v7272_v62  ;;  %v2456_v63 = vld [vmem:[#allocation10 + $0x2d8] sm:$0xff]  ;;  %2609 = vmatpush.msrb.mxu2 %v2459_v60  ;;  %v2414_v60 = vld [vmem:[#allocation10 + $0x188] sm:$0xff] }
 0x4e7   : > { %v6136_v20 = vpop.permute.xlu0 %6135  ;;  %2610 = vmatpush.msrb.mxu2 %v2456_v63  ;;  %v2412_v63 = vld [vmem:[#allocation10 + $0x178] sm:$0xff] }
 0x4e8   : > { %v6137_v41 = vunpack.i.l.bf16 %v6136_v20  ;;  %v6138_v19 = vunpack.i.h.bf16 %v6136_v20 }
 0x4e9   : > { %2197 = vadd.xlane.f32.xlu2 %v2196_v3 }
 0x4ea   : > { %2138 = vmatpush.msra.mxu1 %v6137_v41 }
 0x4ec   : > { %v6141_v37 = vpop.permute.xlu1 %6140  ;;  %2139 = vmatpush.msra.mxu1 %v6138_v19 }
 0x4ed   : > { %v6142_v48 = vunpack.i.l.bf16 %v6141_v37  ;;  %5941 = vmatmul.msk.f32.vlgmr.msra.gmra.mxu1 %vm1807_vm9, %v2108_v44  ;;  %v6143_v51 = vunpack.i.h.bf16 %v6141_v37 }
 0x4ef   : > { %v1953_v52 = vpop.f32.mrf.mxu1  ;;  %2326 = vmatpush.msrb.mxu1 %v6142_v48 }
 0x4f0   : > { %2337 = vrot.lane.b32.xlu0 %v1953_v52, %s6678_s7  ;;  %v2458_v52 = vld [vmem:[#allocation10 + $0x2e8] sm:$0xff] }
 0x4f1   : > { %2200 = vadd.xlane.f32.xlu2 %v2199_v61  ;;  %2327 = vmatpush.msrb.mxu1 %v6143_v51  ;;  %v2460_v61 = vld [vmem:[#allocation10 + $0x2f8] sm:$0xff] }
 0x4f3   : > { %2586 = vmatpush.msra.mxu1 %v2411_v54  ;;  %v2453_v54 = vld [vmem:[#allocation10 + $0x2c0] sm:$0xff] }
 0x4f4   : > { %2611 = vmatpush.msrb.mxu2 %v2453_v54  ;;  %v2505_v54 = vld [vmem:[#allocation10 + $0x460] sm:$0xff] }
 0x4f5   : > { %5942 = vmatmul.msk.f32.gmra.mxu1 %vm1807_vm9, %v2109_v50  ;;  %v2506_v50 = vld [vmem:[#allocation10 + $0x468] sm:$0xff] }
 0x4f6   : > { %2587 = vmatpush.msra.mxu1 %v2408_v59  ;;  %2563 = vmatpush.msra.mxu0 %v2506_v50  ;;  %v2500_v59 = vld [vmem:[#allocation10 + $0x438] sm:$0xff]  ;;  %v2461_v50 = vld [vmem:[#allocation10 + $0x300] sm:$0xff] }
 0x4f7   : > { %v1956_v0 = vpop.f32.mrf.mxu1 }
 0x4f8   : > { %2588 = vmatpush.msra.mxu1 %v2405_v45  ;;  %v2450_v45 = vld [vmem:[#allocation10 + $0x2a8] sm:$0xff] }
 0x4f9   : > { %2612 = vmatpush.msrb.mxu2 %v2450_v45  ;;  %v2498_v45 = vld [vmem:[#allocation10 + $0x428] sm:$0xff] }
 0x4fa   : > { %2589 = vmatpush.msra.mxu1 %v2402_v4  ;;  %v2497_v4 = vld [vmem:[#allocation10 + $0x420] sm:$0xff] }
 0x4fc   : > { %2590 = vmatpush.msra.mxu1 %v2399_v12  ;;  %v2444_v12 = vld [vmem:[#allocation10 + $0x278] sm:$0xff] }
 0x4fd   : > { %5953 = vmatmul.msk.f32.vlgmr.msrb.gmra.mxu1 %vm1807_vm9, %v2296_v55  ;;  %v2503_v55 = vld [vmem:[#allocation10 + $0x450] sm:$0xff] }
 0x4fe   : > { %2591 = vmatpush.msra.mxu1 %v2396_v18  ;;  %2564 = vmatpush.msra.mxu0 %v2503_v55  ;;  %v2491_v18 = vld [vmem:[#allocation10 + $0x3f0] sm:$0xff]  ;;  %v2504_v55 = vld [vmem:[#allocation10 + $0x458] sm:$0xff] }
 0x500   : > { %2592 = vmatpush.msra.mxu1 %v2393_v25  ;;  %2565 = vmatpush.msra.mxu0 %v2500_v59  ;;  %v2441_v25 = vld [vmem:[#allocation10 + $0x260] sm:$0xff]  ;;  %v2406_v59 = vld [vmem:[#allocation10 + $0x148] sm:$0xff] }
 0x502   : > { %2593 = vmatpush.msra.mxu1 %v2390_v5  ;;  %2566 = vmatpush.msra.mxu0 %v2497_v4  ;;  %v2488_v5 = vld [vmem:[#allocation10 + $0x3d8] sm:$0xff]  ;;  %v2499_v4 = vld [vmem:[#allocation10 + $0x430] sm:$0xff] }
 0x504   : > { %2594 = vmatpush.msra.mxu1 %v2387_v8  ;;  %v2438_v8 = vld [vmem:[#allocation10 + $0x248] sm:$0xff] }
 0x509   : > { %2339 = vrot.lane.b32.xlu2 %v1956_v0, %s6678_s7  ;;  %v2446_v0 = vld [vmem:[#allocation10 + $0x288] sm:$0xff] }
 0x512   : > { %v2293_v62 = vpop.xlane.xlu0 %2292 }
 0x513   : > { %6188 = vrcp.f32 %v2293_v62  ;;  %v2447_v62 = vld [vmem:[#allocation10 + $0x290] sm:$0xff] }
 0x514   : > { %2613 = vmatpush.msrb.mxu2 %v2447_v62  ;;  %v2400_v62 = vld [vmem:[#allocation10 + $0x118] sm:$0xff] }
 0x516   : > { %2614 = vmatpush.msrb.mxu2 %v2444_v12  ;;  %v2493_v12 = vld [vmem:[#allocation10 + $0x400] sm:$0xff] }
 0x518   : > { %2615 = vmatpush.msrb.mxu2 %v2441_v25  ;;  %v2486_v25 = vld [vmem:[#allocation10 + $0x3c8] sm:$0xff] }
 0x519   : > { %v6189_v6 = vpop.eup %6188 }
 0x51a   : > { %v2297_v7 = vmul.f32 %v6189_v6, %v7285_v10  ;;  %v2384_v10 = vld [vmem:[#allocation10 + $0x98] sm:$0xff]  ;;  %2616 = vmatpush.msrb.mxu2 %v2438_v8 }
 0x51b   : > { %2595 = vmatpush.msra.mxu1 %v2384_v10  ;;  %v2448_v6 = vld [vmem:[#allocation10 + $0x298] sm:$0xff]  ;;  %v2485_v10 = vld [vmem:[#allocation10 + $0x3c0] sm:$0xff] }
 0x51c   : > { %5954 = vmatmul.msk.f32.gmra.mxu1 %vm1807_vm9, %v2297_v7  ;;  %v2494_v7 = vld [vmem:[#allocation10 + $0x408] sm:$0xff]  ;;  %v2388_v8 = vld [vmem:[#allocation10 + $0xb8] sm:$0xff] }
 0x51d   : > { %2596 = vmatpush.msra.mxu1 %v2381_v13  ;;  %2567 = vmatpush.msra.mxu0 %v2494_v7  ;;  %v2435_v13 = vld [vmem:[#allocation10 + $0x230] sm:$0xff]  ;;  %v2492_v7 = vld [vmem:[#allocation10 + $0x3f8] sm:$0xff] }
 0x51e   : > { %2617 = vmatpush.msrb.mxu2 %v2435_v13  ;;  %v2481_v13 = vld [vmem:[#allocation10 + $0x3a0] sm:$0xff] }
 0x51f   : > { %2597 = vmatpush.msra.mxu1 %v2378_v21  ;;  %2568 = vmatpush.msra.mxu0 %v2491_v18  ;;  %v2482_v21 = vld [vmem:[#allocation10 + $0x3a8] sm:$0xff] }
 0x520   : > { %v2394_v18 = vld [vmem:[#allocation10 + $0xe8] sm:$0xff] }
 0x521   : > { %2598 = vmatpush.msra.mxu1 %v2375_v22  ;;  %2569 = vmatpush.msra.mxu0 %v2488_v5  ;;  %v2432_v22 = vld [vmem:[#allocation10 + $0x218] sm:$0xff]  ;;  %v2487_v5 = vld [vmem:[#allocation10 + $0x3d0] sm:$0xff] }
 0x522   : > { %2618 = vmatpush.msrb.mxu2 %v2432_v22  ;;  %v2474_v22 = vld [vmem:[#allocation10 + $0x368] sm:$0xff] }
 0x523   : > { %2599 = vmatpush.msra.mxu1 %v2372_v29  ;;  %2570 = vmatpush.msra.mxu0 %v2485_v10  ;;  %v2479_v29 = vld [vmem:[#allocation10 + $0x390] sm:$0xff]  ;;  %v2480_v10 = vld [vmem:[#allocation10 + $0x398] sm:$0xff] }
 0x525   : > { %2600 = vmatpush.msra.mxu1 %v2369_v40  ;;  %2571 = vmatpush.msra.mxu0 %v2482_v21  ;;  %v2429_v40 = vld [vmem:[#allocation10 + $0x200] sm:$0xff]  ;;  %v2382_v21 = vld [vmem:[#allocation10 + $0x88] sm:$0xff] }
 0x526   : > { %2619 = vmatpush.msrb.mxu2 %v2429_v40  ;;  %v2376_v40 = vld [vmem:[#allocation10 + $0x58] sm:$0xff] }
 0x527   : > { %2601 = vmatpush.msra.mxu1 %v2366_v30  ;;  %v2476_v30 = vld [vmem:[#allocation10 + $0x378] sm:$0xff]  ;;  %2572 = vmatpush.msra.mxu0 %v2479_v29  ;;  %v2475_v29 = vld [vmem:[#allocation10 + $0x370] sm:$0xff] }
 0x529   : > { %2678 = vmatpush.msrb.mxu1 %v2460_v61  ;;  %2573 = vmatpush.msra.mxu0 %v2476_v30  ;;  %v2415_v61 = vld [vmem:[#allocation10 + $0x190] sm:$0xff] }
 0x54c   : > { %v2010_v9 = vpop.xlane.xlu1 %2009 }
 0x54d   : > { %6190 = vrcp.f32 %v2010_v9  ;;  %v2425_v9 = vld [vmem:[#allocation10 + $0x1e0] sm:$0xff] }
 0x553   : > { %v6191_v33 = vpop.eup %6190 }
 0x554   : > { %v2016_v34 = vmul.f32 %v6191_v33, %v7289_v39  ;;  %v2013_v35 = vpop.xlane.xlu2 %2012  ;;  %v2426_v33 = vld [vmem:[#allocation10 + $0x1e8] sm:$0xff] }
 0x555   : > { %6192 = vrcp.f32 %v2013_v35  ;;  %v2473_v35 = vld [vmem:[#allocation10 + $0x360] sm:$0xff]  ;;  %2620 = vmatpush.msrb.mxu2 %v2426_v33 }
 0x556   : > { %5935 = vmatmul.msk.f32.vlgmr.msrb.gmra.mxu3 %vm1807_vm9, %v2016_v34  ;;  %v2427_v34 = vld [vmem:[#allocation10 + $0x1f0] sm:$0xff]  ;;  %2574 = vmatpush.msra.mxu0 %v2473_v35  ;;  %v2373_v33 = vld [vmem:[#allocation10 + $0x40] sm:$0xff] }
 0x557   : > { %2540 = vmatpush.msrb.mxu3 %v2458_v52  ;;  %v2413_v52 = vld [vmem:[#allocation10 + $0x180] sm:$0xff] }
 0x558   : > { %v2465_v35 = vld [vmem:[#allocation10 + $0x320] sm:$0xff] }
 0x55b   : > { %v6193_v26 = vpop.eup %6192 }
 0x55c   : > { %v2198_v31 = vpop.xlane.xlu2 %2197  ;;  %v2017_v20 = vmul.f32 %v6193_v26, %v7294_v32  ;;  %v2422_v26 = vld [vmem:[#allocation10 + $0x1c8] sm:$0xff] }
 0x55d   : > { %6194 = vrcp.f32 %v2198_v31  ;;  %v2423_v31 = vld [vmem:[#allocation10 + $0x1d0] sm:$0xff] }
 0x55e   : > { %5936 = vmatmul.msk.f32.gmra.mxu3 %vm1807_vm9, %v2017_v20  ;;  %v2424_v20 = vld [vmem:[#allocation10 + $0x1d8] sm:$0xff]  ;;  %2621 = vmatpush.msrb.mxu2 %v2423_v31 }
 0x562   : > { %v2338_v57 = vpop.permute.xlu0 %2337 }
 0x563   : > { %v6195_v41 = vpop.eup %6194  ;;  %v7323_v3 = vsel %vm1769_vm7, %v7255_v46, %v2338_v57 }
 0x564   : > { %v2204_v19 = vmul.f32 %v6195_v41, %v7299_v36  ;;  %v2201_v39 = vpop.xlane.xlu2 %2200  ;;  %2533 = vmatmul.f32.vlgmr.msra.gmra.mxu2 %v7323_v3  ;;  %2602 = vmatmul.f32.vlgmr.msra.gmra.mxu1 %v7323_v3  ;;  %v2470_v41 = vld [vmem:[#allocation10 + $0x348] sm:$0xff] }
 0x565   : > { %6196 = vrcp.f32 %v2201_v39  ;;  %v2420_v39 = vld [vmem:[#allocation10 + $0x1b8] sm:$0xff]  ;;  %2575 = vmatpush.msra.mxu0 %v2470_v41  ;;  %v2462_v41 = vld [vmem:[#allocation10 + $0x308] sm:$0xff] }
 0x566   : > { %5947 = vmatmul.msk.f32.vlgmr.msra.gmra.mxu3 %vm1807_vm9, %v2204_v19  ;;  %v2419_v19 = vld [vmem:[#allocation10 + $0x1b0] sm:$0xff]  ;;  %2622 = vmatpush.msrb.mxu2 %v2420_v39 }
 0x567   : > { %v2463_v39 = vld [vmem:[#allocation10 + $0x310] sm:$0xff] }
 0x56a   : > { %v2141_v32 = vpop.f32.mrf.mxu1 }
 0x56b   : > { %v6197_v44 = vpop.eup %6196  ;;  %2345 = vrot.lane.b32.xlu1 %v2141_v32, %s6678_s7  ;;  %v2421_v32 = vld [vmem:[#allocation10 + $0x1c0] sm:$0xff] }
 0x56c   : > { %v2340_v37 = vpop.permute.xlu2 %2339  ;;  %v2205_v48 = vmul.f32 %v6197_v44, %v7304_v47  ;;  %v2455_v47 = vld [vmem:[#allocation10 + $0x2d0] sm:$0xff] }
 0x56d   : > { %v7333_v46 = vsel %vm1769_vm7, %v7257_v49, %v2340_v37  ;;  %v2457_v49 = vld [vmem:[#allocation10 + $0x2e0] sm:$0xff]  ;;  %2541 = vmatpush.msrb.mxu3 %v2455_v47  ;;  %v2467_v44 = vld [vmem:[#allocation10 + $0x330] sm:$0xff]  ;;  %v2416_v37 = vld [vmem:[#allocation10 + $0x198] sm:$0xff] }
 0x56e   : > { %5948 = vmatmul.msk.f32.gmra.mxu3 %vm1807_vm9, %v2205_v48  ;;  %2536 = vmatmul.f32.gmra.mxu2 %v7333_v46  ;;  %v2417_v48 = vld [vmem:[#allocation10 + $0x1a0] sm:$0xff]  ;;  %v2507_v47 = vld [vmem:[#allocation10 + $0x470] sm:$0xff] }
 0x56f   : > { %2605 = vmatmul.f32.gmra.mxu1 %v7333_v46  ;;  %2542 = vmatpush.msrb.mxu3 %v2452_v53  ;;  %v2409_v53 = vld [vmem:[#allocation10 + $0x160] sm:$0xff] }
 0x570   : > { %2679 = vmatpush.msrb.mxu1 %v2457_v49  ;;  %2576 = vmatpush.msra.mxu0 %v2467_v44  ;;  %v2508_v49 = vld [vmem:[#allocation10 + $0x478] sm:$0xff] }
 0x571   : > { %2543 = vmatpush.msrb.mxu3 %v2449_v38  ;;  %2623 = vmatpush.msrb.mxu2 %v2417_v48  ;;  %v2502_v38 = vld [vmem:[#allocation10 + $0x448] sm:$0xff] }
 0x572   : > { %v2144_v36 = vpop.f32.mrf.mxu1  ;;  %2680 = vmatpush.msrb.mxu1 %v2454_v58  ;;  %v2501_v58 = vld [vmem:[#allocation10 + $0x440] sm:$0xff] }
 0x573   : > { %2544 = vmatpush.msrb.mxu3 %v2446_v0  ;;  %2624 = vmatpush.msrb.mxu2 %v2414_v60  ;;  %v2495_v0 = vld [vmem:[#allocation10 + $0x410] sm:$0xff] }
 0x574   : > { %2681 = vmatpush.msrb.mxu1 %v2451_v17  ;;  %v2403_v17 = vld [vmem:[#allocation10 + $0x130] sm:$0xff] }
 0x575   : > { %2545 = vmatpush.msrb.mxu3 %v2443_v11  ;;  %2701 = vmatpush.msra.mxu2 %v2508_v49  ;;  %v2397_v11 = vld [vmem:[#allocation10 + $0x100] sm:$0xff] }
 0x576   : > { %2682 = vmatpush.msrb.mxu1 %v2448_v6  ;;  %v2496_v6 = vld [vmem:[#allocation10 + $0x418] sm:$0xff] }
 0x577   : > { %2546 = vmatpush.msrb.mxu3 %v2440_v27  ;;  %2702 = vmatpush.msra.mxu2 %v2505_v54  ;;  %v2490_v27 = vld [vmem:[#allocation10 + $0x3e8] sm:$0xff] }
 0x578   : > { %2683 = vmatpush.msrb.mxu1 %v2445_v15  ;;  %v2489_v15 = vld [vmem:[#allocation10 + $0x3e0] sm:$0xff] }
 0x579   : > { %2547 = vmatpush.msrb.mxu3 %v2437_v14  ;;  %2703 = vmatpush.msra.mxu2 %v2502_v38  ;;  %v2483_v14 = vld [vmem:[#allocation10 + $0x3b0] sm:$0xff] }
 0x57a   : > { %v2329_v51 = vpop.f32.mrf.mxu1  ;;  %2684 = vmatpush.msrb.mxu1 %v2442_v56  ;;  %v2391_v56 = vld [vmem:[#allocation10 + $0xd0] sm:$0xff] }
 0x57b   : > { %2353 = vrot.lane.b32.xlu0 %v2329_v51, %s6678_s7  ;;  %2548 = vmatpush.msrb.mxu3 %v2434_v24  ;;  %v2464_v51 = vld [vmem:[#allocation10 + $0x318] sm:$0xff]  ;;  %v2385_v24 = vld [vmem:[#allocation10 + $0xa0] sm:$0xff] }
 0x57c   : > { %2685 = vmatpush.msrb.mxu1 %v2439_v28  ;;  %2577 = vmatpush.msra.mxu0 %v2464_v51  ;;  %v2484_v28 = vld [vmem:[#allocation10 + $0x3b8] sm:$0xff] }
 0x57d   : > { %2549 = vmatpush.msrb.mxu3 %v2431_v43  ;;  %2704 = vmatpush.msra.mxu2 %v2499_v4  ;;  %v2478_v43 = vld [vmem:[#allocation10 + $0x388] sm:$0xff] }
 0x57e   : > { %2686 = vmatpush.msrb.mxu1 %v2436_v16  ;;  %2578 = vmatpush.msra.mxu0 %v2461_v50  ;;  %v2477_v16 = vld [vmem:[#allocation10 + $0x380] sm:$0xff] }
 0x57f   : > { %2550 = vmatpush.msrb.mxu3 %v2428_v2  ;;  %2705 = vmatpush.msra.mxu2 %v2496_v6  ;;  %v2471_v2 = vld [vmem:[#allocation10 + $0x350] sm:$0xff] }
 0x580   : > { %2687 = vmatpush.msrb.mxu1 %v2433_v23  ;;  %2655 = vmatpush.msrb.mxu0 %v2412_v63  ;;  %v2379_v23 = vld [vmem:[#allocation10 + $0x70] sm:$0xff] }
 0x581   : > { %2551 = vmatpush.msrb.mxu3 %v2425_v9  ;;  %2706 = vmatpush.msra.mxu2 %v2493_v12  ;;  %v2468_v9 = vld [vmem:[#allocation10 + $0x338] sm:$0xff] }
 0x582   : > { %2688 = vmatpush.msrb.mxu1 %v2430_v1  ;;  %2656 = vmatpush.msrb.mxu0 %v2409_v53  ;;  %v2472_v1 = vld [vmem:[#allocation10 + $0x358] sm:$0xff] }
 0x583   : > { %2347 = vrot.lane.b32.xlu0 %v2144_v36, %s6678_s7  ;;  %2552 = vmatpush.msrb.mxu3 %v2422_v26  ;;  %v2418_v36 = vld [vmem:[#allocation10 + $0x1a8] sm:$0xff] }
 0x584   : > { %2689 = vmatpush.msrb.mxu1 %v2427_v34  ;;  %2657 = vmatpush.msrb.mxu0 %v2406_v59  ;;  %v2469_v34 = vld [vmem:[#allocation10 + $0x340] sm:$0xff]  ;;  %v2370_v26 = vld [vmem:[#allocation10 + $0x28] sm:$0xff] }
 0x585   : > { %2553 = vmatpush.msrb.mxu3 %v2419_v19  ;;  %2707 = vmatpush.msra.mxu2 %v2490_v27  ;;  %v2367_v19 = vld [vmem:[#allocation10 + $0x10] sm:$0xff] }
 0x586   : > { %2690 = vmatpush.msrb.mxu1 %v2424_v20  ;;  %2658 = vmatpush.msrb.mxu0 %v2403_v17  ;;  %v2466_v20 = vld [vmem:[#allocation10 + $0x328] sm:$0xff] }
 0x587   : > { %2554 = vmatpush.msrb.mxu3 %v2416_v37  ;;  %2708 = vmatpush.msra.mxu2 %v2487_v5 }
 0x588   : > { %2691 = vmatpush.msrb.mxu1 %v2421_v32  ;;  %2659 = vmatpush.msrb.mxu0 %v2400_v62 }
 0x589   : > { %2555 = vmatpush.msrb.mxu3 %v2413_v52  ;;  %2709 = vmatpush.msra.mxu2 %v2484_v28  ;;  %v6202_v28 = vld [vmem:[%s6908_s6] sm:$0xff] }
 0x58a   : > { %2692 = vmatpush.msrb.mxu1 %v2418_v36  ;;  %2660 = vmatpush.msrb.mxu0 %v2397_v11 }
 0x58b   : > { %2632 = vmatpush.msra.mxu3 %v2507_v47  ;;  %2710 = vmatpush.msra.mxu2 %v2481_v13  ;;  %v6203_v13 = vld [vmem:[%s6908_s6 + $0x8] sm:$0xff] }
 0x58c   : > { %2693 = vmatpush.msrb.mxu1 %v2415_v61  ;;  %2661 = vmatpush.msrb.mxu0 %v2394_v18 }
 0x58d   : > { %2633 = vmatpush.msra.mxu3 %v2504_v55  ;;  %2711 = vmatpush.msra.mxu2 %v2478_v43 }
 0x58e   : > { %2662 = vmatpush.msrb.mxu0 %v2391_v56 }
 0x58f   : > { %2634 = vmatpush.msra.mxu3 %v2501_v58  ;;  %2712 = vmatpush.msra.mxu2 %v2475_v29  ;;  %v2509_v58 = vld [vmem:[#allocation11] sm:$0x7] }
 0x590   : > { %2663 = vmatpush.msrb.mxu0 %v2388_v8  ;;  %v2511_v59 = vperm.slane %v2509_v58, 0  ;;  %v2513_v17 = vperm.slane %v2509_v58, 2  ;;  %v2512_v4 = vperm.slane %v2509_v58, 1  ;;  %v3346_v58 = vld [vmem:[#allocation16 + $0x1080] sm:$0xff] }
 0x591   : > { %2635 = vmatpush.msra.mxu3 %v2498_v45  ;;  %2713 = vmatpush.msra.mxu2 %v2472_v1 }
 0x592   : > { %2664 = vmatpush.msrb.mxu0 %v2385_v24 }
 0x593   : > { %2636 = vmatpush.msra.mxu3 %v2495_v0  ;;  %2714 = vmatpush.msra.mxu2 %v2469_v34 }
 0x594   : > { %2665 = vmatpush.msrb.mxu0 %v2382_v21 }
 0x595   : > { %2637 = vmatpush.msra.mxu3 %v2492_v7  ;;  %2715 = vmatpush.msra.mxu2 %v2466_v20 }
 0x596   : > { %2666 = vmatpush.msrb.mxu0 %v2379_v23 }
 0x597   : > { %2638 = vmatpush.msra.mxu3 %v2489_v15  ;;  %2716 = vmatpush.msra.mxu2 %v2463_v39 }
 0x598   : > { %2667 = vmatpush.msrb.mxu0 %v2376_v40 }
 0x599   : > { %v2332_v57 = vpop.f32.mrf.mxu1  ;;  %2639 = vmatpush.msra.mxu3 %v2486_v25 }
 0x59a   : > { %2355 = vrot.lane.b32.xlu2 %v2332_v57, %s6678_s7  ;;  %2668 = vmatpush.msrb.mxu0 %v2373_v33 }
 0x59b   : > { %2640 = vmatpush.msra.mxu3 %v2483_v14 }
 0x59c   : > { %2669 = vmatpush.msrb.mxu0 %v2370_v26 }
 0x59d   : > { %2641 = vmatpush.msra.mxu3 %v2480_v10 }
 0x59e   : > { %2670 = vmatpush.msrb.mxu0 %v2367_v19  ;;  %v6207_v19 = vld [vmem:[%s6908_s6 + $0x28] sm:$0xff] }
 0x59f   : > { %2642 = vmatpush.msra.mxu3 %v2477_v16 }
 0x5a1   : > { %2643 = vmatpush.msra.mxu3 %v2474_v22  ;;  %v6204_v22 = vld [vmem:[%s6908_s6 + $0x10] sm:$0xff] }
 0x5a3   : > { %2644 = vmatpush.msra.mxu3 %v2471_v2 }
 0x5a5   : > { %2645 = vmatpush.msra.mxu3 %v2468_v9 }
 0x5a7   : > { %2646 = vmatpush.msra.mxu3 %v2465_v35 }
 0x5a9   : > { %2647 = vmatpush.msra.mxu3 %v2462_v41 }
 0x5d9   : > { %v2041_v30 = vpop.f32.mrf.mxu3 }
 0x5dd   : > { %v2346_v31 = vpop.permute.xlu1 %2345 }
 0x5de   : > { %v2361_v57 = vsel %vm1769_vm7, %v2041_v30, %v2346_v31  ;;  %v6205_v31 = vld [vmem:[%s6908_s6 + $0x18] sm:$0xff] }
 0x5df   : > { %2556 = vmatmul.f32.vlgmr.msrb.gmra.mxu3 %v2361_v57  ;;  %2625 = vmatmul.f32.vlgmr.msrb.gmra.mxu2 %v2361_v57 }
 0x5e0   : > { %2694 = vmatmul.f32.vlgmr.msrb.gmra.mxu1 %v2361_v57  ;;  %v6206_v57 = vld [vmem:[%s6908_s6 + $0x20] sm:$0xff] }
 0x5e1   : > { %v2044_v32 = vpop.f32.mrf.mxu3  ;;  %v2603_v49 = vpop.f32.mrf.mxu1 }
 0x5e7   : > { %v2534_v50 = vpop.f32.mrf.mxu2 }
 0x5e8   : > { %v2535_v62 = vadd.f32 %v2534_v50, %v2511_v59  ;;  %v2987_v50 = vld [vmem:[#allocation16 + $0x548] sm:$0xff] }
 0x5e9   : > { %v2229_v44 = vpop.f32.mrf.mxu3 }
 0x5ec   : > { %v2606_v38 = vpop.f32.mrf.mxu1 }
 0x5ed   : > { %v2354_v37 = vpop.permute.xlu0 %2353  ;;  %v2607_v43 = vadd.f32 %v2606_v38, %v2512_v4  ;;  %v2950_v38 = vld [vmem:[#allocation16 + $0x420] sm:$0xff] }
 0x5ee   : > { %v2363_v48 = vsel %vm1769_vm7, %v2229_v44, %v2354_v37  ;;  %v2998_v37 = vld [vmem:[#allocation16 + $0x5a0] sm:$0xff] }
 0x5ef   : > { %2579 = vmatmul.f32.vlgmr.msra.gmra.mxu0 %v2363_v48  ;;  %3422 = vmatpush.msrb.mxu3 %v2998_v37 }
 0x5f1   : > { %v2232_v36 = vpop.f32.mrf.mxu3  ;;  %v2537_v47 = vpop.f32.mrf.mxu2 }
 0x5f2   : > { %v2538_v25 = vadd.f32 %v2537_v47, %v2511_v59  ;;  %v2974_v47 = vld [vmem:[#allocation16 + $0x4e0] sm:$0xff]  ;;  %v2963_v59 = vld [vmem:[#allocation16 + $0x488] sm:$0xff] }
 0x5f4   : > { %v2356_v51 = vpop.permute.xlu2 %2355 }
 0x5f5   : > { %v2348_v52 = vpop.permute.xlu0 %2347  ;;  %v2364_v60 = vsel %vm1769_vm7, %v2232_v36, %v2356_v51  ;;  %v3382_v36 = vld [vmem:[#allocation16 + $0x11a0] sm:$0xff]  ;;  %v2999_v51 = vld [vmem:[#allocation16 + $0x5a8] sm:$0xff] }
 0x5f6   : > { %v2362_v61 = vsel %vm1769_vm7, %v2044_v32, %v2348_v52  ;;  %v2986_v52 = vld [vmem:[#allocation16 + $0x540] sm:$0xff]  ;;  %3468 = vmatpush.msra.mxu1 %v3382_v36  ;;  %3491 = vmatpush.msrb.mxu2 %v2999_v51  ;;  %v2867_v36 = vld [vmem:[#allocation16 + $0x188] sm:$0xff] }
 0x5f7   : > { %2559 = vmatmul.f32.gmra.mxu3 %v2362_v61  ;;  %2582 = vmatmul.f32.gmra.mxu0 %v2364_v60  ;;  %v2854_v51 = vld [vmem:[#allocation16 + $0x120] sm:$0xff] }
 0x5f8   : > { %2628 = vmatmul.f32.gmra.mxu2 %v2362_v61  ;;  %2697 = vmatmul.f32.gmra.mxu1 %v2362_v61  ;;  %v3370_v61 = vld [vmem:[#allocation16 + $0x1140] sm:$0xff] }
 0x5f9   : > { %3423 = vmatpush.msrb.mxu3 %v2986_v52  ;;  %3469 = vmatpush.msra.mxu1 %v3370_v61  ;;  %v3046_v52 = vld [vmem:[#allocation16 + $0x720] sm:$0xff] }
 0x5fa   : > { %3492 = vmatpush.msrb.mxu2 %v2987_v50 }
 0x5fb   : > { %3424 = vmatpush.msrb.mxu3 %v2974_v47 }
 0x5ff   : > { %2648 = vmatmul.f32.vlgmr.msra.gmra.mxu3 %v2363_v48  ;;  %2671 = vmatmul.f32.vlgmr.msrb.gmra.mxu0 %v7323_v3 }
 0x600   : > { %2717 = vmatmul.f32.vlgmr.msra.gmra.mxu2 %v2363_v48  ;;  %v3190_v48 = vld [vmem:[#allocation16 + $0xba0] sm:$0xff] }
 0x601   : > { %3445 = vmatpush.msra.mxu0 %v3190_v48 }
 0x607   : > { %2651 = vmatmul.f32.gmra.mxu3 %v2364_v60  ;;  %2674 = vmatmul.f32.gmra.mxu0 %v7333_v46  ;;  %v2604_v46 = vadd.f32 %v2603_v49, %v2512_v4  ;;  %v3358_v49 = vld [vmem:[#allocation16 + $0x10e0] sm:$0xff]  ;;  %v2951_v4 = vld [vmem:[#allocation16 + $0x428] sm:$0xff] }
 0x608   : > { %2720 = vmatmul.f32.gmra.mxu2 %v2364_v60  ;;  %v3178_v60 = vld [vmem:[#allocation16 + $0xb40] sm:$0xff]  ;;  %3470 = vmatpush.msra.mxu1 %v3358_v49 }
 0x609   : > { %3446 = vmatpush.msra.mxu0 %v3178_v60  ;;  %v3238_v60 = vld [vmem:[#allocation16 + $0xd20] sm:$0xff] }
 0x60a   : > { %3471 = vmatpush.msra.mxu1 %v3346_v58  ;;  %v2842_v49 = vld [vmem:[#allocation16 + $0xc0] sm:$0xff] }
 0x65d   : > { %v2695_v11 = vpop.f32.mrf.mxu1 }
 0x662   : > { %v2557_v55 = vpop.f32.mrf.mxu3  ;;  %v2626_v53 = vpop.f32.mrf.mxu2 }
 0x663   : > { %v2558_v7 = vadd.f32 %v2557_v55, %v2535_v62  ;;  %v2627_v12 = vadd.f32 %v2626_v53, %v2604_v46  ;;  %v2975_v55 = vld [vmem:[#allocation16 + $0x4e8] sm:$0xff]  ;;  %v2962_v53 = vld [vmem:[#allocation16 + $0x480] sm:$0xff] }
 0x664   : > { %3493 = vmatpush.msrb.mxu2 %v2975_v55  ;;  %3425 = vmatpush.msrb.mxu3 %v2962_v53  ;;  %v3322_v62 = vld [vmem:[#allocation16 + $0xfc0] sm:$0xff] }
 0x665   : > { %v2926_v46 = vld [vmem:[#allocation16 + $0x360] sm:$0xff] }
 0x666   : > { %3494 = vmatpush.msrb.mxu2 %v2963_v59  ;;  %3426 = vmatpush.msrb.mxu3 %v2950_v38  ;;  %v3034_v55 = vld [vmem:[#allocation16 + $0x6c0] sm:$0xff]  ;;  %v2843_v59 = vld [vmem:[#allocation16 + $0xc8] sm:$0xff] }
 0x667   : > { %v3226_v53 = vld [vmem:[#allocation16 + $0xcc0] sm:$0xff] }
 0x668   : > { %3495 = vmatpush.msrb.mxu2 %v2951_v4  ;;  %v2830_v38 = vld [vmem:[#allocation16 + $0x60] sm:$0xff] }
 0x66c   : > { %v2580_v63 = vpop.f32.mrf.mxu0 }
 0x66d   : > { %v2581_v15 = vadd.f32 %v2580_v63, %v2558_v7  ;;  %v3166_v63 = vld [vmem:[#allocation16 + $0xae0] sm:$0xff] }
 0x66e   : > { %3447 = vmatpush.msra.mxu0 %v3166_v63  ;;  %v3118_v7 = vld [vmem:[#allocation16 + $0x960] sm:$0xff]  ;;  %v2855_v63 = vld [vmem:[#allocation16 + $0x128] sm:$0xff] }
 0x66f   : > { %v7348_v10 = vadd.f32 %v6202_v28, %v2581_v15  ;;  %v2914_v15 = vld [vmem:[#allocation16 + $0x300] sm:$0xff] }
 0x670   : > { %v3286_v28 = vld [vmem:[#allocation16 + $0xea0] sm:$0xff] }
 0x674   : > { %v2583_v54 = vpop.f32.mrf.mxu0 }
 0x675   : > { %v2698_v2 = vpop.f32.mrf.mxu1 }
 0x67a   : > { %v2560_v45 = vpop.f32.mrf.mxu3 }
 0x67b   : > { %v2629_v0 = vpop.f32.mrf.mxu2  ;;  %v2561_v24 = vadd.f32 %v2560_v45, %v2538_v25  ;;  %v3142_v45 = vld [vmem:[#allocation16 + $0xa20] sm:$0xff] }
 0x67c   : > { %v2672_v3 = vpop.f32.mrf.mxu0  ;;  %v2630_v1 = vadd.f32 %v2629_v0, %v2607_v43  ;;  %v2938_v0 = vld [vmem:[#allocation16 + $0x3c0] sm:$0xff] }
 0x67d   : > { %v2673_v6 = vadd.f32 %v2672_v3, %v2513_v17  ;;  %v2584_v40 = vadd.f32 %v2583_v54, %v2561_v24  ;;  %v3154_v54 = vld [vmem:[#allocation16 + $0xa80] sm:$0xff]  ;;  %3427 = vmatpush.msrb.mxu3 %v2938_v0  ;;  %v2903_v24 = vld [vmem:[#allocation16 + $0x2a8] sm:$0xff] }
 0x67e   : > { %3448 = vmatpush.msra.mxu0 %v3154_v54  ;;  %v3130_v3 = vld [vmem:[#allocation16 + $0x9c0] sm:$0xff] }
 0x67f   : > { %v2696_v27 = vadd.f32 %v2695_v11, %v2673_v6  ;;  %v7360_v20 = vadd.f32 %v6205_v31, %v2584_v40  ;;  %v2939_v6 = vld [vmem:[#allocation16 + $0x3c8] sm:$0xff]  ;;  %v3310_v11 = vld [vmem:[#allocation16 + $0xf60] sm:$0xff]  ;;  %3428 = vmatpush.msrb.mxu3 %v2926_v46 }
 0x680   : > { %3449 = vmatpush.msra.mxu0 %v3142_v45  ;;  %3496 = vmatpush.msrb.mxu2 %v2939_v6  ;;  %v3298_v25 = vld [vmem:[#allocation16 + $0xf00] sm:$0xff]  ;;  %v2891_v40 = vld [vmem:[#allocation16 + $0x248] sm:$0xff] }
 0x681   : > { %3429 = vmatpush.msrb.mxu3 %v2914_v15  ;;  %v3022_v45 = vld [vmem:[#allocation16 + $0x660] sm:$0xff]  ;;  %v3383_v15 = vld [vmem:[#allocation16 + $0x11a8] sm:$0xff] }
 0x682   : > { %v2649_v18 = vpop.f32.mrf.mxu3  ;;  %3450 = vmatpush.msra.mxu0 %v3130_v3  ;;  %v2831_v3 = vld [vmem:[#allocation16 + $0x68] sm:$0xff]  ;;  %v3010_v6 = vld [vmem:[#allocation16 + $0x600] sm:$0xff] }
 0x683   : > { %v2650_v56 = vadd.f32 %v2649_v18, %v2627_v12  ;;  %v2718_v5 = vpop.f32.mrf.mxu2  ;;  %v2927_v12 = vld [vmem:[#allocation16 + $0x368] sm:$0xff]  ;;  %v3106_v18 = vld [vmem:[#allocation16 + $0x900] sm:$0xff] }
 0x684   : > { %v2719_v14 = vadd.f32 %v2718_v5, %v2696_v27  ;;  %v2675_v8 = vpop.f32.mrf.mxu0  ;;  %3451 = vmatpush.msra.mxu0 %v3118_v7  ;;  %3497 = vmatpush.msrb.mxu2 %v2927_v12  ;;  %v3202_v7 = vld [vmem:[#allocation16 + $0xc00] sm:$0xff]  ;;  %v3191_v12 = vld [vmem:[#allocation16 + $0xba8] sm:$0xff] }
 0x685   : > { %v7351_v16 = vadd.f32 %v6203_v13, %v2650_v56  ;;  %v2676_v21 = vadd.f32 %v2675_v8, %v2513_v17  ;;  %v3334_v17 = vld [vmem:[#allocation16 + $0x1020] sm:$0xff]  ;;  %v2915_v56 = vld [vmem:[#allocation16 + $0x308] sm:$0xff] }
 0x686   : > { %v7354_v23 = vadd.f32 %v6204_v22, %v2719_v14  ;;  %3472 = vmatpush.msra.mxu1 %v3334_v17  ;;  %v2902_v14 = vld [vmem:[#allocation16 + $0x2a0] sm:$0xff]  ;;  %3452 = vmatpush.msra.mxu0 %v3106_v18  ;;  %v3000_v18 = vld [vmem:[#allocation16 + $0x5b0] sm:$0xff] }
 0x687   : > { %v2732_v29 = vadd.f32 %v7351_v16, %v7348_v10  ;;  %v2699_v33 = vadd.f32 %v2698_v2, %v2676_v21  ;;  %v3094_v8 = vld [vmem:[#allocation16 + $0x8a0] sm:$0xff]  ;;  %3498 = vmatpush.msrb.mxu2 %v2915_v56  ;;  %3430 = vmatpush.msrb.mxu3 %v2902_v14  ;;  %v3371_v56 = vld [vmem:[#allocation16 + $0x1148] sm:$0xff]  ;;  %v3180_v14 = vld [vmem:[#allocation16 + $0xb50] sm:$0xff] }
 0x688   : > { %3473 = vmatpush.msra.mxu1 %v3322_v62  ;;  %v2890_v22 = vld [vmem:[#allocation16 + $0x240] sm:$0xff]  ;;  %3453 = vmatpush.msra.mxu0 %v3094_v8  ;;  %v3167_v8 = vld [vmem:[#allocation16 + $0xae8] sm:$0xff] }
 0x689   : > { %v2733_v30 = vadd.f32 %v2732_v29, %v7354_v23  ;;  %v3082_v29 = vld [vmem:[#allocation16 + $0x840] sm:$0xff]  ;;  %3499 = vmatpush.msrb.mxu2 %v2903_v24  ;;  %3431 = vmatpush.msrb.mxu3 %v2890_v22  ;;  %v2976_v24 = vld [vmem:[#allocation16 + $0x4f0] sm:$0xff] }
 0x68a   : > { %v2652_v9 = vpop.f32.mrf.mxu3  ;;  %3474 = vmatpush.msra.mxu1 %v3310_v11  ;;  %v3274_v2 = vld [vmem:[#allocation16 + $0xe40] sm:$0xff]  ;;  %3454 = vmatpush.msra.mxu0 %v3082_v29  ;;  %v2819_v11 = vld [vmem:[#allocation16 + $0x8] sm:$0xff]  ;;  %v3168_v22 = vld [vmem:[#allocation16 + $0xaf0] sm:$0xff] }
 0x68b   : > { %v2653_v34 = vadd.f32 %v2652_v9, %v2630_v1  ;;  %v2721_v35 = vpop.f32.mrf.mxu2  ;;  %2734 = vadd.xlane.f32.xlu0 %v2733_v30  ;;  %v2878_v9 = vld [vmem:[#allocation16 + $0x1e0] sm:$0xff]  ;;  %3500 = vmatpush.msrb.mxu2 %v2891_v40  ;;  %v3155_v29 = vld [vmem:[#allocation16 + $0xa88] sm:$0xff]  ;;  %v2964_v40 = vld [vmem:[#allocation16 + $0x490] sm:$0xff] }
 0x68c   : > { %v2722_v26 = vadd.f32 %v2721_v35, %v2699_v33  ;;  %3475 = vmatpush.msra.mxu1 %v3298_v25  ;;  %v3070_v33 = vld [vmem:[#allocation16 + $0x7e0] sm:$0xff]  ;;  %v2879_v35 = vld [vmem:[#allocation16 + $0x1e8] sm:$0xff]  ;;  %3432 = vmatpush.msrb.mxu3 %v2878_v9 }
 0x68d   : > { %v7363_v41 = vadd.f32 %v6206_v57, %v2653_v34  ;;  %v3262_v34 = vld [vmem:[#allocation16 + $0xde0] sm:$0xff]  ;;  %3455 = vmatpush.msra.mxu0 %v3070_v33  ;;  %3501 = vmatpush.msrb.mxu2 %v2879_v35  ;;  %v3179_v25 = vld [vmem:[#allocation16 + $0xb48] sm:$0xff]  ;;  %v2952_v33 = vld [vmem:[#allocation16 + $0x430] sm:$0xff] }
 0x68e   : > { %v7366_v39 = vadd.f32 %v6207_v19, %v2722_v26  ;;  %3476 = vmatpush.msra.mxu1 %v3286_v28  ;;  %v2866_v57 = vld [vmem:[#allocation16 + $0x180] sm:$0xff]  ;;  %v3359_v28 = vld [vmem:[#allocation16 + $0x10e8] sm:$0xff] }
 0x68f   : > { %v2736_v32 = vadd.f32 %v7363_v41, %v7360_v20  ;;  %v3058_v19 = vld [vmem:[#allocation16 + $0x780] sm:$0xff]  ;;  %3433 = vmatpush.msrb.mxu3 %v2866_v57  ;;  %3502 = vmatpush.msrb.mxu2 %v2867_v36  ;;  %v3335_v9 = vld [vmem:[#allocation16 + $0x1028] sm:$0xff]  ;;  %v3132_v57 = vld [vmem:[#allocation16 + $0x9d0] sm:$0xff] }
 0x690   : > { %3477 = vmatpush.msra.mxu1 %v3274_v2  ;;  %3456 = vmatpush.msra.mxu0 %v3058_v19  ;;  %v3214_v17 = vld [vmem:[#allocation16 + $0xc60] sm:$0xff]  ;;  %v3347_v2 = vld [vmem:[#allocation16 + $0x1088] sm:$0xff] }
 0x691   : > { %v2737_v44 = vadd.f32 %v2736_v32, %v7366_v39  ;;  %3434 = vmatpush.msrb.mxu3 %v2854_v51  ;;  %3503 = vmatpush.msrb.mxu2 %v2855_v63  ;;  %v2818_v62 = vld [vmem:[#allocation16] sm:$0xff]  ;;  %v3131_v35 = vld [vmem:[#allocation16 + $0x9c8] sm:$0xff]  ;;  %v2916_v51 = vld [vmem:[#allocation16 + $0x310] sm:$0xff] }
 0x692   : > { %3478 = vmatpush.msra.mxu1 %v3262_v34  ;;  %3457 = vmatpush.msra.mxu0 %v3046_v52  ;;  %v3144_v34 = vld [vmem:[#allocation16 + $0xa30] sm:$0xff]  ;;  %v3119_v19 = vld [vmem:[#allocation16 + $0x968] sm:$0xff] }
 0x693   : > { %2738 = vadd.xlane.f32.xlu2 %v2737_v44  ;;  %v3250_v44 = vld [vmem:[#allocation16 + $0xd80] sm:$0xff]  ;;  %3435 = vmatpush.msrb.mxu3 %v2842_v49  ;;  %v3299_v36 = vld [vmem:[#allocation16 + $0xf08] sm:$0xff]  ;;  %v3108_v52 = vld [vmem:[#allocation16 + $0x910] sm:$0xff] }
 0x694   : > { %3479 = vmatpush.msra.mxu1 %v3250_v44  ;;  %3458 = vmatpush.msra.mxu0 %v3034_v55  ;;  %v2928_v44 = vld [vmem:[#allocation16 + $0x370] sm:$0xff]  ;;  %v3287_v63 = vld [vmem:[#allocation16 + $0xea8] sm:$0xff] }
 0x695   : > { %3504 = vmatpush.msrb.mxu2 %v2843_v59  ;;  %3436 = vmatpush.msrb.mxu3 %v2830_v38  ;;  %v2904_v49 = vld [vmem:[#allocation16 + $0x2b0] sm:$0xff] }
 0x696   : > { %3480 = vmatpush.msra.mxu1 %v3238_v60  ;;  %3459 = vmatpush.msra.mxu0 %v3022_v45  ;;  %v3095_v60 = vld [vmem:[#allocation16 + $0x8a8] sm:$0xff]  ;;  %v3096_v55 = vld [vmem:[#allocation16 + $0x8b0] sm:$0xff] }
 0x697   : > { %3505 = vmatpush.msrb.mxu2 %v2831_v3  ;;  %3437 = vmatpush.msrb.mxu3 %v2818_v62  ;;  %v3084_v59 = vld [vmem:[#allocation16 + $0x850] sm:$0xff]  ;;  %v3071_v45 = vld [vmem:[#allocation16 + $0x7e8] sm:$0xff] }
 0x698   : > { %3481 = vmatpush.msra.mxu1 %v3226_v53  ;;  %3460 = vmatpush.msra.mxu0 %v3010_v6  ;;  %v3083_v53 = vld [vmem:[#allocation16 + $0x848] sm:$0xff]  ;;  %v3072_v3 = vld [vmem:[#allocation16 + $0x7f0] sm:$0xff] }
 0x699   : > { %3506 = vmatpush.msrb.mxu2 %v2819_v11  ;;  %3514 = vmatpush.msra.mxu3 %v3191_v12  ;;  %v3059_v62 = vld [vmem:[#allocation16 + $0x788] sm:$0xff]  ;;  %v3060_v11 = vld [vmem:[#allocation16 + $0x790] sm:$0xff] }
 0x69a   : > { %3482 = vmatpush.msra.mxu1 %v3214_v17  ;;  %3537 = vmatpush.msrb.mxu0 %v3383_v15  ;;  %v3263_v17 = vld [vmem:[#allocation16 + $0xde8] sm:$0xff] }
 0x69b   : > { %3515 = vmatpush.msra.mxu3 %v3179_v25  ;;  %v3251_v6 = vld [vmem:[#allocation16 + $0xd88] sm:$0xff] }
 0x69c   : > { %3483 = vmatpush.msra.mxu1 %v3202_v7  ;;  %3538 = vmatpush.msrb.mxu0 %v3371_v56  ;;  %v3047_v12 = vld [vmem:[#allocation16 + $0x728] sm:$0xff] }
 0x69d   : > { %3516 = vmatpush.msra.mxu3 %v3167_v8  ;;  %v3239_v15 = vld [vmem:[#allocation16 + $0xd28] sm:$0xff] }
 0x69e   : > { %3560 = vmatpush.msrb.mxu1 %v3000_v18  ;;  %3539 = vmatpush.msrb.mxu0 %v3359_v28  ;;  %v2856_v18 = vld [vmem:[#allocation16 + $0x130] sm:$0xff]  ;;  %v3035_v25 = vld [vmem:[#allocation16 + $0x6c8] sm:$0xff] }
 0x69f   : > { %3517 = vmatpush.msra.mxu3 %v3155_v29  ;;  %v3227_v56 = vld [vmem:[#allocation16 + $0xcc8] sm:$0xff] }
 0x6a0   : > { %3540 = vmatpush.msrb.mxu0 %v3347_v2  ;;  %v3023_v8 = vld [vmem:[#allocation16 + $0x668] sm:$0xff] }
 0x6a1   : > { %v3215_v28 = vld [vmem:[#allocation16 + $0xc68] sm:$0xff] }
 0x6a2   : > { %3541 = vmatpush.msrb.mxu0 %v3335_v9  ;;  %v3011_v2 = vld [vmem:[#allocation16 + $0x608] sm:$0xff]  ;;  %v3012_v9 = vld [vmem:[#allocation16 + $0x610] sm:$0xff] }
 0x6fe   : > { %v2735_v27 = vpop.xlane.xlu0 %2734 }
 0x6ff   : > { %v2740_v5 = vmul.f32 %v2735_v27, %v6962_v42  ;;  %v3192_v27 = vld [vmem:[#allocation16 + $0xbb0] sm:$0xff] }
 0x700   : > { %3583 = vmatpush.msra.mxu2 %v3192_v27  ;;  %v3048_v27 = vld [vmem:[#allocation16 + $0x730] sm:$0xff] }
 0x701   : > { %v7373_v13 = vsub.f32 %v7348_v10, %v2740_v5  ;;  %v7376_v21 = vsub.f32 %v7351_v16, %v2740_v5  ;;  %v7379_v43 = vsub.f32 %v7354_v23, %v2740_v5  ;;  %v2988_v5 = vld [vmem:[#allocation16 + $0x550] sm:$0xff] }
 0x702   : > { %3561 = vmatpush.msrb.mxu1 %v2988_v5  ;;  %3584 = vmatpush.msra.mxu2 %v3180_v14  ;;  %v2844_v5 = vld [vmem:[#allocation16 + $0xd0] sm:$0xff] }
 0x703   : > { %v2748_v1 = vmul.f32 %v7373_v13, %v7373_v13  ;;  %v2749_v30 = vmul.f32 %v7376_v21, %v7376_v21  ;;  %v2750_v26 = vmul.f32 %v7379_v43, %v7379_v43  ;;  %v3036_v14 = vld [vmem:[#allocation16 + $0x6d0] sm:$0xff] }
 0x704   : > { %3562 = vmatpush.msrb.mxu1 %v2976_v24  ;;  %3585 = vmatpush.msra.mxu2 %v3168_v22  ;;  %v2832_v24 = vld [vmem:[#allocation16 + $0x70] sm:$0xff] }
 0x705   : > { %v2754_v31 = vadd.f32 %v2749_v30, %v2748_v1  ;;  %v3156_v1 = vld [vmem:[#allocation16 + $0xa90] sm:$0xff]  ;;  %v3143_v30 = vld [vmem:[#allocation16 + $0xa28] sm:$0xff] }
 0x706   : > { %v2739_v32 = vpop.xlane.xlu2 %2738  ;;  %3563 = vmatpush.msrb.mxu1 %v2964_v40  ;;  %3586 = vmatpush.msra.mxu2 %v3156_v1  ;;  %v3024_v22 = vld [vmem:[#allocation16 + $0x670] sm:$0xff]  ;;  %v3203_v40 = vld [vmem:[#allocation16 + $0xc08] sm:$0xff] }
 0x707   : > { %v2741_v37 = vmul.f32 %v2739_v32, %v6962_v42  ;;  %v2755_v48 = vadd.f32 %v2754_v31, %v2750_v26  ;;  %3518 = vmatpush.msra.mxu3 %v3143_v30  ;;  %v3323_v26 = vld [vmem:[#allocation16 + $0xfc8] sm:$0xff]  ;;  %v2940_v31 = vld [vmem:[#allocation16 + $0x3d0] sm:$0xff] }
 0x708   : > { %3564 = vmatpush.msrb.mxu1 %v2952_v33  ;;  %3587 = vmatpush.msra.mxu2 %v3144_v34  ;;  %v3311_v32 = vld [vmem:[#allocation16 + $0xf68] sm:$0xff]  ;;  %v2820_v30 = vld [vmem:[#allocation16 + $0x10] sm:$0xff] }
 0x709   : > { %v7389_v61 = vsub.f32 %v7360_v20, %v2741_v37  ;;  %v7392_v50 = vsub.f32 %v7363_v41, %v2741_v37  ;;  %v7395_v47 = vsub.f32 %v7366_v39, %v2741_v37  ;;  %2756 = vadd.xlane.f32.xlu1 %v2755_v48  ;;  %3519 = vmatpush.msra.mxu3 %v3131_v35  ;;  %v3120_v37 = vld [vmem:[#allocation16 + $0x970] sm:$0xff]  ;;  %v3107_v48 = vld [vmem:[#allocation16 + $0x908] sm:$0xff] }
 0x70a   : > { %3542 = vmatpush.msrb.mxu0 %v3323_v26  ;;  %3565 = vmatpush.msrb.mxu1 %v2940_v31 }
 0x70b   : > { %v2751_v54 = vmul.f32 %v7389_v61, %v7389_v61  ;;  %v2752_v58 = vmul.f32 %v7392_v50, %v7392_v50  ;;  %v2753_v4 = vmul.f32 %v7395_v47, %v7395_v47  ;;  %3588 = vmatpush.msra.mxu2 %v3132_v57  ;;  %3520 = vmatpush.msra.mxu3 %v3119_v19  ;;  %v2730_v57 = vld [vmem:[#allocation13] sm:$0x7] }
 0x70c   : > { %3543 = vmatpush.msrb.mxu0 %v3311_v32  ;;  %3566 = vmatpush.msrb.mxu1 %v2928_v44  ;;  %v7405_v32 = vld [vmem:[#allocation14] sm:$0x7] }
 0x70d   : > { %v2758_v0 = vadd.f32 %v2752_v58, %v2751_v54  ;;  %3589 = vmatpush.msra.mxu2 %v3120_v37  ;;  %3521 = vmatpush.msra.mxu3 %v3107_v48  ;;  %v3275_v54 = vld [vmem:[#allocation16 + $0xe48] sm:$0xff]  ;;  %v2892_v58 = vld [vmem:[#allocation16 + $0x250] sm:$0xff]  ;;  %v2793_v48 = vperm.slane %v2730_v57, 0 }
 0x70e   : > { %3544 = vmatpush.msrb.mxu0 %v3299_v36  ;;  %3567 = vmatpush.msrb.mxu1 %v2916_v51  ;;  %v2794_v36 = vperm.slane %v2730_v57, 1  ;;  %v2795_v51 = vperm.slane %v2730_v57, 2  ;;  %v3133_v57 = vld [vmem:[#allocation16 + $0x9d8] sm:$0xff] }
 0x70f   : > { %v2759_v46 = vadd.f32 %v2758_v0, %v2753_v4  ;;  %3590 = vmatpush.msra.mxu2 %v3108_v52  ;;  %3522 = vmatpush.msra.mxu3 %v3095_v60  ;;  %v2880_v4 = vld [vmem:[#allocation16 + $0x1f0] sm:$0xff]  ;;  %v2806_v52 = vperm.slane %v7405_v32, 0  ;;  %v2807_v60 = vperm.slane %v7405_v32, 1 }
 0x710   : > { %3545 = vmatpush.msrb.mxu0 %v3287_v63  ;;  %3568 = vmatpush.msrb.mxu1 %v2904_v49 }
 0x711   : > { %2760 = vadd.xlane.f32.xlu0 %v2759_v46  ;;  %3591 = vmatpush.msra.mxu2 %v3096_v55  ;;  %v2868_v46 = vld [vmem:[#allocation16 + $0x190] sm:$0xff]  ;;  %v2808_v55 = vperm.slane %v7405_v32, 2  ;;  %v2929_v32 = vld [vmem:[#allocation16 + $0x378] sm:$0xff] }
 0x712   : > { %3523 = vmatpush.msra.mxu3 %v3083_v53  ;;  %3546 = vmatpush.msrb.mxu0 %v3275_v54 }
 0x713   : > { %3569 = vmatpush.msrb.mxu1 %v2892_v58  ;;  %3592 = vmatpush.msra.mxu2 %v3084_v59 }
 0x714   : > { %3524 = vmatpush.msra.mxu3 %v3071_v45  ;;  %3547 = vmatpush.msrb.mxu0 %v3263_v17 }
 0x715   : > { %3570 = vmatpush.msrb.mxu1 %v2880_v4  ;;  %3593 = vmatpush.msra.mxu2 %v3072_v3 }
 0x716   : > { %3525 = vmatpush.msra.mxu3 %v3059_v62  ;;  %3548 = vmatpush.msrb.mxu0 %v3251_v6 }
 0x717   : > { %3571 = vmatpush.msrb.mxu1 %v2868_v46  ;;  %3594 = vmatpush.msra.mxu2 %v3060_v11  ;;  %v3384_v46 = vld [vmem:[#allocation16 + $0x11b0] sm:$0xff] }
 0x718   : > { %3526 = vmatpush.msra.mxu3 %v3047_v12  ;;  %3549 = vmatpush.msrb.mxu0 %v3239_v15  ;;  %v3372_v11 = vld [vmem:[#allocation16 + $0x1150] sm:$0xff]  ;;  %v2989_v12 = vld [vmem:[#allocation16 + $0x558] sm:$0xff] }
 0x719   : > { %3572 = vmatpush.msrb.mxu1 %v2856_v18  ;;  %3595 = vmatpush.msra.mxu2 %v3048_v27 }
 0x71a   : > { %3527 = vmatpush.msra.mxu3 %v3035_v25  ;;  %3550 = vmatpush.msrb.mxu0 %v3227_v56  ;;  %v3181_v25 = vld [vmem:[#allocation16 + $0xb58] sm:$0xff] }
 0x71b   : > { %3573 = vmatpush.msrb.mxu1 %v2844_v5  ;;  %3596 = vmatpush.msra.mxu2 %v3036_v14  ;;  %v3373_v56 = vld [vmem:[#allocation16 + $0x1158] sm:$0xff]  ;;  %v3360_v5 = vld [vmem:[#allocation16 + $0x10f0] sm:$0xff] }
 0x71c   : > { %3528 = vmatpush.msra.mxu3 %v3023_v8  ;;  %3551 = vmatpush.msrb.mxu0 %v3215_v28  ;;  %v2977_v14 = vld [vmem:[#allocation16 + $0x4f8] sm:$0xff] }
 0x71d   : > { %3574 = vmatpush.msrb.mxu1 %v2832_v24  ;;  %3597 = vmatpush.msra.mxu2 %v3024_v22  ;;  %v3169_v22 = vld [vmem:[#allocation16 + $0xaf8] sm:$0xff] }
 0x71e   : > { %3529 = vmatpush.msra.mxu3 %v3011_v2  ;;  %3552 = vmatpush.msrb.mxu0 %v3203_v40  ;;  %v3157_v40 = vld [vmem:[#allocation16 + $0xa98] sm:$0xff] }
 0x71f   : > { %3575 = vmatpush.msrb.mxu1 %v2820_v30  ;;  %3598 = vmatpush.msra.mxu2 %v3012_v9  ;;  %v3336_v9 = vld [vmem:[#allocation16 + $0x1030] sm:$0xff] }
 0x77c   : > { %v2757_v38 = vpop.xlane.xlu1 %2756 }
 0x77d   : > { %v2762_v0 = vmul.f32 %v2757_v38, %v6962_v42 }
 0x77f   : > { %v2764_v7 = vadd.f32 1e-05, %v2762_v0 }
 0x781   : > { %6198 = vrsqrt.f32 %v2764_v7  ;;  %vm2772_vm12 = vweird.f32 %v2764_v7 }
 0x784   : > { %v2761_v29 = vpop.xlane.xlu0 %2760 }
 0x785   : > { %v2763_v1 = vmul.f32 %v2761_v29, %v6962_v42  ;;  %v3361_v29 = vld [vmem:[#allocation16 + $0x10f8] sm:$0xff] }
 0x787   : > { %v6199_v33 = vpop.eup %6198  ;;  %v2765_v34 = vadd.f32 1e-05, %v2763_v1  ;;  %v3349_v1 = vld [vmem:[#allocation16 + $0x1098] sm:$0xff] }
 0x788   : > { %v2767_v35 = vmul.f32 %v6199_v33, %v2764_v7  ;;  %vm2773_vm11 = vweird.f32 %v6199_v33 }
 0x789   : > { %6200 = vrsqrt.f32 %v2765_v34  ;;  %vm2774_vm13 = vmor %vm2772_vm12, %vm2773_vm11  ;;  %vm2782_vm15 = vweird.f32 %v2765_v34 }
 0x78a   : > { %v2768_v26 = vmul.f32 %v6199_v33, %v2767_v35  ;;  %v3337_v35 = vld [vmem:[#allocation16 + $0x1038] sm:$0xff] }
 0x78c   : > { %v2769_v31 = vmul.f32 0.5, %v2768_v26  ;;  %v3324_v26 = vld [vmem:[#allocation16 + $0xfd0] sm:$0xff] }
 0x78e   : > { %v2770_v19 = vsub.f32 1.5, %v2769_v31  ;;  %v2941_v31 = vld [vmem:[#allocation16 + $0x3d8] sm:$0xff] }
 0x78f   : > { %v6201_v42 = vpop.eup %6200 }
 0x790   : > { %v2771_v44 = vmul.f32 %v6199_v33, %v2770_v19  ;;  %v2777_v37 = vmul.f32 %v6201_v42, %v2765_v34  ;;  %vm2783_vm14 = vweird.f32 %v6201_v42  ;;  %v3145_v34 = vld [vmem:[#allocation16 + $0xa38] sm:$0xff] }
 0x791   : > { %vm2784_vm0 = vmor %vm2782_vm15, %vm2783_vm14  ;;  %v3325_v19 = vld [vmem:[#allocation16 + $0xfd8] sm:$0xff] }
 0x792   : > { %v2775_v63 = vsel %vm2774_vm13, %v6199_v33, %v2771_v44  ;;  %v2778_v49 = vmul.f32 %v6201_v42, %v2777_v37  ;;  %v2953_v33 = vld [vmem:[#allocation16 + $0x438] sm:$0xff] }
 0x793   : > { %v2786_v53 = vmul.f32 %v2775_v63, %v7373_v13  ;;  %v2787_v54 = vmul.f32 %v2775_v63, %v7376_v21  ;;  %v2788_v58 = vmul.f32 %v2775_v63, %v7379_v43  ;;  %v3001_v13 = vld [vmem:[#allocation16 + $0x5b8] sm:$0xff] }
 0x794   : > { %v2779_v59 = vmul.f32 0.5, %v2778_v49  ;;  %v3193_v21 = vld [vmem:[#allocation16 + $0xbb8] sm:$0xff] }
 0x795   : > { %v2799_v38 = vmul.f32 %v2793_v48, %v2786_v53  ;;  %v2800_v45 = vmul.f32 %v2794_v36, %v2787_v54  ;;  %v2801_v17 = vmul.f32 %v2795_v51, %v2788_v58  ;;  %v3385_v43 = vld [vmem:[#allocation16 + $0x11b8] sm:$0xff]  ;;  %v3276_v53 = vld [vmem:[#allocation16 + $0xe50] sm:$0xff] }
 0x796   : > { %v2780_v4 = vsub.f32 1.5, %v2779_v59  ;;  %v3121_v44 = vld [vmem:[#allocation16 + $0x978] sm:$0xff] }
 0x797   : > { %v7413_v0 = vadd.f32 %v2806_v52, %v2799_v38  ;;  %v7415_v3 = vadd.f32 %v2807_v60, %v2800_v45  ;;  %v7417_v62 = vadd.f32 %v2808_v55, %v2801_v17  ;;  %v3313_v37 = vld [vmem:[#allocation16 + $0xf78] sm:$0xff]  ;;  %v3264_v38 = vld [vmem:[#allocation16 + $0xdf0] sm:$0xff] }
 0x798   : > { %v2781_v6 = vmul.f32 %v6201_v42, %v2780_v4  ;;  %v2905_v63 = vld [vmem:[#allocation16 + $0x2b8] sm:$0xff] }
 0x799   : > { %3438 = vmatmul.f32.vlgmr.msrb.gmra.mxu3 %v7413_v0  ;;  %3461 = vmatmul.f32.vlgmr.msra.gmra.mxu0 %v7415_v3  ;;  %v3097_v49 = vld [vmem:[#allocation16 + $0x8b8] sm:$0xff] }
 0x79a   : > { %v2785_v7 = vsel %vm2784_vm0, %v6201_v42, %v2781_v6  ;;  %3484 = vmatmul.f32.vlgmr.msra.gmra.mxu1 %v7417_v62  ;;  %3507 = vmatmul.f32.vlgmr.msrb.gmra.mxu2 %v7413_v0  ;;  %v3312_v42 = vld [vmem:[#allocation16 + $0xf70] sm:$0xff]  ;;  %v2893_v54 = vld [vmem:[#allocation16 + $0x258] sm:$0xff] }
 0x79b   : > { %v2789_v15 = vmul.f32 %v2785_v7, %v7389_v61  ;;  %v2790_v18 = vmul.f32 %v2785_v7, %v7392_v50  ;;  %v2791_v27 = vmul.f32 %v2785_v7, %v7395_v47  ;;  %3606 = vmatpush.msrb.mxu3 %v3384_v46  ;;  %3629 = vmatpush.msra.mxu0 %v3001_v13  ;;  %v3348_v61 = vld [vmem:[#allocation16 + $0x1090] sm:$0xff]  ;;  %v2965_v50 = vld [vmem:[#allocation16 + $0x498] sm:$0xff] }
 0x79c   : > { %3652 = vmatpush.msra.mxu1 %v3193_v21  ;;  %3675 = vmatpush.msrb.mxu2 %v3385_v43  ;;  %v3085_v58 = vld [vmem:[#allocation16 + $0x858] sm:$0xff]  ;;  %v3252_v6 = vld [vmem:[#allocation16 + $0xd90] sm:$0xff] }
 0x79d   : > { %v2802_v8 = vmul.f32 %v2793_v48, %v2789_v15  ;;  %v2803_v28 = vmul.f32 %v2794_v36, %v2790_v18  ;;  %v2804_v24 = vmul.f32 %v2795_v51, %v2791_v27  ;;  %3607 = vmatpush.msrb.mxu3 %v3372_v11  ;;  %3630 = vmatpush.msra.mxu0 %v2989_v12  ;;  %v3300_v48 = vld [vmem:[#allocation16 + $0xf10] sm:$0xff]  ;;  %v2917_v36 = vld [vmem:[#allocation16 + $0x318] sm:$0xff] }
 0x79e   : > { %3653 = vmatpush.msra.mxu1 %v3181_v25  ;;  %3676 = vmatpush.msrb.mxu2 %v3373_v56  ;;  %v3109_v51 = vld [vmem:[#allocation16 + $0x918] sm:$0xff]  ;;  %v3240_v43 = vld [vmem:[#allocation16 + $0xd30] sm:$0xff] }
 0x79f   : > { %v7426_v47 = vadd.f32 %v2806_v52, %v2802_v8  ;;  %v7428_v2 = vadd.f32 %v2807_v60, %v2803_v28  ;;  %3608 = vmatpush.msrb.mxu3 %v3360_v5  ;;  %3631 = vmatpush.msra.mxu0 %v2977_v14  ;;  %v7430_v30 = vadd.f32 %v2808_v55, %v2804_v24  ;;  %v3301_v52 = vld [vmem:[#allocation16 + $0xf18] sm:$0xff]  ;;  %v3288_v60 = vld [vmem:[#allocation16 + $0xeb0] sm:$0xff] }
 0x7a0   : > { %3654 = vmatpush.msra.mxu1 %v3169_v22  ;;  %3677 = vmatpush.msrb.mxu2 %v3361_v29  ;;  %v3289_v55 = vld [vmem:[#allocation16 + $0xeb8] sm:$0xff]  ;;  %v3228_v15 = vld [vmem:[#allocation16 + $0xcd0] sm:$0xff] }
 0x7a1   : > { %3609 = vmatpush.msrb.mxu3 %v3348_v61  ;;  %3632 = vmatpush.msra.mxu0 %v2965_v50  ;;  %v3277_v59 = vld [vmem:[#allocation16 + $0xe58] sm:$0xff]  ;;  %v3216_v56 = vld [vmem:[#allocation16 + $0xc70] sm:$0xff]  ;;  %v3002_v61 = vld [vmem:[#allocation16 + $0x5c0] sm:$0xff] }
 0x7a2   : > { %3655 = vmatpush.msra.mxu1 %v3157_v40  ;;  %3678 = vmatpush.msrb.mxu2 %v3349_v1  ;;  %v2881_v45 = vld [vmem:[#allocation16 + $0x1f8] sm:$0xff]  ;;  %v3204_v28 = vld [vmem:[#allocation16 + $0xc10] sm:$0xff]  ;;  %v3194_v50 = vld [vmem:[#allocation16 + $0xbc0] sm:$0xff] }
 0x7a3   : > { %3441 = vmatmul.f32.gmra.mxu3 %v7426_v47  ;;  %3464 = vmatmul.f32.gmra.mxu0 %v7428_v2  ;;  %v3073_v17 = vld [vmem:[#allocation16 + $0x7f8] sm:$0xff]  ;;  %v3386_v40 = vld [vmem:[#allocation16 + $0x11c0] sm:$0xff]  ;;  %v3003_v1 = vld [vmem:[#allocation16 + $0x5c8] sm:$0xff] }
 0x7a4   : > { %3487 = vmatmul.f32.gmra.mxu1 %v7430_v30  ;;  %3510 = vmatmul.f32.gmra.mxu2 %v7426_v47  ;;  %v3265_v4 = vld [vmem:[#allocation16 + $0xdf8] sm:$0xff] }
 0x7a5   : > { %3610 = vmatpush.msrb.mxu3 %v3336_v9  ;;  %3633 = vmatpush.msra.mxu0 %v2953_v33  ;;  %v2869_v46 = vld [vmem:[#allocation16 + $0x198] sm:$0xff]  ;;  %v2990_v9 = vld [vmem:[#allocation16 + $0x560] sm:$0xff] }
 0x7a6   : > { %3656 = vmatpush.msra.mxu1 %v3145_v34  ;;  %3679 = vmatpush.msrb.mxu2 %v3337_v35  ;;  %v3061_v13 = vld [vmem:[#allocation16 + $0x798] sm:$0xff]  ;;  %v3182_v33 = vld [vmem:[#allocation16 + $0xb60] sm:$0xff]  ;;  %v2991_v35 = vld [vmem:[#allocation16 + $0x568] sm:$0xff] }
 0x7a7   : > { %3611 = vmatpush.msrb.mxu3 %v3324_v26  ;;  %3634 = vmatpush.msra.mxu0 %v2941_v31  ;;  %v3253_v21 = vld [vmem:[#allocation16 + $0xd98] sm:$0xff]  ;;  %v3374_v34 = vld [vmem:[#allocation16 + $0x1160] sm:$0xff] }
 0x7a8   : > { %3657 = vmatpush.msra.mxu1 %v3133_v57  ;;  %3680 = vmatpush.msrb.mxu2 %v3325_v19  ;;  %v2857_v7 = vld [vmem:[#allocation16 + $0x138] sm:$0xff]  ;;  %v2978_v26 = vld [vmem:[#allocation16 + $0x500] sm:$0xff]  ;;  %v2979_v19 = vld [vmem:[#allocation16 + $0x508] sm:$0xff] }
 0x7a9   : > { %3612 = vmatpush.msrb.mxu3 %v3312_v42  ;;  %3635 = vmatpush.msra.mxu0 %v2929_v32  ;;  %v3049_v11 = vld [vmem:[#allocation16 + $0x738] sm:$0xff]  ;;  %v3170_v31 = vld [vmem:[#allocation16 + $0xb00] sm:$0xff] }
 0x7aa   : > { %3658 = vmatpush.msra.mxu1 %v3121_v44  ;;  %3681 = vmatpush.msrb.mxu2 %v3313_v37  ;;  %v3241_v12 = vld [vmem:[#allocation16 + $0xd38] sm:$0xff]  ;;  %v3362_v57 = vld [vmem:[#allocation16 + $0x1100] sm:$0xff]  ;;  %v2967_v37 = vld [vmem:[#allocation16 + $0x4a8] sm:$0xff] }
 0x7ab   : > { %3613 = vmatpush.msrb.mxu3 %v3300_v48  ;;  %3636 = vmatpush.msra.mxu0 %v2917_v36  ;;  %v2845_v18 = vld [vmem:[#allocation16 + $0xd8] sm:$0xff]  ;;  %v2966_v42 = vld [vmem:[#allocation16 + $0x4a0] sm:$0xff] }
 0x7ac   : > { %3659 = vmatpush.msra.mxu1 %v3109_v51  ;;  %3682 = vmatpush.msrb.mxu2 %v3301_v52  ;;  %v3037_v27 = vld [vmem:[#allocation16 + $0x6d8] sm:$0xff]  ;;  %v3158_v32 = vld [vmem:[#allocation16 + $0xaa0] sm:$0xff]  ;;  %v2955_v52 = vld [vmem:[#allocation16 + $0x448] sm:$0xff] }
 0x7ad   : > { %3530 = vmatmul.f32.vlgmr.msra.gmra.mxu3 %v7415_v3  ;;  %3553 = vmatmul.f32.vlgmr.msrb.gmra.mxu0 %v7417_v62  ;;  %v3229_v25 = vld [vmem:[#allocation16 + $0xcd8] sm:$0xff]  ;;  %v3350_v44 = vld [vmem:[#allocation16 + $0x10a0] sm:$0xff] }
 0x7ae   : > { %3576 = vmatmul.f32.vlgmr.msrb.gmra.mxu1 %v7413_v0  ;;  %3599 = vmatmul.f32.vlgmr.msra.gmra.mxu2 %v7415_v3  ;;  %v2833_v5 = vld [vmem:[#allocation16 + $0x78] sm:$0xff]  ;;  %v2954_v48 = vld [vmem:[#allocation16 + $0x440] sm:$0xff] }
 0x7af   : > { %3614 = vmatpush.msrb.mxu3 %v3288_v60  ;;  %3637 = vmatpush.msra.mxu0 %v2905_v63  ;;  %v3025_v14 = vld [vmem:[#allocation16 + $0x678] sm:$0xff]  ;;  %v3146_v36 = vld [vmem:[#allocation16 + $0xa40] sm:$0xff] }
 0x7b0   : > { %3660 = vmatpush.msra.mxu1 %v3097_v49  ;;  %3683 = vmatpush.msrb.mxu2 %v3289_v55  ;;  %v3217_v8 = vld [vmem:[#allocation16 + $0xc78] sm:$0xff]  ;;  %v3338_v51 = vld [vmem:[#allocation16 + $0x1040] sm:$0xff]  ;;  %v2943_v55 = vld [vmem:[#allocation16 + $0x3e8] sm:$0xff] }
 0x7b1   : > { %3615 = vmatpush.msrb.mxu3 %v3276_v53  ;;  %3638 = vmatpush.msra.mxu0 %v2893_v54  ;;  %v2821_v24 = vld [vmem:[#allocation16 + $0x18] sm:$0xff]  ;;  %v2942_v60 = vld [vmem:[#allocation16 + $0x3e0] sm:$0xff] }
 0x7b2   : > { %3661 = vmatpush.msra.mxu1 %v3085_v58  ;;  %3684 = vmatpush.msrb.mxu2 %v3277_v59  ;;  %v3013_v22 = vld [vmem:[#allocation16 + $0x618] sm:$0xff]  ;;  %v3134_v63 = vld [vmem:[#allocation16 + $0x9e0] sm:$0xff]  ;;  %v2931_v59 = vld [vmem:[#allocation16 + $0x388] sm:$0xff] }
 0x7b3   : > { %3616 = vmatpush.msrb.mxu3 %v3264_v38  ;;  %3639 = vmatpush.msra.mxu0 %v2881_v45  ;;  %v3205_v29 = vld [vmem:[#allocation16 + $0xc18] sm:$0xff]  ;;  %v3326_v49 = vld [vmem:[#allocation16 + $0xfe0] sm:$0xff] }
 0x7b4   : > { %3662 = vmatpush.msra.mxu1 %v3073_v17  ;;  %3685 = vmatpush.msrb.mxu2 %v3265_v4  ;;  %v2930_v53 = vld [vmem:[#allocation16 + $0x380] sm:$0xff]  ;;  %v2919_v4 = vld [vmem:[#allocation16 + $0x328] sm:$0xff] }
 0x7b5   : > { %3617 = vmatpush.msrb.mxu3 %v3252_v6  ;;  %3640 = vmatpush.msra.mxu0 %v2869_v46  ;;  %v3122_v54 = vld [vmem:[#allocation16 + $0x980] sm:$0xff] }
 0x7b6   : > { %3663 = vmatpush.msra.mxu1 %v3061_v13  ;;  %3686 = vmatpush.msrb.mxu2 %v3253_v21  ;;  %v3314_v58 = vld [vmem:[#allocation16 + $0xf80] sm:$0xff]  ;;  %v2907_v21 = vld [vmem:[#allocation16 + $0x2c8] sm:$0xff] }
 0x7b7   : > { %3533 = vmatmul.f32.gmra.mxu3 %v7428_v2  ;;  %3556 = vmatmul.f32.gmra.mxu0 %v7430_v30  ;;  %v2918_v38 = vld [vmem:[#allocation16 + $0x320] sm:$0xff] }
 0x7b8   : > { %3579 = vmatmul.f32.gmra.mxu1 %v7426_v47  ;;  %3602 = vmatmul.f32.gmra.mxu2 %v7428_v2  ;;  %v3110_v45 = vld [vmem:[#allocation16 + $0x920] sm:$0xff] }
 0x7b9   : > { %3618 = vmatpush.msrb.mxu3 %v3240_v43  ;;  %3641 = vmatpush.msra.mxu0 %v2857_v7  ;;  %v3302_v17 = vld [vmem:[#allocation16 + $0xf20] sm:$0xff] }
 0x7ba   : > { %3664 = vmatpush.msra.mxu1 %v3049_v11  ;;  %3687 = vmatpush.msrb.mxu2 %v3241_v12  ;;  %v2906_v6 = vld [vmem:[#allocation16 + $0x2c0] sm:$0xff]  ;;  %v2895_v12 = vld [vmem:[#allocation16 + $0x268] sm:$0xff] }
 0x7bb   : > { %3619 = vmatpush.msrb.mxu3 %v3228_v15  ;;  %3642 = vmatpush.msra.mxu0 %v2845_v18  ;;  %v3098_v46 = vld [vmem:[#allocation16 + $0x8c0] sm:$0xff] }
 0x7bc   : > { %3665 = vmatpush.msra.mxu1 %v3037_v27  ;;  %3688 = vmatpush.msrb.mxu2 %v3229_v25  ;;  %v3290_v13 = vld [vmem:[#allocation16 + $0xec0] sm:$0xff]  ;;  %v2883_v25 = vld [vmem:[#allocation16 + $0x208] sm:$0xff] }
 0x7bd   : > { %3620 = vmatpush.msrb.mxu3 %v3216_v56  ;;  %3643 = vmatpush.msra.mxu0 %v2833_v5  ;;  %v2894_v43 = vld [vmem:[#allocation16 + $0x260] sm:$0xff] }
 0x7be   : > { %3666 = vmatpush.msra.mxu1 %v3025_v14  ;;  %3689 = vmatpush.msrb.mxu2 %v3217_v8  ;;  %v3086_v7 = vld [vmem:[#allocation16 + $0x860] sm:$0xff]  ;;  %v2871_v8 = vld [vmem:[#allocation16 + $0x1a8] sm:$0xff] }
 0x7bf   : > { %3621 = vmatpush.msrb.mxu3 %v3204_v28  ;;  %3644 = vmatpush.msra.mxu0 %v2821_v24  ;;  %v3278_v11 = vld [vmem:[#allocation16 + $0xe60] sm:$0xff] }
 0x7c0   : > { %3667 = vmatpush.msra.mxu1 %v3013_v22  ;;  %3690 = vmatpush.msrb.mxu2 %v3205_v29  ;;  %v2882_v15 = vld [vmem:[#allocation16 + $0x200] sm:$0xff]  ;;  %v2859_v29 = vld [vmem:[#allocation16 + $0x148] sm:$0xff] }
 0x7c1   : > { %3698 = vmatpush.msra.mxu3 %v3002_v61  ;;  %3721 = vmatpush.msrb.mxu0 %v3194_v50  ;;  %v3074_v18 = vld [vmem:[#allocation16 + $0x800] sm:$0xff] }
 0x7c2   : > { %3744 = vmatpush.msrb.mxu1 %v3386_v40  ;;  %3767 = vmatpush.msra.mxu2 %v3003_v1  ;;  %v3266_v27 = vld [vmem:[#allocation16 + $0xe00] sm:$0xff]  ;;  %v2847_v1 = vld [vmem:[#allocation16 + $0xe8] sm:$0xff] }
 0x7c3   : > { %3622 = vmatmul.f32.vlgmr.msrb.gmra.mxu3 %v7417_v62  ;;  %3645 = vmatmul.f32.vlgmr.msra.gmra.mxu0 %v7413_v0  ;;  %v2870_v56 = vld [vmem:[#allocation16 + $0x1a0] sm:$0xff] }
 0x7c4   : > { %3668 = vmatmul.f32.vlgmr.msra.gmra.mxu1 %v7415_v3  ;;  %3691 = vmatmul.f32.vlgmr.msrb.gmra.mxu2 %v7417_v62  ;;  %v3062_v5 = vld [vmem:[#allocation16 + $0x7a0] sm:$0xff] }
 0x7c5   : > { %3699 = vmatpush.msra.mxu3 %v2990_v9  ;;  %3722 = vmatpush.msrb.mxu0 %v3182_v33  ;;  %v3254_v14 = vld [vmem:[#allocation16 + $0xda0] sm:$0xff] }
 0x7c6   : > { %3745 = vmatpush.msrb.mxu1 %v3374_v34  ;;  %3768 = vmatpush.msra.mxu2 %v2991_v35  ;;  %v2858_v28 = vld [vmem:[#allocation16 + $0x140] sm:$0xff]  ;;  %v2835_v35 = vld [vmem:[#allocation16 + $0x88] sm:$0xff] }
 0x7c7   : > { %3700 = vmatpush.msra.mxu3 %v2978_v26  ;;  %3723 = vmatpush.msrb.mxu0 %v3170_v31  ;;  %v3050_v24 = vld [vmem:[#allocation16 + $0x740] sm:$0xff] }
 0x7c8   : > { %3746 = vmatpush.msrb.mxu1 %v3362_v57  ;;  %3769 = vmatpush.msra.mxu2 %v2979_v19  ;;  %v3242_v22 = vld [vmem:[#allocation16 + $0xd40] sm:$0xff]  ;;  %v2823_v19 = vld [vmem:[#allocation16 + $0x28] sm:$0xff] }
 0x7c9   : > { %3701 = vmatpush.msra.mxu3 %v2966_v42  ;;  %3724 = vmatpush.msrb.mxu0 %v3158_v32  ;;  %v2846_v61 = vld [vmem:[#allocation16 + $0xe0] sm:$0xff]  ;;  %v3195_v42 = vld [vmem:[#allocation16 + $0xbc8] sm:$0xff] }
 0x7ca   : > { %3747 = vmatpush.msrb.mxu1 %v3350_v44  ;;  %3770 = vmatpush.msra.mxu2 %v2967_v37  ;;  %v3038_v50 = vld [vmem:[#allocation16 + $0x6e0] sm:$0xff]  ;;  %v3387_v32 = vld [vmem:[#allocation16 + $0x11c8] sm:$0xff]  ;;  %v3004_v44 = vld [vmem:[#allocation16 + $0x5d0] sm:$0xff] }
 0x7cb   : > { %3702 = vmatpush.msra.mxu3 %v2954_v48  ;;  %3725 = vmatpush.msrb.mxu0 %v3146_v36  ;;  %v3230_v40 = vld [vmem:[#allocation16 + $0xce0] sm:$0xff]  ;;  %v3196_v37 = vld [vmem:[#allocation16 + $0xbd0] sm:$0xff]  ;;  %v3183_v48 = vld [vmem:[#allocation16 + $0xb68] sm:$0xff] }
 0x7cc   : > { %3748 = vmatpush.msrb.mxu1 %v3338_v51  ;;  %3771 = vmatpush.msra.mxu2 %v2955_v52  ;;  %v2834_v9 = vld [vmem:[#allocation16 + $0x80] sm:$0xff]  ;;  %v3375_v36 = vld [vmem:[#allocation16 + $0x1168] sm:$0xff]  ;;  %v2992_v51 = vld [vmem:[#allocation16 + $0x570] sm:$0xff] }
 0x7cd   : > { %3625 = vmatmul.f32.gmra.mxu3 %v7430_v30  ;;  %3648 = vmatmul.f32.gmra.mxu0 %v7426_v47  ;;  %v3026_v33 = vld [vmem:[#allocation16 + $0x680] sm:$0xff]  ;;  %v3184_v52 = vld [vmem:[#allocation16 + $0xb70] sm:$0xff] }
 0x7ce   : > { %3671 = vmatmul.f32.gmra.mxu1 %v7428_v2  ;;  %3694 = vmatmul.f32.gmra.mxu2 %v7430_v30  ;;  %v3218_v34 = vld [vmem:[#allocation16 + $0xc80] sm:$0xff] }
 0x7cf   : > { %3703 = vmatpush.msra.mxu3 %v2942_v60  ;;  %3726 = vmatpush.msrb.mxu0 %v3134_v63  ;;  %v2822_v26 = vld [vmem:[#allocation16 + $0x20] sm:$0xff]  ;;  %v3171_v60 = vld [vmem:[#allocation16 + $0xb08] sm:$0xff] }
 0x7d0   : > { %3749 = vmatpush.msrb.mxu1 %v3326_v49  ;;  %3772 = vmatpush.msra.mxu2 %v2943_v55  ;;  %v3014_v31 = vld [vmem:[#allocation16 + $0x620] sm:$0xff]  ;;  %v3363_v63 = vld [vmem:[#allocation16 + $0x1108] sm:$0xff]  ;;  %v2980_v49 = vld [vmem:[#allocation16 + $0x510] sm:$0xff] }
 0x7d1   : > { %3704 = vmatpush.msra.mxu3 %v2930_v53  ;;  %3727 = vmatpush.msrb.mxu0 %v3122_v54  ;;  %v3206_v57 = vld [vmem:[#allocation16 + $0xc20] sm:$0xff]  ;;  %v3172_v55 = vld [vmem:[#allocation16 + $0xb10] sm:$0xff]  ;;  %v3159_v53 = vld [vmem:[#allocation16 + $0xaa8] sm:$0xff] }
 0x7d2   : > { %3750 = vmatpush.msrb.mxu1 %v3314_v58  ;;  %3773 = vmatpush.msra.mxu2 %v2931_v59  ;;  %v3351_v54 = vld [vmem:[#allocation16 + $0x10a8] sm:$0xff]  ;;  %v2968_v58 = vld [vmem:[#allocation16 + $0x4b0] sm:$0xff] }
 0x7d3   : > { %3705 = vmatpush.msra.mxu3 %v2918_v38  ;;  %3728 = vmatpush.msrb.mxu0 %v3110_v45  ;;  %v3160_v59 = vld [vmem:[#allocation16 + $0xab0] sm:$0xff]  ;;  %v3147_v38 = vld [vmem:[#allocation16 + $0xa48] sm:$0xff] }
 0x7d4   : > { %3751 = vmatpush.msrb.mxu1 %v3302_v17  ;;  %3774 = vmatpush.msra.mxu2 %v2919_v4  ;;  %v3339_v45 = vld [vmem:[#allocation16 + $0x1048] sm:$0xff]  ;;  %v2956_v17 = vld [vmem:[#allocation16 + $0x450] sm:$0xff] }
 0x7d5   : > { %3706 = vmatpush.msra.mxu3 %v2906_v6  ;;  %3729 = vmatpush.msrb.mxu0 %v3098_v46  ;;  %v3148_v4 = vld [vmem:[#allocation16 + $0xa50] sm:$0xff]  ;;  %v3135_v6 = vld [vmem:[#allocation16 + $0x9e8] sm:$0xff] }
 0x7d6   : > { %3752 = vmatpush.msrb.mxu1 %v3290_v13  ;;  %3775 = vmatpush.msra.mxu2 %v2907_v21  ;;  %v3327_v46 = vld [vmem:[#allocation16 + $0xfe8] sm:$0xff]  ;;  %v2944_v13 = vld [vmem:[#allocation16 + $0x3f0] sm:$0xff] }
 0x7d7   : > { %3707 = vmatpush.msra.mxu3 %v2894_v43  ;;  %3730 = vmatpush.msrb.mxu0 %v3086_v7  ;;  %v3136_v21 = vld [vmem:[#allocation16 + $0x9f0] sm:$0xff]  ;;  %v3123_v43 = vld [vmem:[#allocation16 + $0x988] sm:$0xff] }
 0x7d8   : > { %3753 = vmatpush.msrb.mxu1 %v3278_v11  ;;  %3776 = vmatpush.msra.mxu2 %v2895_v12  ;;  %v3315_v7 = vld [vmem:[#allocation16 + $0xf88] sm:$0xff]  ;;  %v2932_v11 = vld [vmem:[#allocation16 + $0x390] sm:$0xff] }
 0x7d9   : > { %3708 = vmatpush.msra.mxu3 %v2882_v15  ;;  %3731 = vmatpush.msrb.mxu0 %v3074_v18  ;;  %v3124_v12 = vld [vmem:[#allocation16 + $0x990] sm:$0xff]  ;;  %v3111_v15 = vld [vmem:[#allocation16 + $0x928] sm:$0xff] }
 0x7da   : > { %3754 = vmatpush.msrb.mxu1 %v3266_v27  ;;  %3777 = vmatpush.msra.mxu2 %v2883_v25  ;;  %v3303_v18 = vld [vmem:[#allocation16 + $0xf28] sm:$0xff]  ;;  %v2920_v27 = vld [vmem:[#allocation16 + $0x330] sm:$0xff] }
 0x7db   : > { %3709 = vmatpush.msra.mxu3 %v2870_v56  ;;  %3732 = vmatpush.msrb.mxu0 %v3062_v5  ;;  %v3112_v25 = vld [vmem:[#allocation16 + $0x930] sm:$0xff]  ;;  %v3099_v56 = vld [vmem:[#allocation16 + $0x8c8] sm:$0xff] }
 0x7dc   : > { %3755 = vmatpush.msrb.mxu1 %v3254_v14  ;;  %3778 = vmatpush.msra.mxu2 %v2871_v8  ;;  %v3291_v5 = vld [vmem:[#allocation16 + $0xec8] sm:$0xff]  ;;  %v2908_v14 = vld [vmem:[#allocation16 + $0x2d0] sm:$0xff] }
 0x7dd   : > { %3710 = vmatpush.msra.mxu3 %v2858_v28  ;;  %3733 = vmatpush.msrb.mxu0 %v3050_v24  ;;  %v3100_v8 = vld [vmem:[#allocation16 + $0x8d0] sm:$0xff]  ;;  %v3087_v28 = vld [vmem:[#allocation16 + $0x868] sm:$0xff] }
 0x7de   : > { %3756 = vmatpush.msrb.mxu1 %v3242_v22  ;;  %3779 = vmatpush.msra.mxu2 %v2859_v29  ;;  %v3279_v24 = vld [vmem:[#allocation16 + $0xe68] sm:$0xff]  ;;  %v2896_v22 = vld [vmem:[#allocation16 + $0x270] sm:$0xff] }
 0x7df   : > { %3711 = vmatpush.msra.mxu3 %v2846_v61  ;;  %3734 = vmatpush.msrb.mxu0 %v3038_v50  ;;  %v3088_v29 = vld [vmem:[#allocation16 + $0x870] sm:$0xff]  ;;  %v3075_v61 = vld [vmem:[#allocation16 + $0x808] sm:$0xff] }
 0x7e0   : > { %3757 = vmatpush.msrb.mxu1 %v3230_v40  ;;  %3780 = vmatpush.msra.mxu2 %v2847_v1  ;;  %v3267_v50 = vld [vmem:[#allocation16 + $0xe08] sm:$0xff]  ;;  %v2884_v40 = vld [vmem:[#allocation16 + $0x210] sm:$0xff] }
 0x7e1   : > { %3712 = vmatpush.msra.mxu3 %v2834_v9  ;;  %3735 = vmatpush.msrb.mxu0 %v3026_v33  ;;  %v3076_v1 = vld [vmem:[#allocation16 + $0x810] sm:$0xff]  ;;  %v3063_v9 = vld [vmem:[#allocation16 + $0x7a8] sm:$0xff] }
 0x7e2   : > { %3758 = vmatpush.msrb.mxu1 %v3218_v34  ;;  %3781 = vmatpush.msra.mxu2 %v2835_v35  ;;  %v3255_v33 = vld [vmem:[#allocation16 + $0xda8] sm:$0xff]  ;;  %v2872_v34 = vld [vmem:[#allocation16 + $0x1b0] sm:$0xff] }
 0x7e3   : > { %3713 = vmatpush.msra.mxu3 %v2822_v26  ;;  %3736 = vmatpush.msrb.mxu0 %v3014_v31  ;;  %v3064_v35 = vld [vmem:[#allocation16 + $0x7b0] sm:$0xff]  ;;  %v3051_v26 = vld [vmem:[#allocation16 + $0x748] sm:$0xff] }
 0x7e4   : > { %3759 = vmatpush.msrb.mxu1 %v3206_v57  ;;  %3782 = vmatpush.msra.mxu2 %v2823_v19  ;;  %v3243_v31 = vld [vmem:[#allocation16 + $0xd48] sm:$0xff]  ;;  %v2860_v57 = vld [vmem:[#allocation16 + $0x150] sm:$0xff] }
 0x7e5   : > { %3714 = vmatmul.f32.vlgmr.msra.gmra.mxu3 %v7413_v0  ;;  %3737 = vmatmul.f32.vlgmr.msrb.gmra.mxu0 %v7415_v3  ;;  %v3052_v19 = vld [vmem:[#allocation16 + $0x750] sm:$0xff] }
 0x7e6   : > { %3760 = vmatmul.f32.vlgmr.msrb.gmra.mxu1 %v7417_v62  ;;  %3783 = vmatmul.f32.vlgmr.msra.gmra.mxu2 %v7413_v0 }
 0x7e7   : > { %3790 = vmatpush.msrb.mxu3 %v3195_v42  ;;  %3813 = vmatpush.msra.mxu0 %v3387_v32  ;;  %v3039_v42 = vld [vmem:[#allocation16 + $0x6e8] sm:$0xff] }
 0x7e8   : > { %3836 = vmatpush.msra.mxu1 %v3004_v44  ;;  %3859 = vmatpush.msrb.mxu2 %v3196_v37  ;;  %v3231_v32 = vld [vmem:[#allocation16 + $0xce8] sm:$0xff]  ;;  %v2848_v44 = vld [vmem:[#allocation16 + $0xf0] sm:$0xff] }
 0x7e9   : > { %3791 = vmatpush.msrb.mxu3 %v3183_v48  ;;  %3814 = vmatpush.msra.mxu0 %v3375_v36  ;;  %v3040_v37 = vld [vmem:[#allocation16 + $0x6f0] sm:$0xff]  ;;  %v3027_v48 = vld [vmem:[#allocation16 + $0x688] sm:$0xff] }
 0x7ea   : > { %3837 = vmatpush.msra.mxu1 %v2992_v51  ;;  %3860 = vmatpush.msrb.mxu2 %v3184_v52  ;;  %v3219_v36 = vld [vmem:[#allocation16 + $0xc88] sm:$0xff]  ;;  %v2836_v51 = vld [vmem:[#allocation16 + $0x90] sm:$0xff] }
 0x7eb   : > { %3792 = vmatpush.msrb.mxu3 %v3171_v60  ;;  %3815 = vmatpush.msra.mxu0 %v3363_v63  ;;  %v3028_v52 = vld [vmem:[#allocation16 + $0x690] sm:$0xff]  ;;  %v3015_v60 = vld [vmem:[#allocation16 + $0x628] sm:$0xff] }
 0x7ec   : > { %3838 = vmatpush.msra.mxu1 %v2980_v49  ;;  %3861 = vmatpush.msrb.mxu2 %v3172_v55  ;;  %v3207_v63 = vld [vmem:[#allocation16 + $0xc28] sm:$0xff]  ;;  %v2824_v49 = vld [vmem:[#allocation16 + $0x30] sm:$0xff] }
 0x7ed   : > { %3793 = vmatpush.msrb.mxu3 %v3159_v53  ;;  %3816 = vmatpush.msra.mxu0 %v3351_v54  ;;  %v3016_v55 = vld [vmem:[#allocation16 + $0x630] sm:$0xff]  ;;  %v3005_v54 = vld [vmem:[#allocation16 + $0x5d8] sm:$0xff] }
 0x7ee   : > { %3839 = vmatpush.msra.mxu1 %v2968_v58  ;;  %3862 = vmatpush.msrb.mxu2 %v3160_v59  ;;  %v3388_v53 = vld [vmem:[#allocation16 + $0x11d0] sm:$0xff]  ;;  %v3197_v58 = vld [vmem:[#allocation16 + $0xbd8] sm:$0xff] }
 0x7ef   : > { %3717 = vmatmul.f32.gmra.mxu3 %v7426_v47  ;;  %3740 = vmatmul.f32.gmra.mxu0 %v7428_v2  ;;  %v3389_v59 = vld [vmem:[#allocation16 + $0x11d8] sm:$0xff] }
 0x7f0   : > { %3763 = vmatmul.f32.gmra.mxu1 %v7430_v30  ;;  %3786 = vmatmul.f32.gmra.mxu2 %v7426_v47 }
 0x7f1   : > { %3794 = vmatpush.msrb.mxu3 %v3147_v38  ;;  %3817 = vmatpush.msra.mxu0 %v3339_v45  ;;  %v3376_v38 = vld [vmem:[#allocation16 + $0x1170] sm:$0xff]  ;;  %v2993_v45 = vld [vmem:[#allocation16 + $0x578] sm:$0xff] }
 0x7f2   : > { %3840 = vmatpush.msra.mxu1 %v2956_v17  ;;  %3863 = vmatpush.msrb.mxu2 %v3148_v4  ;;  %v3185_v17 = vld [vmem:[#allocation16 + $0xb78] sm:$0xff] }
 0x7f3   : > { %3795 = vmatpush.msrb.mxu3 %v3135_v6  ;;  %3818 = vmatpush.msra.mxu0 %v3327_v46  ;;  %v3377_v4 = vld [vmem:[#allocation16 + $0x1178] sm:$0xff]  ;;  %v3364_v6 = vld [vmem:[#allocation16 + $0x1110] sm:$0xff] }
 0x7f4   : > { %3841 = vmatpush.msra.mxu1 %v2944_v13  ;;  %3864 = vmatpush.msrb.mxu2 %v3136_v21  ;;  %v2981_v46 = vld [vmem:[#allocation16 + $0x518] sm:$0xff] }
 0x7f5   : > { %3796 = vmatpush.msrb.mxu3 %v3123_v43  ;;  %3819 = vmatpush.msra.mxu0 %v3315_v7  ;;  %v3173_v13 = vld [vmem:[#allocation16 + $0xb18] sm:$0xff]  ;;  %v3352_v43 = vld [vmem:[#allocation16 + $0x10b0] sm:$0xff] }
 0x7f6   : > { %3842 = vmatpush.msra.mxu1 %v2932_v11  ;;  %3865 = vmatpush.msrb.mxu2 %v3124_v12  ;;  %v3365_v21 = vld [vmem:[#allocation16 + $0x1118] sm:$0xff] }
 0x7f7   : > { %3797 = vmatpush.msrb.mxu3 %v3111_v15  ;;  %3820 = vmatpush.msra.mxu0 %v3303_v18  ;;  %v2969_v7 = vld [vmem:[#allocation16 + $0x4b8] sm:$0xff]  ;;  %v3340_v15 = vld [vmem:[#allocation16 + $0x1050] sm:$0xff] }
 0x7f8   : > { %3843 = vmatpush.msra.mxu1 %v2920_v27  ;;  %3866 = vmatpush.msrb.mxu2 %v3112_v25  ;;  %v3161_v11 = vld [vmem:[#allocation16 + $0xab8] sm:$0xff] }
 0x7f9   : > { %3798 = vmatpush.msrb.mxu3 %v3099_v56  ;;  %3821 = vmatpush.msra.mxu0 %v3291_v5  ;;  %v3353_v12 = vld [vmem:[#allocation16 + $0x10b8] sm:$0xff]  ;;  %v3328_v56 = vld [vmem:[#allocation16 + $0xff0] sm:$0xff] }
 0x7fa   : > { %3844 = vmatpush.msra.mxu1 %v2908_v14  ;;  %3867 = vmatpush.msrb.mxu2 %v3100_v8  ;;  %v2957_v18 = vld [vmem:[#allocation16 + $0x458] sm:$0xff] }
 0x7fb   : > { %3799 = vmatpush.msrb.mxu3 %v3087_v28  ;;  %3822 = vmatpush.msra.mxu0 %v3279_v24  ;;  %v3149_v27 = vld [vmem:[#allocation16 + $0xa58] sm:$0xff]  ;;  %v3316_v28 = vld [vmem:[#allocation16 + $0xf90] sm:$0xff] }
 0x7fc   : > { %3845 = vmatpush.msra.mxu1 %v2896_v22  ;;  %3868 = vmatpush.msrb.mxu2 %v3088_v29  ;;  %v3341_v25 = vld [vmem:[#allocation16 + $0x1058] sm:$0xff] }
 0x7fd   : > { %3800 = vmatpush.msrb.mxu3 %v3075_v61  ;;  %3823 = vmatpush.msra.mxu0 %v3267_v50  ;;  %v2945_v5 = vld [vmem:[#allocation16 + $0x3f8] sm:$0xff]  ;;  %v3304_v61 = vld [vmem:[#allocation16 + $0xf30] sm:$0xff] }
 0x7fe   : > { %3846 = vmatpush.msra.mxu1 %v2884_v40  ;;  %3869 = vmatpush.msrb.mxu2 %v3076_v1  ;;  %v3137_v14 = vld [vmem:[#allocation16 + $0x9f8] sm:$0xff] }
 0x7ff   : > { %3801 = vmatpush.msrb.mxu3 %v3063_v9  ;;  %3824 = vmatpush.msra.mxu0 %v3255_v33  ;;  %v3329_v8 = vld [vmem:[#allocation16 + $0xff8] sm:$0xff]  ;;  %v3292_v9 = vld [vmem:[#allocation16 + $0xed0] sm:$0xff] }
 0x800   : > { %3847 = vmatpush.msra.mxu1 %v2872_v34  ;;  %3870 = vmatpush.msrb.mxu2 %v3064_v35  ;;  %v2933_v24 = vld [vmem:[#allocation16 + $0x398] sm:$0xff] }
 0x801   : > { %3802 = vmatpush.msrb.mxu3 %v3051_v26  ;;  %3825 = vmatpush.msra.mxu0 %v3243_v31  ;;  %v3125_v22 = vld [vmem:[#allocation16 + $0x998] sm:$0xff]  ;;  %v3280_v26 = vld [vmem:[#allocation16 + $0xe70] sm:$0xff] }
 0x802   : > { %3848 = vmatpush.msra.mxu1 %v2860_v57  ;;  %3871 = vmatpush.msrb.mxu2 %v3052_v19  ;;  %v3317_v29 = vld [vmem:[#allocation16 + $0xf98] sm:$0xff] }
 0x803   : > { %3803 = vmatpush.msrb.mxu3 %v3039_v42  ;;  %3826 = vmatpush.msra.mxu0 %v3231_v32  ;;  %v2921_v50 = vld [vmem:[#allocation16 + $0x338] sm:$0xff]  ;;  %v3268_v42 = vld [vmem:[#allocation16 + $0xe10] sm:$0xff] }
 0x804   : > { %3849 = vmatpush.msra.mxu1 %v2848_v44  ;;  %3872 = vmatpush.msrb.mxu2 %v3040_v37  ;;  %v3113_v40 = vld [vmem:[#allocation16 + $0x938] sm:$0xff] }
 0x805   : > { %3804 = vmatpush.msrb.mxu3 %v3027_v48  ;;  %3827 = vmatpush.msra.mxu0 %v3219_v36  ;;  %v3305_v1 = vld [vmem:[#allocation16 + $0xf38] sm:$0xff]  ;;  %v3256_v48 = vld [vmem:[#allocation16 + $0xdb0] sm:$0xff] }
 0x806   : > { %3850 = vmatpush.msra.mxu1 %v2836_v51  ;;  %3873 = vmatpush.msrb.mxu2 %v3028_v52  ;;  %v2909_v33 = vld [vmem:[#allocation16 + $0x2d8] sm:$0xff] }
 0x807   : > { %3805 = vmatpush.msrb.mxu3 %v3015_v60  ;;  %3828 = vmatpush.msra.mxu0 %v3207_v63  ;;  %v3101_v34 = vld [vmem:[#allocation16 + $0x8d8] sm:$0xff]  ;;  %v3244_v60 = vld [vmem:[#allocation16 + $0xd50] sm:$0xff] }
 0x808   : > { %3851 = vmatpush.msra.mxu1 %v2824_v49  ;;  %3874 = vmatpush.msrb.mxu2 %v3016_v55  ;;  %v3293_v35 = vld [vmem:[#allocation16 + $0xed8] sm:$0xff] }
 0x809   : > { %3806 = vmatmul.f32.vlgmr.msrb.gmra.mxu3 %v7415_v3  ;;  %3829 = vmatmul.f32.vlgmr.msra.gmra.mxu0 %v7417_v62  ;;  %v2897_v31 = vld [vmem:[#allocation16 + $0x278] sm:$0xff] }
 0x80a   : > { %3852 = vmatmul.f32.vlgmr.msra.gmra.mxu1 %v7413_v0  ;;  %3875 = vmatmul.f32.vlgmr.msrb.gmra.mxu2 %v7415_v3  ;;  %v3089_v57 = vld [vmem:[#allocation16 + $0x878] sm:$0xff] }
 0x80b   : > { %3882 = vmatpush.msra.mxu3 %v3388_v53  ;;  %3905 = vmatpush.msrb.mxu0 %v3005_v54  ;;  %v3281_v19 = vld [vmem:[#allocation16 + $0xe78] sm:$0xff]  ;;  %v3232_v53 = vld [vmem:[#allocation16 + $0xcf0] sm:$0xff] }
 0x80c   : > { %3928 = vmatpush.msrb.mxu1 %v3197_v58  ;;  %3951 = vmatpush.msra.mxu2 %v3389_v59  ;;  %v2885_v32 = vld [vmem:[#allocation16 + $0x218] sm:$0xff] }
 0x80d   : > { %3883 = vmatpush.msra.mxu3 %v3376_v38  ;;  %3906 = vmatpush.msrb.mxu0 %v2993_v45  ;;  %v3077_v44 = vld [vmem:[#allocation16 + $0x818] sm:$0xff]  ;;  %v3220_v38 = vld [vmem:[#allocation16 + $0xc90] sm:$0xff] }
 0x80e   : > { %3929 = vmatpush.msrb.mxu1 %v3185_v17  ;;  %3952 = vmatpush.msra.mxu2 %v3377_v4  ;;  %v3269_v37 = vld [vmem:[#allocation16 + $0xe18] sm:$0xff] }
 0x80f   : > { %3884 = vmatpush.msra.mxu3 %v3364_v6  ;;  %3907 = vmatpush.msrb.mxu0 %v2981_v46  ;;  %v2873_v36 = vld [vmem:[#allocation16 + $0x1b8] sm:$0xff]  ;;  %v3208_v6 = vld [vmem:[#allocation16 + $0xc30] sm:$0xff] }
 0x810   : > { %3930 = vmatpush.msrb.mxu1 %v3173_v13  ;;  %3953 = vmatpush.msra.mxu2 %v3365_v21  ;;  %v3065_v51 = vld [vmem:[#allocation16 + $0x7b8] sm:$0xff] }
 0x811   : > { %3885 = vmatpush.msra.mxu3 %v3352_v43  ;;  %3908 = vmatpush.msrb.mxu0 %v2969_v7  ;;  %v3257_v52 = vld [vmem:[#allocation16 + $0xdb8] sm:$0xff]  ;;  %v3006_v43 = vld [vmem:[#allocation16 + $0x5e0] sm:$0xff] }
 0x812   : > { %3931 = vmatpush.msrb.mxu1 %v3161_v11  ;;  %3954 = vmatpush.msra.mxu2 %v3353_v12  ;;  %v2861_v63 = vld [vmem:[#allocation16 + $0x158] sm:$0xff]  ;;  %v3198_v7 = vld [vmem:[#allocation16 + $0xbe0] sm:$0xff]  ;;  %v3007_v12 = vld [vmem:[#allocation16 + $0x5e8] sm:$0xff] }
 0x813   : > { %3809 = vmatmul.f32.gmra.mxu3 %v7428_v2  ;;  %3832 = vmatmul.f32.gmra.mxu0 %v7430_v30  ;;  %v3053_v49 = vld [vmem:[#allocation16 + $0x758] sm:$0xff]  ;;  %v3390_v11 = vld [vmem:[#allocation16 + $0x11e0] sm:$0xff] }
 0x814   : > { %3855 = vmatmul.f32.gmra.mxu1 %v7426_v47  ;;  %3878 = vmatmul.f32.gmra.mxu2 %v7428_v2  ;;  %v3245_v55 = vld [vmem:[#allocation16 + $0xd58] sm:$0xff] }
 0x815   : > { %3886 = vmatpush.msra.mxu3 %v3340_v15  ;;  %3909 = vmatpush.msrb.mxu0 %v2957_v18  ;;  %v2849_v54 = vld [vmem:[#allocation16 + $0xf8] sm:$0xff]  ;;  %v2994_v15 = vld [vmem:[#allocation16 + $0x580] sm:$0xff] }
 0x816   : > { %3932 = vmatpush.msrb.mxu1 %v3149_v27  ;;  %3955 = vmatpush.msra.mxu2 %v3341_v25  ;;  %v3041_v58 = vld [vmem:[#allocation16 + $0x6f8] sm:$0xff]  ;;  %v3186_v18 = vld [vmem:[#allocation16 + $0xb80] sm:$0xff]  ;;  %v2995_v25 = vld [vmem:[#allocation16 + $0x588] sm:$0xff] }
 0x817   : > { %3887 = vmatpush.msra.mxu3 %v3328_v56  ;;  %3910 = vmatpush.msrb.mxu0 %v2945_v5  ;;  %v3233_v59 = vld [vmem:[#allocation16 + $0xcf8] sm:$0xff]  ;;  %v3378_v27 = vld [vmem:[#allocation16 + $0x1180] sm:$0xff] }
 0x818   : > { %3933 = vmatpush.msrb.mxu1 %v3137_v14  ;;  %3956 = vmatpush.msra.mxu2 %v3329_v8  ;;  %v2837_v45 = vld [vmem:[#allocation16 + $0x98] sm:$0xff]  ;;  %v2982_v56 = vld [vmem:[#allocation16 + $0x520] sm:$0xff]  ;;  %v2983_v8 = vld [vmem:[#allocation16 + $0x528] sm:$0xff] }
 0x819   : > { %3888 = vmatpush.msra.mxu3 %v3316_v28  ;;  %3911 = vmatpush.msrb.mxu0 %v2933_v24  ;;  %v3029_v17 = vld [vmem:[#allocation16 + $0x698] sm:$0xff]  ;;  %v3174_v5 = vld [vmem:[#allocation16 + $0xb20] sm:$0xff] }
 0x81a   : > { %3934 = vmatpush.msrb.mxu1 %v3125_v22  ;;  %3957 = vmatpush.msra.mxu2 %v3317_v29  ;;  %v3221_v4 = vld [vmem:[#allocation16 + $0xc98] sm:$0xff]  ;;  %v3366_v14 = vld [vmem:[#allocation16 + $0x1120] sm:$0xff]  ;;  %v2971_v29 = vld [vmem:[#allocation16 + $0x4c8] sm:$0xff] }
 0x81b   : > { %3889 = vmatpush.msra.mxu3 %v3304_v61  ;;  %3912 = vmatpush.msrb.mxu0 %v2921_v50  ;;  %v2825_v46 = vld [vmem:[#allocation16 + $0x38] sm:$0xff]  ;;  %v2970_v28 = vld [vmem:[#allocation16 + $0x4c0] sm:$0xff] }
 0x81c   : > { %3935 = vmatpush.msrb.mxu1 %v3113_v40  ;;  %3958 = vmatpush.msra.mxu2 %v3305_v1  ;;  %v3017_v13 = vld [vmem:[#allocation16 + $0x638] sm:$0xff]  ;;  %v3162_v24 = vld [vmem:[#allocation16 + $0xac0] sm:$0xff]  ;;  %v2959_v1 = vld [vmem:[#allocation16 + $0x468] sm:$0xff] }
 0x81d   : > { %3890 = vmatpush.msra.mxu3 %v3292_v9  ;;  %3913 = vmatpush.msrb.mxu0 %v2909_v33  ;;  %v3209_v21 = vld [vmem:[#allocation16 + $0xc38] sm:$0xff]  ;;  %v3354_v22 = vld [vmem:[#allocation16 + $0x10c0] sm:$0xff] }
 0x81e   : > { %3936 = vmatpush.msrb.mxu1 %v3101_v34  ;;  %3959 = vmatpush.msra.mxu2 %v3293_v35  ;;  %v2958_v61 = vld [vmem:[#allocation16 + $0x460] sm:$0xff]  ;;  %v2947_v35 = vld [vmem:[#allocation16 + $0x408] sm:$0xff] }
 0x81f   : > { %3891 = vmatpush.msra.mxu3 %v3280_v26  ;;  %3914 = vmatpush.msrb.mxu0 %v2897_v31  ;;  %v3150_v50 = vld [vmem:[#allocation16 + $0xa60] sm:$0xff] }
 0x820   : > { %3937 = vmatpush.msrb.mxu1 %v3089_v57  ;;  %3960 = vmatpush.msra.mxu2 %v3281_v19  ;;  %v3342_v40 = vld [vmem:[#allocation16 + $0x1060] sm:$0xff]  ;;  %v2935_v19 = vld [vmem:[#allocation16 + $0x3a8] sm:$0xff] }
 0x821   : > { %3892 = vmatpush.msra.mxu3 %v3268_v42  ;;  %3915 = vmatpush.msrb.mxu0 %v2885_v32  ;;  %v2946_v9 = vld [vmem:[#allocation16 + $0x400] sm:$0xff] }
 0x822   : > { %3938 = vmatpush.msrb.mxu1 %v3077_v44  ;;  %3961 = vmatpush.msra.mxu2 %v3269_v37  ;;  %v3138_v33 = vld [vmem:[#allocation16 + $0xa00] sm:$0xff]  ;;  %v2923_v37 = vld [vmem:[#allocation16 + $0x348] sm:$0xff] }
 0x823   : > { %3893 = vmatpush.msra.mxu3 %v3256_v48  ;;  %3916 = vmatpush.msrb.mxu0 %v2873_v36  ;;  %v3330_v34 = vld [vmem:[#allocation16 + $0x1000] sm:$0xff] }
 0x824   : > { %3939 = vmatpush.msrb.mxu1 %v3065_v51  ;;  %3962 = vmatpush.msra.mxu2 %v3257_v52  ;;  %v2934_v26 = vld [vmem:[#allocation16 + $0x3a0] sm:$0xff]  ;;  %v2911_v52 = vld [vmem:[#allocation16 + $0x2e8] sm:$0xff] }
 0x825   : > { %3894 = vmatpush.msra.mxu3 %v3244_v60  ;;  %3917 = vmatpush.msrb.mxu0 %v2861_v63  ;;  %v3126_v31 = vld [vmem:[#allocation16 + $0x9a0] sm:$0xff] }
 0x826   : > { %3940 = vmatpush.msrb.mxu1 %v3053_v49  ;;  %3963 = vmatpush.msra.mxu2 %v3245_v55  ;;  %v3318_v57 = vld [vmem:[#allocation16 + $0xfa0] sm:$0xff]  ;;  %v2899_v55 = vld [vmem:[#allocation16 + $0x288] sm:$0xff] }
 0x827   : > { %3895 = vmatpush.msra.mxu3 %v3232_v53  ;;  %3918 = vmatpush.msrb.mxu0 %v2849_v54  ;;  %v2922_v42 = vld [vmem:[#allocation16 + $0x340] sm:$0xff] }
 0x828   : > { %3941 = vmatpush.msrb.mxu1 %v3041_v58  ;;  %3964 = vmatpush.msra.mxu2 %v3233_v59  ;;  %v3114_v32 = vld [vmem:[#allocation16 + $0x940] sm:$0xff]  ;;  %v2887_v59 = vld [vmem:[#allocation16 + $0x228] sm:$0xff] }
 0x829   : > { %3896 = vmatpush.msra.mxu3 %v3220_v38  ;;  %3919 = vmatpush.msrb.mxu0 %v2837_v45  ;;  %v3306_v44 = vld [vmem:[#allocation16 + $0xf40] sm:$0xff] }
 0x82a   : > { %3942 = vmatpush.msrb.mxu1 %v3029_v17  ;;  %3965 = vmatpush.msra.mxu2 %v3221_v4  ;;  %v2910_v48 = vld [vmem:[#allocation16 + $0x2e0] sm:$0xff]  ;;  %v2875_v4 = vld [vmem:[#allocation16 + $0x1c8] sm:$0xff] }
 0x82b   : > { %3897 = vmatpush.msra.mxu3 %v3208_v6  ;;  %3920 = vmatpush.msrb.mxu0 %v2825_v46  ;;  %v3102_v36 = vld [vmem:[#allocation16 + $0x8e0] sm:$0xff] }
 0x82c   : > { %3943 = vmatpush.msrb.mxu1 %v3017_v13  ;;  %3966 = vmatpush.msra.mxu2 %v3209_v21  ;;  %v3294_v51 = vld [vmem:[#allocation16 + $0xee0] sm:$0xff]  ;;  %v2863_v21 = vld [vmem:[#allocation16 + $0x168] sm:$0xff] }
 0x82d   : > { %3898 = vmatmul.f32.vlgmr.msra.gmra.mxu3 %v7417_v62  ;;  %3921 = vmatmul.f32.vlgmr.msrb.gmra.mxu0 %v7413_v0  ;;  %v2898_v60 = vld [vmem:[#allocation16 + $0x280] sm:$0xff] }
 0x82e   : > { %3944 = vmatmul.f32.vlgmr.msrb.gmra.mxu1 %v7415_v3  ;;  %3967 = vmatmul.f32.vlgmr.msra.gmra.mxu2 %v7417_v62  ;;  %v3090_v63 = vld [vmem:[#allocation16 + $0x880] sm:$0xff] }
 0x82f   : > { %3974 = vmatpush.msrb.mxu3 %v3006_v43  ;;  %3997 = vmatpush.msra.mxu0 %v3198_v7  ;;  %v3282_v49 = vld [vmem:[#allocation16 + $0xe80] sm:$0xff] }
 0x830   : > { %4020 = vmatpush.msra.mxu1 %v3390_v11  ;;  %4043 = vmatpush.msrb.mxu2 %v3007_v12  ;;  %v2886_v53 = vld [vmem:[#allocation16 + $0x220] sm:$0xff]  ;;  %v2851_v12 = vld [vmem:[#allocation16 + $0x108] sm:$0xff] }
 0x831   : > { %3975 = vmatpush.msrb.mxu3 %v2994_v15  ;;  %3998 = vmatpush.msra.mxu0 %v3186_v18  ;;  %v3078_v54 = vld [vmem:[#allocation16 + $0x820] sm:$0xff] }
 0x832   : > { %4021 = vmatpush.msra.mxu1 %v3378_v27  ;;  %4044 = vmatpush.msrb.mxu2 %v2995_v25  ;;  %v3270_v58 = vld [vmem:[#allocation16 + $0xe20] sm:$0xff]  ;;  %v2839_v25 = vld [vmem:[#allocation16 + $0xa8] sm:$0xff] }
 0x833   : > { %3976 = vmatpush.msrb.mxu3 %v2982_v56  ;;  %3999 = vmatpush.msra.mxu0 %v3174_v5  ;;  %v2874_v38 = vld [vmem:[#allocation16 + $0x1c0] sm:$0xff] }
 0x834   : > { %4022 = vmatpush.msra.mxu1 %v3366_v14  ;;  %4045 = vmatpush.msrb.mxu2 %v2983_v8  ;;  %v3066_v45 = vld [vmem:[#allocation16 + $0x7c0] sm:$0xff]  ;;  %v2827_v8 = vld [vmem:[#allocation16 + $0x48] sm:$0xff] }
 0x835   : > { %3977 = vmatpush.msrb.mxu3 %v2970_v28  ;;  %4000 = vmatpush.msra.mxu0 %v3162_v24  ;;  %v3258_v17 = vld [vmem:[#allocation16 + $0xdc0] sm:$0xff]  ;;  %v3199_v28 = vld [vmem:[#allocation16 + $0xbe8] sm:$0xff] }
 0x836   : > { %4023 = vmatpush.msra.mxu1 %v3354_v22  ;;  %4046 = vmatpush.msrb.mxu2 %v2971_v29  ;;  %v2862_v6 = vld [vmem:[#allocation16 + $0x160] sm:$0xff]  ;;  %v3391_v24 = vld [vmem:[#allocation16 + $0x11e8] sm:$0xff]  ;;  %v3008_v22 = vld [vmem:[#allocation16 + $0x5f0] sm:$0xff] }
 0x837   : > { %3901 = vmatmul.f32.gmra.mxu3 %v7430_v30  ;;  %3924 = vmatmul.f32.gmra.mxu0 %v7426_v47  ;;  %v3054_v46 = vld [vmem:[#allocation16 + $0x760] sm:$0xff]  ;;  %v3200_v29 = vld [vmem:[#allocation16 + $0xbf0] sm:$0xff] }
 0x838   : > { %3947 = vmatmul.f32.gmra.mxu1 %v7428_v2  ;;  %3970 = vmatmul.f32.gmra.mxu2 %v7430_v30  ;;  %v3246_v13 = vld [vmem:[#allocation16 + $0xd60] sm:$0xff] }
 0x839   : > { %3978 = vmatpush.msrb.mxu3 %v2958_v61  ;;  %4001 = vmatpush.msra.mxu0 %v3150_v50  ;;  %v2850_v43 = vld [vmem:[#allocation16 + $0x100] sm:$0xff]  ;;  %v3187_v61 = vld [vmem:[#allocation16 + $0xb88] sm:$0xff] }
 0x83a   : > { %4024 = vmatpush.msra.mxu1 %v3342_v40  ;;  %4047 = vmatpush.msrb.mxu2 %v2959_v1  ;;  %v3042_v7 = vld [vmem:[#allocation16 + $0x700] sm:$0xff]  ;;  %v3379_v50 = vld [vmem:[#allocation16 + $0x1188] sm:$0xff]  ;;  %v2996_v40 = vld [vmem:[#allocation16 + $0x590] sm:$0xff] }
 0x83b   : > { %3979 = vmatpush.msrb.mxu3 %v2946_v9  ;;  %4002 = vmatpush.msra.mxu0 %v3138_v33  ;;  %v3234_v11 = vld [vmem:[#allocation16 + $0xd00] sm:$0xff]  ;;  %v3188_v1 = vld [vmem:[#allocation16 + $0xb90] sm:$0xff]  ;;  %v3175_v9 = vld [vmem:[#allocation16 + $0xb28] sm:$0xff] }
 0x83c   : > { %4025 = vmatpush.msra.mxu1 %v3330_v34  ;;  %4048 = vmatpush.msrb.mxu2 %v2947_v35  ;;  %v2838_v15 = vld [vmem:[#allocation16 + $0xa0] sm:$0xff]  ;;  %v3367_v33 = vld [vmem:[#allocation16 + $0x1128] sm:$0xff]  ;;  %v2984_v34 = vld [vmem:[#allocation16 + $0x530] sm:$0xff] }
 0x83d   : > { %3980 = vmatpush.msrb.mxu3 %v2934_v26  ;;  %4003 = vmatpush.msra.mxu0 %v3126_v31  ;;  %v3030_v18 = vld [vmem:[#allocation16 + $0x6a0] sm:$0xff]  ;;  %v3176_v35 = vld [vmem:[#allocation16 + $0xb30] sm:$0xff]  ;;  %v3163_v26 = vld [vmem:[#allocation16 + $0xac8] sm:$0xff] }
 0x83e   : > { %4026 = vmatpush.msra.mxu1 %v3318_v57  ;;  %4049 = vmatpush.msrb.mxu2 %v2935_v19  ;;  %v3222_v27 = vld [vmem:[#allocation16 + $0xca0] sm:$0xff]  ;;  %v3355_v31 = vld [vmem:[#allocation16 + $0x10c8] sm:$0xff]  ;;  %v2972_v57 = vld [vmem:[#allocation16 + $0x4d0] sm:$0xff] }
 0x83f   : > { %3981 = vmatpush.msrb.mxu3 %v2922_v42  ;;  %4004 = vmatpush.msra.mxu0 %v3114_v32  ;;  %v2826_v56 = vld [vmem:[#allocation16 + $0x40] sm:$0xff]  ;;  %v3164_v19 = vld [vmem:[#allocation16 + $0xad0] sm:$0xff]  ;;  %v3151_v42 = vld [vmem:[#allocation16 + $0xa68] sm:$0xff] }
 0x840   : > { %4027 = vmatpush.msra.mxu1 %v3306_v44  ;;  %4050 = vmatpush.msrb.mxu2 %v2923_v37  ;;  %v3018_v5 = vld [vmem:[#allocation16 + $0x640] sm:$0xff]  ;;  %v3343_v32 = vld [vmem:[#allocation16 + $0x1068] sm:$0xff]  ;;  %v2960_v44 = vld [vmem:[#allocation16 + $0x470] sm:$0xff] }
 0x841   : > { %3982 = vmatpush.msrb.mxu3 %v2910_v48  ;;  %4005 = vmatpush.msra.mxu0 %v3102_v36  ;;  %v3210_v14 = vld [vmem:[#allocation16 + $0xc40] sm:$0xff]  ;;  %v3152_v37 = vld [vmem:[#allocation16 + $0xa70] sm:$0xff]  ;;  %v3139_v48 = vld [vmem:[#allocation16 + $0xa08] sm:$0xff] }
 0x842   : > { %4028 = vmatpush.msra.mxu1 %v3294_v51  ;;  %4051 = vmatpush.msrb.mxu2 %v2911_v52  ;;  %v3331_v36 = vld [vmem:[#allocation16 + $0x1008] sm:$0xff]  ;;  %v2948_v51 = vld [vmem:[#allocation16 + $0x410] sm:$0xff] }
 0x843   : > { %3983 = vmatpush.msrb.mxu3 %v2898_v60  ;;  %4006 = vmatpush.msra.mxu0 %v3090_v63  ;;  %v3140_v52 = vld [vmem:[#allocation16 + $0xa10] sm:$0xff]  ;;  %v3127_v60 = vld [vmem:[#allocation16 + $0x9a8] sm:$0xff] }
 0x844   : > { %4029 = vmatpush.msra.mxu1 %v3282_v49  ;;  %4052 = vmatpush.msrb.mxu2 %v2899_v55  ;;  %v3319_v63 = vld [vmem:[#allocation16 + $0xfa8] sm:$0xff]  ;;  %v2936_v49 = vld [vmem:[#allocation16 + $0x3b0] sm:$0xff] }
 0x845   : > { %3984 = vmatpush.msrb.mxu3 %v2886_v53  ;;  %4007 = vmatpush.msra.mxu0 %v3078_v54  ;;  %v3128_v55 = vld [vmem:[#allocation16 + $0x9b0] sm:$0xff]  ;;  %v3115_v53 = vld [vmem:[#allocation16 + $0x948] sm:$0xff] }
 0x846   : > { %4030 = vmatpush.msra.mxu1 %v3270_v58  ;;  %4053 = vmatpush.msrb.mxu2 %v2887_v59  ;;  %v3307_v54 = vld [vmem:[#allocation16 + $0xf48] sm:$0xff]  ;;  %v2924_v58 = vld [vmem:[#allocation16 + $0x350] sm:$0xff] }
 0x847   : > { %3985 = vmatpush.msrb.mxu3 %v2874_v38  ;;  %4008 = vmatpush.msra.mxu0 %v3066_v45  ;;  %v3116_v59 = vld [vmem:[#allocation16 + $0x950] sm:$0xff]  ;;  %v3103_v38 = vld [vmem:[#allocation16 + $0x8e8] sm:$0xff] }
 0x848   : > { %4031 = vmatpush.msra.mxu1 %v3258_v17  ;;  %4054 = vmatpush.msrb.mxu2 %v2875_v4  ;;  %v3295_v45 = vld [vmem:[#allocation16 + $0xee8] sm:$0xff]  ;;  %v2912_v17 = vld [vmem:[#allocation16 + $0x2f0] sm:$0xff] }
 0x849   : > { %3986 = vmatpush.msrb.mxu3 %v2862_v6  ;;  %4009 = vmatpush.msra.mxu0 %v3054_v46  ;;  %v3104_v4 = vld [vmem:[#allocation16 + $0x8f0] sm:$0xff]  ;;  %v3091_v6 = vld [vmem:[#allocation16 + $0x888] sm:$0xff] }
 0x84a   : > { %4032 = vmatpush.msra.mxu1 %v3246_v13  ;;  %4055 = vmatpush.msrb.mxu2 %v2863_v21  ;;  %v3283_v46 = vld [vmem:[#allocation16 + $0xe88] sm:$0xff]  ;;  %v2900_v13 = vld [vmem:[#allocation16 + $0x290] sm:$0xff] }
 0x84b   : > { %3987 = vmatpush.msrb.mxu3 %v2850_v43  ;;  %4010 = vmatpush.msra.mxu0 %v3042_v7  ;;  %v3092_v21 = vld [vmem:[#allocation16 + $0x890] sm:$0xff]  ;;  %v3079_v43 = vld [vmem:[#allocation16 + $0x828] sm:$0xff] }
 0x84c   : > { %4033 = vmatpush.msra.mxu1 %v3234_v11  ;;  %4056 = vmatpush.msrb.mxu2 %v2851_v12  ;;  %v3271_v7 = vld [vmem:[#allocation16 + $0xe28] sm:$0xff]  ;;  %v2888_v11 = vld [vmem:[#allocation16 + $0x230] sm:$0xff] }
 0x84d   : > { %3988 = vmatpush.msrb.mxu3 %v2838_v15  ;;  %4011 = vmatpush.msra.mxu0 %v3030_v18  ;;  %v3080_v12 = vld [vmem:[#allocation16 + $0x830] sm:$0xff]  ;;  %v3067_v15 = vld [vmem:[#allocation16 + $0x7c8] sm:$0xff] }
 0x84e   : > { %4034 = vmatpush.msra.mxu1 %v3222_v27  ;;  %4057 = vmatpush.msrb.mxu2 %v2839_v25  ;;  %v3259_v18 = vld [vmem:[#allocation16 + $0xdc8] sm:$0xff]  ;;  %v2876_v27 = vld [vmem:[#allocation16 + $0x1d0] sm:$0xff] }
 0x84f   : > { %3989 = vmatpush.msrb.mxu3 %v2826_v56  ;;  %4012 = vmatpush.msra.mxu0 %v3018_v5  ;;  %v3068_v25 = vld [vmem:[#allocation16 + $0x7d0] sm:$0xff]  ;;  %v3055_v56 = vld [vmem:[#allocation16 + $0x768] sm:$0xff] }
 0x850   : > { %4035 = vmatpush.msra.mxu1 %v3210_v14  ;;  %4058 = vmatpush.msrb.mxu2 %v2827_v8  ;;  %v3247_v5 = vld [vmem:[#allocation16 + $0xd68] sm:$0xff]  ;;  %v2864_v14 = vld [vmem:[#allocation16 + $0x170] sm:$0xff] }
 0x851   : > { %3990 = vmatmul.f32.vlgmr.msrb.gmra.mxu3 %v7413_v0  ;;  %4013 = vmatmul.f32.vlgmr.msra.gmra.mxu0 %v7415_v3  ;;  %v3056_v8 = vld [vmem:[#allocation16 + $0x770] sm:$0xff] }
 0x852   : > { %4036 = vmatmul.f32.vlgmr.msra.gmra.mxu1 %v7417_v62  ;;  %4059 = vmatmul.f32.vlgmr.msrb.gmra.mxu2 %v7413_v0 }
 0x853   : > { %4066 = vmatpush.msra.mxu3 %v3199_v28  ;;  %4089 = vmatpush.msrb.mxu0 %v3391_v24  ;;  %v3043_v28 = vld [vmem:[#allocation16 + $0x708] sm:$0xff] }
 0x854   : > { %4112 = vmatpush.msrb.mxu1 %v3008_v22  ;;  %4135 = vmatpush.msra.mxu2 %v3200_v29  ;;  %v3235_v24 = vld [vmem:[#allocation16 + $0xd08] sm:$0xff]  ;;  %v2852_v22 = vld [vmem:[#allocation16 + $0x110] sm:$0xff] }
 0x855   : > { %4067 = vmatpush.msra.mxu3 %v3187_v61  ;;  %4090 = vmatpush.msrb.mxu0 %v3379_v50  ;;  %v3044_v29 = vld [vmem:[#allocation16 + $0x710] sm:$0xff]  ;;  %v3031_v61 = vld [vmem:[#allocation16 + $0x6a8] sm:$0xff] }
 0x856   : > { %4113 = vmatpush.msrb.mxu1 %v2996_v40  ;;  %4136 = vmatpush.msra.mxu2 %v3188_v1  ;;  %v3223_v50 = vld [vmem:[#allocation16 + $0xca8] sm:$0xff]  ;;  %v2840_v40 = vld [vmem:[#allocation16 + $0xb0] sm:$0xff] }
 0x857   : > { %4068 = vmatpush.msra.mxu3 %v3175_v9  ;;  %4091 = vmatpush.msrb.mxu0 %v3367_v33  ;;  %v3032_v1 = vld [vmem:[#allocation16 + $0x6b0] sm:$0xff]  ;;  %v3019_v9 = vld [vmem:[#allocation16 + $0x648] sm:$0xff] }
 0x858   : > { %4114 = vmatpush.msrb.mxu1 %v2984_v34  ;;  %4137 = vmatpush.msra.mxu2 %v3176_v35  ;;  %v3211_v33 = vld [vmem:[#allocation16 + $0xc48] sm:$0xff]  ;;  %v2828_v34 = vld [vmem:[#allocation16 + $0x50] sm:$0xff] }
 0x859   : > { %4069 = vmatpush.msra.mxu3 %v3163_v26  ;;  %4092 = vmatpush.msrb.mxu0 %v3355_v31  ;;  %v3020_v35 = vld [vmem:[#allocation16 + $0x650] sm:$0xff]  ;;  %v7484_v26 = vpop.f32.mrf.mxu0 }
 0x85a   : > { %4115 = vmatpush.msrb.mxu1 %v2972_v57  ;;  %4138 = vmatpush.msra.mxu2 %v3164_v19  ;;  %v3392_v31 = vld [vmem:[#allocation16 + $0x11f0] sm:$0xff]  ;;  %v3009_v57 = vld [vmem:[#allocation16 + $0x5f8] sm:$0xff] }
 0x85b   : > { %3993 = vmatmul.f32.gmra.mxu3 %v7426_v47  ;;  %4016 = vmatmul.f32.gmra.mxu0 %v7428_v2  ;;  %v3201_v19 = vld [vmem:[#allocation16 + $0xbf8] sm:$0xff] }
 0x85c   : > { %4039 = vmatmul.f32.gmra.mxu1 %v7430_v30  ;;  %4062 = vmatmul.f32.gmra.mxu2 %v7426_v47 }
 0x85d   : > { %4070 = vmatpush.msra.mxu3 %v3151_v42  ;;  %4093 = vmatpush.msrb.mxu0 %v3343_v32  ;;  %v3393_v42 = vld [vmem:[#allocation16 + $0x11f8] sm:$0xff]  ;;  %v3380_v32 = vld [vmem:[#allocation16 + $0x1190] sm:$0xff] }
 0x85e   : > { %4116 = vmatpush.msrb.mxu1 %v2960_v44  ;;  %4139 = vmatpush.msra.mxu2 %v3152_v37  ;;  %v2997_v44 = vld [vmem:[#allocation16 + $0x598] sm:$0xff] }
 0x85f   : > { %4071 = vmatpush.msra.mxu3 %v3139_v48  ;;  %4094 = vmatpush.msrb.mxu0 %v3331_v36  ;;  %v3189_v37 = vld [vmem:[#allocation16 + $0xb98] sm:$0xff]  ;;  %v3368_v36 = vld [vmem:[#allocation16 + $0x1130] sm:$0xff] }
 0x860   : > { %4117 = vmatpush.msrb.mxu1 %v2948_v51  ;;  %4140 = vmatpush.msra.mxu2 %v3140_v52  ;;  %v3381_v48 = vld [vmem:[#allocation16 + $0x1198] sm:$0xff]  ;;  %v7490_v52 = vpop.f32.mrf.mxu3 }
 0x861   : > { %4072 = vmatpush.msra.mxu3 %v3127_v60  ;;  %4095 = vmatpush.msrb.mxu0 %v3319_v63  ;;  %v2985_v51 = vld [vmem:[#allocation16 + $0x538] sm:$0xff] }
 0x862   : > { %4118 = vmatpush.msrb.mxu1 %v2936_v49  ;;  %4141 = vmatpush.msra.mxu2 %v3128_v55  ;;  %v3177_v60 = vld [vmem:[#allocation16 + $0xb38] sm:$0xff]  ;;  %v7492_v49 = vpop.f32.mrf.mxu1  ;;  %v7494_v55 = vpop.f32.mrf.mxu2 }
 0x863   : > { %4073 = vmatpush.msra.mxu3 %v3115_v53  ;;  %4096 = vmatpush.msrb.mxu0 %v3307_v54  ;;  %v3369_v63 = vld [vmem:[#allocation16 + $0x1138] sm:$0xff]  ;;  %v3356_v53 = vld [vmem:[#allocation16 + $0x10d0] sm:$0xff] }
 0x864   : > { %4119 = vmatpush.msrb.mxu1 %v2924_v58  ;;  %4142 = vmatpush.msra.mxu2 %v3116_v59  ;;  %v2973_v54 = vld [vmem:[#allocation16 + $0x4d8] sm:$0xff] }
 0x865   : > { %4074 = vmatpush.msra.mxu3 %v3103_v38  ;;  %4097 = vmatpush.msrb.mxu0 %v3295_v45  ;;  %v3165_v58 = vld [vmem:[#allocation16 + $0xad8] sm:$0xff]  ;;  %v7496_v38 = vpop.f32.mrf.mxu0  ;;  %v3344_v45 = vld [vmem:[#allocation16 + $0x1070] sm:$0xff] }
 0x866   : > { %4120 = vmatpush.msrb.mxu1 %v2912_v17  ;;  %4143 = vmatpush.msra.mxu2 %v3104_v4  ;;  %v3357_v59 = vld [vmem:[#allocation16 + $0x10d8] sm:$0xff] }
 0x867   : > { %4075 = vmatpush.msra.mxu3 %v3091_v6  ;;  %4098 = vmatpush.msrb.mxu0 %v3283_v46  ;;  %v2961_v17 = vld [vmem:[#allocation16 + $0x478] sm:$0xff]  ;;  %v3332_v46 = vld [vmem:[#allocation16 + $0x1010] sm:$0xff] }
 0x868   : > { %4121 = vmatpush.msrb.mxu1 %v2900_v13  ;;  %4144 = vmatpush.msra.mxu2 %v3092_v21  ;;  %v3153_v4 = vld [vmem:[#allocation16 + $0xa78] sm:$0xff] }
 0x869   : > { %4076 = vmatpush.msra.mxu3 %v3079_v43  ;;  %4099 = vmatpush.msrb.mxu0 %v3271_v7  ;;  %v3345_v6 = vld [vmem:[#allocation16 + $0x1078] sm:$0xff]  ;;  %v3320_v7 = vld [vmem:[#allocation16 + $0xfb0] sm:$0xff] }
 0x86a   : > { %4122 = vmatpush.msrb.mxu1 %v2888_v11  ;;  %4145 = vmatpush.msra.mxu2 %v3080_v12  ;;  %v2949_v13 = vld [vmem:[#allocation16 + $0x418] sm:$0xff]  ;;  %v7502_v12 = vpop.f32.mrf.mxu3 }
 0x86b   : > { %4077 = vmatpush.msra.mxu3 %v3067_v15  ;;  %4100 = vmatpush.msrb.mxu0 %v3259_v18  ;;  %v3141_v21 = vld [vmem:[#allocation16 + $0xa18] sm:$0xff] }
 0x86c   : > { %4123 = vmatpush.msrb.mxu1 %v2876_v27  ;;  %4146 = vmatpush.msra.mxu2 %v3068_v25  ;;  %v3333_v43 = vld [vmem:[#allocation16 + $0x1018] sm:$0xff]  ;;  %v7504_v27 = vpop.f32.mrf.mxu1  ;;  %v7506_v25 = vpop.f32.mrf.mxu2 }
 0x86d   : > { %4078 = vmatpush.msra.mxu3 %v3055_v56  ;;  %4101 = vmatpush.msrb.mxu0 %v3247_v5  ;;  %v2937_v11 = vld [vmem:[#allocation16 + $0x3b8] sm:$0xff]  ;;  %v3308_v56 = vld [vmem:[#allocation16 + $0xf50] sm:$0xff] }
 0x86e   : > { %4124 = vmatpush.msrb.mxu1 %v2864_v14  ;;  %4147 = vmatpush.msra.mxu2 %v3056_v8  ;;  %v3129_v15 = vld [vmem:[#allocation16 + $0x9b8] sm:$0xff] }
 0x86f   : > { %4079 = vmatpush.msra.mxu3 %v3043_v28  ;;  %4102 = vmatpush.msrb.mxu0 %v3235_v24  ;;  %v3321_v18 = vld [vmem:[#allocation16 + $0xfb8] sm:$0xff]  ;;  %v3296_v28 = vld [vmem:[#allocation16 + $0xef0] sm:$0xff] }
 0x870   : > { %4125 = vmatpush.msrb.mxu1 %v2852_v22  ;;  %4148 = vmatpush.msra.mxu2 %v3044_v29  ;;  %v2925_v5 = vld [vmem:[#allocation16 + $0x358] sm:$0xff] }
 0x871   : > { %4080 = vmatpush.msra.mxu3 %v3031_v61  ;;  %4103 = vmatpush.msrb.mxu0 %v3223_v50  ;;  %v3117_v14 = vld [vmem:[#allocation16 + $0x958] sm:$0xff]  ;;  %v7508_v61 = vpop.f32.mrf.mxu0  ;;  %v3284_v50 = vld [vmem:[#allocation16 + $0xe90] sm:$0xff] }
 0x872   : > { %4126 = vmatpush.msrb.mxu1 %v2840_v40  ;;  %4149 = vmatpush.msra.mxu2 %v3032_v1  ;;  %v3309_v8 = vld [vmem:[#allocation16 + $0xf58] sm:$0xff] }
 0x873   : > { %4081 = vmatpush.msra.mxu3 %v3019_v9  ;;  %4104 = vmatpush.msrb.mxu0 %v3211_v33  ;;  %v2913_v24 = vld [vmem:[#allocation16 + $0x2f8] sm:$0xff]  ;;  %v3272_v33 = vld [vmem:[#allocation16 + $0xe30] sm:$0xff] }
 0x874   : > { %4127 = vmatpush.msrb.mxu1 %v2828_v34  ;;  %4150 = vmatpush.msra.mxu2 %v3020_v35  ;;  %v3105_v22 = vld [vmem:[#allocation16 + $0x8f8] sm:$0xff] }
 0x875   : > { %4082 = vmatmul.f32.vlgmr.msra.gmra.mxu3 %v7415_v3  ;;  %4105 = vmatmul.f32.vlgmr.msrb.gmra.mxu0 %v7417_v62  ;;  %v3297_v29 = vld [vmem:[#allocation16 + $0xef8] sm:$0xff] }
 0x876   : > { %4128 = vmatmul.f32.vlgmr.msrb.gmra.mxu1 %v7413_v0  ;;  %4151 = vmatmul.f32.vlgmr.msra.gmra.mxu2 %v7415_v3  ;;  %v2901_v40 = vld [vmem:[#allocation16 + $0x298] sm:$0xff] }
 0x877   : > { %4158 = vmatpush.msrb.mxu3 %v3392_v31  ;;  %4181 = vmatpush.msra.mxu0 %v3009_v57  ;;  %v3093_v1 = vld [vmem:[#allocation16 + $0x898] sm:$0xff]  ;;  %v3260_v57 = vld [vmem:[#allocation16 + $0xdd0] sm:$0xff] }
 0x878   : > { %4204 = vmatpush.msra.mxu1 %v3201_v19  ;;  %4227 = vmatpush.msrb.mxu2 %v3393_v42  ;;  %v3285_v9 = vld [vmem:[#allocation16 + $0xe98] sm:$0xff]  ;;  %v7510_v42 = vpop.f32.mrf.mxu3 }
 0x879   : > { %4159 = vmatpush.msrb.mxu3 %v3380_v32  ;;  %4182 = vmatpush.msra.mxu0 %v2997_v44  ;;  %v2889_v34 = vld [vmem:[#allocation16 + $0x238] sm:$0xff] }
 0x87a   : > { %4205 = vmatpush.msra.mxu1 %v3189_v37  ;;  %4228 = vmatpush.msrb.mxu2 %v3381_v48  ;;  %v3081_v35 = vld [vmem:[#allocation16 + $0x838] sm:$0xff]  ;;  %v7512_v37 = vpop.f32.mrf.mxu1  ;;  %v7514_v48 = vpop.f32.mrf.mxu2 }
 0x87b   : > { %4160 = vmatpush.msrb.mxu3 %v3368_v36  ;;  %4183 = vmatpush.msra.mxu0 %v2985_v51  ;;  %v3273_v31 = vld [vmem:[#allocation16 + $0xe38] sm:$0xff]  ;;  %v3248_v36 = vld [vmem:[#allocation16 + $0xd70] sm:$0xff] }
 0x87c   : > { %4206 = vmatpush.msra.mxu1 %v3177_v60  ;;  %4229 = vmatpush.msrb.mxu2 %v3369_v63  ;;  %v2877_v19 = vld [vmem:[#allocation16 + $0x1d8] sm:$0xff] }
 0x87d   : > { %4161 = vmatpush.msrb.mxu3 %v3356_v53  ;;  %4184 = vmatpush.msra.mxu0 %v2973_v54  ;;  %v3069_v32 = vld [vmem:[#allocation16 + $0x7d8] sm:$0xff]  ;;  %v3236_v53 = vld [vmem:[#allocation16 + $0xd10] sm:$0xff] }
 0x87e   : > { %4207 = vmatpush.msra.mxu1 %v3165_v58  ;;  %4230 = vmatpush.msrb.mxu2 %v3357_v59  ;;  %v3261_v44 = vld [vmem:[#allocation16 + $0xdd8] sm:$0xff] }
 0x87f   : > { %4085 = vmatmul.f32.gmra.mxu3 %v7428_v2  ;;  %4108 = vmatmul.f32.gmra.mxu0 %v7430_v30  ;;  %v2865_v51 = vld [vmem:[#allocation16 + $0x178] sm:$0xff] }
 0x880   : > { %4131 = vmatmul.f32.gmra.mxu1 %v7426_v47  ;;  %4154 = vmatmul.f32.gmra.mxu2 %v7428_v2  ;;  %v3057_v60 = vld [vmem:[#allocation16 + $0x778] sm:$0xff] }
 0x881   : > { %4162 = vmatpush.msrb.mxu3 %v3344_v45  ;;  %4185 = vmatpush.msra.mxu0 %v2961_v17  ;;  %v3249_v63 = vld [vmem:[#allocation16 + $0xd78] sm:$0xff]  ;;  %v7516_v45 = vpop.f32.mrf.mxu0  ;;  %v3224_v17 = vld [vmem:[#allocation16 + $0xcb0] sm:$0xff] }
 0x882   : > { %4208 = vmatpush.msra.mxu1 %v3153_v4  ;;  %4231 = vmatpush.msrb.mxu2 %v3345_v6  ;;  %v2853_v54 = vld [vmem:[#allocation16 + $0x118] sm:$0xff] }
 0x883   : > { %4163 = vmatpush.msrb.mxu3 %v3332_v46  ;;  %4186 = vmatpush.msra.mxu0 %v2949_v13  ;;  %v3045_v58 = vld [vmem:[#allocation16 + $0x718] sm:$0xff]  ;;  %v3212_v13 = vld [vmem:[#allocation16 + $0xc50] sm:$0xff] }
 0x884   : > { %4209 = vmatpush.msra.mxu1 %v3141_v21  ;;  %4232 = vmatpush.msrb.mxu2 %v3333_v43  ;;  %v3237_v59 = vld [vmem:[#allocation16 + $0xd18] sm:$0xff] }
 0x885   : > { %4164 = vmatpush.msrb.mxu3 %v3320_v7  ;;  %4187 = vmatpush.msra.mxu0 %v2937_v11  ;;  %v2841_v4 = vld [vmem:[#allocation16 + $0xb8] sm:$0xff]  ;;  %v7518_v11 = vpop.f32.mrf.mxu3 }
 0x886   : > { %4210 = vmatpush.msra.mxu1 %v3129_v15  ;;  %4233 = vmatpush.msrb.mxu2 %v3321_v18  ;;  %v3033_v6 = vld [vmem:[#allocation16 + $0x6b8] sm:$0xff]  ;;  %v7520_v15 = vpop.f32.mrf.mxu1  ;;  %v7522_v18 = vpop.f32.mrf.mxu2 }
 0x887   : > { %4165 = vmatpush.msrb.mxu3 %v3308_v56  ;;  %4188 = vmatpush.msra.mxu0 %v2925_v5  ;;  %v3225_v46 = vld [vmem:[#allocation16 + $0xcb8] sm:$0xff] }
 0x888   : > { %4211 = vmatpush.msra.mxu1 %v3117_v14  ;;  %4234 = vmatpush.msrb.mxu2 %v3309_v8  ;;  %v2829_v21 = vld [vmem:[#allocation16 + $0x58] sm:$0xff] }
 0x889   : > { %4166 = vmatpush.msrb.mxu3 %v3296_v28  ;;  %4189 = vmatpush.msra.mxu0 %v2913_v24  ;;  %v3021_v43 = vld [vmem:[#allocation16 + $0x658] sm:$0xff] }
 0x88a   : > { %4212 = vmatpush.msra.mxu1 %v3105_v22  ;;  %4235 = vmatpush.msrb.mxu2 %v3297_v29  ;;  %v3213_v7 = vld [vmem:[#allocation16 + $0xc58] sm:$0xff] }
 0x88b   : > { %4167 = vmatpush.msrb.mxu3 %v3284_v50  ;;  %4190 = vmatpush.msra.mxu0 %v2901_v40  ;;  %v4319_v56 = vld [vmem:[#allocation19 + $0x168] sm:$0xff]  ;;  %v4316_v28 = vld [vmem:[#allocation19 + $0x150] sm:$0xff]  ;;  %v7528_v50 = vpop.f32.mrf.mxu0  ;;  %v4313_v40 = vld [vmem:[#allocation19 + $0x138] sm:$0xff] }
 0x88c   : > { %4213 = vmatpush.msra.mxu1 %v3093_v1  ;;  %4236 = vmatpush.msrb.mxu2 %v3285_v9  ;;  %v4367_v5 = vld [vmem:[#allocation19 + $0x2e8] sm:$0xff]  ;;  %v4364_v24 = vld [vmem:[#allocation19 + $0x2d0] sm:$0xff]  ;;  %v4361_v1 = vld [vmem:[#allocation19 + $0x2b8] sm:$0xff] }
 0x88d   : > { %4168 = vmatpush.msrb.mxu3 %v3272_v33  ;;  %4191 = vmatpush.msra.mxu0 %v2889_v34  ;;  %v4415_v14 = vld [vmem:[#allocation19 + $0x468] sm:$0xff]  ;;  %v4412_v22 = vld [vmem:[#allocation19 + $0x450] sm:$0xff]  ;;  %v4457_v9 = vld [vmem:[#allocation19 + $0x5b8] sm:$0xff] }
 0x88e   : > { %4214 = vmatpush.msra.mxu1 %v3081_v35  ;;  %4237 = vmatpush.msrb.mxu2 %v3273_v31  ;;  %v4463_v8 = vld [vmem:[#allocation19 + $0x5e8] sm:$0xff]  ;;  %v4460_v29 = vld [vmem:[#allocation19 + $0x5d0] sm:$0xff]  ;;  %v4406_v33 = vld [vmem:[#allocation19 + $0x420] sm:$0xff]  ;;  %v7530_v35 = vpop.f32.mrf.mxu3  ;;  %v7532_v31 = vpop.f32.mrf.mxu1 }
 0x88f   : > { %4169 = vmatpush.msrb.mxu3 %v3260_v57  ;;  %4192 = vmatpush.msra.mxu0 %v2877_v19  ;;  %v4454_v34 = vld [vmem:[#allocation19 + $0x5a0] sm:$0xff]  ;;  %v7534_v57 = vpop.f32.mrf.mxu2  ;;  %v4307_v19 = vld [vmem:[#allocation19 + $0x108] sm:$0xff] }
 0x890   : > { %4215 = vmatpush.msra.mxu1 %v3069_v32  ;;  %4238 = vmatpush.msrb.mxu2 %v3261_v44  ;;  %v4355_v32 = vld [vmem:[#allocation19 + $0x288] sm:$0xff] }
 0x891   : > { %4170 = vmatpush.msrb.mxu3 %v3248_v36  ;;  %4193 = vmatpush.msra.mxu0 %v2865_v51  ;;  %v4403_v44 = vld [vmem:[#allocation19 + $0x408] sm:$0xff]  ;;  %v4304_v51 = vld [vmem:[#allocation19 + $0xf0] sm:$0xff] }
 0x892   : > { %4216 = vmatpush.msra.mxu1 %v3057_v60  ;;  %4239 = vmatpush.msrb.mxu2 %v3249_v63  ;;  %v4451_v36 = vld [vmem:[#allocation19 + $0x588] sm:$0xff]  ;;  %v4352_v60 = vld [vmem:[#allocation19 + $0x270] sm:$0xff] }
 0x893   : > { %4171 = vmatpush.msrb.mxu3 %v3236_v53  ;;  %4194 = vmatpush.msra.mxu0 %v2853_v54  ;;  %v4400_v63 = vld [vmem:[#allocation19 + $0x3f0] sm:$0xff]  ;;  %v7540_v54 = vpop.f32.mrf.mxu0 }
 0x894   : > { %4217 = vmatpush.msra.mxu1 %v3045_v58  ;;  %4240 = vmatpush.msrb.mxu2 %v3237_v59  ;;  %v4448_v53 = vld [vmem:[#allocation19 + $0x570] sm:$0xff]  ;;  %v4301_v58 = vld [vmem:[#allocation19 + $0xd8] sm:$0xff] }
 0x895   : > { %4172 = vmatpush.msrb.mxu3 %v3224_v17  ;;  %4195 = vmatpush.msra.mxu0 %v2841_v4  ;;  %v4349_v59 = vld [vmem:[#allocation19 + $0x258] sm:$0xff] }
 0x896   : > { %4218 = vmatpush.msra.mxu1 %v3033_v6  ;;  %4241 = vmatpush.msrb.mxu2 %v3225_v46  ;;  %v4445_v17 = vld [vmem:[#allocation19 + $0x558] sm:$0xff]  ;;  %v4394_v6 = vld [vmem:[#allocation19 + $0x3c0] sm:$0xff] }
 0x897   : > { %4173 = vmatpush.msrb.mxu3 %v3212_v13  ;;  %4196 = vmatpush.msra.mxu0 %v2829_v21  ;;  %v7542_v4 = vld [vmem:[#allocation17] sm:$0xff]  ;;  %v4442_v46 = vld [vmem:[#allocation19 + $0x540] sm:$0xff]  ;;  %v4295_v13 = vld [vmem:[#allocation19 + $0xa8] sm:$0xff] }
 0x898   : > { %4219 = vmatpush.msra.mxu1 %v3021_v43  ;;  %4242 = vmatpush.msrb.mxu2 %v3213_v7  ;;  %v4343_v21 = vld [vmem:[#allocation19 + $0x228] sm:$0xff]  ;;  %v3398_v43 = vperm.slane %v7542_v4, 0  ;;  %v7545_v7 = vpop.f32.mrf.mxu3 }
 0x899   : > { %4174 = vmatmul.f32.vlgmr.msrb.gmra.mxu3 %v7417_v62  ;;  %4197 = vmatmul.f32.vlgmr.msra.gmra.mxu0 %v7413_v0  ;;  %v4409_v0 = vld [vmem:[#allocation19 + $0x438] sm:$0xff] }
 0x89a   : > { %4220 = vmatmul.f32.vlgmr.msra.gmra.mxu1 %v7415_v3  ;;  %4243 = vmatmul.f32.vlgmr.msrb.gmra.mxu2 %v7417_v62  ;;  %v4310_v3 = vld [vmem:[#allocation19 + $0x120] sm:$0xff] }
 0x89b   : > { %4858 = vmatpush.msra.mxu3 %v4319_v56  ;;  %4881 = vmatpush.msrb.mxu0 %v4367_v5  ;;  %v4358_v62 = vld [vmem:[#allocation19 + $0x2a0] sm:$0xff]  ;;  %v4391_v56 = vld [vmem:[#allocation19 + $0x3a8] sm:$0xff] }
 0x89c   : > { %4904 = vmatpush.msrb.mxu1 %v4415_v14  ;;  %4927 = vmatpush.msra.mxu2 %v4463_v8  ;;  %v4439_v5 = vld [vmem:[#allocation19 + $0x528] sm:$0xff]  ;;  %v7547_v14 = vpop.f32.mrf.mxu1  ;;  %v7549_v8 = vpop.f32.mrf.mxu2 }
 0x89d   : > { %4859 = vmatpush.msra.mxu3 %v4316_v28  ;;  %4882 = vmatpush.msrb.mxu0 %v4364_v24  ;;  %v4292_v28 = vld [vmem:[#allocation19 + $0x90] sm:$0xff] }
 0x89e   : > { %4905 = vmatpush.msrb.mxu1 %v4412_v22  ;;  %4928 = vmatpush.msra.mxu2 %v4460_v29  ;;  %v4340_v24 = vld [vmem:[#allocation19 + $0x210] sm:$0xff]  ;;  %v3399_v22 = vperm.slane %v7542_v4, 1 }
 0x89f   : > { %4860 = vmatpush.msra.mxu3 %v4313_v40  ;;  %4883 = vmatpush.msrb.mxu0 %v4361_v1  ;;  %v4388_v29 = vld [vmem:[#allocation19 + $0x390] sm:$0xff]  ;;  %v3401_v1 = vperm.slane %v7542_v4, 3 }
 0x8a0   : > { %4906 = vmatpush.msrb.mxu1 %v4409_v0  ;;  %4929 = vmatpush.msra.mxu2 %v4457_v9  ;;  %v4436_v40 = vld [vmem:[#allocation19 + $0x510] sm:$0xff]  ;;  %v7553_v0 = vpop.f32.mrf.mxu0  ;;  %v4289_v9 = vld [vmem:[#allocation19 + $0x78] sm:$0xff] }
 0x8a1   : > { %4861 = vmatpush.msra.mxu3 %v4310_v3  ;;  %4884 = vmatpush.msrb.mxu0 %v4358_v62  ;;  %v4337_v3 = vld [vmem:[#allocation19 + $0x1f8] sm:$0xff]  ;;  %v3440_v62 = vadd.f32 %v7490_v52, %v3398_v43  ;;  %v3647_v52 = vadd.f32 %v7528_v50, %v3401_v1 }
 0x8a2   : > { %4907 = vmatpush.msrb.mxu1 %v4406_v33  ;;  %4930 = vmatpush.msra.mxu2 %v4454_v34  ;;  %v4385_v33 = vld [vmem:[#allocation19 + $0x378] sm:$0xff] }
 0x8a3   : > { %4177 = vmatmul.f32.gmra.mxu3 %v7430_v30  ;;  %4200 = vmatmul.f32.gmra.mxu0 %v7426_v47  ;;  %v4397_v47 = vld [vmem:[#allocation19 + $0x3d8] sm:$0xff] }
 0x8a4   : > { %4223 = vmatmul.f32.gmra.mxu1 %v7428_v2  ;;  %4246 = vmatmul.f32.gmra.mxu2 %v7430_v30  ;;  %v4298_v2 = vld [vmem:[#allocation19 + $0xc0] sm:$0xff]  ;;  %v4433_v34 = vld [vmem:[#allocation19 + $0x4f8] sm:$0xff]  ;;  %v7574_v50 = vpop.f32.mrf.mxu2 }
 0x8a5   : > { %4862 = vmatpush.msra.mxu3 %v4307_v19  ;;  %4885 = vmatpush.msrb.mxu0 %v4355_v32  ;;  %v4346_v30 = vld [vmem:[#allocation19 + $0x240] sm:$0xff]  ;;  %v3400_v19 = vperm.slane %v7542_v4, 2 }
 0x8a6   : > { %4908 = vmatpush.msrb.mxu1 %v4403_v44  ;;  %4931 = vmatpush.msra.mxu2 %v4451_v36  ;;  %v4286_v32 = vld [vmem:[#allocation19 + $0x60] sm:$0xff]  ;;  %v3509_v36 = vadd.f32 %v7494_v55, %v3399_v22  ;;  %v4379_v55 = vld [vmem:[#allocation19 + $0x348] sm:$0xff] }
 0x8a7   : > { %4863 = vmatpush.msra.mxu3 %v4304_v51  ;;  %4886 = vmatpush.msrb.mxu0 %v4352_v60  ;;  %v4334_v44 = vld [vmem:[#allocation19 + $0x1e0] sm:$0xff] }
 0x8a8   : > { %4909 = vmatpush.msrb.mxu1 %v4400_v63  ;;  %4932 = vmatpush.msra.mxu2 %v4448_v53  ;;  %v4382_v51 = vld [vmem:[#allocation19 + $0x360] sm:$0xff]  ;;  %v4283_v63 = vld [vmem:[#allocation19 + $0x48] sm:$0xff] }
 0x8a9   : > { %4864 = vmatpush.msra.mxu3 %v4301_v58  ;;  %4887 = vmatpush.msrb.mxu0 %v4349_v59  ;;  %v4430_v60 = vld [vmem:[#allocation19 + $0x4e0] sm:$0xff]  ;;  %v4331_v53 = vld [vmem:[#allocation19 + $0x1c8] sm:$0xff]  ;;  %v3463_v58 = vadd.f32 %v7484_v26, %v3440_v62  ;;  %v3532_v59 = vadd.f32 %v7510_v42, %v3509_v36  ;;  %v4328_v26 = vld [vmem:[#allocation19 + $0x1b0] sm:$0xff] }
 0x8aa   : > { %4910 = vmatpush.msrb.mxu1 %v4397_v47  ;;  %4933 = vmatpush.msra.mxu2 %v4445_v17  ;;  %v7567_v47 = vpop.f32.mrf.mxu3  ;;  %v4427_v17 = vld [vmem:[#allocation19 + $0x4c8] sm:$0xff]  ;;  %v4376_v42 = vld [vmem:[#allocation19 + $0x330] sm:$0xff]  ;;  %v4418_v62 = vld [vmem:[#allocation19 + $0x480] sm:$0xff] }
 0x8ab   : > { %4865 = vmatpush.msra.mxu3 %v4298_v2  ;;  %4888 = vmatpush.msrb.mxu0 %v4346_v30  ;;  %v3578_v2 = vadd.f32 %v7512_v37, %v3400_v19  ;;  %v7572_v30 = vpop.f32.mrf.mxu1  ;;  %v4325_v37 = vld [vmem:[#allocation19 + $0x198] sm:$0xff] }
 0x8ac   : > { %4911 = vmatpush.msrb.mxu1 %v4394_v6  ;;  %4934 = vmatpush.msra.mxu2 %v4442_v46  ;;  %v4280_v6 = vld [vmem:[#allocation19 + $0x30] sm:$0xff] }
 0x8ad   : > { %4866 = vmatpush.msra.mxu3 %v4295_v13  ;;  %4889 = vmatpush.msrb.mxu0 %v4343_v21  ;;  %v4424_v46 = vld [vmem:[#allocation19 + $0x4b0] sm:$0xff]  ;;  %v3601_v13 = vadd.f32 %v7514_v48, %v3578_v2  ;;  %v3670_v21 = vadd.f32 %v7532_v31, %v3647_v52  ;;  %v4274_v48 = vld [vmem:[#allocation19] sm:$0xff]  ;;  %v7612_v52 = vpop.f32.mrf.mxu2  ;;  %v4601_v2 = vld [vmem:[#allocation19 + $0xa38] sm:$0xff] }
 0x8ae   : > { %4912 = vmatpush.msrb.mxu1 %v4391_v56  ;;  %4935 = vmatpush.msra.mxu2 %v4439_v5  ;;  %v4277_v56 = vld [vmem:[#allocation19 + $0x18] sm:$0xff]  ;;  %v3486_v5 = vadd.f32 %v7492_v49, %v3463_v58  ;;  %v4322_v31 = vld [vmem:[#allocation19 + $0x180] sm:$0xff]  ;;  %v3443_v49 = vadd.f32 %v7502_v12, %v3398_v43  ;;  %v3650_v12 = vadd.f32 %v7540_v54, %v3401_v1  ;;  %v4511_v43 = vld [vmem:[#allocation19 + $0x768] sm:$0xff] }
 0x8af   : > { %4867 = vmatpush.msra.mxu3 %v4292_v28  ;;  %4890 = vmatpush.msrb.mxu0 %v4340_v24  ;;  %v3555_v28 = vadd.f32 %v7508_v61, %v3532_v59  ;;  %v4373_v24 = vld [vmem:[#allocation19 + $0x318] sm:$0xff]  ;;  %v4370_v61 = vld [vmem:[#allocation19 + $0x300] sm:$0xff]  ;;  %v3581_v54 = vadd.f32 %v7520_v15, %v3400_v19 }
 0x8b0   : > { %4913 = vmatpush.msrb.mxu1 %v4388_v29  ;;  %4936 = vmatpush.msra.mxu2 %v4436_v40  ;;  %v4421_v29 = vld [vmem:[#allocation19 + $0x498] sm:$0xff]  ;;  %v3624_v40 = vadd.f32 %v7530_v35, %v3601_v13  ;;  %v3512_v35 = vadd.f32 %v7506_v25, %v3399_v22  ;;  %v3466_v36 = vadd.f32 %v7496_v38, %v3443_v49  ;;  %v4508_v38 = vld [vmem:[#allocation19 + $0x750] sm:$0xff]  ;;  %v4598_v13 = vld [vmem:[#allocation19 + $0xa20] sm:$0xff] }
 0x8b1   : > { %4868 = vmatpush.msra.mxu3 %v4289_v9  ;;  %4891 = vmatpush.msrb.mxu0 %v4337_v3  ;;  %v3693_v9 = vadd.f32 %v7534_v57, %v3670_v21  ;;  %v7582_v3 = vpop.f32.mrf.mxu0  ;;  %v7592_v57 = vmax.f32 %v3555_v28, 0.0  ;;  %v3604_v58 = vadd.f32 %v7522_v18, %v3581_v54  ;;  %v3673_v59 = vadd.f32 %v7547_v14, %v3650_v12  ;;  %v4505_v15 = vld [vmem:[#allocation19 + $0x738] sm:$0xff]  ;;  %v4502_v14 = vld [vmem:[#allocation19 + $0x720] sm:$0xff]  ;;  %v4499_v28 = vld [vmem:[#allocation19 + $0x708] sm:$0xff] }
 0x8b2   : > { %4914 = vmatpush.msrb.mxu1 %v4385_v33  ;;  %4937 = vmatpush.msra.mxu2 %v4433_v34  ;;  %v7587_v33 = vmax.f32 %v3486_v5, 0.0  ;;  %v7594_v34 = vmax.f32 %v3624_v40, 0.0  ;;  %v3535_v25 = vadd.f32 %v7518_v11, %v3512_v35  ;;  %v7603_v22 = vpop.f32.mrf.mxu3  ;;  %v4556_v11 = vld [vmem:[#allocation19 + $0x8d0] sm:$0xff]  ;;  %v4553_v19 = vld [vmem:[#allocation19 + $0x8b8] sm:$0xff]  ;;  %v4646_v21 = vld [vmem:[#allocation19 + $0xba0] sm:$0xff] }
 0x8b3   : > { %4869 = vmatpush.msra.mxu3 %v4286_v32  ;;  %4892 = vmatpush.msrb.mxu0 %v4334_v44  ;;  %v7596_v32 = vmax.f32 %v3693_v9, 0.0  ;;  %v4559_v44 = vld [vmem:[#allocation19 + $0x8e8] sm:$0xff]  ;;  %v7610_v1 = vpop.f32.mrf.mxu1  ;;  %v3696_v18 = vadd.f32 %v7549_v8, %v3673_v59  ;;  %v4496_v9 = vld [vmem:[#allocation19 + $0x6f0] sm:$0xff]  ;;  %v4541_v35 = vld [vmem:[#allocation19 + $0x858] sm:$0xff] }
 0x8b4   : > { %4915 = vmatpush.msrb.mxu1 %v4382_v51  ;;  %4938 = vmatpush.msra.mxu2 %v4430_v60  ;;  %v4607_v51 = vld [vmem:[#allocation19 + $0xa68] sm:$0xff]  ;;  %v4640_v49 = vld [vmem:[#allocation19 + $0xb70] sm:$0xff]  ;;  %v4589_v12 = vld [vmem:[#allocation19 + $0x9d8] sm:$0xff] }
 0x8b5   : > { %4870 = vmatpush.msra.mxu3 %v4283_v63  ;;  %4893 = vmatpush.msrb.mxu0 %v4331_v53  ;;  %v4655_v60 = vld [vmem:[#allocation19 + $0xbe8] sm:$0xff]  ;;  %v4604_v63 = vld [vmem:[#allocation19 + $0xa50] sm:$0xff]  ;;  %v7632_v8 = vmax.f32 %v3696_v18, 0.0  ;;  %v7636_v5 = vpop.f32.mrf.mxu2  ;;  %v4481_v18 = vld [vmem:[#allocation19 + $0x678] sm:$0xff] }
 0x8b6   : > { %4916 = vmatpush.msrb.mxu1 %v4379_v55  ;;  %4939 = vmatpush.msra.mxu2 %v4427_v17  ;;  %v4652_v53 = vld [vmem:[#allocation19 + $0xbd0] sm:$0xff]  ;;  %v3558_v17 = vadd.f32 %v7516_v45, %v3535_v25  ;;  %v4643_v40 = vld [vmem:[#allocation19 + $0xb88] sm:$0xff]  ;;  %v4586_v25 = vld [vmem:[#allocation19 + $0x9c0] sm:$0xff] }
 0x8b7   : > { %4871 = vmatpush.msra.mxu3 %v4280_v6  ;;  %4894 = vmatpush.msrb.mxu0 %v4328_v26  ;;  %v4649_v6 = vld [vmem:[#allocation19 + $0xbb8] sm:$0xff]  ;;  %v3489_v26 = vadd.f32 %v7504_v27, %v3466_v36  ;;  %v4538_v36 = vld [vmem:[#allocation19 + $0x840] sm:$0xff]  ;;  %v4535_v54 = vld [vmem:[#allocation19 + $0x828] sm:$0xff] }
 0x8b8   : > { %4917 = vmatpush.msrb.mxu1 %v4376_v42  ;;  %4940 = vmatpush.msra.mxu2 %v4424_v46  ;;  %v3627_v42 = vadd.f32 %v7545_v7, %v3604_v58  ;;  %v4550_v46 = vld [vmem:[#allocation19 + $0x8a0] sm:$0xff]  ;;  %v7628_v27 = vmax.f32 %v3558_v17, 0.0  ;;  %v3403_v17 = vperm.slane %v7542_v4, 5 }
 0x8b9   : > { %4872 = vmatpush.msra.mxu3 %v4277_v56  ;;  %4895 = vmatpush.msrb.mxu0 %v4325_v37  ;;  %v7618_v55 = vpop.f32.mrf.mxu0  ;;  %v7626_v56 = vmax.f32 %v3489_v26, 0.0  ;;  %v3405_v26 = vperm.slane %v7542_v4, 7 }
 0x8ba   : > { %4918 = vmatpush.msrb.mxu1 %v4373_v24  ;;  %4941 = vmatpush.msra.mxu2 %v4421_v29  ;;  %v7624_v45 = vpop.f32.mrf.mxu3  ;;  %v7630_v7 = vmax.f32 %v3627_v42, 0.0  ;;  %v4547_v24 = vld [vmem:[#allocation19 + $0x888] sm:$0xff] }
 0x8bb   : > { %4873 = vmatpush.msra.mxu3 %v4274_v48  ;;  %4896 = vmatpush.msrb.mxu0 %v4322_v31  ;;  %v7634_v37 = vpop.f32.mrf.mxu1  ;;  %v4595_v29 = vld [vmem:[#allocation19 + $0xa08] sm:$0xff]  ;;  %v4544_v48 = vld [vmem:[#allocation19 + $0x870] sm:$0xff] }
 0x8bc   : > { %4919 = vmatpush.msrb.mxu1 %v4370_v61  ;;  %4942 = vmatpush.msra.mxu2 %v4418_v62  ;;  %v4592_v31 = vld [vmem:[#allocation19 + $0x9f0] sm:$0xff]  ;;  %v4493_v62 = vld [vmem:[#allocation19 + $0x6d8] sm:$0xff] }
 0x8bd   : > { %4874 = vmatmul.f32.vlgmr.msra.gmra.mxu3 %v7587_v33  ;;  %4897 = vmatmul.f32.vlgmr.msrb.gmra.mxu0 %v7592_v57  ;;  %v7649_v59 = vpop.f32.mrf.mxu2 }
 0x8be   : > { %4920 = vmatmul.f32.vlgmr.msrb.gmra.mxu1 %v7594_v34  ;;  %4943 = vmatmul.f32.vlgmr.msra.gmra.mxu2 %v7596_v32 }
 0x8bf   : > { %4950 = vmatpush.msrb.mxu3 %v4511_v43  ;;  %4973 = vmatpush.msra.mxu0 %v4559_v44  ;;  %v4637_v43 = vld [vmem:[#allocation19 + $0xb58] sm:$0xff]  ;;  %v4490_v44 = vld [vmem:[#allocation19 + $0x6c0] sm:$0xff] }
 0x8c0   : > { %4996 = vmatpush.msra.mxu1 %v4607_v51  ;;  %5019 = vmatpush.msrb.mxu2 %v4655_v60  ;;  %v4634_v51 = vld [vmem:[#allocation19 + $0xb40] sm:$0xff]  ;;  %v4487_v60 = vld [vmem:[#allocation19 + $0x6a8] sm:$0xff] }
 0x8c1   : > { %4951 = vmatpush.msrb.mxu3 %v4508_v38  ;;  %4974 = vmatpush.msra.mxu0 %v4556_v11  ;;  %v7642_v61 = vpop.f32.mrf.mxu0  ;;  %v3402_v38 = vperm.slane %v7542_v4, 4 }
 0x8c2   : > { %4997 = vmatpush.msra.mxu1 %v4604_v63  ;;  %5020 = vmatpush.msrb.mxu2 %v4652_v53  ;;  %v7645_v11 = vpop.f32.mrf.mxu3  ;;  %v4583_v63 = vld [vmem:[#allocation19 + $0x9a8] sm:$0xff] }
 0x8c3   : > { %4952 = vmatpush.msrb.mxu3 %v4505_v15  ;;  %4975 = vmatpush.msra.mxu0 %v4553_v19  ;;  %v4631_v53 = vld [vmem:[#allocation19 + $0xb28] sm:$0xff]  ;;  %v7647_v58 = vpop.f32.mrf.mxu1  ;;  %v4484_v15 = vld [vmem:[#allocation19 + $0x690] sm:$0xff] }
 0x8c4   : > { %4998 = vmatpush.msra.mxu1 %v4601_v2  ;;  %5021 = vmatpush.msrb.mxu2 %v4649_v6  ;;  %v4532_v19 = vld [vmem:[#allocation19 + $0x810] sm:$0xff] }
 0x8c5   : > { %4953 = vmatpush.msrb.mxu3 %v4502_v14  ;;  %4976 = vmatpush.msra.mxu0 %v4550_v46  ;;  %v4580_v2 = vld [vmem:[#allocation19 + $0x990] sm:$0xff]  ;;  %v4529_v14 = vld [vmem:[#allocation19 + $0x7f8] sm:$0xff]  ;;  %v3716_v46 = vadd.f32 %v7567_v47, %v3402_v38 }
 0x8c6   : > { %4999 = vmatpush.msra.mxu1 %v4598_v13  ;;  %5022 = vmatpush.msrb.mxu2 %v4646_v21  ;;  %v4628_v6 = vld [vmem:[#allocation19 + $0xb10] sm:$0xff]  ;;  %v4577_v13 = vld [vmem:[#allocation19 + $0x978] sm:$0xff] }
 0x8c7   : > { %4877 = vmatmul.f32.gmra.mxu3 %v7626_v56  ;;  %4900 = vmatmul.f32.gmra.mxu0 %v7628_v27  ;;  %v4625_v21 = vld [vmem:[#allocation19 + $0xaf8] sm:$0xff] }
 0x8c8   : > { %4923 = vmatmul.f32.gmra.mxu1 %v7630_v7  ;;  %4946 = vmatmul.f32.gmra.mxu2 %v7632_v8 }
 0x8c9   : > { %4954 = vmatpush.msrb.mxu3 %v4499_v28  ;;  %4977 = vmatpush.msra.mxu0 %v4547_v24  ;;  %v3922_v42 = vpop.f32.mrf.mxu0  ;;  %v3404_v28 = vperm.slane %v7542_v4, 6  ;;  %v4478_v24 = vld [vmem:[#allocation19 + $0x660] sm:$0xff] }
 0x8ca   : > { %5000 = vmatpush.msra.mxu1 %v4595_v29  ;;  %5023 = vmatpush.msrb.mxu2 %v4643_v40  ;;  %v4526_v29 = vld [vmem:[#allocation19 + $0x7e0] sm:$0xff]  ;;  %v3785_v40 = vadd.f32 %v7574_v50, %v3403_v17  ;;  %v3923_v47 = vadd.f32 %v3922_v42, %v3405_v26  ;;  %v4619_v50 = vld [vmem:[#allocation19 + $0xac8] sm:$0xff]  ;;  %v3719_v42 = vadd.f32 %v7603_v22, %v3402_v38 }
 0x8cb   : > { %4955 = vmatpush.msrb.mxu3 %v4496_v9  ;;  %4978 = vmatpush.msra.mxu0 %v4544_v48  ;;  %v4574_v9 = vld [vmem:[#allocation19 + $0x960] sm:$0xff] }
 0x8cc   : > { %5001 = vmatpush.msra.mxu1 %v4592_v31  ;;  %5024 = vmatpush.msrb.mxu2 %v4640_v49  ;;  %v4622_v48 = vld [vmem:[#allocation19 + $0xae0] sm:$0xff]  ;;  %v4475_v31 = vld [vmem:[#allocation19 + $0x648] sm:$0xff] }
 0x8cd   : > { %4956 = vmatpush.msrb.mxu3 %v4493_v62  ;;  %4979 = vmatpush.msra.mxu0 %v4541_v35  ;;  %v4523_v49 = vld [vmem:[#allocation19 + $0x7c8] sm:$0xff]  ;;  %v3739_v62 = vadd.f32 %v7553_v0, %v3716_v46  ;;  %v3808_v35 = vadd.f32 %v7624_v45, %v3785_v40  ;;  %v4568_v0 = vld [vmem:[#allocation19 + $0x930] sm:$0xff]  ;;  %v4466_v46 = vld [vmem:[#allocation19 + $0x600] sm:$0xff] }
 0x8ce   : > { %5002 = vmatpush.msra.mxu1 %v4589_v12  ;;  %5025 = vmatpush.msrb.mxu2 %v4637_v43  ;;  %v3899_v12 = vpop.f32.mrf.mxu3  ;;  %v4571_v43 = vld [vmem:[#allocation19 + $0x948] sm:$0xff] }
 0x8cf   : > { %4957 = vmatpush.msrb.mxu3 %v4490_v44  ;;  %4980 = vmatpush.msra.mxu0 %v4538_v36  ;;  %v3854_v44 = vadd.f32 %v7634_v37, %v3404_v28  ;;  %v3945_v36 = vpop.f32.mrf.mxu1  ;;  %v3831_v37 = vadd.f32 %v7618_v55, %v3808_v35  ;;  %v3788_v55 = vadd.f32 %v7612_v52, %v3403_v17  ;;  %v4703_v52 = vld [vmem:[#allocation19 + $0xd68] sm:$0xff]  ;;  %v4748_v35 = vld [vmem:[#allocation19 + $0xed0] sm:$0xff] }
 0x8d0   : > { %5003 = vmatpush.msra.mxu1 %v4586_v25  ;;  %5026 = vmatpush.msrb.mxu2 %v4634_v51  ;;  %v3968_v25 = vpop.f32.mrf.mxu2  ;;  %v4472_v51 = vld [vmem:[#allocation19 + $0x630] sm:$0xff]  ;;  %v4751_v17 = vld [vmem:[#allocation19 + $0xee8] sm:$0xff] }
 0x8d1   : > { %4958 = vmatpush.msrb.mxu3 %v4487_v60  ;;  %4981 = vmatpush.msra.mxu0 %v4535_v54  ;;  %v4520_v60 = vld [vmem:[#allocation19 + $0x7b0] sm:$0xff]  ;;  %v3877_v45 = vadd.f32 %v7636_v5, %v3854_v44  ;;  %v3925_v5 = vpop.f32.mrf.mxu0  ;;  %v7678_v22 = vmax.f32 %v3831_v37, 0.0  ;;  %v3811_v40 = vadd.f32 %v7645_v11, %v3788_v55  ;;  %v4745_v44 = vld [vmem:[#allocation19 + $0xeb8] sm:$0xff]  ;;  %v4790_v37 = vld [vmem:[#allocation19 + $0x1020] sm:$0xff] }
 0x8d2   : > { %5004 = vmatpush.msra.mxu1 %v4583_v63  ;;  %5027 = vmatpush.msrb.mxu2 %v4631_v53  ;;  %v4616_v54 = vld [vmem:[#allocation19 + $0xab0] sm:$0xff]  ;;  %v3946_v63 = vadd.f32 %v3945_v36, %v3923_v47  ;;  %v4469_v53 = vld [vmem:[#allocation19 + $0x618] sm:$0xff]  ;;  %v3926_v38 = vadd.f32 %v3925_v5, %v3405_v26  ;;  %v3857_v47 = vadd.f32 %v7647_v58, %v3404_v28  ;;  %v4847_v26 = vld [vmem:[#allocation19 + $0x11e8] sm:$0xff] }
 0x8d3   : > { %4959 = vmatpush.msrb.mxu3 %v4484_v15  ;;  %4982 = vmatpush.msra.mxu0 %v4532_v19  ;;  %v4517_v15 = vld [vmem:[#allocation19 + $0x798] sm:$0xff]  ;;  %v3762_v19 = vadd.f32 %v7572_v30, %v3739_v62  ;;  %v4562_v30 = vld [vmem:[#allocation19 + $0x900] sm:$0xff]  ;;  %v4700_v62 = vld [vmem:[#allocation19 + $0xd50] sm:$0xff] }
 0x8d4   : > { %5005 = vmatpush.msra.mxu1 %v4580_v2  ;;  %5028 = vmatpush.msrb.mxu2 %v4628_v6  ;;  %v4565_v2 = vld [vmem:[#allocation19 + $0x918] sm:$0xff]  ;;  %v4796_v58 = vld [vmem:[#allocation19 + $0x1050] sm:$0xff] }
 0x8d5   : > { %4960 = vmatpush.msrb.mxu3 %v4481_v18  ;;  %4983 = vmatpush.msra.mxu0 %v4529_v14  ;;  %v4613_v6 = vld [vmem:[#allocation19 + $0xa98] sm:$0xff]  ;;  %v3900_v18 = vadd.f32 %v3899_v12, %v3877_v45  ;;  %v3969_v14 = vadd.f32 %v3968_v25, %v3946_v63  ;;  %v3880_v12 = vadd.f32 %v7649_v59, %v3857_v47  ;;  %v4844_v28 = vld [vmem:[#allocation19 + $0x11d0] sm:$0xff]  ;;  %v4694_v59 = vld [vmem:[#allocation19 + $0xd20] sm:$0xff] }
 0x8d6   : > { %5006 = vmatpush.msra.mxu1 %v4577_v13  ;;  %5029 = vmatpush.msrb.mxu2 %v4625_v21  ;;  %v4514_v13 = vld [vmem:[#allocation19 + $0x780] sm:$0xff]  ;;  %v4685_v5 = vld [vmem:[#allocation19 + $0xcd8] sm:$0xff]  ;;  %v4679_v47 = vld [vmem:[#allocation19 + $0xca8] sm:$0xff] }
 0x8d7   : > { %4961 = vmatpush.msrb.mxu3 %v4478_v24  ;;  %4984 = vmatpush.msra.mxu0 %v4526_v29  ;;  %v4610_v21 = vld [vmem:[#allocation19 + $0xa80] sm:$0xff]  ;;  %v7676_v24 = vmax.f32 %v3762_v19, 0.0  ;;  %v3742_v29 = vadd.f32 %v7582_v3, %v3719_v42  ;;  %v4799_v3 = vld [vmem:[#allocation19 + $0x1068] sm:$0xff]  ;;  %v3948_v11 = vpop.f32.mrf.mxu1  ;;  %v4736_v42 = vld [vmem:[#allocation19 + $0xe70] sm:$0xff] }
 0x8d8   : > { %5007 = vmatpush.msra.mxu1 %v4574_v9  ;;  %5030 = vmatpush.msrb.mxu2 %v4622_v48  ;;  %v7684_v9 = vmax.f32 %v3900_v18, 0.0  ;;  %v7686_v48 = vmax.f32 %v3969_v14, 0.0  ;;  %v3949_v4 = vadd.f32 %v3948_v11, %v3926_v38  ;;  %v4739_v19 = vld [vmem:[#allocation19 + $0xe88] sm:$0xff]  ;;  %v4682_v38 = vld [vmem:[#allocation19 + $0xcc0] sm:$0xff] }
 0x8d9   : > { %4962 = vmatpush.msrb.mxu3 %v4475_v31  ;;  %4985 = vmatpush.msra.mxu0 %v4523_v49  ;;  %v3902_v31 = vpop.f32.mrf.mxu3  ;;  %v3971_v49 = vpop.f32.mrf.mxu2  ;;  %v3765_v36 = vadd.f32 %v7610_v1, %v3742_v29  ;;  %v4787_v18 = vld [vmem:[#allocation19 + $0x1008] sm:$0xff]  ;;  %v4730_v29 = vld [vmem:[#allocation19 + $0xe40] sm:$0xff] }
 0x8da   : > { %5008 = vmatpush.msra.mxu1 %v4571_v43  ;;  %5031 = vmatpush.msrb.mxu2 %v4619_v50  ;;  %v3834_v43 = vadd.f32 %v7642_v61, %v3811_v40  ;;  %v4697_v50 = vld [vmem:[#allocation19 + $0xd38] sm:$0xff]  ;;  %v3903_v25 = vadd.f32 %v3902_v31, %v3880_v12  ;;  %v4835_v14 = vld [vmem:[#allocation19 + $0x1188] sm:$0xff]  ;;  %v4014_v55 = vpop.f32.mrf.mxu0 }
 0x8db   : > { %4963 = vmatpush.msrb.mxu3 %v4472_v51  ;;  %4986 = vmatpush.msra.mxu0 %v4520_v60  ;;  %v3972_v51 = vadd.f32 %v3971_v49, %v3949_v4  ;;  %v4793_v60 = vld [vmem:[#allocation19 + $0x1038] sm:$0xff]  ;;  %v7698_v45 = vmax.f32 %v3765_v36, 0.0  ;;  %v4727_v31 = vld [vmem:[#allocation19 + $0xe28] sm:$0xff]  ;;  %v4676_v49 = vld [vmem:[#allocation19 + $0xc90] sm:$0xff] }
 0x8dc   : > { %5009 = vmatpush.msra.mxu1 %v4568_v0  ;;  %5032 = vmatpush.msrb.mxu2 %v4616_v54  ;;  %v4841_v0 = vld [vmem:[#allocation19 + $0x11b8] sm:$0xff]  ;;  %v4742_v54 = vld [vmem:[#allocation19 + $0xea0] sm:$0xff]  ;;  %v7700_v61 = vmax.f32 %v3834_v43, 0.0  ;;  %v7702_v1 = vmax.f32 %v3903_v25, 0.0  ;;  %v4823_v12 = vld [vmem:[#allocation19 + $0x1128] sm:$0xff] }
 0x8dd   : > { %4964 = vmatpush.msrb.mxu3 %v4469_v53  ;;  %4987 = vmatpush.msra.mxu0 %v4517_v15  ;;  %v7704_v63 = vmax.f32 %v3972_v51, 0.0  ;;  %v4691_v15 = vld [vmem:[#allocation19 + $0xd08] sm:$0xff]  ;;  %v4781_v40 = vld [vmem:[#allocation19 + $0xfd8] sm:$0xff]  ;;  %v4772_v43 = vld [vmem:[#allocation19 + $0xf90] sm:$0xff] }
 0x8de   : > { %5010 = vmatpush.msra.mxu1 %v4565_v2  ;;  %5033 = vmatpush.msrb.mxu2 %v4613_v6  ;;  %v4838_v2 = vld [vmem:[#allocation19 + $0x11a0] sm:$0xff]  ;;  %v4688_v6 = vld [vmem:[#allocation19 + $0xcf0] sm:$0xff]  ;;  %v4769_v51 = vld [vmem:[#allocation19 + $0xf78] sm:$0xff] }
 0x8df   : > { %4965 = vmatpush.msrb.mxu3 %v4466_v46  ;;  %4988 = vmatpush.msra.mxu0 %v4514_v13  ;;  %v4733_v46 = vld [vmem:[#allocation19 + $0xe58] sm:$0xff]  ;;  %v4718_v36 = vld [vmem:[#allocation19 + $0xde0] sm:$0xff] }
 0x8e0   : > { %5011 = vmatpush.msra.mxu1 %v4562_v30  ;;  %5034 = vmatpush.msrb.mxu2 %v4610_v21  ;;  %v7710_v13 = vld [vmem:[#allocation17 + $0x8] sm:$0xf]  ;;  %v4784_v30 = vld [vmem:[#allocation19 + $0xff0] sm:$0xff] }
 0x8e1   : > { %4966 = vmatmul.f32.vlgmr.msrb.gmra.mxu3 %v7676_v24  ;;  %4989 = vmatmul.f32.vlgmr.msra.gmra.mxu0 %v7678_v22  ;;  %v3991_v53 = vpop.f32.mrf.mxu3  ;;  %v4832_v21 = vld [vmem:[#allocation19 + $0x1170] sm:$0xff]  ;;  %v3407_v25 = vperm.slane %v7710_v13, 1 }
 0x8e2   : > { %5012 = vmatmul.f32.vlgmr.msra.gmra.mxu1 %v7684_v9  ;;  %5035 = vmatmul.f32.vlgmr.msrb.gmra.mxu2 %v7686_v48 }
 0x8e3   : > { %5042 = vmatpush.msra.mxu3 %v4703_v52  ;;  %5065 = vmatpush.msrb.mxu0 %v4751_v17  ;;  %v4829_v52 = vld [vmem:[#allocation19 + $0x1158] sm:$0xff]  ;;  %v3406_v17 = vperm.slane %v7710_v13, 0 }
 0x8e4   : > { %5088 = vmatpush.msrb.mxu1 %v4799_v3  ;;  %5111 = vmatpush.msra.mxu2 %v4847_v26  ;;  %v4778_v3 = vld [vmem:[#allocation19 + $0xfc0] sm:$0xff] }
 0x8e5   : > { %5043 = vmatpush.msra.mxu3 %v4700_v62  ;;  %5066 = vmatpush.msrb.mxu0 %v4748_v35  ;;  %v4826_v26 = vld [vmem:[#allocation19 + $0x1140] sm:$0xff]  ;;  %v4724_v62 = vld [vmem:[#allocation19 + $0xe10] sm:$0xff]  ;;  %v4775_v35 = vld [vmem:[#allocation19 + $0xfa8] sm:$0xff]  ;;  %v3992_v4 = vadd.f32 %v3991_v53, %v3406_v17 }
 0x8e6   : > { %5089 = vmatpush.msrb.mxu1 %v4796_v58  ;;  %5112 = vmatpush.msra.mxu2 %v4844_v28  ;;  %v4673_v58 = vld [vmem:[#allocation19 + $0xc78] sm:$0xff]  ;;  %v4667_v53 = vld [vmem:[#allocation19 + $0xc48] sm:$0xff] }
 0x8e7   : > { %5044 = vmatpush.msra.mxu3 %v4697_v50  ;;  %5067 = vmatpush.msrb.mxu0 %v4745_v44  ;;  %v4721_v28 = vld [vmem:[#allocation19 + $0xdf8] sm:$0xff]  ;;  %v4820_v50 = vld [vmem:[#allocation19 + $0x1110] sm:$0xff]  ;;  %v4670_v44 = vld [vmem:[#allocation19 + $0xc60] sm:$0xff] }
 0x8e8   : > { %5090 = vmatpush.msrb.mxu1 %v4793_v60  ;;  %5113 = vmatpush.msra.mxu2 %v4841_v0  ;;  %v4817_v60 = vld [vmem:[#allocation19 + $0x10f8] sm:$0xff]  ;;  %v4015_v0 = vadd.f32 %v4014_v55, %v3992_v4 }
 0x8e9   : > { %5045 = vmatpush.msra.mxu3 %v4694_v59  ;;  %5068 = vmatpush.msrb.mxu0 %v4742_v54  ;;  %v3994_v11 = vpop.f32.mrf.mxu3  ;;  %v4060_v59 = vpop.f32.mrf.mxu2  ;;  %v4661_v55 = vld [vmem:[#allocation19 + $0xc18] sm:$0xff] }
 0x8ea   : > { %4969 = vmatmul.f32.gmra.mxu3 %v7698_v45  ;;  %4992 = vmatmul.f32.gmra.mxu0 %v7700_v61  ;;  %v4017_v54 = vpop.f32.mrf.mxu0  ;;  %v4805_v4 = vld [vmem:[#allocation19 + $0x1098] sm:$0xff] }
 0x8eb   : > { %5015 = vmatmul.f32.gmra.mxu1 %v7702_v1  ;;  %5038 = vmatmul.f32.gmra.mxu2 %v7704_v63 }
 0x8ec   : > { %5046 = vmatpush.msra.mxu3 %v4691_v15  ;;  %5069 = vmatpush.msrb.mxu0 %v4739_v19  ;;  %v4715_v15 = vld [vmem:[#allocation19 + $0xdc8] sm:$0xff]  ;;  %v4037_v19 = vpop.f32.mrf.mxu1 }
 0x8ed   : > { %5091 = vmatpush.msrb.mxu1 %v4790_v37  ;;  %5114 = vmatpush.msra.mxu2 %v4838_v2  ;;  %v4766_v37 = vld [vmem:[#allocation19 + $0xf60] sm:$0xff] }
 0x8ee   : > { %5047 = vmatpush.msra.mxu3 %v4688_v6  ;;  %5070 = vmatpush.msrb.mxu0 %v4736_v42  ;;  %v4814_v2 = vld [vmem:[#allocation19 + $0x10e0] sm:$0xff]  ;;  %v4664_v6 = vld [vmem:[#allocation19 + $0xc30] sm:$0xff] }
 0x8ef   : > { %5092 = vmatpush.msrb.mxu1 %v4787_v18  ;;  %5115 = vmatpush.msra.mxu2 %v4835_v14  ;;  %v4712_v42 = vld [vmem:[#allocation19 + $0xdb0] sm:$0xff]  ;;  %v4061_v14 = vadd.f32 %v4060_v59, %v3407_v25 }
 0x8f0   : > { %5048 = vmatpush.msra.mxu3 %v4685_v5  ;;  %5071 = vmatpush.msrb.mxu0 %v4733_v46  ;;  %v4763_v5 = vld [vmem:[#allocation19 + $0xf48] sm:$0xff] }
 0x8f1   : > { %5093 = vmatpush.msrb.mxu1 %v4784_v30  ;;  %5116 = vmatpush.msra.mxu2 %v4832_v21  ;;  %v4811_v46 = vld [vmem:[#allocation19 + $0x10c8] sm:$0xff]  ;;  %v4038_v30 = vadd.f32 %v4037_v19, %v4015_v0  ;;  %v3995_v21 = vadd.f32 %v3994_v11, %v3406_v17  ;;  %v4320_v17 = vld [vmem:[#allocation19 + $0x170] sm:$0xff] }
 0x8f2   : > { %5049 = vmatpush.msra.mxu3 %v4682_v38  ;;  %5072 = vmatpush.msrb.mxu0 %v4730_v29  ;;  %v4709_v38 = vld [vmem:[#allocation19 + $0xd98] sm:$0xff]  ;;  %v4106_v11 = vpop.f32.mrf.mxu0  ;;  %v4416_v0 = vld [vmem:[#allocation19 + $0x470] sm:$0xff] }
 0x8f3   : > { %5094 = vmatpush.msrb.mxu1 %v4781_v40  ;;  %5117 = vmatpush.msra.mxu2 %v4829_v52  ;;  %v4760_v40 = vld [vmem:[#allocation19 + $0xf30] sm:$0xff] }
 0x8f4   : > { %5050 = vmatpush.msra.mxu3 %v4679_v47  ;;  %5073 = vmatpush.msrb.mxu0 %v4727_v31  ;;  %v4808_v52 = vld [vmem:[#allocation19 + $0x10b0] sm:$0xff]  ;;  %v4658_v47 = vld [vmem:[#allocation19 + $0xc00] sm:$0xff] }
 0x8f5   : > { %5095 = vmatpush.msrb.mxu1 %v4778_v3  ;;  %5118 = vmatpush.msra.mxu2 %v4826_v26  ;;  %v4706_v31 = vld [vmem:[#allocation19 + $0xd80] sm:$0xff]  ;;  %v4368_v3 = vld [vmem:[#allocation19 + $0x2f0] sm:$0xff]  ;;  %v7716_v26 = vmax.f32 %v4038_v30, 0.0  ;;  %v4305_v30 = vld [vmem:[#allocation19 + $0xf8] sm:$0xff] }
 0x8f6   : > { %5051 = vmatpush.msra.mxu3 %v4676_v49  ;;  %5074 = vmatpush.msrb.mxu0 %v4724_v62  ;;  %v4018_v49 = vadd.f32 %v4017_v54, %v3995_v21  ;;  %v4757_v62 = vld [vmem:[#allocation19 + $0xf18] sm:$0xff]  ;;  %v4464_v19 = vld [vmem:[#allocation19 + $0x5f0] sm:$0xff]  ;;  %v4410_v21 = vld [vmem:[#allocation19 + $0x440] sm:$0xff] }
 0x8f7   : > { %5096 = vmatpush.msrb.mxu1 %v4775_v35  ;;  %5119 = vmatpush.msra.mxu2 %v4823_v12  ;;  %v4365_v35 = vld [vmem:[#allocation19 + $0x2d8] sm:$0xff] }
 0x8f8   : > { %5052 = vmatpush.msra.mxu3 %v4673_v58  ;;  %5075 = vmatpush.msrb.mxu0 %v4721_v28  ;;  %v4083_v18 = vpop.f32.mrf.mxu3  ;;  %v4063_v58 = vpop.f32.mrf.mxu2  ;;  %v4317_v28 = vld [vmem:[#allocation19 + $0x158] sm:$0xff] }
 0x8f9   : > { %5097 = vmatpush.msrb.mxu1 %v4772_v43  ;;  %5120 = vmatpush.msra.mxu2 %v4820_v50  ;;  %v4084_v29 = vadd.f32 %v4083_v18, %v4061_v14  ;;  %v4754_v43 = vld [vmem:[#allocation19 + $0xf00] sm:$0xff]  ;;  %v4040_v50 = vpop.f32.mrf.mxu1  ;;  %v4064_v54 = vadd.f32 %v4063_v58, %v3407_v25  ;;  %v4308_v18 = vld [vmem:[#allocation19 + $0x110] sm:$0xff]  ;;  %v4413_v14 = vld [vmem:[#allocation19 + $0x458] sm:$0xff] }
 0x8fa   : > { %5053 = vmatpush.msra.mxu3 %v4670_v44  ;;  %5076 = vmatpush.msrb.mxu0 %v4718_v36  ;;  %v4362_v44 = vld [vmem:[#allocation19 + $0x2c0] sm:$0xff]  ;;  %v4353_v25 = vld [vmem:[#allocation19 + $0x278] sm:$0xff] }
 0x8fb   : > { %5098 = vmatpush.msrb.mxu1 %v4769_v51  ;;  %5121 = vmatpush.msra.mxu2 %v4817_v60  ;;  %v4107_v12 = vadd.f32 %v4106_v11, %v4084_v29  ;;  %v4802_v36 = vld [vmem:[#allocation19 + $0x1080] sm:$0xff]  ;;  %v4041_v60 = vadd.f32 %v4040_v50, %v4018_v49  ;;  %v4404_v49 = vld [vmem:[#allocation19 + $0x410] sm:$0xff]  ;;  %v4341_v58 = vld [vmem:[#allocation19 + $0x218] sm:$0xff] }
 0x8fc   : > { %5054 = vmatpush.msra.mxu3 %v4667_v53  ;;  %5077 = vmatpush.msrb.mxu0 %v4715_v15  ;;  %v4314_v51 = vld [vmem:[#allocation19 + $0x140] sm:$0xff]  ;;  %v4359_v53 = vld [vmem:[#allocation19 + $0x2a8] sm:$0xff]  ;;  %v4449_v50 = vld [vmem:[#allocation19 + $0x578] sm:$0xff] }
 0x8fd   : > { %5099 = vmatpush.msrb.mxu1 %v4766_v37  ;;  %5122 = vmatpush.msra.mxu2 %v4814_v2  ;;  %v7721_v15 = vmax.f32 %v4107_v12, 0.0  ;;  %v4311_v37 = vld [vmem:[#allocation19 + $0x128] sm:$0xff]  ;;  %v4356_v2 = vld [vmem:[#allocation19 + $0x290] sm:$0xff]  ;;  %v4458_v29 = vld [vmem:[#allocation19 + $0x5c0] sm:$0xff] }
 0x8fe   : > { %5055 = vmatpush.msra.mxu3 %v4664_v6  ;;  %5078 = vmatpush.msrb.mxu0 %v4712_v42  ;;  %v7723_v42 = vmax.f32 %v4041_v60, 0.0  ;;  %v4446_v60 = vld [vmem:[#allocation19 + $0x560] sm:$0xff] }
 0x8ff   : > { %5100 = vmatpush.msrb.mxu1 %v4763_v5  ;;  %5123 = vmatpush.msra.mxu2 %v4811_v46  ;;  %v4461_v5 = vld [vmem:[#allocation19 + $0x5d8] sm:$0xff]  ;;  %v4109_v46 = vpop.f32.mrf.mxu0 }
 0x900   : > { %5056 = vmatpush.msra.mxu3 %v4661_v55  ;;  %5079 = vmatpush.msrb.mxu0 %v4709_v38  ;;  %v4350_v55 = vld [vmem:[#allocation19 + $0x260] sm:$0xff]  ;;  %v7731_v12 = vpop.f32.mrf.mxu2 }
 0x901   : > { %5101 = vmatpush.msrb.mxu1 %v4760_v40  ;;  %5124 = vmatpush.msra.mxu2 %v4808_v52  ;;  %v4302_v40 = vld [vmem:[#allocation19 + $0xe0] sm:$0xff]  ;;  %v4407_v52 = vld [vmem:[#allocation19 + $0x428] sm:$0xff] }
 0x902   : > { %5057 = vmatpush.msra.mxu3 %v4658_v47  ;;  %5080 = vmatpush.msrb.mxu0 %v4706_v31  ;;  %v4086_v59 = vpop.f32.mrf.mxu3  ;;  %v4347_v47 = vld [vmem:[#allocation19 + $0x248] sm:$0xff] }
 0x903   : > { %5058 = vmatmul.f32.vlgmr.msra.gmra.mxu3 %v7716_v26  ;;  %5102 = vmatpush.msrb.mxu1 %v4757_v62  ;;  %v4087_v6 = vadd.f32 %v4086_v59, %v4064_v54  ;;  %v4455_v31 = vld [vmem:[#allocation19 + $0x5a8] sm:$0xff]  ;;  %v4344_v62 = vld [vmem:[#allocation19 + $0x230] sm:$0xff] }
 0x904   : > { %5157 = vmatpush.msra.mxu0 %v4368_v3  ;;  %5134 = vmatpush.msrb.mxu3 %v4320_v17  ;;  %v4299_v3 = vld [vmem:[#allocation19 + $0xc8] sm:$0xff]  ;;  %v7727_v17 = vpop.f32.mrf.mxu1 }
 0x905   : > { %5125 = vmatpush.msra.mxu2 %v4805_v4  ;;  %5103 = vmatpush.msrb.mxu1 %v4754_v43  ;;  %v4110_v38 = vadd.f32 %v4109_v46, %v4087_v6  ;;  %v4296_v4 = vld [vmem:[#allocation19 + $0xb0] sm:$0xff]  ;;  %v4293_v43 = vld [vmem:[#allocation19 + $0x98] sm:$0xff]  ;;  %v4395_v59 = vld [vmem:[#allocation19 + $0x3c8] sm:$0xff] }
 0x906   : > { %5158 = vmatpush.msra.mxu0 %v4365_v35  ;;  %5135 = vmatpush.msrb.mxu3 %v4317_v28  ;;  %v4452_v35 = vld [vmem:[#allocation19 + $0x590] sm:$0xff]  ;;  %v4401_v28 = vld [vmem:[#allocation19 + $0x3f8] sm:$0xff]  ;;  %v4287_v54 = vld [vmem:[#allocation19 + $0x68] sm:$0xff] }
 0x907   : > { %5126 = vmatpush.msra.mxu2 %v4802_v36  ;;  %5180 = vmatpush.msra.mxu1 %v4416_v0  ;;  %v7729_v11 = vmax.f32 %v4110_v38, 0.0  ;;  %v4398_v36 = vld [vmem:[#allocation19 + $0x3e0] sm:$0xff]  ;;  %v4335_v0 = vld [vmem:[#allocation19 + $0x1e8] sm:$0xff]  ;;  %v4440_v6 = vld [vmem:[#allocation19 + $0x530] sm:$0xff] }
 0x908   : > { %5159 = vmatpush.msra.mxu0 %v4362_v44  ;;  %5136 = vmatpush.msrb.mxu3 %v4314_v51  ;;  %v4338_v44 = vld [vmem:[#allocation19 + $0x200] sm:$0xff]  ;;  %v4281_v46 = vld [vmem:[#allocation19 + $0x38] sm:$0xff] }
 0x909   : > { %5203 = vmatpush.msrb.mxu2 %v4464_v19  ;;  %5081 = vmatmul.f32.vlgmr.msrb.gmra.mxu0 %v7721_v15  ;;  %v4290_v51 = vld [vmem:[#allocation19 + $0x80] sm:$0xff]  ;;  %v4332_v19 = vld [vmem:[#allocation19 + $0x1d0] sm:$0xff] }
 0x90a   : > { %5160 = vmatpush.msra.mxu0 %v4359_v53  ;;  %5137 = vmatpush.msrb.mxu3 %v4311_v37  ;;  %v4443_v53 = vld [vmem:[#allocation19 + $0x548] sm:$0xff]  ;;  %v4392_v37 = vld [vmem:[#allocation19 + $0x3b0] sm:$0xff]  ;;  %v4278_v38 = vld [vmem:[#allocation19 + $0x20] sm:$0xff] }
 0x90b   : > { %5061 = vmatmul.f32.gmra.mxu3 %v7723_v42  ;;  %5181 = vmatpush.msra.mxu1 %v4413_v14  ;;  %v4329_v14 = vld [vmem:[#allocation19 + $0x1b8] sm:$0xff] }
 0x90c   : > { %5161 = vmatpush.msra.mxu0 %v4356_v2  ;;  %5138 = vmatpush.msrb.mxu3 %v4308_v18  ;;  %v4284_v2 = vld [vmem:[#allocation19 + $0x50] sm:$0xff]  ;;  %v7734_v18 = vpop.f32.mrf.mxu1 }
 0x90d   : > { %5204 = vmatpush.msrb.mxu2 %v4461_v5  ;;  %5182 = vmatpush.msra.mxu1 %v4410_v21  ;;  %v7736_v5 = vpop.f32.mrf.mxu2  ;;  %v4326_v21 = vld [vmem:[#allocation19 + $0x1a0] sm:$0xff] }
 0x90e   : > { %5162 = vmatpush.msra.mxu0 %v4353_v25  ;;  %5139 = vmatpush.msrb.mxu3 %v4305_v30  ;;  %v4389_v25 = vld [vmem:[#allocation19 + $0x398] sm:$0xff] }
 0x90f   : > { %5205 = vmatpush.msrb.mxu2 %v4458_v29  ;;  %5183 = vmatpush.msra.mxu1 %v4407_v52  ;;  %v4437_v30 = vld [vmem:[#allocation19 + $0x518] sm:$0xff]  ;;  %v3409_v29 = vperm.slane %v7710_v13, 3  ;;  %v4434_v52 = vld [vmem:[#allocation19 + $0x500] sm:$0xff] }
 0x910   : > { %5163 = vmatpush.msra.mxu0 %v4350_v55  ;;  %5140 = vmatpush.msrb.mxu3 %v4302_v40  ;;  %v4386_v55 = vld [vmem:[#allocation19 + $0x380] sm:$0xff] }
 0x911   : > { %5206 = vmatpush.msrb.mxu2 %v4455_v31  ;;  %5184 = vmatpush.msra.mxu1 %v4404_v49  ;;  %v4383_v31 = vld [vmem:[#allocation19 + $0x368] sm:$0xff] }
 0x912   : > { %5164 = vmatpush.msra.mxu0 %v4347_v47  ;;  %5141 = vmatpush.msrb.mxu3 %v4299_v3  ;;  %v4323_v47 = vld [vmem:[#allocation19 + $0x188] sm:$0xff]  ;;  %v3408_v3 = vperm.slane %v7710_v13, 2  ;;  %v4509_v13 = vld [vmem:[#allocation19 + $0x758] sm:$0xff] }
 0x913   : > { %5207 = vmatpush.msrb.mxu2 %v4452_v35  ;;  %5084 = vmatmul.f32.gmra.mxu0 %v7729_v11  ;;  %v4275_v49 = vld [vmem:[#allocation19 + $0x8] sm:$0xff]  ;;  %v4512_v35 = vld [vmem:[#allocation19 + $0x770] sm:$0xff] }
 0x914   : > { %5165 = vmatpush.msra.mxu0 %v4344_v62  ;;  %5142 = vmatpush.msrb.mxu3 %v4296_v4  ;;  %v4560_v62 = vld [vmem:[#allocation19 + $0x8f0] sm:$0xff] }
 0x915   : > { %5185 = vmatpush.msra.mxu1 %v4401_v28  ;;  %5208 = vmatpush.msrb.mxu2 %v4449_v50  ;;  %v4380_v50 = vld [vmem:[#allocation19 + $0x350] sm:$0xff] }
 0x916   : > { %5166 = vmatpush.msra.mxu0 %v4341_v58  ;;  %5143 = vmatpush.msrb.mxu3 %v4293_v43  ;;  %v4198_v40 = vpop.f32.mrf.mxu0  ;;  %v4431_v58 = vld [vmem:[#allocation19 + $0x4e8] sm:$0xff]  ;;  %v4557_v43 = vld [vmem:[#allocation19 + $0x8d8] sm:$0xff] }
 0x917   : > { %5186 = vmatpush.msra.mxu1 %v4398_v36  ;;  %5209 = vmatpush.msrb.mxu2 %v4446_v60  ;;  %v4199_v4 = vadd.f32 %v4198_v40, %v3409_v29  ;;  %v4221_v28 = vpop.f32.mrf.mxu1  ;;  %v4428_v36 = vld [vmem:[#allocation19 + $0x4d0] sm:$0xff]  ;;  %v4371_v40 = vld [vmem:[#allocation19 + $0x308] sm:$0xff] }
 0x918   : > { %5167 = vmatpush.msra.mxu0 %v4338_v44  ;;  %5144 = vmatpush.msrb.mxu3 %v4290_v51  ;;  %v4130_v44 = vadd.f32 %v7727_v17, %v3408_v3  ;;  %v4551_v17 = vld [vmem:[#allocation19 + $0x8a8] sm:$0xff] }
 0x919   : > { %5187 = vmatpush.msra.mxu1 %v4395_v59  ;;  %5210 = vmatpush.msrb.mxu2 %v4443_v53  ;;  %v4377_v59 = vld [vmem:[#allocation19 + $0x338] sm:$0xff]  ;;  %v4222_v53 = vadd.f32 %v4221_v28, %v4199_v4  ;;  %v4494_v4 = vld [vmem:[#allocation19 + $0x6e0] sm:$0xff] }
 0x91a   : > { %5168 = vmatpush.msra.mxu0 %v4335_v0  ;;  %5145 = vmatpush.msrb.mxu3 %v4287_v54  ;;  %v4554_v0 = vld [vmem:[#allocation19 + $0x8c0] sm:$0xff]  ;;  %v4153_v54 = vadd.f32 %v7731_v12, %v4130_v44  ;;  %v4500_v12 = vld [vmem:[#allocation19 + $0x710] sm:$0xff] }
 0x91b   : > { %5188 = vmatpush.msra.mxu1 %v4392_v37  ;;  %5211 = vmatpush.msrb.mxu2 %v4440_v6  ;;  %v4425_v37 = vld [vmem:[#allocation19 + $0x4b8] sm:$0xff]  ;;  %v4503_v6 = vld [vmem:[#allocation19 + $0x728] sm:$0xff]  ;;  %v4608_v44 = vld [vmem:[#allocation19 + $0xa70] sm:$0xff] }
 0x91c   : > { %5169 = vmatpush.msra.mxu0 %v4332_v19  ;;  %5146 = vmatpush.msrb.mxu3 %v4284_v2  ;;  %v4175_v51 = vpop.f32.mrf.mxu3  ;;  %v4506_v19 = vld [vmem:[#allocation19 + $0x740] sm:$0xff] }
 0x91d   : > { %5189 = vmatpush.msra.mxu1 %v4389_v25  ;;  %5212 = vmatpush.msrb.mxu2 %v4437_v30  ;;  %v4244_v60 = vpop.f32.mrf.mxu2  ;;  %v4374_v2 = vld [vmem:[#allocation19 + $0x320] sm:$0xff]  ;;  %v4548_v30 = vld [vmem:[#allocation19 + $0x890] sm:$0xff] }
 0x91e   : > { %5170 = vmatpush.msra.mxu0 %v4329_v14  ;;  %5147 = vmatpush.msrb.mxu3 %v4281_v46  ;;  %v4176_v14 = vadd.f32 %v4175_v51, %v4153_v54  ;;  %v4245_v25 = vadd.f32 %v4244_v60, %v4222_v53  ;;  %v4653_v51 = vld [vmem:[#allocation19 + $0xbd8] sm:$0xff]  ;;  %v4602_v54 = vld [vmem:[#allocation19 + $0xa40] sm:$0xff] }
 0x91f   : > { %5190 = vmatpush.msra.mxu1 %v4386_v55  ;;  %5213 = vmatpush.msrb.mxu2 %v4434_v52  ;;  %v4650_v53 = vld [vmem:[#allocation19 + $0xbc0] sm:$0xff] }
 0x920   : > { %5171 = vmatpush.msra.mxu0 %v4326_v21  ;;  %5148 = vmatpush.msrb.mxu3 %v4278_v38  ;;  %v4201_v46 = vpop.f32.mrf.mxu0  ;;  %v4422_v21 = vld [vmem:[#allocation19 + $0x4a0] sm:$0xff]  ;;  %v4545_v38 = vld [vmem:[#allocation19 + $0x878] sm:$0xff]  ;;  %v7745_v52 = vmax.f32 %v4176_v14, 0.0  ;;  %v4647_v14 = vld [vmem:[#allocation19 + $0xba8] sm:$0xff] }
 0x921   : > { %5191 = vmatpush.msra.mxu1 %v4383_v31  ;;  %5214 = vmatpush.msrb.mxu2 %v4431_v58  ;;  %v4202_v55 = vadd.f32 %v4201_v46, %v3409_v29  ;;  %v4497_v31 = vld [vmem:[#allocation19 + $0x6f8] sm:$0xff]  ;;  %v4542_v29 = vld [vmem:[#allocation19 + $0x860] sm:$0xff] }
 0x922   : > { %5172 = vmatpush.msra.mxu0 %v4323_v47  ;;  %5149 = vmatpush.msrb.mxu3 %v4275_v49  ;;  %v7747_v47 = vmax.f32 %v4245_v25, 0.0  ;;  %v4419_v49 = vld [vmem:[#allocation19 + $0x488] sm:$0xff]  ;;  %v4482_v25 = vld [vmem:[#allocation19 + $0x680] sm:$0xff] }
 0x923   : > { %5173 = vmatmul.f32.vlgmr.msra.gmra.mxu0 %v7592_v57  ;;  %5150 = vmatmul.f32.vlgmr.msrb.gmra.mxu3 %v7587_v33  ;;  %v4530_v46 = vld [vmem:[#allocation19 + $0x800] sm:$0xff] }
 0x924   : > { %5249 = vmatpush.msrb.mxu0 %v4560_v62  ;;  %5226 = vmatpush.msra.mxu3 %v4512_v35  ;;  %v4133_v62 = vadd.f32 %v7734_v18, %v3408_v3  ;;  %v4224_v35 = vpop.f32.mrf.mxu1  ;;  %v4491_v18 = vld [vmem:[#allocation19 + $0x6c8] sm:$0xff] }
 0x925   : > { %5192 = vmatpush.msra.mxu1 %v4380_v50  ;;  %5215 = vmatpush.msrb.mxu2 %v4428_v36  ;;  %v4225_v50 = vadd.f32 %v4224_v35, %v4202_v55  ;;  %v4539_v3 = vld [vmem:[#allocation19 + $0x848] sm:$0xff]  ;;  %v4605_v36 = vld [vmem:[#allocation19 + $0xa58] sm:$0xff]  ;;  %v4638_v35 = vld [vmem:[#allocation19 + $0xb60] sm:$0xff] }
 0x926   : > { %5250 = vmatpush.msrb.mxu0 %v4557_v43  ;;  %5227 = vmatpush.msra.mxu3 %v4509_v13  ;;  %v4178_v58 = vpop.f32.mrf.mxu3  ;;  %v4156_v43 = vadd.f32 %v7736_v5, %v4133_v62  ;;  %v4656_v13 = vld [vmem:[#allocation19 + $0xbf0] sm:$0xff]  ;;  %v4527_v55 = vld [vmem:[#allocation19 + $0x7e8] sm:$0xff]  ;;  %v4590_v62 = vld [vmem:[#allocation19 + $0x9e0] sm:$0xff] }
 0x927   : > { %5193 = vmatpush.msra.mxu1 %v4377_v59  ;;  %5216 = vmatpush.msrb.mxu2 %v4425_v37  ;;  %v4247_v28 = vpop.f32.mrf.mxu2  ;;  %v4488_v5 = vld [vmem:[#allocation19 + $0x6b0] sm:$0xff]  ;;  %v4533_v37 = vld [vmem:[#allocation19 + $0x818] sm:$0xff] }
 0x928   : > { %5251 = vmatpush.msrb.mxu0 %v4554_v0  ;;  %5228 = vmatpush.msra.mxu3 %v4506_v19  ;;  %v4179_v60 = vadd.f32 %v4178_v58, %v4156_v43  ;;  %v4248_v0 = vadd.f32 %v4247_v28, %v4225_v50  ;;  %v4536_v59 = vld [vmem:[#allocation19 + $0x830] sm:$0xff]  ;;  %v4485_v19 = vld [vmem:[#allocation19 + $0x698] sm:$0xff]  ;;  %v4587_v58 = vld [vmem:[#allocation19 + $0x9c8] sm:$0xff] }
 0x929   : > { %5194 = vmatpush.msra.mxu1 %v4374_v2  ;;  %5217 = vmatpush.msrb.mxu2 %v4422_v21  ;;  %v4479_v21 = vld [vmem:[#allocation19 + $0x668] sm:$0xff]  ;;  %v4470_v43 = vld [vmem:[#allocation19 + $0x620] sm:$0xff] }
 0x92a   : > { %5252 = vmatpush.msrb.mxu0 %v4551_v17  ;;  %5229 = vmatpush.msra.mxu3 %v4503_v6  ;;  %v7754_v17 = vmax.f32 %v4179_v60, 0.0  ;;  %v7756_v2 = vmax.f32 %v4248_v0, 0.0  ;;  %v4599_v6 = vld [vmem:[#allocation19 + $0xa28] sm:$0xff]  ;;  %v4518_v50 = vld [vmem:[#allocation19 + $0x7a0] sm:$0xff]  ;;  %v4704_v60 = vld [vmem:[#allocation19 + $0xd70] sm:$0xff] }
 0x92b   : > { %5176 = vmatmul.f32.gmra.mxu0 %v7628_v27  ;;  %5153 = vmatmul.f32.gmra.mxu3 %v7626_v56  ;;  %v4635_v28 = vld [vmem:[#allocation19 + $0xb48] sm:$0xff]  ;;  %v4752_v0 = vld [vmem:[#allocation19 + $0xef0] sm:$0xff] }
 0x92c   : > { %5253 = vmatpush.msrb.mxu0 %v4548_v30  ;;  %5230 = vmatpush.msra.mxu3 %v4500_v12  ;;  %v4596_v30 = vld [vmem:[#allocation19 + $0xa10] sm:$0xff] }
 0x92d   : > { %5195 = vmatpush.msra.mxu1 %v4371_v40  ;;  %5218 = vmatpush.msrb.mxu2 %v4419_v49  ;;  %v4644_v12 = vld [vmem:[#allocation19 + $0xb90] sm:$0xff]  ;;  %v4641_v40 = vld [vmem:[#allocation19 + $0xb78] sm:$0xff] }
 0x92e   : > { %5254 = vmatpush.msrb.mxu0 %v4545_v38  ;;  %5231 = vmatpush.msra.mxu3 %v4497_v31  ;;  %v4593_v38 = vld [vmem:[#allocation19 + $0x9f8] sm:$0xff]  ;;  %v4476_v31 = vld [vmem:[#allocation19 + $0x650] sm:$0xff] }
 0x92f   : > { %5104 = vmatmul.f32.vlgmr.msrb.gmra.mxu1 %v7745_v52  ;;  %5127 = vmatmul.f32.vlgmr.msra.gmra.mxu2 %v7747_v47  ;;  %v4524_v49 = vld [vmem:[#allocation19 + $0x7d0] sm:$0xff] }
 0x930   : > { %5232 = vmatpush.msra.mxu3 %v4494_v4  ;;  %5255 = vmatpush.msrb.mxu0 %v4542_v29  ;;  %v4473_v4 = vld [vmem:[#allocation19 + $0x638] sm:$0xff] }
 0x931   : > { %5272 = vmatpush.msrb.mxu1 %v4608_v44  ;;  %5295 = vmatpush.msra.mxu2 %v4656_v13  ;;  %v4521_v29 = vld [vmem:[#allocation19 + $0x7b8] sm:$0xff]  ;;  %v4584_v44 = vld [vmem:[#allocation19 + $0x9b0] sm:$0xff] }
 0x932   : > { %5233 = vmatpush.msra.mxu3 %v4491_v18  ;;  %5256 = vmatpush.msrb.mxu0 %v4539_v3  ;;  %v4632_v13 = vld [vmem:[#allocation19 + $0xb30] sm:$0xff]  ;;  %v4467_v18 = vld [vmem:[#allocation19 + $0x608] sm:$0xff] }
 0x933   : > { %5273 = vmatpush.msrb.mxu1 %v4605_v36  ;;  %5296 = vmatpush.msra.mxu2 %v4653_v51  ;;  %v4515_v3 = vld [vmem:[#allocation19 + $0x788] sm:$0xff]  ;;  %v4581_v36 = vld [vmem:[#allocation19 + $0x998] sm:$0xff] }
 0x934   : > { %5234 = vmatpush.msra.mxu3 %v4488_v5  ;;  %5257 = vmatpush.msrb.mxu0 %v4536_v59  ;;  %v4629_v51 = vld [vmem:[#allocation19 + $0xb18] sm:$0xff]  ;;  %v4578_v5 = vld [vmem:[#allocation19 + $0x980] sm:$0xff] }
 0x935   : > { %5274 = vmatpush.msrb.mxu1 %v4602_v54  ;;  %5297 = vmatpush.msra.mxu2 %v4650_v53  ;;  %v4626_v59 = vld [vmem:[#allocation19 + $0xb00] sm:$0xff]  ;;  %v4701_v54 = vld [vmem:[#allocation19 + $0xd58] sm:$0xff] }
 0x936   : > { %5235 = vmatpush.msra.mxu3 %v4485_v19  ;;  %5258 = vmatpush.msrb.mxu0 %v4533_v37  ;;  %v4749_v53 = vld [vmem:[#allocation19 + $0xed8] sm:$0xff]  ;;  %v4575_v19 = vld [vmem:[#allocation19 + $0x968] sm:$0xff] }
 0x937   : > { %5275 = vmatpush.msrb.mxu1 %v4599_v6  ;;  %5298 = vmatpush.msra.mxu2 %v4647_v14  ;;  %v4623_v37 = vld [vmem:[#allocation19 + $0xae8] sm:$0xff]  ;;  %v4698_v6 = vld [vmem:[#allocation19 + $0xd40] sm:$0xff] }
 0x938   : > { %5107 = vmatmul.f32.gmra.mxu1 %v7754_v17  ;;  %5130 = vmatmul.f32.gmra.mxu2 %v7756_v2  ;;  %v4746_v14 = vld [vmem:[#allocation19 + $0xec0] sm:$0xff] }
 0x939   : > { %5236 = vmatpush.msra.mxu3 %v4482_v25  ;;  %5259 = vmatpush.msrb.mxu0 %v4530_v46  ;;  %v4572_v25 = vld [vmem:[#allocation19 + $0x950] sm:$0xff] }
 0x93a   : > { %5276 = vmatpush.msrb.mxu1 %v4596_v30  ;;  %5299 = vmatpush.msra.mxu2 %v4644_v12  ;;  %v4620_v46 = vld [vmem:[#allocation19 + $0xad0] sm:$0xff]  ;;  %v4695_v30 = vld [vmem:[#allocation19 + $0xd28] sm:$0xff] }
 0x93b   : > { %5237 = vmatpush.msra.mxu3 %v4479_v21  ;;  %5260 = vmatpush.msrb.mxu0 %v4527_v55  ;;  %v4743_v12 = vld [vmem:[#allocation19 + $0xea8] sm:$0xff]  ;;  %v4569_v21 = vld [vmem:[#allocation19 + $0x938] sm:$0xff] }
 0x93c   : > { %5277 = vmatpush.msrb.mxu1 %v4593_v38  ;;  %5300 = vmatpush.msra.mxu2 %v4641_v40  ;;  %v4617_v55 = vld [vmem:[#allocation19 + $0xab8] sm:$0xff]  ;;  %v4692_v38 = vld [vmem:[#allocation19 + $0xd10] sm:$0xff] }
 0x93d   : > { %5238 = vmatpush.msra.mxu3 %v4476_v31  ;;  %5261 = vmatpush.msrb.mxu0 %v4524_v49  ;;  %v4740_v40 = vld [vmem:[#allocation19 + $0xe90] sm:$0xff]  ;;  %v4566_v31 = vld [vmem:[#allocation19 + $0x920] sm:$0xff] }
 0x93e   : > { %5278 = vmatpush.msrb.mxu1 %v4590_v62  ;;  %5301 = vmatpush.msra.mxu2 %v4638_v35  ;;  %v4614_v49 = vld [vmem:[#allocation19 + $0xaa0] sm:$0xff]  ;;  %v4689_v62 = vld [vmem:[#allocation19 + $0xcf8] sm:$0xff] }
 0x93f   : > { %5239 = vmatpush.msra.mxu3 %v4473_v4  ;;  %5262 = vmatpush.msrb.mxu0 %v4521_v29  ;;  %v4737_v35 = vld [vmem:[#allocation19 + $0xe78] sm:$0xff]  ;;  %v4563_v4 = vld [vmem:[#allocation19 + $0x908] sm:$0xff] }
 0x940   : > { %5279 = vmatpush.msrb.mxu1 %v4587_v58  ;;  %5302 = vmatpush.msra.mxu2 %v4635_v28  ;;  %v4611_v29 = vld [vmem:[#allocation19 + $0xa88] sm:$0xff]  ;;  %v4686_v58 = vld [vmem:[#allocation19 + $0xce0] sm:$0xff] }
 0x941   : > { %5196 = vmatmul.f32.vlgmr.msra.gmra.mxu1 %v7594_v34  ;;  %5219 = vmatmul.f32.vlgmr.msrb.gmra.mxu2 %v7596_v32  ;;  %v4734_v28 = vld [vmem:[#allocation19 + $0xe60] sm:$0xff] }
 0x942   : > { %5240 = vmatpush.msra.mxu3 %v4470_v43  ;;  %5263 = vmatpush.msrb.mxu0 %v4518_v50  ;;  %v4800_v43 = vld [vmem:[#allocation19 + $0x1070] sm:$0xff] }
 0x943   : > { %5280 = vmatpush.msrb.mxu1 %v4584_v44  ;;  %5303 = vmatpush.msra.mxu2 %v4632_v13  ;;  %v4848_v50 = vld [vmem:[#allocation19 + $0x11f0] sm:$0xff]  ;;  %v4683_v44 = vld [vmem:[#allocation19 + $0xcc8] sm:$0xff] }
 0x944   : > { %5241 = vmatpush.msra.mxu3 %v4467_v18  ;;  %5264 = vmatpush.msrb.mxu0 %v4515_v3  ;;  %v4731_v13 = vld [vmem:[#allocation19 + $0xe48] sm:$0xff]  ;;  %v4797_v18 = vld [vmem:[#allocation19 + $0x1058] sm:$0xff] }
 0x945   : > { %5281 = vmatpush.msrb.mxu1 %v4581_v36  ;;  %5304 = vmatpush.msra.mxu2 %v4629_v51  ;;  %v4845_v3 = vld [vmem:[#allocation19 + $0x11d8] sm:$0xff]  ;;  %v4680_v36 = vld [vmem:[#allocation19 + $0xcb0] sm:$0xff] }
 0x946   : > { %5242 = vmatmul.f32.vlgmr.msra.gmra.mxu3 %v7676_v24  ;;  %5265 = vmatmul.f32.vlgmr.msrb.gmra.mxu0 %v7678_v22  ;;  %v4728_v51 = vld [vmem:[#allocation19 + $0xe30] sm:$0xff] }
 0x947   : > { %5318 = vmatpush.msrb.mxu3 %v4704_v60  ;;  %5341 = vmatpush.msra.mxu0 %v4752_v0  ;;  %v4794_v60 = vld [vmem:[#allocation19 + $0x1040] sm:$0xff] }
 0x948   : > { %5282 = vmatpush.msrb.mxu1 %v4578_v5  ;;  %5305 = vmatpush.msra.mxu2 %v4626_v59  ;;  %v4842_v0 = vld [vmem:[#allocation19 + $0x11c0] sm:$0xff]  ;;  %v4677_v5 = vld [vmem:[#allocation19 + $0xc98] sm:$0xff] }
 0x949   : > { %5319 = vmatpush.msrb.mxu3 %v4701_v54  ;;  %5342 = vmatpush.msra.mxu0 %v4749_v53  ;;  %v4725_v59 = vld [vmem:[#allocation19 + $0xe18] sm:$0xff]  ;;  %v4791_v54 = vld [vmem:[#allocation19 + $0x1028] sm:$0xff] }
 0x94a   : > { %5283 = vmatpush.msrb.mxu1 %v4575_v19  ;;  %5306 = vmatpush.msra.mxu2 %v4623_v37  ;;  %v4839_v53 = vld [vmem:[#allocation19 + $0x11a8] sm:$0xff]  ;;  %v4674_v19 = vld [vmem:[#allocation19 + $0xc80] sm:$0xff] }
 0x94b   : > { %5320 = vmatpush.msrb.mxu3 %v4698_v6  ;;  %5343 = vmatpush.msra.mxu0 %v4746_v14  ;;  %v4722_v37 = vld [vmem:[#allocation19 + $0xe00] sm:$0xff]  ;;  %v4788_v6 = vld [vmem:[#allocation19 + $0x1010] sm:$0xff] }
 0x94c   : > { %5199 = vmatmul.f32.gmra.mxu1 %v7630_v7  ;;  %5222 = vmatmul.f32.gmra.mxu2 %v7632_v8  ;;  %v4836_v14 = vld [vmem:[#allocation19 + $0x1190] sm:$0xff] }
 0x94d   : > { %5284 = vmatpush.msrb.mxu1 %v4572_v25  ;;  %5307 = vmatpush.msra.mxu2 %v4620_v46  ;;  %v4671_v25 = vld [vmem:[#allocation19 + $0xc68] sm:$0xff] }
 0x94e   : > { %5321 = vmatpush.msrb.mxu3 %v4695_v30  ;;  %5344 = vmatpush.msra.mxu0 %v4743_v12  ;;  %v4719_v46 = vld [vmem:[#allocation19 + $0xde8] sm:$0xff]  ;;  %v4785_v30 = vld [vmem:[#allocation19 + $0xff8] sm:$0xff] }
 0x94f   : > { %5285 = vmatpush.msrb.mxu1 %v4569_v21  ;;  %5308 = vmatpush.msra.mxu2 %v4617_v55  ;;  %v4833_v12 = vld [vmem:[#allocation19 + $0x1178] sm:$0xff]  ;;  %v4668_v21 = vld [vmem:[#allocation19 + $0xc50] sm:$0xff] }
 0x950   : > { %5245 = vmatmul.f32.gmra.mxu3 %v7698_v45  ;;  %5268 = vmatmul.f32.gmra.mxu0 %v7700_v61  ;;  %v4716_v55 = vld [vmem:[#allocation19 + $0xdd0] sm:$0xff] }
 0x951   : > { %5322 = vmatpush.msrb.mxu3 %v4692_v38  ;;  %5345 = vmatpush.msra.mxu0 %v4740_v40  ;;  %v4782_v38 = vld [vmem:[#allocation19 + $0xfe0] sm:$0xff] }
 0x952   : > { %5286 = vmatpush.msrb.mxu1 %v4566_v31  ;;  %5309 = vmatpush.msra.mxu2 %v4614_v49  ;;  %v4830_v40 = vld [vmem:[#allocation19 + $0x1160] sm:$0xff]  ;;  %v4665_v31 = vld [vmem:[#allocation19 + $0xc38] sm:$0xff] }
 0x953   : > { %5323 = vmatpush.msrb.mxu3 %v4689_v62  ;;  %5346 = vmatpush.msra.mxu0 %v4737_v35  ;;  %v4713_v49 = vld [vmem:[#allocation19 + $0xdb8] sm:$0xff]  ;;  %v4779_v62 = vld [vmem:[#allocation19 + $0xfc8] sm:$0xff] }
 0x954   : > { %5287 = vmatpush.msrb.mxu1 %v4563_v4  ;;  %5310 = vmatpush.msra.mxu2 %v4611_v29  ;;  %v4827_v35 = vld [vmem:[#allocation19 + $0x1148] sm:$0xff]  ;;  %v4662_v4 = vld [vmem:[#allocation19 + $0xc20] sm:$0xff] }
 0x955   : > { %5324 = vmatpush.msrb.mxu3 %v4686_v58  ;;  %5347 = vmatpush.msra.mxu0 %v4734_v28  ;;  %v4710_v29 = vld [vmem:[#allocation19 + $0xda0] sm:$0xff]  ;;  %v4776_v58 = vld [vmem:[#allocation19 + $0xfb0] sm:$0xff] }
 0x956   : > { %5364 = vmatpush.msra.mxu1 %v4800_v43  ;;  %5387 = vmatpush.msrb.mxu2 %v4848_v50  ;;  %v4824_v28 = vld [vmem:[#allocation19 + $0x1130] sm:$0xff]  ;;  %v4659_v43 = vld [vmem:[#allocation19 + $0xc08] sm:$0xff] }
 0x957   : > { %5288 = vmatmul.f32.vlgmr.msrb.gmra.mxu1 %v7684_v9  ;;  %5311 = vmatmul.f32.vlgmr.msra.gmra.mxu2 %v7686_v48  ;;  %v4707_v50 = vld [vmem:[#allocation19 + $0xd88] sm:$0xff] }
 0x958   : > { %5325 = vmatpush.msrb.mxu3 %v4683_v44  ;;  %5348 = vmatpush.msra.mxu0 %v4731_v13  ;;  %v4773_v44 = vld [vmem:[#allocation19 + $0xf98] sm:$0xff] }
 0x959   : > { %5365 = vmatpush.msra.mxu1 %v4797_v18  ;;  %5388 = vmatpush.msrb.mxu2 %v4845_v3  ;;  %v4821_v13 = vld [vmem:[#allocation19 + $0x1118] sm:$0xff] }
 0x95a   : > { %5326 = vmatpush.msrb.mxu3 %v4680_v36  ;;  %5349 = vmatpush.msra.mxu0 %v4728_v51  ;;  %v4321_v18 = vld [vmem:[#allocation19 + $0x178] sm:$0xff]  ;;  %v4770_v36 = vld [vmem:[#allocation19 + $0xf80] sm:$0xff] }
 0x95b   : > { %5366 = vmatpush.msra.mxu1 %v4794_v60  ;;  %5389 = vmatpush.msrb.mxu2 %v4842_v0  ;;  %v4369_v3 = vld [vmem:[#allocation19 + $0x2f8] sm:$0xff]  ;;  %v4818_v51 = vld [vmem:[#allocation19 + $0x1100] sm:$0xff] }
 0x95c   : > { %5327 = vmatpush.msrb.mxu3 %v4677_v5  ;;  %5350 = vmatpush.msra.mxu0 %v4725_v59  ;;  %v4318_v60 = vld [vmem:[#allocation19 + $0x160] sm:$0xff]  ;;  %v4767_v5 = vld [vmem:[#allocation19 + $0xf68] sm:$0xff] }
 0x95d   : > { %5367 = vmatpush.msra.mxu1 %v4791_v54  ;;  %5390 = vmatpush.msrb.mxu2 %v4839_v53  ;;  %v4366_v0 = vld [vmem:[#allocation19 + $0x2e0] sm:$0xff]  ;;  %v4815_v59 = vld [vmem:[#allocation19 + $0x10e8] sm:$0xff] }
 0x95e   : > { %5328 = vmatpush.msrb.mxu3 %v4674_v19  ;;  %5351 = vmatpush.msra.mxu0 %v4722_v37  ;;  %v4315_v54 = vld [vmem:[#allocation19 + $0x148] sm:$0xff]  ;;  %v4764_v19 = vld [vmem:[#allocation19 + $0xf50] sm:$0xff] }
 0x95f   : > { %5368 = vmatpush.msra.mxu1 %v4788_v6  ;;  %5391 = vmatpush.msrb.mxu2 %v4836_v14  ;;  %v4363_v53 = vld [vmem:[#allocation19 + $0x2c8] sm:$0xff]  ;;  %v4812_v37 = vld [vmem:[#allocation19 + $0x10d0] sm:$0xff] }
 0x960   : > { %5291 = vmatmul.f32.gmra.mxu1 %v7702_v1  ;;  %5314 = vmatmul.f32.gmra.mxu2 %v7704_v63  ;;  %v4312_v6 = vld [vmem:[#allocation19 + $0x130] sm:$0xff] }
 0x961   : > { %5329 = vmatpush.msrb.mxu3 %v4671_v25  ;;  %5352 = vmatpush.msra.mxu0 %v4719_v46  ;;  %v4360_v14 = vld [vmem:[#allocation19 + $0x2b0] sm:$0xff]  ;;  %v4761_v25 = vld [vmem:[#allocation19 + $0xf38] sm:$0xff] }
 0x962   : > { %5369 = vmatpush.msra.mxu1 %v4785_v30  ;;  %5392 = vmatpush.msrb.mxu2 %v4833_v12  ;;  %v4809_v46 = vld [vmem:[#allocation19 + $0x10b8] sm:$0xff] }
 0x963   : > { %5330 = vmatpush.msrb.mxu3 %v4668_v21  ;;  %5353 = vmatpush.msra.mxu0 %v4716_v55  ;;  %v4309_v30 = vld [vmem:[#allocation19 + $0x118] sm:$0xff]  ;;  %v4758_v21 = vld [vmem:[#allocation19 + $0xf20] sm:$0xff] }
 0x964   : > { %5370 = vmatpush.msra.mxu1 %v4782_v38  ;;  %5393 = vmatpush.msrb.mxu2 %v4830_v40  ;;  %v4357_v12 = vld [vmem:[#allocation19 + $0x298] sm:$0xff]  ;;  %v4806_v55 = vld [vmem:[#allocation19 + $0x10a0] sm:$0xff] }
 0x965   : > { %5331 = vmatpush.msrb.mxu3 %v4665_v31  ;;  %5354 = vmatpush.msra.mxu0 %v4713_v49  ;;  %v4306_v38 = vld [vmem:[#allocation19 + $0x100] sm:$0xff]  ;;  %v4755_v31 = vld [vmem:[#allocation19 + $0xf08] sm:$0xff] }
 0x966   : > { %5371 = vmatpush.msra.mxu1 %v4779_v62  ;;  %5394 = vmatpush.msrb.mxu2 %v4827_v35  ;;  %v4354_v40 = vld [vmem:[#allocation19 + $0x280] sm:$0xff]  ;;  %v4803_v49 = vld [vmem:[#allocation19 + $0x1088] sm:$0xff] }
 0x967   : > { %5332 = vmatpush.msrb.mxu3 %v4662_v4  ;;  %5355 = vmatpush.msra.mxu0 %v4710_v29  ;;  %v4303_v62 = vld [vmem:[#allocation19 + $0xe8] sm:$0xff]  ;;  %v4417_v4 = vld [vmem:[#allocation19 + $0x478] sm:$0xff] }
 0x968   : > { %5372 = vmatpush.msra.mxu1 %v4776_v58  ;;  %5395 = vmatpush.msrb.mxu2 %v4824_v28  ;;  %v4351_v35 = vld [vmem:[#allocation19 + $0x268] sm:$0xff]  ;;  %v4465_v29 = vld [vmem:[#allocation19 + $0x5f8] sm:$0xff]  ;;  %v4300_v58 = vld [vmem:[#allocation19 + $0xd0] sm:$0xff] }
 0x969   : > { %5333 = vmatpush.msrb.mxu3 %v4659_v43  ;;  %5356 = vmatpush.msra.mxu0 %v4707_v50  ;;  %v4348_v28 = vld [vmem:[#allocation19 + $0x250] sm:$0xff]  ;;  %v4414_v43 = vld [vmem:[#allocation19 + $0x460] sm:$0xff] }
 0x96a   : > { %5373 = vmatpush.msra.mxu1 %v4773_v44  ;;  %5396 = vmatpush.msrb.mxu2 %v4821_v13  ;;  %v4462_v50 = vld [vmem:[#allocation19 + $0x5e0] sm:$0xff]  ;;  %v4297_v44 = vld [vmem:[#allocation19 + $0xb8] sm:$0xff] }
 0x96b   : > { %5334 = vmatmul.f32.vlgmr.msrb.gmra.mxu3 %v7716_v26  ;;  %5357 = vmatmul.f32.vlgmr.msra.gmra.mxu0 %v7721_v15  ;;  %v4345_v13 = vld [vmem:[#allocation19 + $0x238] sm:$0xff] }
 0x96c   : > { %5410 = vmatpush.msra.mxu3 %v4321_v18  ;;  %5433 = vmatpush.msrb.mxu0 %v4369_v3  ;;  %v4411_v18 = vld [vmem:[#allocation19 + $0x448] sm:$0xff] }
 0x96d   : > { %5374 = vmatpush.msra.mxu1 %v4770_v36  ;;  %5397 = vmatpush.msrb.mxu2 %v4818_v51  ;;  %v4459_v3 = vld [vmem:[#allocation19 + $0x5c8] sm:$0xff]  ;;  %v4294_v36 = vld [vmem:[#allocation19 + $0xa0] sm:$0xff] }
 0x96e   : > { %5411 = vmatpush.msra.mxu3 %v4318_v60  ;;  %5434 = vmatpush.msrb.mxu0 %v4366_v0  ;;  %v4342_v51 = vld [vmem:[#allocation19 + $0x220] sm:$0xff]  ;;  %v4408_v60 = vld [vmem:[#allocation19 + $0x430] sm:$0xff] }
 0x96f   : > { %5375 = vmatpush.msra.mxu1 %v4767_v5  ;;  %5398 = vmatpush.msrb.mxu2 %v4815_v59  ;;  %v4456_v0 = vld [vmem:[#allocation19 + $0x5b0] sm:$0xff]  ;;  %v4291_v5 = vld [vmem:[#allocation19 + $0x88] sm:$0xff] }
 0x970   : > { %5412 = vmatpush.msra.mxu3 %v4315_v54  ;;  %5435 = vmatpush.msrb.mxu0 %v4363_v53  ;;  %v4339_v59 = vld [vmem:[#allocation19 + $0x208] sm:$0xff]  ;;  %v4405_v54 = vld [vmem:[#allocation19 + $0x418] sm:$0xff] }
 0x971   : > { %5376 = vmatpush.msra.mxu1 %v4764_v19  ;;  %5399 = vmatpush.msrb.mxu2 %v4812_v37  ;;  %v4453_v53 = vld [vmem:[#allocation19 + $0x598] sm:$0xff]  ;;  %v4288_v19 = vld [vmem:[#allocation19 + $0x70] sm:$0xff] }
 0x972   : > { %5413 = vmatpush.msra.mxu3 %v4312_v6  ;;  %5436 = vmatpush.msrb.mxu0 %v4360_v14  ;;  %v4336_v37 = vld [vmem:[#allocation19 + $0x1f0] sm:$0xff]  ;;  %v4402_v6 = vld [vmem:[#allocation19 + $0x400] sm:$0xff] }
 0x973   : > { %5377 = vmatpush.msra.mxu1 %v4761_v25  ;;  %5400 = vmatpush.msrb.mxu2 %v4809_v46  ;;  %v4450_v14 = vld [vmem:[#allocation19 + $0x580] sm:$0xff]  ;;  %v4285_v25 = vld [vmem:[#allocation19 + $0x58] sm:$0xff] }
 0x974   : > { %5337 = vmatmul.f32.gmra.mxu3 %v7723_v42  ;;  %5360 = vmatmul.f32.gmra.mxu0 %v7729_v11  ;;  %v4333_v46 = vld [vmem:[#allocation19 + $0x1d8] sm:$0xff] }
 0x975   : > { %5414 = vmatpush.msra.mxu3 %v4309_v30  ;;  %5437 = vmatpush.msrb.mxu0 %v4357_v12  ;;  %v4875_v30 = vpop.f32.mrf.mxu3  ;;  %v4399_v12 = vld [vmem:[#allocation19 + $0x3e8] sm:$0xff] }
 0x976   : > { %5378 = vmatpush.msra.mxu1 %v4758_v21  ;;  %5401 = vmatpush.msrb.mxu2 %v4806_v55  ;;  %v4447_v21 = vld [vmem:[#allocation19 + $0x568] sm:$0xff]  ;;  %v4282_v55 = vld [vmem:[#allocation19 + $0x40] sm:$0xff] }
 0x977   : > { %5415 = vmatpush.msra.mxu3 %v4306_v38  ;;  %5438 = vmatpush.msrb.mxu0 %v4354_v40  ;;  %v4330_v38 = vld [vmem:[#allocation19 + $0x1c0] sm:$0xff]  ;;  %v7780_v40 = vpop.f32.mrf.mxu0 }
 0x978   : > { %5379 = vmatpush.msra.mxu1 %v4755_v31  ;;  %5402 = vmatpush.msrb.mxu2 %v4803_v49  ;;  %v4396_v31 = vld [vmem:[#allocation19 + $0x3d0] sm:$0xff] }
 0x979   : > { %5380 = vmatmul.f32.vlgmr.msra.gmra.mxu1 %v7745_v52  ;;  %5403 = vmatmul.f32.vlgmr.msrb.gmra.mxu2 %v7747_v47  ;;  %v4444_v49 = vld [vmem:[#allocation19 + $0x550] sm:$0xff] }
 0x97a   : > { %5416 = vmatpush.msra.mxu3 %v4303_v62  ;;  %5439 = vmatpush.msrb.mxu0 %v4351_v35  ;;  %v4279_v62 = vld [vmem:[#allocation19 + $0x28] sm:$0xff] }
 0x97b   : > { %5456 = vmatpush.msrb.mxu1 %v4417_v4  ;;  %5479 = vmatpush.msra.mxu2 %v4465_v29  ;;  %v4327_v35 = vld [vmem:[#allocation19 + $0x1a8] sm:$0xff]  ;;  %v7782_v4 = vpop.f32.mrf.mxu1  ;;  %v4393_v29 = vld [vmem:[#allocation19 + $0x3b8] sm:$0xff] }
 0x97c   : > { %5417 = vmatpush.msra.mxu3 %v4300_v58  ;;  %5440 = vmatpush.msrb.mxu0 %v4348_v28  ;;  %v4441_v58 = vld [vmem:[#allocation19 + $0x538] sm:$0xff]  ;;  %v7784_v28 = vld [vmem:[#allocation20] sm:$0x7] }
 0x97d   : > { %5457 = vmatpush.msrb.mxu1 %v4414_v43  ;;  %5480 = vmatpush.msra.mxu2 %v4462_v50  ;;  %v4276_v43 = vld [vmem:[#allocation19 + $0x10] sm:$0xff] }
 0x97e   : > { %5418 = vmatpush.msra.mxu3 %v4297_v44  ;;  %5441 = vmatpush.msrb.mxu0 %v4345_v13  ;;  %v4324_v50 = vld [vmem:[#allocation19 + $0x190] sm:$0xff]  ;;  %v4390_v44 = vld [vmem:[#allocation19 + $0x3a0] sm:$0xff] }
 0x97f   : > { %5458 = vmatpush.msrb.mxu1 %v4411_v18  ;;  %5481 = vmatpush.msra.mxu2 %v4459_v3  ;;  %v4438_v13 = vld [vmem:[#allocation19 + $0x520] sm:$0xff]  ;;  %v4852_v18 = vperm.slane %v7784_v28, 0  ;;  %v4513_v3 = vld [vmem:[#allocation19 + $0x778] sm:$0xff] }
 0x980   : > { %5419 = vmatpush.msra.mxu3 %v4294_v36  ;;  %5442 = vmatpush.msrb.mxu0 %v4342_v51  ;;  %v4561_v36 = vld [vmem:[#allocation19 + $0x8f8] sm:$0xff]  ;;  %v7787_v51 = vpop.f32.mrf.mxu2 }
 0x981   : > { %5459 = vmatpush.msrb.mxu1 %v4408_v60  ;;  %5482 = vmatpush.msra.mxu2 %v4456_v0  ;;  %v4387_v60 = vld [vmem:[#allocation19 + $0x388] sm:$0xff] }
 0x982   : > { %5383 = vmatmul.f32.gmra.mxu1 %v7754_v17  ;;  %5406 = vmatmul.f32.gmra.mxu2 %v7756_v2  ;;  %v4435_v0 = vld [vmem:[#allocation19 + $0x508] sm:$0xff] }
 0x983   : > { %5420 = vmatpush.msra.mxu3 %v4291_v5  ;;  %5443 = vmatpush.msrb.mxu0 %v4339_v59  ;;  %v4878_v5 = vpop.f32.mrf.mxu3  ;;  %v4510_v59 = vld [vmem:[#allocation19 + $0x760] sm:$0xff] }
 0x984   : > { %5460 = vmatpush.msrb.mxu1 %v4405_v54  ;;  %5483 = vmatpush.msra.mxu2 %v4453_v53  ;;  %v4558_v54 = vld [vmem:[#allocation19 + $0x8e0] sm:$0xff]  ;;  %v4384_v53 = vld [vmem:[#allocation19 + $0x370] sm:$0xff] }
 0x985   : > { %5421 = vmatpush.msra.mxu3 %v4288_v19  ;;  %5444 = vmatpush.msrb.mxu0 %v4336_v37  ;;  %v4432_v19 = vld [vmem:[#allocation19 + $0x4f0] sm:$0xff]  ;;  %v4876_v37 = vadd.f32 %v4875_v30, %v4852_v18 }
 0x986   : > { %5461 = vmatpush.msrb.mxu1 %v4402_v6  ;;  %5484 = vmatpush.msra.mxu2 %v4450_v14  ;;  %v4901_v6 = vpop.f32.mrf.mxu0  ;;  %v4507_v14 = vld [vmem:[#allocation19 + $0x748] sm:$0xff] }
 0x987   : > { %5422 = vmatpush.msra.mxu3 %v4285_v25  ;;  %5445 = vmatpush.msrb.mxu0 %v4333_v46  ;;  %v4555_v25 = vld [vmem:[#allocation19 + $0x8c8] sm:$0xff]  ;;  %v4381_v46 = vld [vmem:[#allocation19 + $0x358] sm:$0xff]  ;;  %v4899_v30 = vadd.f32 %v7780_v40, %v4876_v37 }
 0x988   : > { %5462 = vmatpush.msrb.mxu1 %v4399_v12  ;;  %5485 = vmatpush.msra.mxu2 %v4447_v21  ;;  %v4429_v12 = vld [vmem:[#allocation19 + $0x4d8] sm:$0xff]  ;;  %v7791_v21 = vpop.f32.mrf.mxu1 }
 0x989   : > { %5423 = vmatpush.msra.mxu3 %v4282_v55  ;;  %5446 = vmatpush.msrb.mxu0 %v4330_v38  ;;  %v4378_v55 = vld [vmem:[#allocation19 + $0x340] sm:$0xff]  ;;  %v4922_v40 = vadd.f32 %v7782_v4, %v4899_v30  ;;  %v4492_v4 = vld [vmem:[#allocation19 + $0x6d0] sm:$0xff] }
 0x98a   : > { %5463 = vmatpush.msrb.mxu1 %v4396_v31  ;;  %5486 = vmatpush.msra.mxu2 %v4444_v49  ;;  %v4426_v38 = vld [vmem:[#allocation19 + $0x4c0] sm:$0xff]  ;;  %v4501_v31 = vld [vmem:[#allocation19 + $0x718] sm:$0xff] }
 0x98b   : > { %5424 = vmatpush.msra.mxu3 %v4279_v62  ;;  %5447 = vmatpush.msrb.mxu0 %v4327_v35  ;;  %v4549_v49 = vld [vmem:[#allocation19 + $0x898] sm:$0xff]  ;;  %v4967_v62 = vpop.f32.mrf.mxu3  ;;  %v4375_v35 = vld [vmem:[#allocation19 + $0x328] sm:$0xff] }
 0x98c   : > { %5464 = vmatpush.msrb.mxu1 %v4393_v29  ;;  %5487 = vmatpush.msra.mxu2 %v4441_v58  ;;  %v4423_v29 = vld [vmem:[#allocation19 + $0x4a8] sm:$0xff]  ;;  %v7794_v58 = vpop.f32.mrf.mxu2 }
 0x98d   : > { %5425 = vmatpush.msra.mxu3 %v4276_v43  ;;  %5448 = vmatpush.msrb.mxu0 %v4324_v50  ;;  %v4498_v43 = vld [vmem:[#allocation19 + $0x700] sm:$0xff] }
 0x98e   : > { %5465 = vmatpush.msrb.mxu1 %v4390_v44  ;;  %5488 = vmatpush.msra.mxu2 %v4438_v13  ;;  %v4546_v50 = vld [vmem:[#allocation19 + $0x880] sm:$0xff]  ;;  %v4990_v44 = vpop.f32.mrf.mxu0  ;;  %v4372_v13 = vld [vmem:[#allocation19 + $0x310] sm:$0xff] }
 0x98f   : > { %5426 = vmatmul.f32.vlgmr.msra.gmra.mxu3 %v7587_v33  ;;  %5449 = vmatmul.f32.vlgmr.msrb.gmra.mxu0 %v7592_v57  ;;  %v4504_v33 = vld [vmem:[#allocation19 + $0x730] sm:$0xff] }
 0x990   : > { %5502 = vmatpush.msrb.mxu3 %v4513_v3  ;;  %5525 = vmatpush.msra.mxu0 %v4561_v36  ;;  %v4552_v57 = vld [vmem:[#allocation19 + $0x8b0] sm:$0xff]  ;;  %v4879_v36 = vadd.f32 %v4878_v5, %v4852_v18  ;;  %v4606_v5 = vld [vmem:[#allocation19 + $0xa60] sm:$0xff] }
 0x991   : > { %5466 = vmatpush.msrb.mxu1 %v4387_v60  ;;  %5489 = vmatpush.msra.mxu2 %v4435_v0  ;;  %v4420_v3 = vld [vmem:[#allocation19 + $0x490] sm:$0xff]  ;;  %v5013_v60 = vpop.f32.mrf.mxu1  ;;  %v4495_v0 = vld [vmem:[#allocation19 + $0x6e8] sm:$0xff] }
 0x992   : > { %5503 = vmatpush.msrb.mxu3 %v4510_v59  ;;  %5526 = vmatpush.msra.mxu0 %v4558_v54  ;;  %v4543_v59 = vld [vmem:[#allocation19 + $0x868] sm:$0xff]  ;;  %v4945_v54 = vadd.f32 %v7787_v51, %v4922_v40  ;;  %v4902_v18 = vadd.f32 %v4901_v6, %v4879_v36  ;;  %v4477_v36 = vld [vmem:[#allocation19 + $0x658] sm:$0xff] }
 0x993   : > { %5467 = vmatpush.msrb.mxu1 %v4384_v53  ;;  %5490 = vmatpush.msra.mxu2 %v4432_v19  ;;  %v4540_v53 = vld [vmem:[#allocation19 + $0x850] sm:$0xff]  ;;  %v4654_v19 = vld [vmem:[#allocation19 + $0xbe0] sm:$0xff]  ;;  %v4603_v51 = vld [vmem:[#allocation19 + $0xa48] sm:$0xff] }
 0x994   : > { %5504 = vmatpush.msrb.mxu3 %v4507_v14  ;;  %5527 = vmatpush.msra.mxu0 %v4555_v25  ;;  %v4968_v37 = vadd.f32 %v4967_v62, %v4945_v54  ;;  %v4489_v14 = vld [vmem:[#allocation19 + $0x6b8] sm:$0xff]  ;;  %v4925_v6 = vadd.f32 %v7791_v21, %v4902_v18  ;;  %v4480_v21 = vld [vmem:[#allocation19 + $0x670] sm:$0xff] }
 0x995   : > { %5468 = vmatpush.msrb.mxu1 %v4381_v46  ;;  %5491 = vmatpush.msra.mxu2 %v4429_v12  ;;  %v4537_v25 = vld [vmem:[#allocation19 + $0x838] sm:$0xff]  ;;  %v5036_v46 = vpop.f32.mrf.mxu2  ;;  %v4651_v12 = vld [vmem:[#allocation19 + $0xbc8] sm:$0xff] }
 0x996   : > { %5505 = vmatpush.msrb.mxu3 %v4504_v33  ;;  %5528 = vmatpush.msra.mxu0 %v4552_v57  ;;  %v4534_v33 = vld [vmem:[#allocation19 + $0x820] sm:$0xff]  ;;  %v4600_v57 = vld [vmem:[#allocation19 + $0xa30] sm:$0xff]  ;;  %v4993_v30 = vpop.f32.mrf.mxu0 }
 0x997   : > { %5469 = vmatpush.msrb.mxu1 %v4378_v55  ;;  %5492 = vmatpush.msra.mxu2 %v4426_v38  ;;  %v4648_v55 = vld [vmem:[#allocation19 + $0xbb0] sm:$0xff]  ;;  %v4991_v38 = vadd.f32 %v4990_v44, %v4968_v37  ;;  %v4594_v44 = vld [vmem:[#allocation19 + $0xa00] sm:$0xff] }
 0x998   : > { %5429 = vmatmul.f32.gmra.mxu3 %v7626_v56  ;;  %5452 = vmatmul.f32.gmra.mxu0 %v7628_v27  ;;  %v4609_v56 = vld [vmem:[#allocation19 + $0xa78] sm:$0xff] }
 0x999   : > { %5506 = vmatpush.msrb.mxu3 %v4501_v31  ;;  %5529 = vmatpush.msra.mxu0 %v4549_v49  ;;  %v4657_v27 = vld [vmem:[#allocation19 + $0xbf8] sm:$0xff]  ;;  %v4483_v31 = vld [vmem:[#allocation19 + $0x688] sm:$0xff]  ;;  %v5016_v62 = vpop.f32.mrf.mxu1  ;;  %v5014_v40 = vadd.f32 %v5013_v60, %v4991_v38 }
 0x99a   : > { %5470 = vmatpush.msrb.mxu1 %v4375_v35  ;;  %5493 = vmatpush.msra.mxu2 %v4423_v29  ;;  %v4531_v49 = vld [vmem:[#allocation19 + $0x808] sm:$0xff]  ;;  %v4597_v35 = vld [vmem:[#allocation19 + $0xa18] sm:$0xff] }
 0x99b   : > { %5507 = vmatpush.msrb.mxu3 %v4498_v43  ;;  %5530 = vmatpush.msra.mxu0 %v4546_v50  ;;  %v4645_v29 = vld [vmem:[#allocation19 + $0xb98] sm:$0xff]  ;;  %v4948_v43 = vadd.f32 %v7794_v58, %v4925_v6  ;;  %v4528_v50 = vld [vmem:[#allocation19 + $0x7f0] sm:$0xff]  ;;  %v4591_v58 = vld [vmem:[#allocation19 + $0x9e8] sm:$0xff]  ;;  %v5037_v60 = vadd.f32 %v5036_v46, %v5014_v40 }
 0x99c   : > { %5471 = vmatpush.msrb.mxu1 %v4372_v13  ;;  %5494 = vmatpush.msra.mxu2 %v4420_v3  ;;  %v4642_v13 = vld [vmem:[#allocation19 + $0xb80] sm:$0xff]  ;;  %v4516_v46 = vld [vmem:[#allocation19 + $0x790] sm:$0xff] }
 0x99d   : > { %5472 = vmatmul.f32.vlgmr.msrb.gmra.mxu1 %v7594_v34  ;;  %5495 = vmatmul.f32.vlgmr.msra.gmra.mxu2 %v7596_v32  ;;  %v4970_v34 = vpop.f32.mrf.mxu3  ;;  %v4486_v32 = vld [vmem:[#allocation19 + $0x6a0] sm:$0xff]  ;;  %v4624_v40 = vld [vmem:[#allocation19 + $0xaf0] sm:$0xff] }
 0x99e   : > { %5508 = vmatpush.msrb.mxu3 %v4495_v0  ;;  %5531 = vmatpush.msra.mxu0 %v4543_v59  ;;  %v4971_v3 = vadd.f32 %v4970_v34, %v4948_v43  ;;  %v4525_v0 = vld [vmem:[#allocation19 + $0x7d8] sm:$0xff]  ;;  %v5082_v54 = vpop.f32.mrf.mxu0  ;;  %v4750_v43 = vld [vmem:[#allocation19 + $0xee0] sm:$0xff] }
 0x99f   : > { %5548 = vmatpush.msra.mxu1 %v4609_v56  ;;  %5571 = vmatpush.msrb.mxu2 %v4657_v27  ;;  %v4639_v56 = vld [vmem:[#allocation19 + $0xb68] sm:$0xff]  ;;  %v4522_v27 = vld [vmem:[#allocation19 + $0x7c0] sm:$0xff] }
 0x9a0   : > { %5509 = vmatpush.msrb.mxu3 %v4492_v4  ;;  %5532 = vmatpush.msra.mxu0 %v4540_v53  ;;  %v4588_v4 = vld [vmem:[#allocation19 + $0x9d0] sm:$0xff]  ;;  %v4994_v18 = vadd.f32 %v4993_v30, %v4971_v3  ;;  %v4579_v30 = vld [vmem:[#allocation19 + $0x988] sm:$0xff] }
 0x9a1   : > { %5549 = vmatpush.msra.mxu1 %v4606_v5  ;;  %5572 = vmatpush.msrb.mxu2 %v4654_v19  ;;  %v4636_v53 = vld [vmem:[#allocation19 + $0xb50] sm:$0xff]  ;;  %v4471_v5 = vld [vmem:[#allocation19 + $0x628] sm:$0xff] }
 0x9a2   : > { %5510 = vmatpush.msrb.mxu3 %v4489_v14  ;;  %5533 = vmatpush.msra.mxu0 %v4537_v25  ;;  %v4519_v19 = vld [vmem:[#allocation19 + $0x7a8] sm:$0xff]  ;;  %v4585_v14 = vld [vmem:[#allocation19 + $0x9b8] sm:$0xff]  ;;  %v5017_v6 = vadd.f32 %v5016_v62, %v4994_v18 }
 0x9a3   : > { %5550 = vmatpush.msra.mxu1 %v4603_v51  ;;  %5573 = vmatpush.msrb.mxu2 %v4651_v12  ;;  %v4633_v25 = vld [vmem:[#allocation19 + $0xb38] sm:$0xff]  ;;  %v4468_v12 = vld [vmem:[#allocation19 + $0x610] sm:$0xff]  ;;  %v4747_v3 = vld [vmem:[#allocation19 + $0xec8] sm:$0xff] }
 0x9a4   : > { %5511 = vmatpush.msrb.mxu3 %v4486_v32  ;;  %5534 = vmatpush.msra.mxu0 %v4534_v33  ;;  %v4582_v32 = vld [vmem:[#allocation19 + $0x9a0] sm:$0xff] }
 0x9a5   : > { %5551 = vmatpush.msra.mxu1 %v4600_v57  ;;  %5574 = vmatpush.msrb.mxu2 %v4648_v55  ;;  %v5059_v59 = vpop.f32.mrf.mxu3  ;;  %v4630_v33 = vld [vmem:[#allocation19 + $0xb20] sm:$0xff]  ;;  %v4705_v57 = vld [vmem:[#allocation19 + $0xd78] sm:$0xff] }
 0x9a6   : > { %5475 = vmatmul.f32.gmra.mxu1 %v7630_v7  ;;  %5498 = vmatmul.f32.gmra.mxu2 %v7632_v8  ;;  %v5039_v7 = vpop.f32.mrf.mxu2  ;;  %v4474_v8 = vld [vmem:[#allocation19 + $0x640] sm:$0xff]  ;;  %v5060_v37 = vadd.f32 %v5059_v59, %v5037_v60  ;;  %v4753_v55 = vld [vmem:[#allocation19 + $0xef8] sm:$0xff]  ;;  %v4696_v59 = vld [vmem:[#allocation19 + $0xd30] sm:$0xff] }
 0x9a7   : > { %5512 = vmatpush.msrb.mxu3 %v4483_v31  ;;  %5535 = vmatpush.msra.mxu0 %v4531_v49  ;;  %v4627_v31 = vld [vmem:[#allocation19 + $0xb08] sm:$0xff]  ;;  %v4741_v60 = vld [vmem:[#allocation19 + $0xe98] sm:$0xff] }
 0x9a8   : > { %5552 = vmatpush.msra.mxu1 %v4597_v35  ;;  %5575 = vmatpush.msrb.mxu2 %v4645_v29  ;;  %v5083_v34 = vadd.f32 %v5082_v54, %v5060_v37  ;;  %v4702_v29 = vld [vmem:[#allocation19 + $0xd60] sm:$0xff] }
 0x9a9   : > { %5513 = vmatpush.msrb.mxu3 %v4480_v21  ;;  %5536 = vmatpush.msra.mxu0 %v4528_v50  ;;  %v5040_v21 = vadd.f32 %v5039_v7, %v5017_v6  ;;  %v4576_v50 = vld [vmem:[#allocation19 + $0x970] sm:$0xff]  ;;  %v4846_v6 = vld [vmem:[#allocation19 + $0x11e0] sm:$0xff] }
 0x9aa   : > { %5553 = vmatpush.msra.mxu1 %v4594_v44  ;;  %5576 = vmatpush.msrb.mxu2 %v4642_v13  ;;  %v5085_v44 = vpop.f32.mrf.mxu0  ;;  %v4699_v13 = vld [vmem:[#allocation19 + $0xd48] sm:$0xff] }
 0x9ab   : > { %5514 = vmatpush.msrb.mxu3 %v4477_v36  ;;  %5537 = vmatpush.msra.mxu0 %v4525_v0 }
 0x9ac   : > { %5554 = vmatpush.msra.mxu1 %v4591_v58  ;;  %5577 = vmatpush.msrb.mxu2 %v4639_v56  ;;  %v5105_v51 = vpop.f32.mrf.mxu1  ;;  %v4744_v58 = vld [vmem:[#allocation19 + $0xeb0] sm:$0xff] }
 0x9ad   : > { %5515 = vmatpush.msrb.mxu3 %v4474_v8  ;;  %5538 = vmatpush.msra.mxu0 %v4522_v27  ;;  %v5106_v38 = vadd.f32 %v5105_v51, %v5083_v34  ;;  %v5062_v35 = vpop.f32.mrf.mxu3  ;;  %v4570_v8 = vld [vmem:[#allocation19 + $0x940] sm:$0xff]  ;;  %v4693_v27 = vld [vmem:[#allocation19 + $0xd18] sm:$0xff]  ;;  %v4684_v34 = vld [vmem:[#allocation19 + $0xcd0] sm:$0xff] }
 0x9ae   : > { %5555 = vmatpush.msra.mxu1 %v4588_v4  ;;  %5578 = vmatpush.msrb.mxu2 %v4636_v53  ;;  %v5063_v0 = vadd.f32 %v5062_v35, %v5040_v21  ;;  %v4567_v4 = vld [vmem:[#allocation19 + $0x928] sm:$0xff]  ;;  %v4720_v21 = vld [vmem:[#allocation19 + $0xdf0] sm:$0xff] }
 0x9af   : > { %5516 = vmatpush.msrb.mxu3 %v4471_v5  ;;  %5539 = vmatpush.msra.mxu0 %v4519_v19  ;;  %v4615_v53 = vld [vmem:[#allocation19 + $0xaa8] sm:$0xff]  ;;  %v4690_v5 = vld [vmem:[#allocation19 + $0xd00] sm:$0xff] }
 0x9b0   : > { %5556 = vmatpush.msra.mxu1 %v4585_v14  ;;  %5579 = vmatpush.msrb.mxu2 %v4633_v25  ;;  %v5086_v7 = vadd.f32 %v5085_v44, %v5063_v0  ;;  %v4738_v19 = vld [vmem:[#allocation19 + $0xe80] sm:$0xff]  ;;  %v4564_v14 = vld [vmem:[#allocation19 + $0x910] sm:$0xff]  ;;  %v4723_v35 = vld [vmem:[#allocation19 + $0xe08] sm:$0xff] }
 0x9b1   : > { %5517 = vmatpush.msrb.mxu3 %v4468_v12  ;;  %5540 = vmatpush.msra.mxu0 %v4516_v46  ;;  %v4612_v25 = vld [vmem:[#allocation19 + $0xa90] sm:$0xff]  ;;  %v4687_v12 = vld [vmem:[#allocation19 + $0xce8] sm:$0xff]  ;;  %v4669_v44 = vld [vmem:[#allocation19 + $0xc58] sm:$0xff] }
 0x9b2   : > { %5557 = vmatpush.msra.mxu1 %v4582_v32  ;;  %5580 = vmatpush.msrb.mxu2 %v4630_v33  ;;  %v5128_v49 = vpop.f32.mrf.mxu2  ;;  %v4735_v46 = vld [vmem:[#allocation19 + $0xe68] sm:$0xff]  ;;  %v4732_v32 = vld [vmem:[#allocation19 + $0xe50] sm:$0xff]  ;;  %v4798_v33 = vld [vmem:[#allocation19 + $0x1060] sm:$0xff] }
 0x9b3   : > { %5518 = vmatmul.f32.vlgmr.msrb.gmra.mxu3 %v7676_v24  ;;  %5541 = vmatmul.f32.vlgmr.msra.gmra.mxu0 %v7678_v22  ;;  %v5129_v62 = vadd.f32 %v5128_v49, %v5106_v38  ;;  %v4573_v24 = vld [vmem:[#allocation19 + $0x958] sm:$0xff]  ;;  %v4843_v38 = vld [vmem:[#allocation19 + $0x11c8] sm:$0xff] }
 0x9b4   : > { %5594 = vmatpush.msra.mxu3 %v4705_v57  ;;  %5617 = vmatpush.msrb.mxu0 %v4753_v55  ;;  %v4621_v22 = vld [vmem:[#allocation19 + $0xad8] sm:$0xff]  ;;  %v4795_v55 = vld [vmem:[#allocation19 + $0x1048] sm:$0xff] }
 0x9b5   : > { %5558 = vmatpush.msra.mxu1 %v4579_v30  ;;  %5581 = vmatpush.msrb.mxu2 %v4627_v31  ;;  %v5686_v36 = vadd.f32 %v5129_v62, %v7348_v10  ;;  %v5108_v56 = vpop.f32.mrf.mxu1  ;;  %v4618_v10 = vld [vmem:[#allocation19 + $0xac0] sm:$0xff]  ;;  %v4729_v57 = vld [vmem:[#allocation19 + $0xe38] sm:$0xff]  ;;  %v4840_v31 = vld [vmem:[#allocation19 + $0x11b0] sm:$0xff] }
 0x9b6   : > { %5595 = vmatpush.msra.mxu3 %v4702_v29  ;;  %5618 = vmatpush.msrb.mxu0 %v4750_v43  ;;  %v5109_v54 = vadd.f32 %v5108_v56, %v5086_v7  ;;  %v4678_v30 = vld [vmem:[#allocation19 + $0xca0] sm:$0xff]  ;;  %v4675_v49 = vld [vmem:[#allocation19 + $0xc88] sm:$0xff]  ;;  %v4789_v29 = vld [vmem:[#allocation19 + $0x1018] sm:$0xff] }
 0x9b7   : > { %5559 = vmatpush.msra.mxu1 %v4576_v50  ;;  %5582 = vmatpush.msrb.mxu2 %v4624_v40  ;;  %5692 = vst [vmem:[%s7811_s25] sm:$0xff] %v5686_v36  ;;  %v4837_v43 = vld [vmem:[#allocation19 + $0x1198] sm:$0xff]  ;;  %v4672_v62 = vld [vmem:[#allocation19 + $0xc70] sm:$0xff]  ;;  %v4786_v50 = vld [vmem:[#allocation19 + $0x1000] sm:$0xff] }
 0x9b8   : > { %5596 = vmatpush.msra.mxu3 %v4699_v13  ;;  %5619 = vmatpush.msrb.mxu0 %v4747_v3  ;;  %v4834_v40 = vld [vmem:[#allocation19 + $0x1180] sm:$0xff]  ;;  %v4717_v13 = vld [vmem:[#allocation19 + $0xdd8] sm:$0xff]  ;;  %v5151_v3 = vpop.f32.mrf.mxu3  ;;  %v4783_v36 = vld [vmem:[#allocation19 + $0xfe8] sm:$0xff] }
 0x9b9   : > { %5560 = vmatpush.msra.mxu1 %v4573_v24  ;;  %5583 = vmatpush.msrb.mxu2 %v4621_v22  ;;  %v4831_v0 = vld [vmem:[#allocation19 + $0x1168] sm:$0xff]  ;;  %v4714_v24 = vld [vmem:[#allocation19 + $0xdc0] sm:$0xff]  ;;  %v4828_v22 = vld [vmem:[#allocation19 + $0x1150] sm:$0xff] }
 0x9ba   : > { %5597 = vmatpush.msra.mxu3 %v4696_v59  ;;  %5620 = vmatpush.msrb.mxu0 %v4744_v58  ;;  %v4663_v59 = vld [vmem:[#allocation19 + $0xc28] sm:$0xff]  ;;  %v4777_v56 = vld [vmem:[#allocation19 + $0xfb8] sm:$0xff] }
 0x9bb   : > { %5561 = vmatpush.msra.mxu1 %v4570_v8  ;;  %5584 = vmatpush.msrb.mxu2 %v4618_v10  ;;  %v5131_v18 = vpop.f32.mrf.mxu2  ;;  %v4711_v58 = vld [vmem:[#allocation19 + $0xda8] sm:$0xff]  ;;  %v4825_v7 = vld [vmem:[#allocation19 + $0x1138] sm:$0xff]  ;;  %v4660_v10 = vld [vmem:[#allocation19 + $0xc10] sm:$0xff] }
 0x9bc   : > { %5521 = vmatmul.f32.gmra.mxu3 %v7698_v45  ;;  %5544 = vmatmul.f32.gmra.mxu0 %v7700_v61  ;;  %v5132_v37 = vadd.f32 %v5131_v18, %v5109_v54  ;;  %v4801_v45 = vld [vmem:[#allocation19 + $0x1078] sm:$0xff]  ;;  %v4774_v54 = vld [vmem:[#allocation19 + $0xfa0] sm:$0xff]  ;;  %v4819_v18 = vld [vmem:[#allocation19 + $0x1108] sm:$0xff] }
 0x9bd   : > { %5598 = vmatpush.msra.mxu3 %v4693_v27  ;;  %5621 = vmatpush.msrb.mxu0 %v4741_v60  ;;  %v4849_v61 = vld [vmem:[#allocation19 + $0x11f8] sm:$0xff]  ;;  %v4708_v27 = vld [vmem:[#allocation19 + $0xd90] sm:$0xff]  ;;  %v5174_v60 = vpop.f32.mrf.mxu0 }
 0x9be   : > { %5562 = vmatpush.msra.mxu1 %v4567_v4  ;;  %5585 = vmatpush.msrb.mxu2 %v4615_v53  ;;  %v5689_v51 = vadd.f32 %v5132_v37, %v7360_v20  ;;  %v4681_v20 = vld [vmem:[#allocation19 + $0xcb8] sm:$0xff]  ;;  %v5197_v8 = vpop.f32.mrf.mxu1  ;;  %v4822_v4 = vld [vmem:[#allocation19 + $0x1120] sm:$0xff]  ;;  %v4771_v53 = vld [vmem:[#allocation19 + $0xf88] sm:$0xff] }
 0x9bf   : > { %5599 = vmatpush.msra.mxu3 %v4690_v5  ;;  %5622 = vmatpush.msrb.mxu0 %v4738_v19  ;;  %v4768_v37 = vld [vmem:[#allocation19 + $0xf70] sm:$0xff] }
 0x9c0   : > { %5563 = vmatpush.msra.mxu1 %v4564_v14  ;;  %5586 = vmatpush.msrb.mxu2 %v4612_v25  ;;  %5695 = vst [vmem:[%s7811_s25 + $0x18] sm:$0xff] %v5689_v51  ;;  %v5154_v19 = vpop.f32.mrf.mxu3  ;;  %v4816_v14 = vld [vmem:[#allocation19 + $0x10f0] sm:$0xff]  ;;  %v4765_v25 = vld [vmem:[#allocation19 + $0xf58] sm:$0xff] }
 0x9c1   : > { %5564 = vmatmul.f32.vlgmr.msra.gmra.mxu1 %v7684_v9  ;;  %5587 = vmatmul.f32.vlgmr.msrb.gmra.mxu2 %v7686_v48  ;;  %v4726_v9 = vld [vmem:[#allocation19 + $0xe20] sm:$0xff]  ;;  %v4792_v48 = vld [vmem:[#allocation19 + $0x1030] sm:$0xff]  ;;  %v4813_v51 = vld [vmem:[#allocation19 + $0x10d8] sm:$0xff] }
 0x9c2   : > { %5600 = vmatpush.msra.mxu3 %v4687_v12  ;;  %5623 = vmatpush.msrb.mxu0 %v4735_v46  ;;  %v4853_v12 = vperm.slane %v7784_v28, 1 }
 0x9c3   : > { %5640 = vmatpush.msrb.mxu1 %v4801_v45  ;;  %5663 = vmatpush.msra.mxu2 %v4849_v61  ;;  %v4762_v45 = vld [vmem:[#allocation19 + $0xf40] sm:$0xff] }
 0x9c4   : > { %5601 = vmatpush.msra.mxu3 %v4684_v34  ;;  %5624 = vmatpush.msrb.mxu0 %v4732_v32  ;;  %v5220_v5 = vpop.f32.mrf.mxu2  ;;  %v4810_v61 = vld [vmem:[#allocation19 + $0x10c0] sm:$0xff]  ;;  %v4759_v32 = vld [vmem:[#allocation19 + $0xf28] sm:$0xff] }
 0x9c5   : > { %5641 = vmatpush.msrb.mxu1 %v4798_v33  ;;  %5664 = vmatpush.msra.mxu2 %v4846_v6  ;;  %v5177_v34 = vpop.f32.mrf.mxu0  ;;  %v4756_v6 = vld [vmem:[#allocation19 + $0xf10] sm:$0xff] }
 0x9c6   : > { %5602 = vmatpush.msra.mxu3 %v4681_v20  ;;  %5625 = vmatpush.msrb.mxu0 %v4729_v57  ;;  %v4804_v20 = vld [vmem:[#allocation19 + $0x1090] sm:$0xff] }
 0x9c7   : > { %5642 = vmatpush.msrb.mxu1 %v4795_v55  ;;  %5665 = vmatpush.msra.mxu2 %v4843_v38 }
 0x9c8   : > { %5603 = vmatpush.msra.mxu3 %v4678_v30  ;;  %5626 = vmatpush.msrb.mxu0 %v4726_v9 }
 0x9c9   : > { %5643 = vmatpush.msrb.mxu1 %v4792_v48  ;;  %5666 = vmatpush.msra.mxu2 %v4840_v31  ;;  %v5200_v46 = vpop.f32.mrf.mxu1  ;;  %v5243_v33 = vpop.f32.mrf.mxu3  ;;  %v5155_v31 = vadd.f32 %v5154_v19, %v4853_v12 }
 0x9ca   : > { %5567 = vmatmul.f32.gmra.mxu1 %v7702_v1  ;;  %5590 = vmatmul.f32.gmra.mxu2 %v7704_v63  ;;  %v4666_v1 = vld [vmem:[#allocation19 + $0xc40] sm:$0xff]  ;;  %v4780_v63 = vld [vmem:[#allocation19 + $0xfd0] sm:$0xff] }
 0x9cb   : > { %5604 = vmatpush.msra.mxu3 %v4675_v49  ;;  %5627 = vmatpush.msrb.mxu0 %v4723_v35  ;;  %v5178_v35 = vadd.f32 %v5177_v34, %v5155_v31 }
 0x9cc   : > { %5644 = vmatpush.msrb.mxu1 %v4789_v29  ;;  %5667 = vmatpush.msra.mxu2 %v4837_v43 }
 0x9cd   : > { %5605 = vmatpush.msra.mxu3 %v4672_v62  ;;  %5628 = vmatpush.msrb.mxu0 %v4720_v21  ;;  %v5266_v30 = vpop.f32.mrf.mxu0  ;;  %v5201_v29 = vadd.f32 %v5200_v46, %v5178_v35 }
 0x9ce   : > { %5645 = vmatpush.msrb.mxu1 %v4786_v50  ;;  %5668 = vmatpush.msra.mxu2 %v4834_v40 }
 0x9cf   : > { %5606 = vmatpush.msra.mxu3 %v4669_v44  ;;  %5629 = vmatpush.msrb.mxu0 %v4717_v13  ;;  %v5223_v57 = vpop.f32.mrf.mxu2 }
 0x9d0   : > { %5646 = vmatpush.msrb.mxu1 %v4783_v36  ;;  %5669 = vmatpush.msra.mxu2 %v4831_v0 }
 0x9d1   : > { %5607 = vmatpush.msra.mxu3 %v4666_v1  ;;  %5630 = vmatpush.msrb.mxu0 %v4714_v24 }
 0x9d2   : > { %5647 = vmatpush.msrb.mxu1 %v4780_v63  ;;  %5670 = vmatpush.msra.mxu2 %v4828_v22 }
 0x9d3   : > { %5608 = vmatpush.msra.mxu3 %v4663_v59  ;;  %5631 = vmatpush.msrb.mxu0 %v4711_v58 }
 0x9d4   : > { %5648 = vmatpush.msrb.mxu1 %v4777_v56  ;;  %5671 = vmatpush.msra.mxu2 %v4825_v7  ;;  %v5289_v9 = vpop.f32.mrf.mxu1 }
 0x9d5   : > { %5609 = vmatpush.msra.mxu3 %v4660_v10  ;;  %5632 = vmatpush.msrb.mxu0 %v4708_v27  ;;  %v5269_v43 = vpop.f32.mrf.mxu0 }
 0x9d6   : > { %5649 = vmatpush.msrb.mxu1 %v4774_v54  ;;  %5672 = vmatpush.msra.mxu2 %v4822_v4 }
 0x9d7   : > { %5610 = vmatmul.f32.vlgmr.msra.gmra.mxu3 %v7716_v26  ;;  %5633 = vmatmul.f32.vlgmr.msrb.gmra.mxu0 %v7721_v15  ;;  %v4807_v26 = vld [vmem:[#allocation19 + $0x10a8] sm:$0xff]  ;;  %v5152_v15 = vadd.f32 %v5151_v3, %v4853_v12  ;;  %v4854_v12 = vperm.slane %v7784_v28, 2 }
 0x9d8   : > { %5650 = vmatpush.msrb.mxu1 %v4771_v53  ;;  %5673 = vmatpush.msra.mxu2 %v4819_v18 }
 0x9d9   : > { %v5175_v55 = vadd.f32 %v5174_v60, %v5152_v15 }
 0x9da   : > { %5651 = vmatpush.msrb.mxu1 %v4768_v37  ;;  %5674 = vmatpush.msra.mxu2 %v4816_v14  ;;  %v5312_v49 = vpop.f32.mrf.mxu2 }
 0x9db   : > { %v5198_v38 = vadd.f32 %v5197_v8, %v5175_v55 }
 0x9dc   : > { %5652 = vmatpush.msrb.mxu1 %v4765_v25  ;;  %5675 = vmatpush.msra.mxu2 %v4813_v51 }
 0x9dd   : > { %v5221_v48 = vadd.f32 %v5220_v5, %v5198_v38  ;;  %v5292_v21 = vpop.f32.mrf.mxu1 }
 0x9de   : > { %5653 = vmatpush.msrb.mxu1 %v4762_v45  ;;  %5676 = vmatpush.msra.mxu2 %v4810_v61 }
 0x9df   : > { %5613 = vmatmul.f32.gmra.mxu3 %v7723_v42  ;;  %5636 = vmatmul.f32.gmra.mxu0 %v7729_v11  ;;  %v5246_v42 = vpop.f32.mrf.mxu3  ;;  %v5244_v11 = vadd.f32 %v5243_v33, %v5221_v48 }
 0x9e0   : > { %5654 = vmatpush.msrb.mxu1 %v4759_v32  ;;  %5677 = vmatpush.msra.mxu2 %v4807_v26 }
 0x9e1   : > { %v5267_v62 = vadd.f32 %v5266_v30, %v5244_v11 }
 0x9e2   : > { %5655 = vmatpush.msrb.mxu1 %v4756_v6  ;;  %5678 = vmatpush.msra.mxu2 %v4804_v20 }
 0x9e3   : > { %5656 = vmatmul.f32.vlgmr.msrb.gmra.mxu1 %v7745_v52  ;;  %5679 = vmatmul.f32.vlgmr.msra.gmra.mxu2 %v7747_v47  ;;  %v5224_v52 = vadd.f32 %v5223_v57, %v5201_v29  ;;  %v5290_v50 = vadd.f32 %v5289_v9, %v5267_v62  ;;  %v5315_v13 = vpop.f32.mrf.mxu2 }
 0x9e5   : > { %v5313_v40 = vadd.f32 %v5312_v49, %v5290_v50  ;;  %v5247_v44 = vadd.f32 %v5246_v42, %v5224_v52 }
 0x9e7   : > { %v5270_v1 = vadd.f32 %v5269_v43, %v5247_v44 }
 0x9e8   : > { %v5358_v36 = vpop.f32.mrf.mxu0 }
 0x9eb   : > { %5659 = vmatmul.f32.gmra.mxu1 %v7754_v17  ;;  %5682 = vmatmul.f32.gmra.mxu2 %v7756_v2  ;;  %v5293_v17 = vadd.f32 %v5292_v21, %v5270_v1 }
 0x9ed   : > { %v5316_v22 = vadd.f32 %v5315_v13, %v5293_v17 }
 0x9ee   : > { %v5335_v47 = vpop.f32.mrf.mxu3 }
 0x9ef   : > { %v5336_v3 = vadd.f32 %v5335_v47, %v5313_v40 }
 0x9f1   : > { %v5359_v24 = vadd.f32 %v5358_v36, %v5336_v3  ;;  %v5361_v8 = vpop.f32.mrf.mxu0 }
 0x9f6   : > { %v5381_v0 = vpop.f32.mrf.mxu1 }
 0x9f7   : > { %v5382_v2 = vadd.f32 %v5381_v0, %v5359_v24  ;;  %v5338_v63 = vpop.f32.mrf.mxu3 }
 0x9f8   : > { %v5339_v56 = vadd.f32 %v5338_v63, %v5316_v22 }
 0x9fa   : > { %v5362_v27 = vadd.f32 %v5361_v8, %v5339_v56 }
 0x9fc   : > { %v5404_v59 = vpop.f32.mrf.mxu2 }
 0x9fd   : > { %v5405_v58 = vadd.f32 %v5404_v59, %v5382_v2 }
 0x9ff   : > { %v5687_v7 = vadd.f32 %v5405_v58, %v7351_v16  ;;  %v5384_v10 = vpop.f32.mrf.mxu1 }
 0xa00   : > { %v5385_v60 = vadd.f32 %v5384_v10, %v5362_v27 }
 0xa01   : > { %5693 = vst [vmem:[%s7811_s25 + $0x8] sm:$0xff] %v5687_v7 }
 0xa05   : > { %v5407_v54 = vpop.f32.mrf.mxu2 }
 0xa06   : > { %v5408_v4 = vadd.f32 %v5407_v54, %v5385_v60 }
 0xa08   : > { %v5690_v53 = vadd.f32 %v5408_v4, %v7363_v41 }
 0xa0a   : > { %5696 = vst [vmem:[%s7811_s25 + $0x20] sm:$0xff] %v5690_v53 }
 0xa0c   : > { %v5450_v5 = vpop.f32.mrf.mxu0 }
 0xa12   : > { %v5427_v18 = vpop.f32.mrf.mxu3 }
 0xa13   : > { %v5428_v46 = vadd.f32 %v5427_v18, %v4854_v12 }
 0xa15   : > { %v5453_v25 = vpop.f32.mrf.mxu0  ;;  %v5451_v32 = vadd.f32 %v5450_v5, %v5428_v46 }
 0xa1a   : > { %v5473_v19 = vpop.f32.mrf.mxu1 }
 0xa1b   : > { %v5430_v37 = vpop.f32.mrf.mxu3  ;;  %v5474_v26 = vadd.f32 %v5473_v19, %v5451_v32 }
 0xa1c   : > { %v5431_v33 = vadd.f32 %v5430_v37, %v4854_v12 }
 0xa1e   : > { %v5454_v57 = vadd.f32 %v5453_v25, %v5431_v33 }
 0xa20   : > { %v5496_v14 = vpop.f32.mrf.mxu2 }
 0xa21   : > { %v5497_v41 = vadd.f32 %v5496_v14, %v5474_v26 }
 0xa23   : > { %v5476_v51 = vpop.f32.mrf.mxu1 }
 0xa24   : > { %v5477_v30 = vadd.f32 %v5476_v51, %v5454_v57 }
 0xa29   : > { %v5499_v45 = vpop.f32.mrf.mxu2 }
 0xa2a   : > { %v5500_v28 = vadd.f32 %v5499_v45, %v5477_v30 }
 0xa30   : > { %v5542_v61 = vpop.f32.mrf.mxu0 }
 0xa36   : > { %v5519_v16 = vpop.f32.mrf.mxu3 }
 0xa37   : > { %v5520_v20 = vadd.f32 %v5519_v16, %v5497_v41 }
 0xa39   : > { %v5545_v55 = vpop.f32.mrf.mxu0  ;;  %v5543_v9 = vadd.f32 %v5542_v61, %v5520_v20 }
 0xa3e   : > { %v5565_v34 = vpop.f32.mrf.mxu1 }
 0xa3f   : > { %v5522_v15 = vpop.f32.mrf.mxu3  ;;  %v5566_v31 = vadd.f32 %v5565_v34, %v5543_v9 }
 0xa40   : > { %v5523_v42 = vadd.f32 %v5522_v15, %v5500_v28 }
 0xa42   : > { %v5546_v62 = vadd.f32 %v5545_v55, %v5523_v42 }
 0xa44   : > { %v5588_v6 = vpop.f32.mrf.mxu2 }
 0xa45   : > { %v5589_v49 = vadd.f32 %v5588_v6, %v5566_v31 }
 0xa47   : > { %v5568_v38 = vpop.f32.mrf.mxu1 }
 0xa48   : > { %v5569_v21 = vadd.f32 %v5568_v38, %v5546_v62 }
 0xa4d   : > { %v5591_v11 = vpop.f32.mrf.mxu2 }
 0xa4e   : > { %v5592_v47 = vadd.f32 %v5591_v11, %v5569_v21 }
 0xa54   : > { %v5634_v29 = vpop.f32.mrf.mxu0 }
 0xa5a   : > { %v5611_v48 = vpop.f32.mrf.mxu3 }
 0xa5b   : > { %v5612_v35 = vadd.f32 %v5611_v48, %v5589_v49 }
 0xa5c   : > { %v5637_v0 = vpop.f32.mrf.mxu0 }
 0xa5d   : > { %v5635_v52 = vadd.f32 %v5634_v29, %v5612_v35 }
 0xa60   : > { %v5657_v43 = vpop.f32.mrf.mxu1 }
 0xa61   : > { %v5658_v40 = vadd.f32 %v5657_v43, %v5635_v52 }
 0xa62   : > { %v5614_v50 = vpop.f32.mrf.mxu3 }
 0xa63   : > { %v5615_v13 = vadd.f32 %v5614_v50, %v5592_v47 }
 0xa65   : > { %v5638_v24 = vadd.f32 %v5637_v0, %v5615_v13 }
 0xa66   : > { %v5680_v44 = vpop.f32.mrf.mxu2 }
 0xa67   : > { %v5681_v3 = vadd.f32 %v5680_v44, %v5658_v40 }
 0xa68   : > { %v5660_v1 = vpop.f32.mrf.mxu1 }
 0xa69   : > { %v5688_v36 = vadd.f32 %v5681_v3, %v7354_v23  ;;  %v5661_v17 = vadd.f32 %v5660_v1, %v5638_v24 }
 0xa6b   : > { %5694 = vst [vmem:[%s7811_s25 + $0x10] sm:$0xff] %v5688_v36 }
 0xa6e   : > { %v5683_v2 = vpop.f32.mrf.mxu2 }
 0xa6f   : > { %v5684_v63 = vadd.f32 %v5683_v2, %v5661_v17 }
 0xa71   : > { %v5691_v22 = vadd.f32 %v5684_v63, %v7366_v39 }
 0xa73   : > { %5697 = vst [vmem:[%s7811_s25 + $0x28] sm:$0xff] %v5691_v22 }
 0xa74   : > { %6595 = shalt.err (!%p6592_p9)
}
 0xa75   : > { %s6679_s5 = smov 384   ;;  %s6680_s7 = smov 24  }
 0xa76   : > { %6008 = dma.vmem_to_hbm [thread:$0]  (%p6868_p0), %s5712_s14, 768, %s5714_s30, %s5699_s28, %s6679_s5, %s6679_s5, %s6680_s7  }
 0xa77 PF: > { %s5728_s25 = sand.u32 1, %s6646_s21   ;;  %p7921_p10 = scmp.ge.s32.totalorder %s6658_s24, 2 }
 0xa78   : > { %s5729_s19 = scalar_lea.sflag [#allocation4], %s5728_s25 }
 0xa79   : > { %p6049_p11 = pnand %p7921_p10, %p6874_p6 }
 0xa7b   : > { %p6050_p12 = pneg %p6049_p11 }
 0xa7d   : > { %6641 = dma.done.wait (%p6050_p12), %s5729_s19, 768  }
 0xa7e   : > { %6643 = vsyncadd (%p6050_p12), %s5729_s19, 4294966528  ;;  %p31_p2 = scmp.ge.s32.totalorder %s6848_s18, 4   ;;  %s7922_s21 = smov %s6650_s22 }
 0xa7f   : > { %s7923_s22 = smov %s6654_s23  ;;  %s7924_s23 = smov %s6860_s15 }
 0xa80   : > { %s7925_s24 = smov %s6848_s18  ;;  %33 = sbr.rel (!%p31_p2) target bundleno = 20 (0x14), region = 157 }
 0xa85   :  { %5735 = vsyncpa [#allocation3], 1 }
 0xa86   :  { %5737 = vsyncpa [#allocation3 + $0x1], 1 }
 0xa87   :  { %5738 = vsyncpa [#allocation6], 1 }
 0xa88   :  { %5739 = vsyncpa [#allocation9], 1 }
 0xa89   :  { %5740 = vsyncpa [#allocation12], 1 }
 0xa8a   :  { %5741 = vsyncpa [#allocation15], 1 }
 0xa8b   :  { %5742 = vsyncpa [#allocation18], 1 }
 0xa8c   :  { %5743 = vsyncpa [#allocation21], 1 }
 0xa8d   :  { %5744 = vsyncpa [#allocation4], 1 }
 0xa8e   :  { %5746 = vsyncpa [#allocation4 + $0x1], 1 }

</bundles_post_ra>
